<compile_context>
chip_gen: v6e
topology: v6e:2x2x1
jax: 0.10.0
libtpu: 0.0.40
codegen_flags: <defaults>
</compile_context>

<pallas_src>
import functools

import jax
import jax.numpy as jnp
from jax import lax
from jax.experimental import pallas as pl
from jax.experimental.pallas import tpu as pltpu


# ---------------------------------------------------------------------------
# Fused [BN+ReLU of previous layer] + zero-pad + Conv3x3 + BN-partial-stats kernel
# ---------------------------------------------------------------------------
def _conv_bn_stats_kernel(x_ref, sc_ref, sh_ref, w_ref, b_ref, y_ref, st_ref, pad_ref,
                          *, height, width, apply_in_norm):
    # x_ref  : (Ci, H*W)       channel-major activation (f32 for layer 0, bf16 afterwards)
    # sc/sh  : (Ci, 1)   f32   BN scale/shift of the PREVIOUS layer (unused for layer 0)
    # w_ref  : (9*Ci, Co) bf16 conv weights, taps folded into K (resident block)
    # b_ref  : (1, Co)   f32   conv bias
    # y_ref  : (Co, H*W) bf16  pre-BN conv output of THIS layer (lane-dense store)
    # st_ref : (2, Co)   f32   per-image [sum, sum-of-squares] of the conv output
    # pad_ref: (H+2, W+2, Ci) bf16 VMEM scratch holding the zero-padded NHWC window
    ci = x_ref.shape[0]
    hw = height * width

    x = x_ref[...]                                             # (Ci, H*W)
    if apply_in_norm:
        # Fused BatchNorm + ReLU of the previous layer, applied in bf16 (cheap VALU work).
        sc = sc_ref[...].astype(x.dtype)
        sh = sh_ref[...].astype(x.dtype)
        x = jnp.maximum(x * sc + sh, 0)

    # Channel-major -> NHWC spatial window; zero halo is built AFTER BN+ReLU so the padding
    # semantics of "conv(pad(relu(bn(.))))" are exact with no extra masking.
    xs = x.T.astype(jnp.bfloat16).reshape(height, width, ci)   # (H, W, Ci)
    pad_ref[...] = jnp.zeros(pad_ref.shape, pad_ref.dtype)
    pad_ref[1:height + 1, 1:width + 1, :] = xs

    # im2col: 9 static taps -> (H*W, 9*Ci), then ONE MXU matmul against the folded weights.
    taps = [pad_ref[dh:dh + height, dw:dw + width, :].reshape(hw, ci)
            for dh in range(3) for dw in range(3)]
    patches = jnp.concatenate(taps, axis=-1)                   # (H*W, 9*Ci) bf16

    acc = jnp.dot(patches, w_ref[...], preferred_element_type=jnp.float32)
    acc = acc + b_ref[...]                                     # (H*W, Co) f32, bias added once

    # Per-image BatchNorm partial statistics (reduced globally by tiny JAX glue).
    st_ref[0:1, :] = jnp.sum(acc, axis=0, keepdims=True)
    st_ref[1:2, :] = jnp.sum(acc * acc, axis=0, keepdims=True)

    # Lane-dense writeback: minor dim is H*W (>=128), not Co.
    y_ref[...] = acc.astype(jnp.bfloat16).T                    # (Co, H*W)


def conv3x3_bn_stats(x, w, b, scale_in, shift_in, *, height, width):
    """x: (N, Ci, H*W) channel-major activation. Returns (y, stats).

    y     : (N, Co, H*W) bf16 pre-BN conv output (its BN+ReLU is fused into the next layer)
    stats : (N, 2, Co)   f32  per-image [sum, sum^2] of the conv output
    """
    n, ci, hw = x.shape
    co = w.shape[-1]
    assert w.shape[0] == 9 * ci, (w.shape, ci)
    assert hw == height * width

    apply_in_norm = scale_in is not None
    if scale_in is None:                         # layer 0: no previous BN/ReLU to fuse
        scale_in = jnp.ones((ci, 1), jnp.float32)
        shift_in = jnp.zeros((ci, 1), jnp.float32)

    kern = functools.partial(_conv_bn_stats_kernel, height=height, width=width,
                             apply_in_norm=apply_in_norm)
    y, st = pl.pallas_call(
        kern,
        grid=(n,),                               # whole image per grid step (small H/W)
        in_specs=[
            pl.BlockSpec((None, ci, hw), lambda i: (i, 0, 0)),
            pl.BlockSpec((ci, 1), lambda i: (0, 0)),
            pl.BlockSpec((ci, 1), lambda i: (0, 0)),
            pl.BlockSpec((9 * ci, co), lambda i: (0, 0)),      # resident weights
            pl.BlockSpec((1, co), lambda i: (0, 0)),
        ],
        out_specs=[
            pl.BlockSpec((None, co, hw), lambda i: (i, 0, 0)),
            pl.BlockSpec((None, 2, co), lambda i: (i, 0, 0)),
        ],
        out_shape=[
            jax.ShapeDtypeStruct((n, co, hw), jnp.bfloat16),
            jax.ShapeDtypeStruct((n, 2, co), jnp.float32),
        ],
        scratch_shapes=[pltpu.VMEM((height + 2, width + 2, ci), jnp.bfloat16)],
        compiler_params=pltpu.CompilerParams(dimension_semantics=("parallel",)),
    )(x, scale_in, shift_in, w, b)
    return y, st


# ---------------------------------------------------------------------------
# Standalone BN + ReLU kernel (only for the last layer's output; lane-dense in/out)
# ---------------------------------------------------------------------------
def _bn_relu_kernel(y_ref, sc_ref, sh_ref, o_ref):
    y = y_ref[...].astype(jnp.float32)                         # (Co, H*W)
    o_ref[...] = jnp.maximum(y * sc_ref[...] + sh_ref[...], 0.0)


def bn_relu(y, scale, shift):
    n, co, hw = y.shape
    return pl.pallas_call(
        _bn_relu_kernel,
        grid=(n,),
        in_specs=[
            pl.BlockSpec((None, co, hw), lambda i: (i, 0, 0)),
            pl.BlockSpec((co, 1), lambda i: (0, 0)),
            pl.BlockSpec((co, 1), lambda i: (0, 0)),
        ],
        out_specs=pl.BlockSpec((None, co, hw), lambda i: (i, 0, 0)),
        out_shape=jax.ShapeDtypeStruct((n, co, hw), jnp.float32),
        compiler_params=pltpu.CompilerParams(dimension_semantics=("parallel",)),
    )(y, scale, shift)


# ---------------------------------------------------------------------------
# JAX glue: 3 x (conv + stats) with BN+ReLU of layer i fused into layer i+1
# ---------------------------------------------------------------------------
def conv_block_forward(params, x_nchw, *, eps=1e-5):
    n, ci, h, w = x_nchw.shape
    hw = h * w
    m_total = n * hw

    cur = x_nchw.reshape(n, ci, hw)            # NCHW -> channel-major flat (free reshape), f32
    scale = shift = None                       # BN scale/shift of previous layer
    y = None
    for i in range(3):
        y, st = conv3x3_bn_stats(cur, params[f"w{i}"], params[f"b{i}"], scale, shift,
                                 height=h, width=w)
        # Global train-mode BatchNorm statistics from per-image partial sums (tiny math).
        s = jnp.sum(st[:, 0, :], axis=0)
        ss = jnp.sum(st[:, 1, :], axis=0)
        mean = s / m_total
        var = jnp.maximum(ss / m_total - mean * mean, 0.0)     # biased (train-mode) variance
        inv = lax.rsqrt(var + eps)
        gamma, beta = params[f"gamma{i}"], params[f"beta{i}"]
        scale = (gamma * inv).reshape(-1, 1).astype(jnp.float32)
        shift = (beta - mean * gamma * inv).reshape(-1, 1).astype(jnp.float32)
        cur = y                                # pre-BN conv output feeds the next fused kernel

    out = bn_relu(y, scale, shift)             # last layer's BN+ReLU, f32 (N, Co, H*W)
    co = out.shape[1]
    return out.reshape(n, co, h, w)            # already NCHW (free reshape)


# ---------------------------------------------------------------------------
# Deterministic parameters (PyTorch conventions, converted to (9*Ci, Co) bf16 kernels)
# ---------------------------------------------------------------------------
def make_params(key, in_channels, out_channels):
    ks = jax.random.split(key, 12)
    params = {}
    cin = in_channels
    for i in range(3):
        w = 0.1 * jax.random.normal(ks[4 * i], (out_channels, cin, 3, 3), jnp.float32)
        # torch (Co,Ci,Kh,Kw) -> (Kh,Kw,Ci,Co) -> (9*Ci, Co); K order = (kh*3+kw)*Ci + ci,
        # matching the in-kernel im2col tap order.
        params[f"w{i}"] = jnp.transpose(w, (2, 3, 1, 0)).reshape(
            9 * cin, out_channels).astype(jnp.bfloat16)
        params[f"b{i}"] = (0.1 * jax.random.normal(
            ks[4 * i + 1], (out_channels,), jnp.float32)).reshape(1, out_channels)
        params[f"gamma{i}"] = 1.0 + 0.1 * jax.random.normal(
            ks[4 * i + 2], (out_channels,), jnp.float32)
        params[f"beta{i}"] = 0.1 * jax.random.normal(
            ks[4 * i + 3], (out_channels,), jnp.float32)
        cin = out_channels
    return params


if __name__ == "__main__":
    key = jax.random.PRNGKey(0)
    k_param, k_x = jax.random.split(key)

    B, IN_CH, OUT_CH, H, W = 2, 8, 32, 16, 16
    params = make_params(k_param, IN_CH, OUT_CH)
    x = jax.random.normal(k_x, (B, IN_CH, H, W), jnp.float32)   # NCHW, like the PyTorch module

    fwd = jax.jit(conv_block_forward)
    out = jax.block_until_ready(fwd(params, x))

    assert out.shape == (B, OUT_CH, H, W), out.shape
    assert bool(jnp.all(jnp.isfinite(out)))
    print("KERNEL_OK")
</pallas_src>

<mosaic_0001>
module attributes {stable_mosaic.version = 11 : i64} {
  func.func @_conv_bn_stats_kernel(%arg0: i32, %arg1: memref<1x8x256xf32, #tpu.memory_space<vmem>>, %arg2: memref<8x1xf32, #tpu.memory_space<vmem>>, %arg3: memref<8x1xf32, #tpu.memory_space<vmem>>, %arg4: memref<72x32xbf16, #tpu.memory_space<vmem>>, %arg5: memref<1x32xf32, #tpu.memory_space<vmem>>, %arg6: memref<1x32x256xbf16, #tpu.memory_space<vmem>>, %arg7: memref<1x2x32xf32, #tpu.memory_space<vmem>>, %arg8: memref<18x18x8xbf16, #tpu.memory_space<vmem>>) attributes {dimension_semantics = [#tpu.dimension_semantics<parallel>], iteration_bounds = array<i64: 2>, scalar_prefetch = 0 : i64, scratch_operands = 1 : i64, tpu.core_type = #tpu.core_type<tc>, window_params = [{transform_indices = @transform_0, window_bounds = array<i64: 1, 8, 256>}, {pipeline_mode = #tpu.pipeline_mode<synchronous>, transform_indices = @transform_1, window_bounds = array<i64: 8, 1>}, {pipeline_mode = #tpu.pipeline_mode<synchronous>, transform_indices = @transform_2, window_bounds = array<i64: 8, 1>}, {pipeline_mode = #tpu.pipeline_mode<synchronous>, transform_indices = @transform_3, window_bounds = array<i64: 72, 32>}, {pipeline_mode = #tpu.pipeline_mode<synchronous>, transform_indices = @transform_4, window_bounds = array<i64: 1, 32>}, {transform_indices = @transform_5, window_bounds = array<i64: 1, 32, 256>}, {transform_indices = @transform_6, window_bounds = array<i64: 1, 2, 32>}]} {
    %c0 = arith.constant 0 : index
    %c0_0 = arith.constant 0 : index
    %c0_1 = arith.constant 0 : index
    %0 = vector.load %arg1[%c0, %c0_0, %c0_1] : memref<1x8x256xf32, #tpu.memory_space<vmem>>, vector<1x8x256xf32>
    %1 = vector.shape_cast %0 : vector<1x8x256xf32> to vector<8x256xf32>
    %2 = tpu.transpose %1, [1, 0] : vector<8x256xf32> -> vector<256x8xf32>
    %3 = arith.truncf %2 : vector<256x8xf32> to vector<256x8xbf16>
    %4 = vector.shape_cast %3 : vector<256x8xbf16> to vector<16x16x8xbf16>
    %cst = arith.constant 0.000000e+00 : bf16
    %5 = vector.broadcast %cst : bf16 to vector<18x18x8xbf16>
    %c0_2 = arith.constant 0 : index
    %c0_3 = arith.constant 0 : index
    %c0_4 = arith.constant 0 : index
    %6 = vector.load %arg8[%c0_2, %c0_3, %c0_4] : memref<18x18x8xbf16, #tpu.memory_space<vmem>>, vector<18x18x8xbf16>
    tpu.vector_store %arg8[%c0_2, %c0_3, %c0_4], %5 {strides = array<i32>} : memref<18x18x8xbf16, #tpu.memory_space<vmem>>, vector<18x18x8xbf16>,
    %c1 = arith.constant 1 : index
    %c1_5 = arith.constant 1 : index
    %c0_6 = arith.constant 0 : index
    %7 = vector.load %arg8[%c1, %c1_5, %c0_6] : memref<18x18x8xbf16, #tpu.memory_space<vmem>>, vector<16x16x8xbf16>
    tpu.vector_store %arg8[%c1, %c1_5, %c0_6], %4 {strides = array<i32>} : memref<18x18x8xbf16, #tpu.memory_space<vmem>>, vector<16x16x8xbf16>,
    %c0_7 = arith.constant 0 : index
    %c0_8 = arith.constant 0 : index
    %c0_9 = arith.constant 0 : index
    %8 = vector.load %arg8[%c0_7, %c0_8, %c0_9] : memref<18x18x8xbf16, #tpu.memory_space<vmem>>, vector<16x16x8xbf16>
    %9 = vector.shape_cast %8 : vector<16x16x8xbf16> to vector<256x8xbf16>
    %c0_10 = arith.constant 0 : index
    %c1_11 = arith.constant 1 : index
    %c0_12 = arith.constant 0 : index
    %10 = vector.load %arg8[%c0_10, %c1_11, %c0_12] : memref<18x18x8xbf16, #tpu.memory_space<vmem>>, vector<16x16x8xbf16>
    %11 = vector.shape_cast %10 : vector<16x16x8xbf16> to vector<256x8xbf16>
    %c0_13 = arith.constant 0 : index
    %c2 = arith.constant 2 : index
    %c0_14 = arith.constant 0 : index
    %12 = vector.load %arg8[%c0_13, %c2, %c0_14] : memref<18x18x8xbf16, #tpu.memory_space<vmem>>, vector<16x16x8xbf16>
    %13 = vector.shape_cast %12 : vector<16x16x8xbf16> to vector<256x8xbf16>
    %c1_15 = arith.constant 1 : index
    %c0_16 = arith.constant 0 : index
    %c0_17 = arith.constant 0 : index
    %14 = vector.load %arg8[%c1_15, %c0_16, %c0_17] : memref<18x18x8xbf16, #tpu.memory_space<vmem>>, vector<16x16x8xbf16>
    %15 = vector.shape_cast %14 : vector<16x16x8xbf16> to vector<256x8xbf16>
    %c1_18 = arith.constant 1 : index
    %c1_19 = arith.constant 1 : index
    %c0_20 = arith.constant 0 : index
    %16 = vector.load %arg8[%c1_18, %c1_19, %c0_20] : memref<18x18x8xbf16, #tpu.memory_space<vmem>>, vector<16x16x8xbf16>
    %17 = vector.shape_cast %16 : vector<16x16x8xbf16> to vector<256x8xbf16>
    %c1_21 = arith.constant 1 : index
    %c2_22 = arith.constant 2 : index
    %c0_23 = arith.constant 0 : index
    %18 = vector.load %arg8[%c1_21, %c2_22, %c0_23] : memref<18x18x8xbf16, #tpu.memory_space<vmem>>, vector<16x16x8xbf16>
    %19 = vector.shape_cast %18 : vector<16x16x8xbf16> to vector<256x8xbf16>
    %c2_24 = arith.constant 2 : index
    %c0_25 = arith.constant 0 : index
    %c0_26 = arith.constant 0 : index
    %20 = vector.load %arg8[%c2_24, %c0_25, %c0_26] : memref<18x18x8xbf16, #tpu.memory_space<vmem>>, vector<16x16x8xbf16>
    %21 = vector.shape_cast %20 : vector<16x16x8xbf16> to vector<256x8xbf16>
    %c2_27 = arith.constant 2 : index
    %c1_28 = arith.constant 1 : index
    %c0_29 = arith.constant 0 : index
    %22 = vector.load %arg8[%c2_27, %c1_28, %c0_29] : memref<18x18x8xbf16, #tpu.memory_space<vmem>>, vector<16x16x8xbf16>
    %23 = vector.shape_cast %22 : vector<16x16x8xbf16> to vector<256x8xbf16>
    %c2_30 = arith.constant 2 : index
    %c2_31 = arith.constant 2 : index
    %c0_32 = arith.constant 0 : index
    %24 = vector.load %arg8[%c2_30, %c2_31, %c0_32] : memref<18x18x8xbf16, #tpu.memory_space<vmem>>, vector<16x16x8xbf16>
    %25 = vector.shape_cast %24 : vector<16x16x8xbf16> to vector<256x8xbf16>
    %26 = tpu.concatenate %9, %11, %13, %15, %17, %19, %21, %23, %25 in 1 : vector<256x8xbf16>, vector<256x8xbf16>, vector<256x8xbf16>, vector<256x8xbf16>, vector<256x8xbf16>, vector<256x8xbf16>, vector<256x8xbf16>, vector<256x8xbf16>, vector<256x8xbf16> -> vector<256x72xbf16>
    %c0_33 = arith.constant 0 : index
    %c0_34 = arith.constant 0 : index
    %27 = vector.load %arg4[%c0_33, %c0_34] : memref<72x32xbf16, #tpu.memory_space<vmem>>, vector<72x32xbf16>
    %cst_35 = arith.constant dense<0.000000e+00> : vector<256x32xf32>
    %28 = tpu.matmul %26, %27, %cst_35 {dimension_numbers = #tpu.dot_dimension_numbers<[1], [0], [0], [1], [0, 0, 1, 1], [], []>} : vector<256x72xbf16>, vector<72x32xbf16>, vector<256x32xf32> -> vector<256x32xf32>
    %c0_36 = arith.constant 0 : index
    %c0_37 = arith.constant 0 : index
    %29 = vector.load %arg5[%c0_36, %c0_37] : memref<1x32xf32, #tpu.memory_space<vmem>>, vector<1x32xf32>
    %30 = vector.broadcast %29 : vector<1x32xf32> to vector<256x32xf32>
    %31 = arith.addf %28, %30 : vector<256x32xf32>
    %cst_38 = arith.constant dense<0.000000e+00> : vector<32xf32>
    %32 = vector.multi_reduction <add>, %31, %cst_38 [0] : vector<256x32xf32> to vector<32xf32>
    %33 = vector.shape_cast %32 : vector<32xf32> to vector<1x32xf32>
    %c0_39 = arith.constant 0 : index
    %c0_40 = arith.constant 0 : index
    %c0_41 = arith.constant 0 : index
    %34 = vector.load %arg7[%c0_39, %c0_40, %c0_41] : memref<1x2x32xf32, #tpu.memory_space<vmem>>, vector<1x1x32xf32>
    %35 = vector.shape_cast %34 : vector<1x1x32xf32> to vector<1x32xf32>
    %36 = vector.shape_cast %33 : vector<1x32xf32> to vector<1x1x32xf32>
    tpu.vector_store %arg7[%c0_39, %c0_40, %c0_41], %36 {strides = array<i32>} : memref<1x2x32xf32, #tpu.memory_space<vmem>>, vector<1x1x32xf32>,
    %37 = arith.mulf %31, %31 : vector<256x32xf32>
    %cst_42 = arith.constant dense<0.000000e+00> : vector<32xf32>
    %38 = vector.multi_reduction <add>, %37, %cst_42 [0] : vector<256x32xf32> to vector<32xf32>
    %39 = vector.shape_cast %38 : vector<32xf32> to vector<1x32xf32>
    %c0_43 = arith.constant 0 : index
    %c1_44 = arith.constant 1 : index
    %c0_45 = arith.constant 0 : index
    %40 = vector.load %arg7[%c0_43, %c1_44, %c0_45] : memref<1x2x32xf32, #tpu.memory_space<vmem>>, vector<1x1x32xf32>
    %41 = vector.shape_cast %40 : vector<1x1x32xf32> to vector<1x32xf32>
    %42 = vector.shape_cast %39 : vector<1x32xf32> to vector<1x1x32xf32>
    tpu.vector_store %arg7[%c0_43, %c1_44, %c0_45], %42 {strides = array<i32>} : memref<1x2x32xf32, #tpu.memory_space<vmem>>, vector<1x1x32xf32>,
    %43 = arith.truncf %31 : vector<256x32xf32> to vector<256x32xbf16>
    %44 = tpu.transpose %43, [1, 0] : vector<256x32xbf16> -> vector<32x256xbf16>
    %c0_46 = arith.constant 0 : index
    %c0_47 = arith.constant 0 : index
    %c0_48 = arith.constant 0 : index
    %45 = vector.load %arg6[%c0_46, %c0_47, %c0_48] : memref<1x32x256xbf16, #tpu.memory_space<vmem>>, vector<1x32x256xbf16>
    %46 = vector.shape_cast %45 : vector<1x32x256xbf16> to vector<32x256xbf16>
    %47 = vector.shape_cast %44 : vector<32x256xbf16> to vector<1x32x256xbf16>
    tpu.vector_store %arg6[%c0_46, %c0_47, %c0_48], %47 {strides = array<i32>} : memref<1x32x256xbf16, #tpu.memory_space<vmem>>, vector<1x32x256xbf16>,
    return
  }
  func.func @transform_0(%arg0: i32) -> (i32, i32, i32) {
    %c0_i32 = arith.constant 0 : i32
    %c0_i32_0 = arith.constant 0 : i32
    %c0_i32_1 = arith.constant 0 : i32
    return %arg0, %c0_i32, %c0_i32_0 : i32, i32, i32
  }
  func.func @transform_1(%arg0: i32) -> (i32, i32) {
    %c0_i32 = arith.constant 0 : i32
    %c0_i32_0 = arith.constant 0 : i32
    %c0_i32_1 = arith.constant 0 : i32
    return %c0_i32, %c0_i32_0 : i32, i32
  }
  func.func @transform_2(%arg0: i32) -> (i32, i32) {
    %c0_i32 = arith.constant 0 : i32
    %c0_i32_0 = arith.constant 0 : i32
    %c0_i32_1 = arith.constant 0 : i32
    return %c0_i32, %c0_i32_0 : i32, i32
  }
  func.func @transform_3(%arg0: i32) -> (i32, i32) {
    %c0_i32 = arith.constant 0 : i32
    %c0_i32_0 = arith.constant 0 : i32
    %c0_i32_1 = arith.constant 0 : i32
    return %c0_i32, %c0_i32_0 : i32, i32
  }
  func.func @transform_4(%arg0: i32) -> (i32, i32) {
    %c0_i32 = arith.constant 0 : i32
    %c0_i32_0 = arith.constant 0 : i32
    %c0_i32_1 = arith.constant 0 : i32
    return %c0_i32, %c0_i32_0 : i32, i32
  }
  func.func @transform_5(%arg0: i32) -> (i32, i32, i32) {
    %c0_i32 = arith.constant 0 : i32
    %c0_i32_0 = arith.constant 0 : i32
    %c0_i32_1 = arith.constant 0 : i32
    return %arg0, %c0_i32, %c0_i32_0 : i32, i32, i32
  }
  func.func @transform_6(%arg0: i32) -> (i32, i32, i32) {
    %c0_i32 = arith.constant 0 : i32
    %c0_i32_0 = arith.constant 0 : i32
    %c0_i32_1 = arith.constant 0 : i32
    return %arg0, %c0_i32, %c0_i32_0 : i32, i32, i32
  }
}

module attributes {stable_mosaic.version = 11 : i64} {
  func.func @_bn_relu_kernel(%arg0: i32, %arg1: memref<1x32x256xbf16, #tpu.memory_space<vmem>>, %arg2: memref<32x1xf32, #tpu.memory_space<vmem>>, %arg3: memref<32x1xf32, #tpu.memory_space<vmem>>, %arg4: memref<1x32x256xf32, #tpu.memory_space<vmem>>) attributes {dimension_semantics = [#tpu.dimension_semantics<parallel>], iteration_bounds = array<i64: 2>, scalar_prefetch = 0 : i64, scratch_operands = 0 : i64, tpu.core_type = #tpu.core_type<tc>, window_params = [{transform_indices = @transform_0, window_bounds = array<i64: 1, 32, 256>}, {pipeline_mode = #tpu.pipeline_mode<synchronous>, transform_indices = @transform_1, window_bounds = array<i64: 32, 1>}, {pipeline_mode = #tpu.pipeline_mode<synchronous>, transform_indices = @transform_2, window_bounds = array<i64: 32, 1>}, {transform_indices = @transform_3, window_bounds = array<i64: 1, 32, 256>}]} {
    %c0 = arith.constant 0 : index
    %c0_0 = arith.constant 0 : index
    %c0_1 = arith.constant 0 : index
    %0 = vector.load %arg1[%c0, %c0_0, %c0_1] : memref<1x32x256xbf16, #tpu.memory_space<vmem>>, vector<1x32x256xbf16>
    %1 = vector.shape_cast %0 : vector<1x32x256xbf16> to vector<32x256xbf16>
    %2 = arith.extf %1 : vector<32x256xbf16> to vector<32x256xf32>
    %c0_2 = arith.constant 0 : index
    %c0_3 = arith.constant 0 : index
    %3 = vector.load %arg2[%c0_2, %c0_3] : memref<32x1xf32, #tpu.memory_space<vmem>>, vector<32x1xf32>
    %4 = vector.broadcast %3 : vector<32x1xf32> to vector<32x256xf32>
    %5 = arith.mulf %2, %4 : vector<32x256xf32>
    %c0_4 = arith.constant 0 : index
    %c0_5 = arith.constant 0 : index
    %6 = vector.load %arg3[%c0_4, %c0_5] : memref<32x1xf32, #tpu.memory_space<vmem>>, vector<32x1xf32>
    %7 = vector.broadcast %6 : vector<32x1xf32> to vector<32x256xf32>
    %8 = arith.addf %5, %7 : vector<32x256xf32>
    %cst = arith.constant 0.000000e+00 : f32
    %9 = vector.broadcast %cst : f32 to vector<32x256xf32>
    %10 = arith.maximumf %8, %9 : vector<32x256xf32>
    %c0_6 = arith.constant 0 : index
    %c0_7 = arith.constant 0 : index
    %c0_8 = arith.constant 0 : index
    %11 = vector.load %arg4[%c0_6, %c0_7, %c0_8] : memref<1x32x256xf32, #tpu.memory_space<vmem>>, vector<1x32x256xf32>
    %12 = vector.shape_cast %11 : vector<1x32x256xf32> to vector<32x256xf32>
    %13 = vector.shape_cast %10 : vector<32x256xf32> to vector<1x32x256xf32>
    tpu.vector_store %arg4[%c0_6, %c0_7, %c0_8], %13 {strides = array<i32>} : memref<1x32x256xf32, #tpu.memory_space<vmem>>, vector<1x32x256xf32>,
    return
  }
  func.func @transform_0(%arg0: i32) -> (i32, i32, i32) {
    %c0_i32 = arith.constant 0 : i32
    %c0_i32_0 = arith.constant 0 : i32
    %c0_i32_1 = arith.constant 0 : i32
    return %arg0, %c0_i32, %c0_i32_0 : i32, i32, i32
  }
  func.func @transform_1(%arg0: i32) -> (i32, i32) {
    %c0_i32 = arith.constant 0 : i32
    %c0_i32_0 = arith.constant 0 : i32
    %c0_i32_1 = arith.constant 0 : i32
    return %c0_i32, %c0_i32_0 : i32, i32
  }
  func.func @transform_2(%arg0: i32) -> (i32, i32) {
    %c0_i32 = arith.constant 0 : i32
    %c0_i32_0 = arith.constant 0 : i32
    %c0_i32_1 = arith.constant 0 : i32
    return %c0_i32, %c0_i32_0 : i32, i32
  }
  func.func @transform_3(%arg0: i32) -> (i32, i32, i32) {
    %c0_i32 = arith.constant 0 : i32
    %c0_i32_0 = arith.constant 0 : i32
    %c0_i32_1 = arith.constant 0 : i32
    return %arg0, %c0_i32, %c0_i32_0 : i32, i32, i32
  }
}

module attributes {stable_mosaic.version = 11 : i64} {
  func.func @_conv_bn_stats_kernel(%arg0: i32, %arg1: memref<1x32x256xbf16, #tpu.memory_space<vmem>>, %arg2: memref<32x1xf32, #tpu.memory_space<vmem>>, %arg3: memref<32x1xf32, #tpu.memory_space<vmem>>, %arg4: memref<288x32xbf16, #tpu.memory_space<vmem>>, %arg5: memref<1x32xf32, #tpu.memory_space<vmem>>, %arg6: memref<1x32x256xbf16, #tpu.memory_space<vmem>>, %arg7: memref<1x2x32xf32, #tpu.memory_space<vmem>>, %arg8: memref<18x18x32xbf16, #tpu.memory_space<vmem>>) attributes {dimension_semantics = [#tpu.dimension_semantics<parallel>], iteration_bounds = array<i64: 2>, scalar_prefetch = 0 : i64, scratch_operands = 1 : i64, tpu.core_type = #tpu.core_type<tc>, window_params = [{transform_indices = @transform_0, window_bounds = array<i64: 1, 32, 256>}, {pipeline_mode = #tpu.pipeline_mode<synchronous>, transform_indices = @transform_1, window_bounds = array<i64: 32, 1>}, {pipeline_mode = #tpu.pipeline_mode<synchronous>, transform_indices = @transform_2, window_bounds = array<i64: 32, 1>}, {pipeline_mode = #tpu.pipeline_mode<synchronous>, transform_indices = @transform_3, window_bounds = array<i64: 288, 32>}, {pipeline_mode = #tpu.pipeline_mode<synchronous>, transform_indices = @transform_4, window_bounds = array<i64: 1, 32>}, {transform_indices = @transform_5, window_bounds = array<i64: 1, 32, 256>}, {transform_indices = @transform_6, window_bounds = array<i64: 1, 2, 32>}]} {
    %c0 = arith.constant 0 : index
    %c0_0 = arith.constant 0 : index
    %c0_1 = arith.constant 0 : index
    %0 = vector.load %arg1[%c0, %c0_0, %c0_1] : memref<1x32x256xbf16, #tpu.memory_space<vmem>>, vector<1x32x256xbf16>
    %1 = vector.shape_cast %0 : vector<1x32x256xbf16> to vector<32x256xbf16>
    %c0_2 = arith.constant 0 : index
    %c0_3 = arith.constant 0 : index
    %2 = vector.load %arg2[%c0_2, %c0_3] : memref<32x1xf32, #tpu.memory_space<vmem>>, vector<32x1xf32>
    %3 = arith.truncf %2 : vector<32x1xf32> to vector<32x1xbf16>
    %c0_4 = arith.constant 0 : index
    %c0_5 = arith.constant 0 : index
    %4 = vector.load %arg3[%c0_4, %c0_5] : memref<32x1xf32, #tpu.memory_space<vmem>>, vector<32x1xf32>
    %5 = arith.truncf %4 : vector<32x1xf32> to vector<32x1xbf16>
    %6 = vector.broadcast %3 : vector<32x1xbf16> to vector<32x256xbf16>
    %7 = arith.mulf %1, %6 : vector<32x256xbf16>
    %8 = vector.broadcast %5 : vector<32x1xbf16> to vector<32x256xbf16>
    %9 = arith.addf %7, %8 : vector<32x256xbf16>
    %cst = arith.constant 0.000000e+00 : bf16
    %10 = vector.broadcast %cst : bf16 to vector<32x256xbf16>
    %11 = arith.maximumf %9, %10 : vector<32x256xbf16>
    %12 = tpu.transpose %11, [1, 0] : vector<32x256xbf16> -> vector<256x32xbf16>
    %13 = vector.shape_cast %12 : vector<256x32xbf16> to vector<16x16x32xbf16>
    %cst_6 = arith.constant 0.000000e+00 : bf16
    %14 = vector.broadcast %cst_6 : bf16 to vector<18x18x32xbf16>
    %c0_7 = arith.constant 0 : index
    %c0_8 = arith.constant 0 : index
    %c0_9 = arith.constant 0 : index
    %15 = vector.load %arg8[%c0_7, %c0_8, %c0_9] : memref<18x18x32xbf16, #tpu.memory_space<vmem>>, vector<18x18x32xbf16>
    tpu.vector_store %arg8[%c0_7, %c0_8, %c0_9], %14 {strides = array<i32>} : memref<18x18x32xbf16, #tpu.memory_space<vmem>>, vector<18x18x32xbf16>,
    %c1 = arith.constant 1 : index
    %c1_10 = arith.constant 1 : index
    %c0_11 = arith.constant 0 : index
    %16 = vector.load %arg8[%c1, %c1_10, %c0_11] : memref<18x18x32xbf16, #tpu.memory_space<vmem>>, vector<16x16x32xbf16>
    tpu.vector_store %arg8[%c1, %c1_10, %c0_11], %13 {strides = array<i32>} : memref<18x18x32xbf16, #tpu.memory_space<vmem>>, vector<16x16x32xbf16>,
    %c0_12 = arith.constant 0 : index
    %c0_13 = arith.constant 0 : index
    %c0_14 = arith.constant 0 : index
    %17 = vector.load %arg8[%c0_12, %c0_13, %c0_14] : memref<18x18x32xbf16, #tpu.memory_space<vmem>>, vector<16x16x32xbf16>
    %18 = vector.shape_cast %17 : vector<16x16x32xbf16> to vector<256x32xbf16>
    %c0_15 = arith.constant 0 : index
    %c1_16 = arith.constant 1 : index
    %c0_17 = arith.constant 0 : index
    %19 = vector.load %arg8[%c0_15, %c1_16, %c0_17] : memref<18x18x32xbf16, #tpu.memory_space<vmem>>, vector<16x16x32xbf16>
    %20 = vector.shape_cast %19 : vector<16x16x32xbf16> to vector<256x32xbf16>
    %c0_18 = arith.constant 0 : index
    %c2 = arith.constant 2 : index
    %c0_19 = arith.constant 0 : index
    %21 = vector.load %arg8[%c0_18, %c2, %c0_19] : memref<18x18x32xbf16, #tpu.memory_space<vmem>>, vector<16x16x32xbf16>
    %22 = vector.shape_cast %21 : vector<16x16x32xbf16> to vector<256x32xbf16>
    %c1_20 = arith.constant 1 : index
    %c0_21 = arith.constant 0 : index
    %c0_22 = arith.constant 0 : index
    %23 = vector.load %arg8[%c1_20, %c0_21, %c0_22] : memref<18x18x32xbf16, #tpu.memory_space<vmem>>, vector<16x16x32xbf16>
    %24 = vector.shape_cast %23 : vector<16x16x32xbf16> to vector<256x32xbf16>
    %c1_23 = arith.constant 1 : index
    %c1_24 = arith.constant 1 : index
    %c0_25 = arith.constant 0 : index
    %25 = vector.load %arg8[%c1_23, %c1_24, %c0_25] : memref<18x18x32xbf16, #tpu.memory_space<vmem>>, vector<16x16x32xbf16>
    %26 = vector.shape_cast %25 : vector<16x16x32xbf16> to vector<256x32xbf16>
    %c1_26 = arith.constant 1 : index
    %c2_27 = arith.constant 2 : index
    %c0_28 = arith.constant 0 : index
    %27 = vector.load %arg8[%c1_26, %c2_27, %c0_28] : memref<18x18x32xbf16, #tpu.memory_space<vmem>>, vector<16x16x32xbf16>
    %28 = vector.shape_cast %27 : vector<16x16x32xbf16> to vector<256x32xbf16>
    %c2_29 = arith.constant 2 : index
    %c0_30 = arith.constant 0 : index
    %c0_31 = arith.constant 0 : index
    %29 = vector.load %arg8[%c2_29, %c0_30, %c0_31] : memref<18x18x32xbf16, #tpu.memory_space<vmem>>, vector<16x16x32xbf16>
    %30 = vector.shape_cast %29 : vector<16x16x32xbf16> to vector<256x32xbf16>
    %c2_32 = arith.constant 2 : index
    %c1_33 = arith.constant 1 : index
    %c0_34 = arith.constant 0 : index
    %31 = vector.load %arg8[%c2_32, %c1_33, %c0_34] : memref<18x18x32xbf16, #tpu.memory_space<vmem>>, vector<16x16x32xbf16>
    %32 = vector.shape_cast %31 : vector<16x16x32xbf16> to vector<256x32xbf16>
    %c2_35 = arith.constant 2 : index
    %c2_36 = arith.constant 2 : index
    %c0_37 = arith.constant 0 : index
    %33 = vector.load %arg8[%c2_35, %c2_36, %c0_37] : memref<18x18x32xbf16, #tpu.memory_space<vmem>>, vector<16x16x32xbf16>
    %34 = vector.shape_cast %33 : vector<16x16x32xbf16> to vector<256x32xbf16>
    %35 = tpu.concatenate %18, %20, %22, %24, %26, %28, %30, %32, %34 in 1 : vector<256x32xbf16>, vector<256x32xbf16>, vector<256x32xbf16>, vector<256x32xbf16>, vector<256x32xbf16>, vector<256x32xbf16>, vector<256x32xbf16>, vector<256x32xbf16>, vector<256x32xbf16> -> vector<256x288xbf16>
    %c0_38 = arith.constant 0 : index
    %c0_39 = arith.constant 0 : index
    %36 = vector.load %arg4[%c0_38, %c0_39] : memref<288x32xbf16, #tpu.memory_space<vmem>>, vector<288x32xbf16>
    %cst_40 = arith.constant dense<0.000000e+00> : vector<256x32xf32>
    %37 = tpu.matmul %35, %36, %cst_40 {dimension_numbers = #tpu.dot_dimension_numbers<[1], [0], [0], [1], [0, 0, 1, 1], [], []>} : vector<256x288xbf16>, vector<288x32xbf16>, vector<256x32xf32> -> vector<256x32xf32>
    %c0_41 = arith.constant 0 : index
    %c0_42 = arith.constant 0 : index
    %38 = vector.load %arg5[%c0_41, %c0_42] : memref<1x32xf32, #tpu.memory_space<vmem>>, vector<1x32xf32>
    %39 = vector.broadcast %38 : vector<1x32xf32> to vector<256x32xf32>
    %40 = arith.addf %37, %39 : vector<256x32xf32>
    %cst_43 = arith.constant dense<0.000000e+00> : vector<32xf32>
    %41 = vector.multi_reduction <add>, %40, %cst_43 [0] : vector<256x32xf32> to vector<32xf32>
    %42 = vector.shape_cast %41 : vector<32xf32> to vector<1x32xf32>
    %c0_44 = arith.constant 0 : index
    %c0_45 = arith.constant 0 : index
    %c0_46 = arith.constant 0 : index
    %43 = vector.load %arg7[%c0_44, %c0_45, %c0_46] : memref<1x2x32xf32, #tpu.memory_space<vmem>>, vector<1x1x32xf32>
    %44 = vector.shape_cast %43 : vector<1x1x32xf32> to vector<1x32xf32>
    %45 = vector.shape_cast %42 : vector<1x32xf32> to vector<1x1x32xf32>
    tpu.vector_store %arg7[%c0_44, %c0_45, %c0_46], %45 {strides = array<i32>} : memref<1x2x32xf32, #tpu.memory_space<vmem>>, vector<1x1x32xf32>,
    %46 = arith.mulf %40, %40 : vector<256x32xf32>
    %cst_47 = arith.constant dense<0.000000e+00> : vector<32xf32>
    %47 = vector.multi_reduction <add>, %46, %cst_47 [0] : vector<256x32xf32> to vector<32xf32>
    %48 = vector.shape_cast %47 : vector<32xf32> to vector<1x32xf32>
    %c0_48 = arith.constant 0 : index
    %c1_49 = arith.constant 1 : index
    %c0_50 = arith.constant 0 : index
    %49 = vector.load %arg7[%c0_48, %c1_49, %c0_50] : memref<1x2x32xf32, #tpu.memory_space<vmem>>, vector<1x1x32xf32>
    %50 = vector.shape_cast %49 : vector<1x1x32xf32> to vector<1x32xf32>
    %51 = vector.shape_cast %48 : vector<1x32xf32> to vector<1x1x32xf32>
    tpu.vector_store %arg7[%c0_48, %c1_49, %c0_50], %51 {strides = array<i32>} : memref<1x2x32xf32, #tpu.memory_space<vmem>>, vector<1x1x32xf32>,
    %52 = arith.truncf %40 : vector<256x32xf32> to vector<256x32xbf16>
    %53 = tpu.transpose %52, [1, 0] : vector<256x32xbf16> -> vector<32x256xbf16>
    %c0_51 = arith.constant 0 : index
    %c0_52 = arith.constant 0 : index
    %c0_53 = arith.constant 0 : index
    %54 = vector.load %arg6[%c0_51, %c0_52, %c0_53] : memref<1x32x256xbf16, #tpu.memory_space<vmem>>, vector<1x32x256xbf16>
    %55 = vector.shape_cast %54 : vector<1x32x256xbf16> to vector<32x256xbf16>
    %56 = vector.shape_cast %53 : vector<32x256xbf16> to vector<1x32x256xbf16>
    tpu.vector_store %arg6[%c0_51, %c0_52, %c0_53], %56 {strides = array<i32>} : memref<1x32x256xbf16, #tpu.memory_space<vmem>>, vector<1x32x256xbf16>,
    return
  }
  func.func @transform_0(%arg0: i32) -> (i32, i32, i32) {
    %c0_i32 = arith.constant 0 : i32
    %c0_i32_0 = arith.constant 0 : i32
    %c0_i32_1 = arith.constant 0 : i32
    return %arg0, %c0_i32, %c0_i32_0 : i32, i32, i32
  }
  func.func @transform_1(%arg0: i32) -> (i32, i32) {
    %c0_i32 = arith.constant 0 : i32
    %c0_i32_0 = arith.constant 0 : i32
    %c0_i32_1 = arith.constant 0 : i32
    return %c0_i32, %c0_i32_0 : i32, i32
  }
  func.func @transform_2(%arg0: i32) -> (i32, i32) {
    %c0_i32 = arith.constant 0 : i32
    %c0_i32_0 = arith.constant 0 : i32
    %c0_i32_1 = arith.constant 0 : i32
    return %c0_i32, %c0_i32_0 : i32, i32
  }
  func.func @transform_3(%arg0: i32) -> (i32, i32) {
    %c0_i32 = arith.constant 0 : i32
    %c0_i32_0 = arith.constant 0 : i32
    %c0_i32_1 = arith.constant 0 : i32
    return %c0_i32, %c0_i32_0 : i32, i32
  }
  func.func @transform_4(%arg0: i32) -> (i32, i32) {
    %c0_i32 = arith.constant 0 : i32
    %c0_i32_0 = arith.constant 0 : i32
    %c0_i32_1 = arith.constant 0 : i32
    return %c0_i32, %c0_i32_0 : i32, i32
  }
  func.func @transform_5(%arg0: i32) -> (i32, i32, i32) {
    %c0_i32 = arith.constant 0 : i32
    %c0_i32_0 = arith.constant 0 : i32
    %c0_i32_1 = arith.constant 0 : i32
    return %arg0, %c0_i32, %c0_i32_0 : i32, i32, i32
  }
  func.func @transform_6(%arg0: i32) -> (i32, i32, i32) {
    %c0_i32 = arith.constant 0 : i32
    %c0_i32_0 = arith.constant 0 : i32
    %c0_i32_1 = arith.constant 0 : i32
    return %arg0, %c0_i32, %c0_i32_0 : i32, i32, i32
  }
}

</mosaic_0001>

<bundles_post_ra>
// kernel: conv_block_forward.7
= control target key start
LH: loop header
LB: loop body
LE: loop exit
PB: predicated region body
PF: predicated region fallthrough
CT: control target
= control target key end

     0   :  { %s371_s12 = smov 0   ;;  %s416_s0 = inlined_call_operand.vmem [shape: bf16[2,32,256], index: 0, kind: input, shape index: {}]   ;;  %s417_s1 = inlined_call_operand.vmem [shape: f32[32,1], index: 1, kind: input, shape index: {}]   ;;  %s418_s2 = inlined_call_operand.vmem [shape: f32[32,1], index: 2, kind: input, shape index: {}]   ;;  %s419_s3 = inlined_call_operand.vmem [shape: f32[2,32,256], index: 3, kind: output, shape index: {}]  }
   0x1 LB: > { %s318_s13 = sadd.s32 4294967295, %s348_s12   ;;  %p322_p0 = scmp.ge.s32.totalorder %s348_s12, 1  ;;  %s348_s12 = sphi %s371_s12, %s13_s12  }
   0x2   : > { %p137_p1 = scmp.lt.s32.totalorder %s348_s12, 3 }
   0x4   : > { %p138_p2 = pnand %p322_p0, %p137_p1 }
   0x5   : > { %p161_p3 = scmp.lt.s32.totalorder (!%p138_p2), %s318_s13, 1 }
   0x6   : > { %141 = sbr.rel (%p138_p2) target bundleno = 155 (0x9b), region = 32 }
   0xb   : > { %v185_v0 = vld [vmem:[%s417_s1 + $0x10] sm:$0xff]  ;;  %v183_v1 = vld [vmem:[%s417_s1] sm:$0xff]  ;;  %v350_v2 = vmov 0   ;;  %v186_v3 = vld [vmem:[%s417_s1 + $0x18] sm:$0xff]  ;;  %s421_s13 = smov (!%p161_p3, %s318_s13), 1 }
   0xc   : > { %341 = vset.pattern.permute.xlu1 %v350_v2  ;;  %340 = vset.pattern.permute.xlu0 %v350_v2  ;;  %v184_v4 = vld [vmem:[%s417_s1 + $0x8] sm:$0xff]  ;;  %v215_v6 = vld [vmem:[%s418_s2] sm:$0xff]  ;;  %v218_v7 = vld [vmem:[%s418_s2 + $0x18] sm:$0xff]  ;;  %s329_s30 = sshll.u32 %s421_s13, 5  ;;  %s330_s7 = sshll.u32 %s421_s13, 6 }
   0xd   : > { %199 = vperm.xlu1 %341, %v185_v0   ;;  %189 = vperm.xlu0 %340, %v183_v1   ;;  %v216_v5 = vld [vmem:[%s418_s2 + $0x8] sm:$0xff]  ;;  %v217_v8 = vld [vmem:[%s418_s2 + $0x10] sm:$0xff]  ;;  %s165_s6 = scalar_lea.vmem %s416_s0, %s329_s30  ;;  %s170_s10 = scalar_lea.vmem %s419_s3, %s330_s7 }
   0xe   : > { %v171_v11 = vld [vmem:[%s165_s6] sm:$0xff]  ;;  %v172_v12 = vld [vmem:[%s165_s6 + $0x8] sm:$0xff]  ;;  %v173_v13 = vld [vmem:[%s165_s6 + $0x10] sm:$0xff] }
   0xf   : > { %v175_v14 = vunpack.c.l.bf16 %v171_v11  ;;  %v176_v15 = vunpack.c.h.bf16 %v171_v11  ;;  %v174_v16 = vld [vmem:[%s165_s6 + $0x18] sm:$0xff]  ;;  %v177_v17 = vunpack.c.l.bf16 %v172_v12  ;;  %v178_v18 = vunpack.c.h.bf16 %v172_v12 }
  0x10   : > { %v179_v21 = vunpack.c.l.bf16 %v173_v13  ;;  %v180_v22 = vunpack.c.h.bf16 %v173_v13  ;;  %v181_v23 = vunpack.c.l.bf16 %v174_v16  ;;  %v182_v24 = vunpack.c.h.bf16 %v174_v16 }
  0x11   : > { %204 = vperm.xlu1 %341, %v186_v3   ;;  %194 = vperm.xlu0 %340, %v184_v4  }
  0x15   : > { %226 = vperm.xlu1 %341, %v216_v5   ;;  %221 = vperm.xlu0 %340, %v215_v6  }
  0x19   : > { %236 = vperm.xlu1 %341, %v218_v7   ;;  %231 = vperm.xlu0 %340, %v217_v8  }
  0x88   : > { %v200_v9 = vpop.permute.xlu1 %199  ;;  %v190_v10 = vpop.permute.xlu0 %189 }
  0x89   : > { %v207_v25 = vmul.f32 %v190_v10, %v175_v14  ;;  %v208_v26 = vmul.f32 %v190_v10, %v176_v15  ;;  %v211_v35 = vmul.f32 %v200_v9, %v179_v21  ;;  %v212_v36 = vmul.f32 %v200_v9, %v180_v22 }
  0x8c   : > { %v205_v19 = vpop.permute.xlu1 %204  ;;  %v195_v20 = vpop.permute.xlu0 %194 }
  0x8d   : > { %v209_v27 = vmul.f32 %v195_v20, %v177_v17  ;;  %v210_v28 = vmul.f32 %v195_v20, %v178_v18  ;;  %v213_v37 = vmul.f32 %v205_v19, %v181_v23  ;;  %v214_v38 = vmul.f32 %v205_v19, %v182_v24 }
  0x90   : > { %v227_v29 = vpop.permute.xlu1 %226  ;;  %v222_v30 = vpop.permute.xlu0 %221 }
  0x91   : > { %v241_v31 = vadd.f32 %v227_v29, %v209_v27  ;;  %v242_v32 = vadd.f32 %v227_v29, %v210_v28  ;;  %v239_v33 = vadd.f32 %v222_v30, %v207_v25  ;;  %v240_v34 = vadd.f32 %v222_v30, %v208_v26 }
  0x93   : > { %v249_v39 = vmax.f32 %v241_v31, 0.0  ;;  %v250_v40 = vmax.f32 %v242_v32, 0.0  ;;  %v247_v41 = vmax.f32 %v239_v33, 0.0  ;;  %v248_v42 = vmax.f32 %v240_v34, 0.0 }
  0x94   : > { %v237_v43 = vpop.permute.xlu1 %236  ;;  %v232_v44 = vpop.permute.xlu0 %231 }
  0x95   : > { %257 = vst [vmem:[%s170_s10 + $0x10] sm:$0xff] %v249_v39  ;;  %258 = vst [vmem:[%s170_s10 + $0x18] sm:$0xff] %v250_v40  ;;  %v245_v45 = vadd.f32 %v237_v43, %v213_v37  ;;  %v246_v46 = vadd.f32 %v237_v43, %v214_v38  ;;  %v243_v47 = vadd.f32 %v232_v44, %v211_v35 }
  0x96   : > { %255 = vst [vmem:[%s170_s10] sm:$0xff] %v247_v41  ;;  %256 = vst [vmem:[%s170_s10 + $0x8] sm:$0xff] %v248_v42  ;;  %v244_v48 = vadd.f32 %v232_v44, %v212_v36 }
  0x97   : > { %v253_v49 = vmax.f32 %v245_v45, 0.0  ;;  %v254_v50 = vmax.f32 %v246_v46, 0.0  ;;  %v251_v51 = vmax.f32 %v243_v47, 0.0 }
  0x98   : > { %v252_v52 = vmax.f32 %v244_v48, 0.0 }
  0x99   : > { %261 = vst [vmem:[%s170_s10 + $0x30] sm:$0xff] %v253_v49  ;;  %262 = vst [vmem:[%s170_s10 + $0x38] sm:$0xff] %v254_v50 }
  0x9a   : > { %259 = vst [vmem:[%s170_s10 + $0x20] sm:$0xff] %v251_v51  ;;  %260 = vst [vmem:[%s170_s10 + $0x28] sm:$0xff] %v252_v52 }
  0x9b PF: > { %s13_s12 = sadd.s32 1, %s348_s12  }
  0x9c   : > { %p10_p4 = scmp.ge.s32.totalorder %s13_s12, 4  }
  0x9e   :  { %12 = sbr.rel (!%p10_p4) target bundleno = 1 (0x1), region = 62 }

// kernel: conv_block_forward.4
= control target key start
LH: loop header
LB: loop body
LE: loop exit
PB: predicated region body
PF: predicated region fallthrough
CT: control target
= control target key end

     0   :  { %s4947_s21 = smov 0   ;;  %s6952_s0 = inlined_call_operand.vmem [shape: f32[2,8,256], index: 0, kind: input, shape index: {}]   ;;  %s6953_s1 = inlined_call_operand.vmem [shape: f32[8,1], index: 1, kind: input, shape index: {}]   ;;  %s6954_s2 = inlined_call_operand.vmem [shape: f32[8,1], index: 2, kind: input, shape index: {}]   ;;  %s6955_s3 = inlined_call_operand.vmem [shape: bf16[72,32], index: 3, kind: input, shape index: {}]   ;;  %s6956_s4 = inlined_call_operand.vmem [shape: f32[1,32], index: 4, kind: input, shape index: {}]   ;;  %s6957_s5 = inlined_call_operand.vmem [shape: bf16[2,32,256], index: 5, kind: output, shape index: {0}]   ;;  %s6958_s6 = inlined_call_operand.vmem [shape: f32[2,2,32], index: 6, kind: output, shape index: {1}]  }
   0x1 LB: > { %s4342_s1 = sadd.s32 4294967295, %s4901_s21   ;;  %p4346_p0 = scmp.ge.s32.totalorder %s4901_s21, 1  ;;  %s4901_s21 = sphi %s4947_s21, %s17_s21  }
   0x2   : > { %p215_p1 = scmp.lt.s32.totalorder %s4901_s21, 3 }
   0x4   : > { %p216_p2 = pnand %p4346_p0, %p215_p1 }
   0x6   : > { %219 = sbr.rel (%p216_p2) target bundleno = 964 (0x3c4), region = 40 }
   0xb   : > { %p4957_p3 = scmp.lt.s32.totalorder %s4342_s1, 1  ;;  %vm346_vm0 = vcmask 60416   ;;  %v4903_v0 = vmov 0   ;;  %vm349_vm1 = vcmask 57344   ;;  %vm1422_vm2 = vcmask 1042432   ;;  %s4904_s26 = smov 16  }
   0xc   : > { %351 = vst.msk [vmem:[#allocation2 + $0xc] sm:$0xf] %vm346_vm0, %v4903_v0  ;;  %375 = vst.msk [vmem:[#allocation2 + $0x6c] sm:$0xf] %vm346_vm0, %v4903_v0  ;;  %vm1423_vm3 = vcmask 1046532   ;;  %s4905_s27 = smov 8  }
   0xd   : > { %347 = vst.msk [vmem:[#allocation2] sm:$0xf] %vm346_vm0, %v4903_v0  ;;  %348 = vst.msk [vmem:[#allocation2 + $0x4] sm:$0xf] %vm346_vm0, %v4903_v0  ;;  %s7016_s1 = smov (!%p4957_p3, %s4342_s1), 1  ;;  %s4906_s28 = smov 24  }
   0xe   : > { %352 = vst.msk [vmem:[#allocation2 + $0x10] sm:$0xf] %vm346_vm0, %v4903_v0  ;;  %354 = vst.msk [vmem:[#allocation2 + $0x18] sm:$0xf] %vm346_vm0, %v4903_v0  ;;  %s4604_s22 = sshll.u32 %s7016_s1, 4  ;;  %s4907_s29 = smov 40  }
   0xf   : > { %355 = vst.msk [vmem:[#allocation2 + $0x1c] sm:$0xf] %vm346_vm0, %v4903_v0  ;;  %357 = vst.msk [vmem:[#allocation2 + $0x24] sm:$0xf] %vm346_vm0, %v4903_v0  ;;  %s253_s25 = scalar_lea.vmem %s6952_s0, %s4604_s22  ;;  %vm971_vm5 = vsmask.f32 3328 }
  0x10   : > { %358 = vst.msk [vmem:[#allocation2 + $0x28] sm:$0xf] %vm346_vm0, %v4903_v0  ;;  %360 = vst.msk [vmem:[#allocation2 + $0x30] sm:$0xf] %vm346_vm0, %v4903_v0  ;;  %v264_v1 = vld [vmem:[%s253_s25] sm:$0xff]  ;;  %v265_v2 = vld [vmem:[%s253_s25 + $0x8] sm:$0xff] }
  0x11   : > { %361 = vst.msk [vmem:[#allocation2 + $0x34] sm:$0xf] %vm346_vm0, %v4903_v0  ;;  %363 = vst.msk [vmem:[#allocation2 + $0x3c] sm:$0xf] %vm346_vm0, %v4903_v0  ;;  %v4731_v3 = vpack.i.bf16 %v265_v2, %v264_v1  ;;  %vm972_vm6 = vsmask.f32 7440 }
  0x12   : > { %364 = vst.msk [vmem:[#allocation2 + $0x40] sm:$0xf] %vm346_vm0, %v4903_v0  ;;  %366 = vst.msk [vmem:[#allocation2 + $0x48] sm:$0xf] %vm346_vm0, %v4903_v0  ;;  %vm807_vm8 = vsmask.f32 7938 }
  0x13   : > { %367 = vst.msk [vmem:[#allocation2 + $0x4c] sm:$0xf] %vm346_vm0, %v4903_v0  ;;  %369 = vst.msk [vmem:[#allocation2 + $0x54] sm:$0xf] %vm346_vm0, %v4903_v0  ;;  %4732 = vxpose.xlu0.b32.start.end [1/1] (short) %v4731_v3, 128  ;;  %v809_v44 = vld [vmem:[#allocation2 + $0xc] sm:$0xf] }
  0x14   : > { %370 = vst.msk [vmem:[#allocation2 + $0x58] sm:$0xf] %vm346_vm0, %v4903_v0  ;;  %372 = vst.msk [vmem:[#allocation2 + $0x60] sm:$0xf] %vm346_vm0, %v4903_v0  ;;  %v924_v4 = vld [vmem:[#allocation2 + $0x4] sm:$0xf] }
  0x15   : > { %373 = vst.msk [vmem:[#allocation2 + $0x64] sm:$0xf] %vm346_vm0, %v4903_v0  ;;  %376 = vst.msk [vmem:[#allocation2 + $0x70] sm:$0xf] %vm346_vm0, %v4903_v0  ;;  %v1427_v5 = vrot.slane %v924_v4, 5  ;;  %v984_v18 = vshll.u32 %v924_v4, 16 }
  0x16   : > { %378 = vst.msk [vmem:[#allocation2 + $0x78] sm:$0xf] %vm346_vm0, %v4903_v0  ;;  %379 = vst.msk [vmem:[#allocation2 + $0x7c] sm:$0xf] %vm346_vm0, %v4903_v0  ;;  %v1358_v7 = vld [vmem:[#allocation2] sm:$0xe] }
  0x17   : > { %381 = vst.msk [vmem:[#allocation2 + $0x84] sm:$0xf] %vm346_vm0, %v4903_v0  ;;  %382 = vst.msk [vmem:[#allocation2 + $0x88] sm:$0xf] %vm346_vm0, %v4903_v0  ;;  %v1429_v8 = vrot.slane %v1427_v5, 4  ;;  %v4384_v11 = vrot.slane %v1358_v7, 9 }
  0x18   : > { %384 = vst.msk [vmem:[#allocation2 + $0x90] sm:$0xf] %vm346_vm0, %v4903_v0  ;;  %385 = vst.msk [vmem:[#allocation2 + $0x94] sm:$0xf] %vm346_vm0, %v4903_v0  ;;  %v923_v15 = vld [vmem:[#allocation2] sm:$0xf] }
  0x19   : > { %387 = vst.msk [vmem:[#allocation2 + $0x9c] sm:$0xf] %vm346_vm0, %v4903_v0  ;;  %388 = vst.msk [vmem:[#allocation2 + $0xa0] sm:$0xf] %vm346_vm0, %v4903_v0  ;;  %v975_v16 = vshrl.u32 %v923_v15, 16  ;;  %v978_v17 = vshll.u32 %v923_v15, 16 }
  0x1a   : > { %390 = vst.msk [vmem:[#allocation2 + $0xa8] sm:$0xf] %vm346_vm0, %v4903_v0  ;;  %391 = vst.msk [vmem:[#allocation2 + $0xac] sm:$0xf] %vm346_vm0, %v4903_v0  ;;  %v988_v19 = vshrl.u32 %v924_v4, 16  ;;  %v986_v22 = vrot.slane %v984_v18, 5 }
  0x1b   : > { %393 = vst.msk [vmem:[#allocation2 + $0xb4] sm:$0xf] %vm346_vm0, %v4903_v0  ;;  %394 = vst.msk [vmem:[#allocation2 + $0xb8] sm:$0xf] %vm346_vm0, %v4903_v0  ;;  %v977_v20 = vrot.slane %v975_v16, 4  ;;  %v980_v21 = vrot.slane %v978_v17, 5 }
  0x1c   : > { %396 = vst.msk [vmem:[#allocation2 + $0xc0] sm:$0xf] %vm346_vm0, %v4903_v0  ;;  %397 = vst.msk [vmem:[#allocation2 + $0xc4] sm:$0xf] %vm346_vm0, %v4903_v0  ;;  %v990_v23 = vrot.slane %v988_v19, 4  ;;  %s4908_s30 = smov 32  }
  0x1d   : > { %399 = vst.msk [vmem:[#allocation2 + $0xcc] sm:$0xf] %vm346_vm0, %v4903_v0  ;;  %400 = vst.msk [vmem:[#allocation2 + $0xd0] sm:$0xf] %vm346_vm0, %v4903_v0  ;;  %v981_v24 = vor.u32 %v980_v21, %v977_v20  ;;  %v867_v50 = vld [vmem:[#allocation2 + $0x6c] sm:$0xf] }
  0x1e   : > { %353 = vst.msk [vmem:[#allocation2 + $0x14] sm:$0x1] %vm349_vm1, %v4903_v0  ;;  %377 = vst.msk [vmem:[#allocation2 + $0x74] sm:$0x1] %vm349_vm1, %v4903_v0  ;;  %v991_v25 = vor.u32 %v990_v23, %v986_v22  ;;  %vm482_vm10 = vsmask.f32 256 }
  0x1f   : > { %350 = vst.msk [vmem:[#allocation2 + $0x8] sm:$0x1] %vm349_vm1, %v4903_v0  ;;  %356 = vst.msk [vmem:[#allocation2 + $0x20] sm:$0x1] %vm349_vm1, %v4903_v0  ;;  %v982_v27 = vrot.slane %v981_v24, 4  ;;  %s4909_s7 = smov 48  }
  0x20   : > { %359 = vst.msk [vmem:[#allocation2 + $0x2c] sm:$0x1] %vm349_vm1, %v4903_v0  ;;  %362 = vst.msk [vmem:[#allocation2 + $0x38] sm:$0x1] %vm349_vm1, %v4903_v0  ;;  %v992_v28 = vrot.slane %v991_v25, 4  ;;  %s4910_s8 = smov 56  }
  0x21   : > { %365 = vst.msk [vmem:[#allocation2 + $0x44] sm:$0x1] %vm349_vm1, %v4903_v0  ;;  %368 = vst.msk [vmem:[#allocation2 + $0x50] sm:$0x1] %vm349_vm1, %v4903_v0  ;;  %vm483_vm11 = vsmask.f32 4368 }
  0x22   : > { %371 = vst.msk [vmem:[#allocation2 + $0x5c] sm:$0x1] %vm349_vm1, %v4903_v0  ;;  %374 = vst.msk [vmem:[#allocation2 + $0x68] sm:$0x1] %vm349_vm1, %v4903_v0  ;;  %s4911_s9 = smov 64   ;;  %vm3490_vm14 = vcmask 64512  }
  0x23   : > { %380 = vst.msk [vmem:[#allocation2 + $0x80] sm:$0x1] %vm349_vm1, %v4903_v0  ;;  %383 = vst.msk [vmem:[#allocation2 + $0x8c] sm:$0x1] %vm349_vm1, %v4903_v0  ;;  %vm3539_vm15 = vcmask 130048   ;;  %s4351_s22 = sshll.u32 %s7016_s1, 1 }
  0x24   : > { %386 = vst.msk [vmem:[#allocation2 + $0x98] sm:$0x1] %vm349_vm1, %v4903_v0  ;;  %389 = vst.msk [vmem:[#allocation2 + $0xa4] sm:$0x1] %vm349_vm1, %v4903_v0  ;;  %s262_s25 = scalar_lea.vmem %s6958_s6, %s4351_s22 }
  0x25   : > { %392 = vst.msk [vmem:[#allocation2 + $0xb0] sm:$0x1] %vm349_vm1, %v4903_v0  ;;  %395 = vst.msk [vmem:[#allocation2 + $0xbc] sm:$0x1] %vm349_vm1, %v4903_v0  ;;  %v815_v7 = vld [vmem:[#allocation2 + $0x14] sm:$0x1] }
  0x26   : > { %398 = vst.msk [vmem:[#allocation2 + $0xc8] sm:$0x1] %vm349_vm1, %v4903_v0  ;;  %401 = vst.msk [vmem:[#allocation2 + $0xd4] sm:$0x1] %vm349_vm1, %v4903_v0  ;;  %v955_v6 = vld [vmem:[#allocation2 + $0x8] sm:$0x1] }
  0x27   : > { %v1430_v9 = vrot.slane %v955_v6, 5  ;;  %vm5025_vm4 = vmor %vm1422_vm2, %vm1423_vm3  ;;  %v994_v26 = vshll.u32 %v955_v6, 16  ;;  %vm3638_vm2 = vcmask 326656   ;;  %vm3671_vm3 = vcmask 392192  }
  0x28   : > { %v1428_v13 = vsel %vm5025_vm4, %v4384_v11, %v1427_v5  ;;  %vm5034_vm7 = vmor %vm971_vm5, %vm972_vm6  ;;  %vm3704_vm5 = vcmask 457728   ;;  %vm3737_vm6 = vcmask 523264  }
  0x29   : > { %v1431_v12 = vsel %vm5025_vm4, %v1429_v8, %v1430_v9  ;;  %v996_v29 = vrot.slane %v994_v26, 5  ;;  %v987_v31 = vsel %vm5034_vm7, %v982_v27, %v986_v22  ;;  %vm5044_vm9 = vmand %vm346_vm0, %vm807_vm8  ;;  %v871_v8 = vld [vmem:[#allocation2 + $0x74] sm:$0x1]  ;;  %vm3813_vm8 = vcmask 588800  }
  0x2a   : > { %v4464_v14 = vcombine.low %v1428_v13, %v1431_v12  ;;  %vm5054_vm12 = vmor %vm482_vm10, %vm483_vm11 }
  0x2b   : > { %v997_v32 = vsel %vm5034_vm7, %v992_v28, %v996_v29  ;;  %vm5060_vm13 = vmand %vm349_vm1, %vm482_vm10  ;;  %v874_v29 = vld [vmem:[#allocation2 + $0x78] sm:$0xf]  ;;  %vm3605_vm1 = vcmask 261120  }
  0x2c   : > { %2946 = vrot.lane.b32.xlu1 %v4464_v14, %s4904_s26  ;;  %v4448_v33 = vcombine.low %v987_v31, %v997_v32 }
  0x78   : > { %2866 = vrot.lane.b32.xlu0 %v4448_v33, %s4905_s27 }
  0x8f   : > { %v4733_v34 = vpop.trf.xlu0 }
  0x90   : > { %v4737_v35 = vunpack.i.h.bf16 %v4733_v34  ;;  %v4734_v36 = vunpack.i.l.bf16 %v4733_v34 }
  0x92   : > { %v4622_v37 = vpack.c.bf16 %v4737_v35, %v4737_v35  ;;  %v4606_v38 = vpack.c.bf16 %v4734_v36, %v4734_v36 }
  0x93   : > { %v4738_v39 = vpop.trf.xlu0 }
  0x94   : > { %v622_v40 = vshrl.u32 %v4622_v37, 16  ;;  %v486_v41 = vshrl.u32 %v4606_v38, 16  ;;  %v4742_v42 = vunpack.i.h.bf16 %v4738_v39  ;;  %v4739_v43 = vunpack.i.l.bf16 %v4738_v39 }
  0x95   : > { %v625_v46 = vshll.u32 %v4622_v37, 16  ;;  %v489_v48 = vshll.u32 %v4606_v38, 16  ;;  %v818_v38 = vld [vmem:[#allocation2 + $0x18] sm:$0xf] }
  0x96   : > { %v624_v45 = vrot.slane %v622_v40, 7  ;;  %v488_v47 = vrot.slane %v486_v41, 7  ;;  %v4623_v51 = vpack.c.bf16 %v4742_v42, %v4742_v42  ;;  %v4607_v52 = vpack.c.bf16 %v4739_v43, %v4739_v43 }
  0x97   : > { %v4743_v53 = vpop.trf.xlu0 }
  0x98   : > { %v627_v54 = vor.u32 %v625_v46, %v624_v45  ;;  %v628_v55 = vrot.slane %v624_v45, 4  ;;  %v491_v56 = vor.u32 %v489_v48, %v488_v47  ;;  %v492_v57 = vrot.slane %v488_v47, 4 }
  0x99   : > { %v630_v58 = vshrl.u32 %v4623_v51, 16  ;;  %v633_v59 = vshll.u32 %v4623_v51, 16  ;;  %v494_v60 = vshrl.u32 %v4607_v52, 16  ;;  %v497_v61 = vshll.u32 %v4607_v52, 16 }
  0x9a   : > { %v868_v62 = vsel %vm5044_vm9, %v627_v54, %v867_v50  ;;  %v810_v63 = vsel %vm5044_vm9, %v491_v56, %v809_v44  ;;  %v4747_v0 = vunpack.i.h.bf16 %v4743_v53  ;;  %v4744_v4 = vunpack.i.l.bf16 %v4743_v53  ;;  %v878_v44 = vld [vmem:[#allocation2 + $0x80] sm:$0x1] }
  0x9b   : > { %869 = vst [vmem:[#allocation2 + $0x6c] sm:$0xf] %v868_v62  ;;  %811 = vst [vmem:[#allocation2 + $0xc] sm:$0xf] %v810_v63  ;;  %v632_v2 = vrot.slane %v630_v58, 7  ;;  %v496_v3 = vrot.slane %v494_v60, 7  ;;  %v4748_v5 = vpop.trf.xlu0 }
  0x9c   : > { %v4624_v9 = vpack.c.bf16 %v4747_v0, %v4747_v0  ;;  %v4752_v11 = vunpack.i.h.bf16 %v4748_v5  ;;  %v4608_v18 = vpack.c.bf16 %v4744_v4, %v4744_v4  ;;  %v4749_v32 = vunpack.i.l.bf16 %v4748_v5  ;;  %v881_v62 = vld [vmem:[#allocation2 + $0x84] sm:$0xf] }
  0x9d   : > { %v635_v12 = vor.u32 %v633_v59, %v632_v2  ;;  %v637_v13 = vrot.slane %v632_v2, 4  ;;  %v499_v14 = vor.u32 %v497_v61, %v496_v3  ;;  %v501_v15 = vrot.slane %v496_v3, 4  ;;  %v822_v61 = vld [vmem:[#allocation2 + $0x20] sm:$0x1] }
  0x9e   : > { %v639_v16 = vshrl.u32 %v4624_v9, 16  ;;  %v642_v17 = vshll.u32 %v4624_v9, 16  ;;  %v4625_v19 = vpack.c.bf16 %v4752_v11, %v4752_v11  ;;  %v503_v25 = vshrl.u32 %v4608_v18, 16 }
  0x9f   : > { %v872_v20 = vsel %vm5060_vm13, %v637_v13, %v871_v8  ;;  %v500_v21 = vsel %vm5054_vm12, %v492_v57, %v499_v14  ;;  %v636_v22 = vsel %vm5054_vm12, %v628_v55, %v635_v12  ;;  %v816_v23 = vsel %vm5060_vm13, %v501_v15, %v815_v7  ;;  %v4753_v28 = vpop.trf.xlu0  ;;  %v825_v14 = vld [vmem:[#allocation2 + $0x24] sm:$0xf] }
  0xa0   : > { %873 = vst [vmem:[#allocation2 + $0x74] sm:$0x1] %v872_v20  ;;  %812 = vst.msk [vmem:[#allocation2 + $0x10] sm:$0xf] %vm346_vm0, %v500_v21  ;;  %v641_v24 = vrot.slane %v639_v16, 7  ;;  %v506_v26 = vshll.u32 %v4608_v18, 16  ;;  %v4757_v33 = vunpack.i.h.bf16 %v4753_v28  ;;  %v4609_v39 = vpack.c.bf16 %v4749_v32, %v4749_v32 }
  0xa1   : > { %817 = vst [vmem:[#allocation2 + $0x14] sm:$0x1] %v816_v23  ;;  %870 = vst.msk [vmem:[#allocation2 + $0x70] sm:$0xf] %vm346_vm0, %v636_v22  ;;  %v647_v27 = vshrl.u32 %v4625_v19, 16  ;;  %v650_v31 = vshll.u32 %v4625_v19, 16  ;;  %v4754_v41 = vunpack.i.l.bf16 %v4753_v28 }
  0xa2   : > { %v644_v34 = vor.u32 %v642_v17, %v641_v24  ;;  %v645_v35 = vrot.slane %v641_v24, 4  ;;  %v505_v36 = vrot.slane %v503_v25, 7  ;;  %v4626_v40 = vpack.c.bf16 %v4757_v33, %v4757_v33  ;;  %v5080_v55 = vld [vmem:[#allocation2 + $0xc] sm:$0xf] }
  0xa3   : > { %v649_v37 = vrot.slane %v647_v27, 7  ;;  %v511_v47 = vshrl.u32 %v4609_v39, 16  ;;  %v514_v48 = vshll.u32 %v4609_v39, 16  ;;  %v4610_v54 = vpack.c.bf16 %v4754_v41, %v4754_v41  ;;  %v4758_v7 = vpop.trf.xlu0  ;;  %v1553_v11 = vld [vmem:[#allocation2 + $0x6c] sm:$0xf] }
  0xa4   : > { %v875_v42 = vsel %vm5044_vm9, %v644_v34, %v874_v29  ;;  %v508_v43 = vor.u32 %v506_v26, %v505_v36  ;;  %v656_v50 = vshrl.u32 %v4626_v40, 16  ;;  %v659_v53 = vshll.u32 %v4626_v40, 16 }
  0xa5   : > { %v652_v45 = vor.u32 %v650_v31, %v649_v37  ;;  %876 = vst [vmem:[#allocation2 + $0x78] sm:$0xf] %v875_v42  ;;  %v654_v46 = vrot.slane %v649_v37, 4  ;;  %v509_v56 = vrot.slane %v505_v36, 4  ;;  %v513_v58 = vrot.slane %v511_v47, 7 }
  0xa6   : > { %v819_v51 = vsel %vm5044_vm9, %v508_v43, %v818_v38  ;;  %v5085_v59 = vrot.slane %v656_v50, 7  ;;  %v520_v63 = vshrl.u32 %v4610_v54, 16  ;;  %v523_v0 = vshll.u32 %v4610_v54, 16  ;;  %v885_v37 = vld [vmem:[#allocation2 + $0x8c] sm:$0x1] }
  0xa7   : > { %v653_v52 = vsel %vm5054_vm12, %v645_v35, %v652_v45  ;;  %820 = vst [vmem:[#allocation2 + $0x18] sm:$0xf] %v819_v51  ;;  %v879_v57 = vsel %vm5060_vm13, %v654_v46, %v878_v44  ;;  %v5087_v60 = vld [vmem:[#allocation2 + $0x10] sm:$0xf]  ;;  %v516_v3 = vor.u32 %v514_v48, %v513_v58  ;;  %v518_v4 = vrot.slane %v513_v58, 4  ;;  %v4763_v32 = vpop.trf.xlu0 }
  0xa8   : > { %877 = vst.msk [vmem:[#allocation2 + $0x7c] sm:$0xf] %vm346_vm0, %v653_v52  ;;  %880 = vst [vmem:[#allocation2 + $0x80] sm:$0x1] %v879_v57  ;;  %v4480_v2 = vcombine.low %v5080_v55, %v5087_v60  ;;  %v661_v5 = vor.u32 %v659_v53, %v5085_v59  ;;  %v5092_v8 = vrot.slane %v520_v63, 7  ;;  %v4762_v9 = vunpack.i.h.bf16 %v4758_v7 }
  0xa9   : > { %v517_v12 = vsel %vm5054_vm12, %v509_v56, %v516_v3  ;;  %v823_v13 = vsel %vm5060_vm13, %v518_v4, %v822_v61  ;;  %v662_v16 = vrot.slane %v5085_v59, 4  ;;  %v5104_v19 = vld [vmem:[#allocation2 + $0x70] sm:$0xf]  ;;  %v4759_v20 = vunpack.i.l.bf16 %v4758_v7  ;;  %v1359_v51 = vld [vmem:[#allocation2 + $0xc] sm:$0xe] }
  0xaa   : > { %3042 = vrot.lane.b32.xlu1 %v4480_v2, %s4906_s28  ;;  %v882_v15 = vsel %vm5044_vm9, %v661_v5, %v881_v62  ;;  %821 = vst.msk [vmem:[#allocation2 + $0x1c] sm:$0xf] %vm346_vm0, %v517_v12  ;;  %824 = vst [vmem:[#allocation2 + $0x20] sm:$0x1] %v823_v13  ;;  %v525_v17 = vor.u32 %v523_v0, %v5092_v8  ;;  %v4627_v18 = vpack.c.bf16 %v4762_v9, %v4762_v9  ;;  %v829_v52 = vld [vmem:[#allocation2 + $0x2c] sm:$0x1] }
  0xab   : > { %883 = vst [vmem:[#allocation2 + $0x84] sm:$0xf] %v882_v15  ;;  %v1778_v21 = vshrl.u32 %v1553_v11, 16  ;;  %v1781_v22 = vshll.u32 %v1553_v11, 16  ;;  %v526_v23 = vrot.slane %v5092_v8, 4  ;;  %v4611_v27 = vpack.c.bf16 %v4759_v20, %v4759_v20  ;;  %v4768_v13 = vpop.trf.xlu0 }
  0xac   : > { %v826_v24 = vsel %vm5044_vm9, %v525_v17, %v825_v14  ;;  %v664_v25 = vshrl.u32 %v4627_v18, 16  ;;  %v667_v26 = vshll.u32 %v4627_v18, 16  ;;  %v1791_v29 = vshrl.u32 %v5104_v19, 16  ;;  %v1555_v33 = vld [vmem:[#allocation2 + $0x78] sm:$0xf] }
  0xad   : > { %827 = vst [vmem:[#allocation2 + $0x24] sm:$0xf] %v826_v24  ;;  %v5109_v28 = vrot.slane %v1778_v21, 4  ;;  %v4488_v31 = vcombine.low %v1553_v11, %v5104_v19  ;;  %v4767_v36 = vunpack.i.h.bf16 %v4763_v32  ;;  %v528_v38 = vshrl.u32 %v4611_v27, 16  ;;  %v5124_v58 = vld [vmem:[#allocation2 + $0x10] sm:$0xf] }
  0xae   : > { %v666_v35 = vrot.slane %v664_v25, 7  ;;  %v531_v39 = vshll.u32 %v4611_v27, 16  ;;  %v5115_v40 = vrot.slane %v1781_v22, 5  ;;  %v4764_v41 = vunpack.i.l.bf16 %v4763_v32  ;;  %v5127_v0 = vld [vmem:[#allocation2 + $0x14] sm:$0x1] }
  0xaf   : > { %v5113_v34 = vld [vmem:[#allocation2 + $0x7c] sm:$0xf]  ;;  %3058 = vrot.lane.b32.xlu1 %v4488_v31, %s4906_s28  ;;  %v4628_v44 = vpack.c.bf16 %v4767_v36, %v4767_v36  ;;  %v530_v46 = vrot.slane %v528_v38, 7  ;;  %v1802_v48 = vshrl.u32 %v1555_v33, 16  ;;  %v1805_v50 = vshll.u32 %v1555_v33, 16 }
  0xb0   : > { %v669_v42 = vor.u32 %v667_v26, %v666_v35  ;;  %v671_v43 = vrot.slane %v666_v35, 4  ;;  %v4489_v45 = vcombine.low %v1555_v33, %v5113_v34  ;;  %v4612_v47 = vpack.c.bf16 %v4764_v41, %v4764_v41  ;;  %v888_v9 = vld [vmem:[#allocation2 + $0x90] sm:$0xf]  ;;  %v5152_v26 = vld [vmem:[#allocation2 + $0x74] sm:$0x1] }
  0xb1   : > { %v673_v56 = vshrl.u32 %v4628_v44, 16  ;;  %v676_v57 = vshll.u32 %v4628_v44, 16  ;;  %v533_v59 = vor.u32 %v531_v39, %v530_v46  ;;  %v535_v61 = vrot.slane %v530_v46, 4  ;;  %v832_v14 = vld [vmem:[#allocation2 + $0x30] sm:$0xf] }
  0xb2   : > { %v886_v53 = vsel %vm5060_vm13, %v671_v43, %v885_v37  ;;  %v670_v54 = vsel %vm5054_vm12, %v662_v16, %v669_v42  ;;  %3060 = vrot.lane.b32.xlu0 %v4489_v45, %s4906_s28  ;;  %v537_v62 = vshrl.u32 %v4612_v47, 16  ;;  %v540_v63 = vshll.u32 %v4612_v47, 16  ;;  %v1969_v35 = vld [vmem:[#allocation2 + $0xc] sm:$0xe]  ;;  %v5161_v41 = vld [vmem:[#allocation2 + $0x14] sm:$0x1] }
  0xb3   : > { %887 = vst [vmem:[#allocation2 + $0x8c] sm:$0x1] %v886_v53  ;;  %884 = vst.msk [vmem:[#allocation2 + $0x88] sm:$0xf] %vm346_vm0, %v670_v54  ;;  %v5129_v2 = vrot.slane %v673_v56, 7  ;;  %v5131_v3 = vrot.slane %v1802_v48, 4  ;;  %v534_v7 = vsel %vm5054_vm12, %v526_v23, %v533_v59  ;;  %v830_v8 = vsel %vm5060_vm13, %v535_v61, %v829_v52  ;;  %v4773_v59 = vpop.trf.xlu0 }
  0xb4   : > { %v5133_v4 = vrot.slane %v1805_v50, 5  ;;  %v4385_v5 = vrot.slane %v1359_v51, 9  ;;  %v5139_v11 = vrot.slane %v537_v62, 7  ;;  %v1434_v12 = vrot.slane %v5124_v58, 5  ;;  %828 = vst.msk [vmem:[#allocation2 + $0x28] sm:$0xf] %vm346_vm0, %v534_v7 }
  0xb5   : > { %831 = vst [vmem:[#allocation2 + $0x2c] sm:$0x1] %v830_v8  ;;  %v678_v15 = vor.u32 %v676_v57, %v5129_v2  ;;  %v679_v16 = vrot.slane %v5129_v2, 4  ;;  %v1437_v17 = vrot.slane %v5127_v0, 5  ;;  %v4772_v18 = vunpack.i.h.bf16 %v4768_v13  ;;  %v892_v48 = vld [vmem:[#allocation2 + $0x98] sm:$0x1] }
  0xb6   : > { %v542_v20 = vor.u32 %v540_v63, %v5139_v11  ;;  %v543_v21 = vrot.slane %v5139_v11, 4  ;;  %v1435_v22 = vsel %vm5025_vm4, %v4385_v5, %v1434_v12  ;;  %v1436_v23 = vrot.slane %v1434_v12, 4  ;;  %v836_v5 = vld [vmem:[#allocation2 + $0x38] sm:$0x1] }
  0xb7   : > { %v889_v24 = vsel %vm5044_vm9, %v678_v15, %v888_v9  ;;  %v4629_v25 = vpack.c.bf16 %v4772_v18, %v4772_v18  ;;  %v4769_v32 = vunpack.i.l.bf16 %v4768_v13  ;;  %v1784_v33 = vor.u32 %v5115_v40, %v5109_v28  ;;  %v5180_v15 = vld [vmem:[#allocation2 + $0x70] sm:$0xf] }
  0xb8   : > { %890 = vst [vmem:[#allocation2 + $0x90] sm:$0xf] %v889_v24  ;;  %v833_v27 = vsel %vm5044_vm9, %v542_v20, %v832_v14  ;;  %v1438_v31 = vsel %vm5025_vm4, %v1436_v23, %v1437_v17  ;;  %v1787_v39 = vshll.u32 %v5104_v19, 16  ;;  %v1793_v44 = vrot.slane %v1791_v29, 4 }
  0xb9   : > { %834 = vst [vmem:[#allocation2 + $0x30] sm:$0xf] %v833_v27  ;;  %v4465_v36 = vcombine.low %v1435_v22, %v1438_v31  ;;  %v681_v37 = vshrl.u32 %v4629_v25, 16  ;;  %v684_v38 = vshll.u32 %v4629_v25, 16  ;;  %v4613_v42 = vpack.c.bf16 %v4769_v32, %v4769_v32  ;;  %v1367_v22 = vld [vmem:[#allocation2 + $0x6c] sm:$0xe] }
  0xba   : > { %v1785_v43 = vrot.slane %v1784_v33, 4  ;;  %v1797_v45 = vshll.u32 %v5152_v26, 16  ;;  %v1789_v28 = vrot.slane %v1787_v39, 5  ;;  %v4400_v40 = vrot.slane %v1969_v35, 9  ;;  %v5188_v27 = vld [vmem:[#allocation2 + $0x74] sm:$0x1] }
  0xbb   : > { %2948 = vrot.lane.b32.xlu1 %v4465_v36, %s4904_s26  ;;  %v683_v46 = vrot.slane %v681_v37, 7  ;;  %v2035_v47 = vrot.slane %v5087_v60, 5  ;;  %v545_v50 = vshrl.u32 %v4613_v42, 16  ;;  %v548_v51 = vshll.u32 %v4613_v42, 16  ;;  %v5197_v37 = vld [vmem:[#allocation2 + $0x80] sm:$0x1] }
  0xbc   : > { %v1799_v52 = vrot.slane %v1797_v45, 5  ;;  %v2038_v53 = vrot.slane %v5161_v41, 5  ;;  %v1790_v29 = vsel %vm5034_vm7, %v1785_v43, %v1789_v28  ;;  %v1794_v57 = vor.u32 %v1793_v44, %v1789_v28  ;;  %v895_v42 = vld [vmem:[#allocation2 + $0x9c] sm:$0xf] }
  0xbd   : > { %v686_v54 = vor.u32 %v684_v38, %v683_v46  ;;  %v688_v56 = vrot.slane %v683_v46, 4  ;;  %v547_v61 = vrot.slane %v545_v50, 7  ;;  %v2036_v62 = vsel %vm5025_vm4, %v4400_v40, %v2035_v47 }
  0xbe   : > { %v2037_v63 = vrot.slane %v2035_v47, 4  ;;  %v4777_v2 = vunpack.i.h.bf16 %v4773_v59  ;;  %v1795_v9 = vrot.slane %v1794_v57, 4  ;;  %v4774_v20 = vunpack.i.l.bf16 %v4773_v59 }
  0xbf   : > { %v893_v7 = vsel %vm5060_vm13, %v688_v56, %v892_v48  ;;  %v687_v8 = vsel %vm5054_vm12, %v679_v16, %v686_v54  ;;  %v550_v11 = vor.u32 %v548_v51, %v547_v61  ;;  %v552_v12 = vrot.slane %v547_v61, 4 }
  0xc0   : > { %894 = vst [vmem:[#allocation2 + $0x98] sm:$0x1] %v893_v7  ;;  %891 = vst.msk [vmem:[#allocation2 + $0x94] sm:$0xf] %vm346_vm0, %v687_v8  ;;  %v2039_v13 = vsel %vm5025_vm4, %v2037_v63, %v2038_v53  ;;  %v4630_v14 = vpack.c.bf16 %v4777_v2, %v4777_v2  ;;  %v1800_v17 = vsel %vm5034_vm7, %v1795_v9, %v1799_v52  ;;  %v1815_v31 = vshrl.u32 %v5113_v34, 16  ;;  %v4778_v52 = vpop.trf.xlu0 }
  0xc1   : > { %v4512_v18 = vcombine.low %v2036_v62, %v2039_v13  ;;  %v551_v16 = vsel %vm5054_vm12, %v543_v21, %v550_v11  ;;  %v837_v23 = vsel %vm5060_vm13, %v552_v12, %v836_v5  ;;  %v4504_v24 = vcombine.low %v1790_v29, %v1800_v17  ;;  %v839_v53 = vld [vmem:[#allocation2 + $0x3c] sm:$0xf]  ;;  %v5220_v13 = vld [vmem:[#allocation2 + $0x18] sm:$0xf] }
  0xc2   : > { %v690_v25 = vshrl.u32 %v4630_v14, 16  ;;  %835 = vst.msk [vmem:[#allocation2 + $0x34] sm:$0xf] %vm346_vm0, %v551_v16  ;;  %838 = vst [vmem:[#allocation2 + $0x38] sm:$0x1] %v837_v23  ;;  %v693_v32 = vshll.u32 %v4630_v14, 16  ;;  %v4614_v33 = vpack.c.bf16 %v4774_v20, %v4774_v20  ;;  %v1808_v38 = vor.u32 %v5133_v4, %v5131_v3 }
  0xc3   : > { %3202 = vrot.lane.b32.xlu1 %v4512_v18, %s4907_s29  ;;  %v1490_v35 = vrot.slane %v5180_v15, 5  ;;  %3138 = vrot.lane.b32.xlu0 %v4504_v24, %s4908_s30  ;;  %v4393_v36 = vrot.slane %v1367_v22, 9  ;;  %v1811_v39 = vshll.u32 %v5113_v34, 16  ;;  %v1493_v46 = vrot.slane %v5188_v27, 5  ;;  %v5222_v14 = vld [vmem:[#allocation2 + $0x1c] sm:$0xf] }
  0xc4   : > { %v5195_v21 = vrot.slane %v690_v25, 7  ;;  %v554_v43 = vshrl.u32 %v4614_v33, 16  ;;  %v557_v44 = vshll.u32 %v4614_v33, 16  ;;  %v1809_v47 = vrot.slane %v1808_v38, 4  ;;  %v1977_v25 = vld [vmem:[#allocation2 + $0x6c] sm:$0xe] }
  0xc5   : > { %v1492_v45 = vrot.slane %v1490_v35, 4  ;;  %v1491_v40 = vsel %vm5025_vm4, %v4393_v36, %v1490_v35  ;;  %v1813_v48 = vrot.slane %v1811_v39, 5  ;;  %v1817_v4 = vrot.slane %v1815_v31, 4  ;;  %v843_v33 = vld [vmem:[#allocation2 + $0x44] sm:$0x1] }
  0xc6   : > { %v695_v28 = vor.u32 %v693_v32, %v5195_v21  ;;  %v5206_v50 = vrot.slane %v554_v43, 7  ;;  %v1821_v51 = vshll.u32 %v5197_v37, 16  ;;  %v4782_v29 = vunpack.i.h.bf16 %v4778_v52  ;;  %v899_v35 = vld [vmem:[#allocation2 + $0xa4] sm:$0x1]  ;;  %v1978_v43 = vld [vmem:[#allocation2 + $0x78] sm:$0xe] }
  0xc7   : > { %v1494_v3 = vsel %vm5025_vm4, %v1492_v45, %v1493_v46  ;;  %v1818_v59 = vor.u32 %v1817_v4, %v1813_v48  ;;  %v4779_v63 = vunpack.i.l.bf16 %v4778_v52  ;;  %v1586_v2 = vshrl.u32 %v5080_v55, 16  ;;  %v5244_v4 = vld [vmem:[#allocation2 + $0x1c] sm:$0xf] }
  0xc8   : > { %v896_v54 = vsel %vm5044_vm9, %v695_v28, %v895_v42  ;;  %v4473_v56 = vcombine.low %v1491_v40, %v1494_v3  ;;  %v559_v57 = vor.u32 %v557_v44, %v5206_v50  ;;  %v1823_v61 = vrot.slane %v1821_v51, 5  ;;  %v925_v40 = vld [vmem:[#allocation2 + $0xc] sm:$0xf]  ;;  %v5242_v3 = vld [vmem:[#allocation2 + $0x18] sm:$0xf] }
  0xc9   : > { %897 = vst [vmem:[#allocation2 + $0x9c] sm:$0xf] %v896_v54  ;;  %v4631_v62 = vpack.c.bf16 %v4782_v29, %v4782_v29  ;;  %v1814_v7 = vsel %vm5034_vm7, %v1809_v47, %v1813_v48  ;;  %v1819_v8 = vrot.slane %v1818_v59, 4  ;;  %v4615_v12 = vpack.c.bf16 %v4779_v63, %v4779_v63  ;;  %v2162_v63 = vld [vmem:[#allocation2 + $0x78] sm:$0xf] }
  0xca   : > { %2964 = vrot.lane.b32.xlu1 %v4473_v56, %s4904_s26  ;;  %v840_v5 = vsel %vm5044_vm9, %v559_v57, %v839_v53  ;;  %v696_v17 = vrot.slane %v5195_v21, 4  ;;  %v4481_v20 = vcombine.low %v5220_v13, %v5222_v14  ;;  %v1599_v31 = vshrl.u32 %v5087_v60, 16 }
  0xcb   : > { %841 = vst [vmem:[#allocation2 + $0x3c] sm:$0xf] %v840_v5  ;;  %v698_v9 = vshrl.u32 %v4631_v62, 16  ;;  %v701_v11 = vshll.u32 %v4631_v62, 16  ;;  %v1824_v18 = vsel %vm5034_vm7, %v1819_v8, %v1823_v61  ;;  %v562_v23 = vshrl.u32 %v4615_v12, 16 }
  0xcc   : > { %v4505_v22 = vcombine.low %v1814_v7, %v1824_v18  ;;  %v565_v24 = vshll.u32 %v4615_v12, 16  ;;  %v5230_v32 = vrot.slane %v1586_v2, 4  ;;  %v2091_v21 = vrot.slane %v5104_v19, 5 }
  0xcd   : > { %v700_v16 = vrot.slane %v698_v9, 7  ;;  %v560_v36 = vrot.slane %v5206_v50, 4  ;;  %v564_v42 = vrot.slane %v562_v23, 7  ;;  %v1589_v44 = vshll.u32 %v5080_v55, 16 }
  0xce   : > { %3044 = vrot.lane.b32.xlu1 %v4481_v20, %s4906_s28  ;;  %3140 = vrot.lane.b32.xlu0 %v4505_v22, %s4908_s30  ;;  %v4408_v45 = vrot.slane %v1977_v25, 9  ;;  %v2093_v46 = vrot.slane %v2091_v21, 4  ;;  %v2094_v28 = vrot.slane %v5152_v26, 5  ;;  %v4528_v51 = vcombine.low %v5242_v3, %v5244_v4 }
  0xcf   : > { %v703_v38 = vor.u32 %v701_v11, %v700_v16  ;;  %v705_v39 = vrot.slane %v700_v16, 4  ;;  %v567_v48 = vor.u32 %v565_v24, %v564_v42  ;;  %v569_v19 = vrot.slane %v564_v42, 4  ;;  %v5278_v42 = vld [vmem:[#allocation2 + $0x84] sm:$0xf] }
  0xd0   : > { %v2092_v55 = vsel %vm5025_vm4, %v4408_v45, %v2091_v21  ;;  %v2095_v26 = vsel %vm5025_vm4, %v2093_v46, %v2094_v28  ;;  %v4409_v52 = vrot.slane %v1978_v43, 9  ;;  %v2098_v29 = vrot.slane %v5113_v34, 5  ;;  %v941_v21 = vld [vmem:[#allocation2 + $0x6c] sm:$0xf]  ;;  %v5282_v28 = vld [vmem:[#allocation2 + $0x88] sm:$0xf] }
  0xd1   : > { %v900_v47 = vsel %vm5060_vm13, %v705_v39, %v899_v35  ;;  %v704_v50 = vsel %vm5054_vm12, %v696_v17, %v703_v38  ;;  %v568_v53 = vsel %vm5054_vm12, %v560_v36, %v567_v48  ;;  %v844_v54 = vsel %vm5060_vm13, %v569_v19, %v843_v33  ;;  %v2163_v33 = vld [vmem:[#allocation2 + $0x7c] sm:$0xf] }
  0xd2   : > { %901 = vst [vmem:[#allocation2 + $0xa4] sm:$0x1] %v900_v47  ;;  %898 = vst.msk [vmem:[#allocation2 + $0xa0] sm:$0xf] %vm346_vm0, %v704_v50  ;;  %v4520_v56 = vcombine.low %v2092_v55, %v2095_v26  ;;  %3298 = vrot.lane.b32.xlu1 %v4528_v51, %s4909_s7  ;;  %v2101_v57 = vrot.slane %v5197_v37, 5  ;;  %v999_v59 = vshrl.u32 %v925_v40, 16  ;;  %v2099_v5 = vsel %vm5025_vm4, %v4409_v52, %v2098_v29 }
  0xd3   : > { %842 = vst.msk [vmem:[#allocation2 + $0x40] sm:$0xf] %vm346_vm0, %v568_v53  ;;  %845 = vst [vmem:[#allocation2 + $0x44] sm:$0x1] %v844_v54  ;;  %v1002_v61 = vshll.u32 %v925_v40, 16  ;;  %v1008_v62 = vshll.u32 %v5124_v58, 16  ;;  %v4536_v47 = vcombine.low %v2162_v63, %v2163_v33  ;;  %v4537_v26 = vcombine.low %v5278_v42, %v5282_v28 }
  0xd4   : > { %v1591_v2 = vrot.slane %v1589_v44, 5  ;;  %3218 = vrot.lane.b32.xlu0 %v4520_v56, %s4907_s29  ;;  %v2100_v34 = vrot.slane %v2098_v29, 4  ;;  %v1012_v7 = vshrl.u32 %v5124_v58, 16  ;;  %v1610_v8 = vshrl.u32 %v5220_v13, 16 }
  0xd5   : > { %v1001_v9 = vrot.slane %v999_v59, 4  ;;  %v1004_v11 = vrot.slane %v1002_v61, 5  ;;  %v1010_v12 = vrot.slane %v1008_v62, 5  ;;  %v1018_v18 = vshll.u32 %v5127_v0, 16  ;;  %v2186_v59 = vld [vmem:[#allocation2 + $0x80] sm:$0x1] }
  0xd6   : > { %v2102_v37 = vsel %vm5025_vm4, %v2100_v34, %v2101_v57  ;;  %v1014_v17 = vrot.slane %v1012_v7, 4  ;;  %v2387_v20 = vshrl.u32 %v2162_v63, 16  ;;  %v2390_v23 = vshll.u32 %v2162_v63, 16  ;;  %v1970_v7 = vld [vmem:[#allocation2 + $0x18] sm:$0xe] }
  0xd7   : > { %v4521_v22 = vcombine.low %v2099_v5, %v2102_v37  ;;  %v1005_v16 = vor.u32 %v1004_v11, %v1001_v9  ;;  %v1613_v24 = vshll.u32 %v5220_v13, 16  ;;  %v1623_v25 = vshrl.u32 %v5222_v14, 16  ;;  %v5300_v11 = vld [vmem:[#allocation2 + $0x20] sm:$0x1] }
  0xd8   : > { %v1015_v58 = vor.u32 %v1014_v17, %v1010_v12  ;;  %v1592_v35 = vor.u32 %v1591_v2, %v5230_v32  ;;  %v1595_v38 = vshll.u32 %v5087_v60, 16  ;;  %v1601_v0 = vrot.slane %v1599_v31, 4 }
  0xd9   : > { %3220 = vrot.lane.b32.xlu0 %v4521_v22, %s4907_s29  ;;  %v1006_v36 = vrot.slane %v1005_v16, 4  ;;  %v1605_v39 = vshll.u32 %v5161_v41, 16  ;;  %v5280_v43 = vrot.slane %v1610_v8, 4  ;;  %v1020_v45 = vrot.slane %v1018_v18, 5 }
  0xda   : > { %v1016_v44 = vrot.slane %v1015_v58, 4  ;;  %v2389_v46 = vrot.slane %v2387_v20, 4  ;;  %v2392_v32 = vrot.slane %v2390_v23, 5  ;;  %v2400_v40 = vshrl.u32 %v2163_v33, 16  ;;  %v931_v20 = vld [vmem:[#allocation2 + $0x30] sm:$0xf] }
  0xdb   : > { %v1597_v48 = vrot.slane %v1595_v38, 5  ;;  %v1011_v19 = vsel %vm5034_vm7, %v1006_v36, %v1010_v12  ;;  %v1593_v41 = vrot.slane %v1592_v35, 4  ;;  %v1607_v31 = vrot.slane %v1605_v39, 5  ;;  %v4890_v30 = vld [vmem:[#allocation2 + $0x40] sm:$0xf] }
  0xdc   : > { %v1021_v60 = vsel %vm5034_vm7, %v1016_v44, %v1020_v45  ;;  %v1191_v51 = vshrl.u32 %v941_v21, 16  ;;  %v1194_v52 = vshll.u32 %v941_v21, 16  ;;  %v1200_v53 = vshll.u32 %v5180_v15, 16 }
  0xdd   : > { %v4449_v50 = vcombine.low %v1011_v19, %v1021_v60  ;;  %3314 = vrot.lane.b32.xlu0 %v4536_v47, %s4909_s7  ;;  %v1602_v55 = vor.u32 %v1601_v0, %v1597_v48  ;;  %v1204_v54 = vshrl.u32 %v5180_v15, 16  ;;  %v1210_v56 = vshll.u32 %v5188_v27, 16  ;;  %v5313_v47 = vld [vmem:[#allocation2 + $0x38] sm:$0x1]  ;;  %v5316_v60 = vld [vmem:[#allocation2 + $0x20] sm:$0x1] }
  0xde   : > { %v1193_v57 = vrot.slane %v1191_v51, 4  ;;  %v2393_v61 = vor.u32 %v2392_v32, %v2389_v46  ;;  %v2396_v62 = vshll.u32 %v2163_v33, 16  ;;  %v1598_v63 = vsel %vm5034_vm7, %v1593_v41, %v1597_v48  ;;  %v5303_v33 = vld [vmem:[#allocation2 + $0x34] sm:$0xf]  ;;  %v2578_v46 = vld [vmem:[#allocation2 + $0x18] sm:$0xe] }
  0xdf   : > { %2868 = vrot.lane.b32.xlu1 %v4449_v50, %s4905_s27  ;;  %v1603_v29 = vrot.slane %v1602_v55, 4  ;;  %v1196_v2 = vrot.slane %v1194_v52, 5  ;;  %v1202_v5 = vrot.slane %v1200_v53, 5  ;;  %v1206_v34 = vrot.slane %v1204_v54, 4  ;;  %v2581_v51 = vld [vmem:[#allocation2 + $0x3c] sm:$0xe] }
  0xe0   : > { %v2394_v15 = vrot.slane %v2393_v61, 4  ;;  %v2398_v27 = vrot.slane %v2396_v62, 5  ;;  %v2402_v9 = vrot.slane %v2400_v40, 4  ;;  %v2406_v18 = vshll.u32 %v2186_v59, 16 }
  0xe1   : > { %v1608_v8 = vsel %vm5034_vm7, %v1603_v29, %v1607_v31  ;;  %3316 = vrot.lane.b32.xlu0 %v4537_v26, %s4909_s7  ;;  %v1197_v37 = vor.u32 %v1196_v2, %v1193_v57  ;;  %v1207_v17 = vor.u32 %v1206_v34, %v1202_v5  ;;  %v1212_v22 = vrot.slane %v1210_v56, 5  ;;  %v2153_v26 = vld [vmem:[#allocation2 + $0x40] sm:$0xf]  ;;  %v5324_v29 = vld [vmem:[#allocation2 + $0x1c] sm:$0xf] }
  0xe2   : > { %v4496_v12 = vcombine.low %v1598_v63, %v1608_v8  ;;  %v2403_v16 = vor.u32 %v2402_v9, %v2398_v27  ;;  %v4401_v23 = vrot.slane %v1970_v7, 9  ;;  %v2042_v58 = vrot.slane %v5222_v14, 5  ;;  %v2181_v63 = vld [vmem:[#allocation2 + $0x44] sm:$0x1]  ;;  %v1360_v8 = vld [vmem:[#allocation2 + $0x18] sm:$0xe] }
  0xe3   : > { %v1198_v35 = vrot.slane %v1197_v37, 4  ;;  %v1208_v21 = vrot.slane %v1207_v17, 4  ;;  %v2408_v36 = vrot.slane %v2406_v18, 5  ;;  %v2045_v38 = vrot.slane %v5300_v11, 5  ;;  %v5332_v37 = vld [vmem:[#allocation2 + $0x20] sm:$0x1] }
  0xe4   : > { %3122 = vrot.lane.b32.xlu1 %v4496_v12, %s4908_s30  ;;  %v2399_v0 = vsel %vm5034_vm7, %v2394_v15, %v2398_v27  ;;  %v2404_v39 = vrot.slane %v2403_v16, 4  ;;  %v2044_v44 = vrot.slane %v2042_v58, 4  ;;  %v1071_v45 = vshrl.u32 %v931_v20, 16 }
  0xe5   : > { %v1203_v32 = vsel %vm5034_vm7, %v1198_v35, %v1202_v5  ;;  %v1213_v40 = vsel %vm5034_vm7, %v1208_v21, %v1212_v22  ;;  %v1074_v48 = vshll.u32 %v931_v20, 16  ;;  %v1080_v19 = vshll.u32 %v5303_v33, 16  ;;  %v933_v21 = vld [vmem:[#allocation2 + $0x3c] sm:$0xf] }
  0xe6   : > { %v4457_v41 = vcombine.low %v1203_v32, %v1213_v40  ;;  %v2409_v31 = vsel %vm5034_vm7, %v2404_v39, %v2408_v36  ;;  %v2043_v50 = vsel %vm5025_vm4, %v4401_v23, %v2042_v58  ;;  %v1073_v55 = vrot.slane %v1071_v45, 4  ;;  %v934_v36 = vld [vmem:[#allocation2 + $0x40] sm:$0xf]  ;;  %v960_v45 = vld [vmem:[#allocation2 + $0x44] sm:$0x1] }
  0xe7   : > { %v4552_v52 = vcombine.low %v2399_v0, %v2409_v31  ;;  %v2046_v53 = vsel %vm5025_vm4, %v2044_v44, %v2045_v38  ;;  %v1076_v54 = vrot.slane %v1074_v48, 5  ;;  %v1082_v56 = vrot.slane %v1080_v19, 5 }
  0xe8   : > { %2884 = vrot.lane.b32.xlu1 %v4457_v41, %s4905_s27  ;;  %v1084_v57 = vshrl.u32 %v5303_v33, 16  ;;  %v1090_v59 = vshll.u32 %v5313_v47, 16  ;;  %v4416_v61 = vrot.slane %v2578_v46, 9  ;;  %v2644_v62 = vrot.slane %v5244_v4, 5 }
  0xe9   : > { %3394 = vrot.lane.b32.xlu0 %v4552_v52, %s4910_s8  ;;  %v1077_v2 = vor.u32 %v1076_v54, %v1073_v55  ;;  %v2647_v5 = vrot.slane %v5316_v60, 5  ;;  %v4419_v34 = vrot.slane %v2581_v51, 9  ;;  %v2665_v7 = vrot.slane %v2153_v26, 5 }
  0xea   : > { %v4513_v15 = vcombine.low %v2043_v50, %v2046_v53  ;;  %v1086_v27 = vrot.slane %v1084_v57, 4  ;;  %v1092_v9 = vrot.slane %v1090_v59, 5  ;;  %v2646_v12 = vrot.slane %v2644_v62, 4  ;;  %v1362_v59 = vld [vmem:[#allocation2 + $0x30] sm:$0xe] }
  0xeb   : > { %v1078_v17 = vrot.slane %v1077_v2, 4  ;;  %v2645_v18 = vsel %vm5025_vm4, %v4416_v61, %v2644_v62  ;;  %v2667_v20 = vrot.slane %v2665_v7, 4  ;;  %v2668_v22 = vrot.slane %v2181_v63, 5 }
  0xec   : > { %3204 = vrot.lane.b32.xlu1 %v4513_v15, %s4907_s29  ;;  %v1087_v16 = vor.u32 %v1086_v27, %v1082_v56  ;;  %v2648_v23 = vsel %vm5025_vm4, %v2646_v12, %v2647_v5  ;;  %v4386_v58 = vrot.slane %v1360_v8, 9  ;;  %v1441_v35 = vrot.slane %v5324_v29, 5  ;;  %v5361_v15 = vld [vmem:[#allocation2 + $0x24] sm:$0xf] }
  0xed   : > { %v2195_v38 = vshrl.u32 %v5242_v3, 16  ;;  %v1083_v0 = vsel %vm5034_vm7, %v1078_v17, %v1082_v56  ;;  %v2666_v39 = vsel %vm5025_vm4, %v4419_v34, %v2665_v7  ;;  %v1444_v44 = vrot.slane %v5332_v37, 5  ;;  %v945_v12 = vld [vmem:[#allocation2 + $0x84] sm:$0xf] }
  0xee   : > { %v1088_v46 = vrot.slane %v1087_v16, 4  ;;  %v4560_v32 = vcombine.low %v2645_v18, %v2648_v23  ;;  %v1442_v40 = vsel %vm5025_vm4, %v4386_v58, %v1441_v35  ;;  %v1443_v48 = vrot.slane %v1441_v35, 4  ;;  %v5370_v16 = vld [vmem:[#allocation2 + $0x28] sm:$0xf] }
  0xef   : > { %v1095_v19 = vshrl.u32 %v933_v21, 16  ;;  %v1098_v41 = vshll.u32 %v933_v21, 16  ;;  %v1104_v31 = vshll.u32 %v934_v36, 16  ;;  %v1108_v50 = vshrl.u32 %v934_v36, 16  ;;  %v5378_v21 = vld [vmem:[#allocation2 + $0x88] sm:$0xf] }
  0xf0   : > { %v1093_v55 = vsel %vm5034_vm7, %v1088_v46, %v1092_v9  ;;  %3458 = vrot.lane.b32.xlu1 %v4560_v32, %s4911_s9  ;;  %v2669_v26 = vsel %vm5025_vm4, %v2667_v20, %v2668_v22  ;;  %v1445_v51 = vsel %vm5025_vm4, %v1443_v48, %v1444_v44  ;;  %v1114_v52 = vshll.u32 %v960_v45, 16 }
  0xf1   : > { %v2198_v53 = vshll.u32 %v5242_v3, 16  ;;  %v4452_v54 = vcombine.low %v1083_v0, %v1093_v55  ;;  %v1097_v56 = vrot.slane %v1095_v19, 4  ;;  %v1100_v57 = vrot.slane %v1098_v41, 5  ;;  %v5392_v19 = vld [vmem:[#allocation2 + $0x8c] sm:$0x1] }
  0xf2   : > { %v1615_v61 = vrot.slane %v1613_v24, 5  ;;  %v4466_v62 = vcombine.low %v1442_v40, %v1445_v51  ;;  %v1106_v63 = vrot.slane %v1104_v31, 5  ;;  %v1110_v2 = vrot.slane %v1108_v50, 4  ;;  %v5366_v24 = vld [vmem:[#allocation2 + $0x24] sm:$0xf] }
  0xf3   : > { %v5358_v5 = vrot.slane %v2195_v38, 4  ;;  %2874 = vrot.lane.b32.xlu0 %v4452_v54, %s4905_s27  ;;  %v4563_v34 = vcombine.low %v2666_v39, %v2669_v26  ;;  %v1101_v7 = vor.u32 %v1100_v57, %v1097_v56  ;;  %v1116_v8 = vrot.slane %v1114_v52, 5  ;;  %v1368_v50 = vld [vmem:[#allocation2 + $0x78] sm:$0xe] }
  0xf4   : > { %2950 = vrot.lane.b32.xlu1 %v4466_v62, %s4904_s26  ;;  %v1111_v3 = vor.u32 %v1110_v2, %v1106_v63  ;;  %v4388_v27 = vrot.slane %v1362_v59, 9  ;;  %v1455_v9 = vrot.slane %v5303_v33, 5  ;;  %v1458_v13 = vrot.slane %v5313_v47, 5  ;;  %v5376_v47 = vld [vmem:[#allocation2 + $0x28] sm:$0xf] }
  0xf5   : > { %v2200_v17 = vrot.slane %v2198_v53, 5  ;;  %v2208_v18 = vshrl.u32 %v5244_v4, 16  ;;  %v2411_v20 = vshrl.u32 %v5278_v42, 16  ;;  %v1102_v22 = vrot.slane %v1101_v7, 4  ;;  %v944_v53 = vld [vmem:[#allocation2 + $0x7c] sm:$0xf] }
  0xf6   : > { %v1112_v23 = vrot.slane %v1111_v3, 4  ;;  %v4529_v58 = vcombine.low %v5361_v15, %v5370_v16  ;;  %v1456_v33 = vsel %vm5025_vm4, %v4388_v27, %v1455_v9  ;;  %v1457_v35 = vrot.slane %v1455_v9, 4  ;;  %v965_v62 = vld [vmem:[#allocation2 + $0x80] sm:$0x1] }
  0xf7   : > { %v2414_v36 = vshll.u32 %v5278_v42, 16  ;;  %3464 = vrot.lane.b32.xlu0 %v4563_v34, %s4911_s9  ;;  %v1107_v0 = vsel %vm5034_vm7, %v1102_v22, %v1106_v63  ;;  %v4482_v39 = vcombine.low %v5366_v24, %v5376_v47  ;;  %v1239_v46 = vshrl.u32 %v945_v12, 16 }
  0xf8   : > { %v1117_v44 = vsel %vm5034_vm7, %v1112_v23, %v1116_v8  ;;  %3300 = vrot.lane.b32.xlu1 %v4529_v58, %s4909_s7  ;;  %v1459_v45 = vsel %vm5025_vm4, %v1457_v35, %v1458_v13  ;;  %v1242_v32 = vshll.u32 %v945_v12, 16  ;;  %v1248_v41 = vshll.u32 %v5378_v21, 16 }
  0xf9   : > { %v4453_v40 = vcombine.low %v1107_v0, %v1117_v44  ;;  %v4468_v48 = vcombine.low %v1456_v33, %v1459_v45  ;;  %v1252_v31 = vshrl.u32 %v5378_v21, 16  ;;  %v1241_v55 = vrot.slane %v1239_v46, 4 }
  0xfa   : > { %v1244_v26 = vrot.slane %v1242_v32, 5  ;;  %v1258_v51 = vshll.u32 %v5392_v19, 16  ;;  %v1616_v52 = vor.u32 %v1615_v61, %v5280_v43  ;;  %v1250_v54 = vrot.slane %v1248_v41, 5 }
  0xfb   : > { %2876 = vrot.lane.b32.xlu0 %v4453_v40, %s4905_s27  ;;  %v1254_v56 = vrot.slane %v1252_v31, 4  ;;  %v1619_v57 = vshll.u32 %v5222_v14, 16  ;;  %v1625_v59 = vrot.slane %v1623_v25, 4  ;;  %v1629_v7 = vshll.u32 %v5300_v11, 16  ;;  %v1369_v11 = vld [vmem:[#allocation2 + $0x84] sm:$0xe] }
  0xfc   : > { %3046 = vrot.lane.b32.xlu1 %v4482_v39, %s4906_s28  ;;  %v1245_v63 = vor.u32 %v1244_v26, %v1241_v55  ;;  %v1260_v2 = vrot.slane %v1258_v51, 5  ;;  %v1617_v34 = vrot.slane %v1616_v52, 4  ;;  %v4394_v61 = vrot.slane %v1368_v50, 9  ;;  %v1557_v51 = vld [vmem:[#allocation2 + $0x84] sm:$0xf] }
  0xfd   : > { %v1255_v8 = vor.u32 %v1254_v56, %v1250_v54  ;;  %v1621_v43 = vrot.slane %v1619_v57, 5  ;;  %v1497_v3 = vrot.slane %v944_v53, 5  ;;  %v1631_v9 = vrot.slane %v1629_v7, 5 }
  0xfe   : > { %v1246_v27 = vrot.slane %v1245_v63, 4  ;;  %v1500_v13 = vrot.slane %v965_v62, 5  ;;  %v2201_v12 = vor.u32 %v2200_v17, %v5358_v5  ;;  %v2204_v0 = vshll.u32 %v5244_v4, 16 }
  0xff   : > { %2954 = vrot.lane.b32.xlu0 %v4468_v48, %s4904_s26  ;;  %v1256_v14 = vrot.slane %v1255_v8, 4  ;;  %v1622_v25 = vsel %vm5034_vm7, %v1617_v34, %v1621_v43  ;;  %v1626_v22 = vor.u32 %v1625_v59, %v1621_v43  ;;  %v1498_v23 = vsel %vm5025_vm4, %v4394_v61, %v1497_v3  ;;  %v927_v48 = vld [vmem:[#allocation2 + $0x18] sm:$0xf]  ;;  %v5433_v34 = vld [vmem:[#allocation2 + $0x88] sm:$0xf] }
 0x100   : > { %v1251_v58 = vsel %vm5034_vm7, %v1246_v27, %v1250_v54  ;;  %v1499_v33 = vrot.slane %v1497_v3, 4  ;;  %v2202_v35 = vrot.slane %v2201_v12, 4  ;;  %v2210_v39 = vrot.slane %v2208_v18, 4 }
 0x101   : > { %v1261_v5 = vsel %vm5034_vm7, %v1256_v14, %v1260_v2  ;;  %v1627_v17 = vrot.slane %v1626_v22, 4  ;;  %v2214_v44 = vshll.u32 %v5316_v60, 16  ;;  %v2206_v32 = vrot.slane %v2204_v0, 5 }
 0x102   : > { %v4459_v45 = vcombine.low %v1251_v58, %v1261_v5  ;;  %v1501_v46 = vsel %vm5025_vm4, %v1499_v33, %v1500_v13  ;;  %v4395_v40 = vrot.slane %v1369_v11, 9  ;;  %v1504_v4 = vrot.slane %v5378_v21, 5  ;;  %v2579_v13 = vld [vmem:[#allocation2 + $0x24] sm:$0xe]  ;;  %v5442_v11 = vld [vmem:[#allocation2 + $0x2c] sm:$0x1] }
 0x103   : > { %v1632_v41 = vsel %vm5034_vm7, %v1627_v17, %v1631_v9  ;;  %v4474_v31 = vcombine.low %v1498_v23, %v1501_v46  ;;  %v2216_v50 = vrot.slane %v2214_v44, 5  ;;  %v2207_v60 = vsel %vm5034_vm7, %v2202_v35, %v2206_v32  ;;  %v4783_v23 = vpop.trf.xlu0  ;;  %v1559_v35 = vld [vmem:[#allocation2 + $0x90] sm:$0xf] }
 0x104   : > { %2888 = vrot.lane.b32.xlu0 %v4459_v45, %s4905_s27  ;;  %v4497_v55 = vcombine.low %v1622_v25, %v1632_v41  ;;  %v2211_v18 = vor.u32 %v2210_v39, %v2206_v32  ;;  %v1507_v26 = vrot.slane %v5392_v19, 5  ;;  %v1505_v52 = vsel %vm5025_vm4, %v4395_v40, %v1504_v4  ;;  %v5454_v41 = vld [vmem:[#allocation2 + $0x94] sm:$0xf] }
 0x105   : > { %v1506_v53 = vrot.slane %v1504_v4, 4  ;;  %v1023_v54 = vshrl.u32 %v927_v48, 16  ;;  %v1026_v56 = vshll.u32 %v927_v48, 16  ;;  %v1032_v21 = vshll.u32 %v5324_v29, 16 }
 0x106   : > { %3124 = vrot.lane.b32.xlu1 %v4497_v55, %s4908_s30  ;;  %v2212_v57 = vrot.slane %v2211_v18, 4  ;;  %v1036_v59 = vshrl.u32 %v5324_v29, 16  ;;  %v1042_v62 = vshll.u32 %v5332_v37, 16  ;;  %v1826_v7 = vshrl.u32 %v1557_v51, 16 }
 0x107   : > { %v1508_v63 = vsel %vm5025_vm4, %v1506_v53, %v1507_v26  ;;  %v1025_v19 = vrot.slane %v1023_v54, 4  ;;  %v1028_v2 = vrot.slane %v1026_v56, 5  ;;  %v1034_v61 = vrot.slane %v1032_v21, 5  ;;  %v902_v26 = vld [vmem:[#allocation2 + $0xa8] sm:$0xf] }
 0x108   : > { %2966 = vrot.lane.b32.xlu0 %v4474_v31, %s4904_s26  ;;  %v2217_v8 = vsel %vm5034_vm7, %v2212_v57, %v2216_v50  ;;  %v4475_v43 = vcombine.low %v1505_v52, %v1508_v63  ;;  %v1038_v3 = vrot.slane %v1036_v59, 4  ;;  %v1044_v9 = vrot.slane %v1042_v62, 5  ;;  %v4788_v62 = vpop.trf.xlu0  ;;  %v5466_v63 = vld [vmem:[#allocation2 + $0x28] sm:$0xf] }
 0x109   : > { %v4544_v27 = vcombine.low %v2207_v60, %v2217_v8  ;;  %v1029_v29 = vor.u32 %v1028_v2, %v1025_v19  ;;  %v5438_v37 = vrot.slane %v1826_v7, 4  ;;  %v1829_v14 = vshll.u32 %v1557_v51, 16  ;;  %v5470_v8 = vld [vmem:[#allocation2 + $0x2c] sm:$0x1] }
 0x10a   : > { %v1039_v12 = vor.u32 %v1038_v3, %v1034_v61  ;;  %v1839_v25 = vshrl.u32 %v5433_v34, 16  ;;  %v4490_v22 = vcombine.low %v1557_v51, %v5433_v34  ;;  %v4787_v33 = vunpack.i.h.bf16 %v4783_v23 }
 0x10b   : > { %3378 = vrot.lane.b32.xlu1 %v4544_v27, %s4910_s8  ;;  %v1030_v58 = vrot.slane %v1029_v29, 4  ;;  %v5446_v5 = vrot.slane %v1829_v14, 5  ;;  %v4784_v17 = vunpack.i.l.bf16 %v4783_v23  ;;  %v4417_v39 = vrot.slane %v2579_v13, 9 }
 0x10c   : > { %2968 = vrot.lane.b32.xlu0 %v4475_v43, %s4904_s26  ;;  %v1040_v0 = vrot.slane %v1039_v12, 4  ;;  %v4632_v45 = vpack.c.bf16 %v4787_v33, %v4787_v33  ;;  %v2651_v46 = vrot.slane %v5370_v16, 5  ;;  %v2654_v32 = vrot.slane %v5442_v11, 5  ;;  %v1361_v43 = vld [vmem:[#allocation2 + $0x24] sm:$0xe] }
 0x10d   : > { %v1035_v44 = vsel %vm5034_vm7, %v1030_v58, %v1034_v61  ;;  %v4616_v48 = vpack.c.bf16 %v4784_v17, %v4784_v17  ;;  %v1850_v31 = vshrl.u32 %v1559_v35, 16  ;;  %v1853_v50 = vshll.u32 %v1559_v35, 16  ;;  %v846_v61 = vld [vmem:[#allocation2 + $0x48] sm:$0xf] }
 0x10e   : > { %v1045_v40 = vsel %vm5034_vm7, %v1040_v0, %v1044_v9  ;;  %v707_v55 = vshrl.u32 %v4632_v45, 16  ;;  %v710_v60 = vshll.u32 %v4632_v45, 16  ;;  %v2652_v18 = vsel %vm5025_vm4, %v4417_v39, %v2651_v46 }
 0x10f   : > { %v4450_v4 = vcombine.low %v1035_v44, %v1045_v40  ;;  %v571_v51 = vshrl.u32 %v4616_v48, 16  ;;  %v574_v52 = vshll.u32 %v4616_v48, 16  ;;  %v2653_v53 = vrot.slane %v2651_v46, 4 }
 0x110   : > { %3062 = vrot.lane.b32.xlu0 %v4490_v22, %s4906_s28  ;;  %v5459_v54 = vrot.slane %v1850_v31, 4  ;;  %v709_v56 = vrot.slane %v707_v55, 7  ;;  %v5462_v57 = vrot.slane %v1853_v50, 5  ;;  %v1863_v21 = vshrl.u32 %v5454_v41, 16  ;;  %v5485_v50 = vld [vmem:[#allocation2 + $0x8c] sm:$0x1] }
 0x111   : > { %2870 = vrot.lane.b32.xlu1 %v4450_v4, %s4905_s27  ;;  %v4491_v59 = vcombine.low %v1559_v35, %v5454_v41  ;;  %v573_v19 = vrot.slane %v571_v51, 7  ;;  %v2655_v2 = vsel %vm5025_vm4, %v2653_v53, %v2654_v32  ;;  %v4792_v7 = vunpack.i.h.bf16 %v4788_v62  ;;  %v906_v55 = vld [vmem:[#allocation2 + $0xb0] sm:$0x1] }
 0x112   : > { %v712_v3 = vor.u32 %v710_v60, %v709_v56  ;;  %v713_v27 = vrot.slane %v709_v56, 4  ;;  %v4561_v29 = vcombine.low %v2652_v18, %v2655_v2  ;;  %v4789_v14 = vunpack.i.l.bf16 %v4788_v62  ;;  %v4793_v56 = vpop.trf.xlu0 }
 0x113   : > { %v576_v9 = vor.u32 %v574_v52, %v573_v19  ;;  %v577_v13 = vrot.slane %v573_v19, 4  ;;  %v4633_v12 = vpack.c.bf16 %v4792_v7, %v4792_v7  ;;  %v4387_v23 = vrot.slane %v1361_v43, 9  ;;  %v1971_v7 = vld [vmem:[#allocation2 + $0x24] sm:$0xe] }
 0x114   : > { %3064 = vrot.lane.b32.xlu0 %v4491_v59, %s4906_s28  ;;  %v903_v22 = vsel %vm5044_vm9, %v712_v3, %v902_v26  ;;  %v1448_v58 = vrot.slane %v5466_v63, 5  ;;  %v1451_v33 = vrot.slane %v5470_v8, 5  ;;  %v4617_v39 = vpack.c.bf16 %v4789_v14, %v4789_v14  ;;  %v850_v59 = vld [vmem:[#allocation2 + $0x50] sm:$0x1]  ;;  %v5500_v14 = vld [vmem:[#allocation2 + $0x2c] sm:$0x1] }
 0x115   : > { %3460 = vrot.lane.b32.xlu1 %v4561_v29, %s4911_s9  ;;  %904 = vst [vmem:[#allocation2 + $0xa8] sm:$0xf] %v903_v22  ;;  %v847_v35 = vsel %vm5044_vm9, %v576_v9, %v846_v61  ;;  %v715_v0 = vshrl.u32 %v4633_v12, 16  ;;  %v718_v17 = vshll.u32 %v4633_v12, 16  ;;  %v1832_v46 = vor.u32 %v5446_v5, %v5438_v37 }
 0x116   : > { %848 = vst [vmem:[#allocation2 + $0x48] sm:$0xf] %v847_v35  ;;  %v1449_v44 = vsel %vm5025_vm4, %v4387_v23, %v1448_v58  ;;  %v1450_v45 = vrot.slane %v1448_v58, 4  ;;  %v1835_v32 = vshll.u32 %v5433_v34, 16  ;;  %v579_v48 = vshrl.u32 %v4617_v39, 16 }
 0x117   : > { %v717_v40 = vrot.slane %v715_v0, 7  ;;  %v582_v31 = vshll.u32 %v4617_v39, 16  ;;  %v1841_v4 = vrot.slane %v1839_v25, 4  ;;  %v1833_v18 = vrot.slane %v1832_v46, 4 }
 0x118   : > { %v1452_v60 = vsel %vm5025_vm4, %v1450_v45, %v1451_v33  ;;  %v1837_v26 = vrot.slane %v1835_v32, 5  ;;  %v1845_v51 = vshll.u32 %v5485_v50, 16  ;;  %v581_v5 = vrot.slane %v579_v48, 7  ;;  %v5517_v48 = vld [vmem:[#allocation2 + $0x98] sm:$0x1] }
 0x119   : > { %v720_v52 = vor.u32 %v718_v17, %v717_v40  ;;  %v722_v37 = vrot.slane %v717_v40, 4  ;;  %v4467_v53 = vcombine.low %v1449_v44, %v1452_v60  ;;  %v4797_v25 = vunpack.i.h.bf16 %v4793_v56 }
 0x11a   : > { %v1838_v62 = vsel %vm5034_vm7, %v1833_v18, %v1837_v26  ;;  %v1842_v19 = vor.u32 %v1841_v4, %v1837_v26  ;;  %v1847_v2 = vrot.slane %v1845_v51, 5  ;;  %v584_v61 = vor.u32 %v582_v31, %v581_v5 }
 0x11b   : > { %v907_v43 = vsel %vm5060_vm13, %v722_v37, %v906_v55  ;;  %v586_v3 = vrot.slane %v581_v5, 4  ;;  %v721_v29 = vsel %vm5054_vm12, %v713_v27, %v720_v52  ;;  %2952 = vrot.lane.b32.xlu1 %v4467_v53, %s4904_s26  ;;  %v4634_v12 = vpack.c.bf16 %v4797_v25, %v4797_v25  ;;  %v909_v55 = vld [vmem:[#allocation2 + $0xb4] sm:$0xf]  ;;  %v4798_v37 = vpop.trf.xlu0 }
 0x11c   : > { %908 = vst [vmem:[#allocation2 + $0xb0] sm:$0x1] %v907_v43  ;;  %905 = vst.msk [vmem:[#allocation2 + $0xac] sm:$0xf] %vm346_vm0, %v721_v29  ;;  %v1843_v9 = vrot.slane %v1842_v19, 4  ;;  %v585_v22 = vsel %vm5054_vm12, %v577_v13, %v584_v61  ;;  %v4794_v58 = vunpack.i.l.bf16 %v4793_v56  ;;  %v4402_v33 = vrot.slane %v1971_v7, 9 }
 0x11d   : > { %v851_v23 = vsel %vm5060_vm13, %v586_v3, %v850_v59  ;;  %849 = vst.msk [vmem:[#allocation2 + $0x4c] sm:$0xf] %vm346_vm0, %v585_v22  ;;  %v724_v35 = vshrl.u32 %v4634_v12, 16  ;;  %v727_v0 = vshll.u32 %v4634_v12, 16  ;;  %v2049_v17 = vrot.slane %v5376_v47, 5 }
 0x11e   : > { %852 = vst [vmem:[#allocation2 + $0x50] sm:$0x1] %v851_v23  ;;  %v1848_v27 = vsel %vm5034_vm7, %v1843_v9, %v1847_v2  ;;  %v4618_v44 = vpack.c.bf16 %v4794_v58, %v4794_v58  ;;  %v2052_v45 = vrot.slane %v5500_v14, 5  ;;  %v1856_v13 = vor.u32 %v5462_v57, %v5459_v54  ;;  %v5544_v9 = vpop.permute.xlu1 %2946  ;;  %v1979_v23 = vld [vmem:[#allocation2 + $0x84] sm:$0xe] }
 0x11f   : > { %v4506_v39 = vcombine.low %v1838_v62, %v1848_v27  ;;  %v5513_v46 = vrot.slane %v724_v35, 7  ;;  %v2050_v32 = vsel %vm5025_vm4, %v4402_v33, %v2049_v17  ;;  %v2051_v40 = vrot.slane %v2049_v17, 4  ;;  %v853_v62 = vld [vmem:[#allocation2 + $0x54] sm:$0xf] }
 0x120   : > { %v1859_v31 = vshll.u32 %v5454_v41, 16  ;;  %v5522_v4 = vrot.slane %v2411_v20, 4  ;;  %v588_v60 = vshrl.u32 %v4618_v44, 16  ;;  %v591_v18 = vshll.u32 %v4618_v44, 16  ;;  %v5556_v17 = vld [vmem:[#allocation2 + $0x34] sm:$0xf] }
 0x121   : > { %3142 = vrot.lane.b32.xlu0 %v4506_v39, %s4908_s30  ;;  %v1865_v54 = vrot.slane %v1863_v21, 4  ;;  %v729_v57 = vor.u32 %v727_v0, %v5513_v46  ;;  %v2053_v26 = vsel %vm5025_vm4, %v2051_v40, %v2052_v45  ;;  %v1857_v51 = vrot.slane %v1856_v13, 4  ;;  %v5554_v0 = vld [vmem:[#allocation2 + $0x30] sm:$0xf]  ;;  %v913_v13 = vld [vmem:[#allocation2 + $0xbc] sm:$0x1] }
 0x122   : > { %v1861_v52 = vrot.slane %v1859_v31, 5  ;;  %v5530_v5 = vrot.slane %v588_v60, 7  ;;  %v4514_v20 = vcombine.low %v2050_v32, %v2053_v26  ;;  %v1869_v53 = vshll.u32 %v5517_v48, 16 }
 0x123   : > { %v4802_v56 = vunpack.i.h.bf16 %v4798_v37  ;;  %v2219_v59 = vshrl.u32 %v5361_v15, 16  ;;  %v910_v21 = vsel %vm5044_vm9, %v729_v57, %v909_v55  ;;  %v5538_v2 = vrot.slane %v2414_v36, 5  ;;  %v5565_v57 = vpop.trf.xlu0 }
 0x124   : > { %v1866_v19 = vor.u32 %v1865_v54, %v1861_v52  ;;  %911 = vst [vmem:[#allocation2 + $0xb4] sm:$0xf] %v910_v21  ;;  %v593_v25 = vor.u32 %v591_v18, %v5530_v5  ;;  %3206 = vrot.lane.b32.xlu1 %v4514_v20, %s4907_s29  ;;  %v1871_v7 = vrot.slane %v1869_v53, 5  ;;  %v1862_v61 = vsel %vm5034_vm7, %v1857_v51, %v1861_v52  ;;  %v1980_v20 = vld [vmem:[#allocation2 + $0x90] sm:$0xe] }
 0x125   : > { %v4635_v43 = vpack.c.bf16 %v4802_v56, %v4802_v56  ;;  %v4799_v29 = vunpack.i.l.bf16 %v4798_v37  ;;  %v2222_v12 = vshll.u32 %v5361_v15, 16  ;;  %v5549_v58 = vrot.slane %v2219_v59, 4  ;;  %v857_v59 = vld [vmem:[#allocation2 + $0x5c] sm:$0x1] }
 0x126   : > { %v1867_v3 = vrot.slane %v1866_v19, 4  ;;  %v854_v42 = vsel %vm5044_vm9, %v593_v25, %v853_v62  ;;  %v2232_v33 = vshrl.u32 %v5370_v16, 16  ;;  %v730_v15 = vrot.slane %v5513_v46, 4 }
 0x127   : > { %v732_v36 = vshrl.u32 %v4635_v43, 16  ;;  %v735_v22 = vshll.u32 %v4635_v43, 16  ;;  %855 = vst [vmem:[#allocation2 + $0x54] sm:$0xf] %v854_v42  ;;  %v4619_v35 = vpack.c.bf16 %v4799_v29, %v4799_v29  ;;  %v4483_v45 = vcombine.low %v5554_v0, %v5556_v17 }
 0x128   : > { %v1872_v27 = vsel %vm5034_vm7, %v1867_v3, %v1871_v7  ;;  %v4410_v31 = vrot.slane %v1979_v23, 9  ;;  %v2105_v55 = vrot.slane %v5433_v34, 5  ;;  %v2224_v60 = vrot.slane %v2222_v12, 5  ;;  %v5570_v34 = vpop.permute.xlu1 %3042  ;;  %v5582_v7 = vld [vmem:[#allocation2 + $0x30] sm:$0xf] }
 0x129   : > { %v4507_v39 = vcombine.low %v1862_v61, %v1872_v27  ;;  %v734_v44 = vrot.slane %v732_v36, 7  ;;  %v596_v32 = vshrl.u32 %v4619_v35, 16  ;;  %v599_v40 = vshll.u32 %v4619_v35, 16  ;;  %3048 = vrot.lane.b32.xlu1 %v4483_v45, %s4906_s28 }
 0x12a   : > { %v2108_v46 = vrot.slane %v5485_v50, 5  ;;  %v594_v26 = vrot.slane %v5530_v5, 4  ;;  %v2106_v52 = vsel %vm5025_vm4, %v4410_v31, %v2105_v55  ;;  %v2107_v37 = vrot.slane %v2105_v55, 4 }
 0x12b   : > { %3144 = vrot.lane.b32.xlu0 %v4507_v39, %s4908_s30  ;;  %v737_v18 = vor.u32 %v735_v22, %v734_v44  ;;  %v739_v54 = vrot.slane %v734_v44, 4  ;;  %v598_v51 = vrot.slane %v596_v32, 7  ;;  %v1634_v53 = vshrl.u32 %v5366_v24, 16  ;;  %v5601_v39 = vpop.trf.xlu0 }
 0x12c   : > { %v1637_v56 = vshll.u32 %v5366_v24, 16  ;;  %v1658_v19 = vshrl.u32 %v5554_v0, 16  ;;  %v2109_v25 = vsel %vm5025_vm4, %v2107_v37, %v2108_v46  ;;  %v5584_v24 = vld [vmem:[#allocation2 + $0x34] sm:$0xf]  ;;  %v4411_v3 = vrot.slane %v1980_v20, 9  ;;  %v5609_v32 = vpop.permute.xlu1 %3058 }
 0x12d   : > { %v914_v50 = vsel %vm5060_vm13, %v739_v54, %v913_v13  ;;  %v738_v62 = vsel %vm5054_vm12, %v730_v15, %v737_v18  ;;  %v601_v5 = vor.u32 %v599_v40, %v598_v51  ;;  %v603_v21 = vrot.slane %v598_v51, 4  ;;  %v2166_v15 = vld [vmem:[#allocation2 + $0x90] sm:$0xf]  ;;  %v929_v13 = vld [vmem:[#allocation2 + $0x24] sm:$0xf]  ;;  %6970 = vst [vmem:[#allocation3_spill] sm:$0xff] %v5609_v32 }
 0x12e   : > { %915 = vst [vmem:[#allocation2 + $0xbc] sm:$0x1] %v914_v50  ;;  %912 = vst.msk [vmem:[#allocation2 + $0xb8] sm:$0xf] %vm346_vm0, %v738_v62  ;;  %v4522_v43 = vcombine.low %v2106_v52, %v2109_v25  ;;  %v4530_v61 = vcombine.low %v5582_v7, %v5584_v24  ;;  %v2112_v29 = vrot.slane %v5454_v41, 5  ;;  %v2115_v36 = vrot.slane %v5517_v48, 5 }
 0x12f   : > { %v602_v12 = vsel %vm5054_vm12, %v594_v26, %v601_v5  ;;  %v858_v42 = vsel %vm5060_vm13, %v603_v21, %v857_v59  ;;  %v2225_v22 = vor.u32 %v2224_v60, %v5549_v58  ;;  %v2228_v27 = vshll.u32 %v5370_v16, 16  ;;  %v5619_v52 = vld [vmem:[#allocation2 + $0x94] sm:$0xf]  ;;  %v5626_v5 = vld [vmem:[#allocation2 + $0x9c] sm:$0xf]  ;;  %v5628_v21 = vpop.permute.xlu0 %2866 }
 0x130   : > { %856 = vst.msk [vmem:[#allocation2 + $0x58] sm:$0xf] %vm346_vm0, %v602_v12  ;;  %859 = vst [vmem:[#allocation2 + $0x5c] sm:$0x1] %v858_v42  ;;  %3222 = vrot.lane.b32.xlu0 %v4522_v43, %s4907_s29  ;;  %3302 = vrot.lane.b32.xlu1 %v4530_v61, %s4909_s7  ;;  %v2113_v41 = vsel %vm5025_vm4, %v4411_v3, %v2112_v29  ;;  %v2114_v23 = vrot.slane %v2112_v29, 4  ;;  %v2234_v35 = vrot.slane %v2232_v33, 4 }
 0x131   : > { %v5603_v48 = vrot.slane %v1634_v53, 4  ;;  %v5605_v58 = vrot.slane %v1637_v56, 5  ;;  %v1647_v44 = vshrl.u32 %v5376_v47, 16  ;;  %v2238_v45 = vshll.u32 %v5442_v11, 16  ;;  %v5631_v3 = vld [vmem:[#allocation2 + $0xa0] sm:$0xf] }
 0x132   : > { %v1661_v40 = vshll.u32 %v5554_v0, 16  ;;  %v2116_v16 = vsel %vm5025_vm4, %v2114_v23, %v2115_v36  ;;  %v2226_v33 = vrot.slane %v2225_v22, 4  ;;  %v2230_v31 = vrot.slane %v2228_v27, 5  ;;  %v864_v60 = vld [vmem:[#allocation2 + $0x68] sm:$0x1] }
 0x133   : > { %v5614_v55 = vrot.slane %v1658_v19, 4  ;;  %v2243_v18 = vshrl.u32 %v5582_v7, 16  ;;  %v4523_v54 = vcombine.low %v2113_v41, %v2116_v16  ;;  %v2240_v26 = vrot.slane %v2238_v45, 5  ;;  %v6041_v32 = vld [vmem:[#allocation2 + $0x4c] sm:$0xf] }
 0x134   : > { %v2235_v46 = vor.u32 %v2234_v35, %v2230_v31  ;;  %v2435_v11 = vshrl.u32 %v2166_v15, 16  ;;  %v1047_v51 = vshrl.u32 %v929_v13, 16  ;;  %v1050_v0 = vshll.u32 %v929_v13, 16  ;;  %v5647_v13 = vpop.permute.xlu0 %3060 }
 0x135   : > { %3224 = vrot.lane.b32.xlu0 %v4523_v54, %s4907_s29  ;;  %v1056_v37 = vshll.u32 %v5466_v63, 16  ;;  %v1060_v20 = vshrl.u32 %v5466_v63, 16  ;;  %v1066_v53 = vshll.u32 %v5470_v8, 16  ;;  %v2231_v56 = vsel %vm5034_vm7, %v2226_v33, %v2230_v31  ;;  %v5633_v63 = vpop.permute.xlu1 %2948  ;;  %6971 = vst [vmem:[#allocation4_spill] sm:$0xff] %v5647_v13 }
 0x136   : > { %v2236_v59 = vrot.slane %v2235_v46, 4  ;;  %v2438_v50 = vshll.u32 %v2166_v15, 16  ;;  %v1049_v62 = vrot.slane %v1047_v51, 4  ;;  %v4538_v19 = vcombine.low %v2166_v15, %v5619_v52 }
 0x137   : > { %v1052_v25 = vrot.slane %v1050_v0, 5  ;;  %v1058_v43 = vrot.slane %v1056_v37, 5  ;;  %v1062_v61 = vrot.slane %v1060_v20, 4  ;;  %v5635_v8 = vrot.slane %v1661_v40, 5 }
 0x138   : > { %v5637_v29 = vrot.slane %v2243_v18, 4  ;;  %v2246_v12 = vshll.u32 %v5582_v7, 16  ;;  %v2241_v42 = vsel %vm5034_vm7, %v2236_v59, %v2240_v26  ;;  %v1068_v23 = vrot.slane %v1066_v53, 5 }
 0x139   : > { %v4545_v36 = vcombine.low %v2231_v56, %v2241_v42  ;;  %3318 = vrot.lane.b32.xlu0 %v4538_v19, %s4909_s7  ;;  %v1053_v22 = vor.u32 %v1052_v25, %v1049_v62  ;;  %v1063_v41 = vor.u32 %v1062_v61, %v1058_v43  ;;  %v2437_v35 = vrot.slane %v2435_v11, 4  ;;  %v1972_v19 = vld [vmem:[#allocation2 + $0x30] sm:$0xe]  ;;  %v5667_v25 = vpop.permute.xlu0 %3138 }
 0x13a   : > { %v2448_v15 = vshrl.u32 %v5619_v52, 16  ;;  %v4539_v45 = vcombine.low %v5626_v5, %v5631_v3  ;;  %v2440_v40 = vrot.slane %v2438_v50, 5  ;;  %v1640_v31 = vor.u32 %v5605_v58, %v5603_v48  ;;  %v5662_v48 = vpop.permute.xlu1 %3202  ;;  %6972 = vst [vmem:[#allocation5_spill] sm:$0xff] %v5667_v25 }
 0x13b   : > { %3380 = vrot.lane.b32.xlu1 %v4545_v36, %s4910_s8  ;;  %v1054_v16 = vrot.slane %v1053_v22, 4  ;;  %v1064_v33 = vrot.slane %v1063_v41, 4  ;;  %v2459_v18 = vshrl.u32 %v5626_v5, 16  ;;  %v1643_v54 = vshll.u32 %v5376_v47, 16  ;;  %v5669_v36 = vld [vmem:[#allocation2 + $0x98] sm:$0x1] }
 0x13c   : > { %v1649_v46 = vrot.slane %v1647_v44, 4  ;;  %v1653_v26 = vshll.u32 %v5500_v14, 16  ;;  %v2462_v0 = vshll.u32 %v5626_v5, 16  ;;  %v4807_v37 = vunpack.i.h.bf16 %v5565_v57 }
 0x13d   : > { %v1059_v11 = vsel %vm5034_vm7, %v1054_v16, %v1058_v43  ;;  %v1069_v51 = vsel %vm5034_vm7, %v1064_v33, %v1068_v23  ;;  %3320 = vrot.lane.b32.xlu0 %v4539_v45, %s4909_s7  ;;  %v1641_v20 = vrot.slane %v1640_v31, 4  ;;  %v1645_v47 = vrot.slane %v1643_v54, 5  ;;  %v5676_v16 = vld [vmem:[#allocation2 + $0x38] sm:$0x1] }
 0x13e   : > { %v4451_v58 = vcombine.low %v1059_v11, %v1069_v51  ;;  %v4636_v44 = vpack.c.bf16 %v4807_v37, %v4807_v37  ;;  %v4804_v14 = vunpack.i.l.bf16 %v5565_v57  ;;  %v2441_v53 = vor.u32 %v2440_v40, %v2437_v35  ;;  %v5678_v31 = vpop.permute.xlu1 %2964 }
 0x13f   : > { %v1650_v56 = vor.u32 %v1649_v46, %v1645_v47  ;;  %v1655_v59 = vrot.slane %v1653_v26, 5  ;;  %v2444_v50 = vshll.u32 %v5619_v52, 16  ;;  %v2450_v62 = vrot.slane %v2448_v15, 4  ;;  %6973 = vst [vmem:[#allocation6_spill] sm:$0xff] %v5678_v31  ;;  %v916_v46 = vld [vmem:[#allocation2 + $0xc0] sm:$0xf] }
 0x140   : > { %2872 = vrot.lane.b32.xlu1 %v4451_v58, %s4905_s27  ;;  %v741_v43 = vshrl.u32 %v4636_v44, 16  ;;  %v744_v61 = vshll.u32 %v4636_v44, 16  ;;  %v4620_v42 = vpack.c.bf16 %v4804_v14, %v4804_v14  ;;  %v2442_v22 = vrot.slane %v2441_v53, 4  ;;  %v860_v44 = vld [vmem:[#allocation2 + $0x60] sm:$0xf] }
 0x141   : > { %v1646_v57 = vsel %vm5034_vm7, %v1641_v20, %v1645_v47  ;;  %v1651_v41 = vrot.slane %v1650_v56, 4  ;;  %v2446_v23 = vrot.slane %v2444_v50, 5  ;;  %v2454_v35 = vshll.u32 %v5669_v36, 16  ;;  %v5691_v50 = vpop.permute.xlu0 %3140 }
 0x142   : > { %v5674_v45 = vrot.slane %v741_v43, 7  ;;  %v605_v40 = vshrl.u32 %v4620_v42, 16  ;;  %v608_v15 = vshll.u32 %v4620_v42, 16  ;;  %v4403_v33 = vrot.slane %v1972_v19, 9  ;;  %6974 = vst [vmem:[#allocation7_spill] sm:$0xff] %v5691_v50 }
 0x143   : > { %v1656_v54 = vsel %vm5034_vm7, %v1651_v41, %v1655_v59  ;;  %v2447_v26 = vsel %vm5034_vm7, %v2442_v22, %v2446_v23  ;;  %v2451_v11 = vor.u32 %v2450_v62, %v2446_v23  ;;  %v2456_v51 = vrot.slane %v2454_v35, 5  ;;  %v5702_v23 = vld [vmem:[#allocation2 + $0x4c] sm:$0xf]  ;;  %v6063_v50 = vld [vmem:[#allocation2 + $0x44] sm:$0x1] }
 0x144   : > { %v4498_v37 = vcombine.low %v1646_v57, %v1656_v54  ;;  %v746_v58 = vor.u32 %v744_v61, %v5674_v45  ;;  %v747_v20 = vrot.slane %v5674_v45, 4  ;;  %v5686_v47 = vrot.slane %v605_v40, 7  ;;  %v935_v61 = vld [vmem:[#allocation2 + $0x48] sm:$0xf]  ;;  %v5709_v54 = vpop.permute.xlu1 %3044 }
 0x145   : > { %v2452_v14 = vrot.slane %v2451_v11, 4  ;;  %v2056_v53 = vrot.slane %v5556_v17, 5  ;;  %v2059_v56 = vrot.slane %v5676_v16, 5  ;;  %v4812_v59 = vunpack.i.h.bf16 %v5601_v39 }
 0x146   : > { %3126 = vrot.lane.b32.xlu1 %v4498_v37, %s4908_s30  ;;  %v917_v62 = vsel %vm5044_vm9, %v746_v58, %v916_v46  ;;  %v610_v19 = vor.u32 %v608_v15, %v5686_v47  ;;  %v611_v43 = vrot.slane %v5686_v47, 4  ;;  %v4809_v40 = vunpack.i.l.bf16 %v5601_v39  ;;  %v5707_v15 = vld [vmem:[#allocation2 + $0x50] sm:$0x1]  ;;  %v920_v58 = vld [vmem:[#allocation2 + $0xc8] sm:$0x1] }
 0x147   : > { %918 = vst [vmem:[#allocation2 + $0xc0] sm:$0xf] %v917_v62  ;;  %v2457_v42 = vsel %vm5034_vm7, %v2452_v14, %v2456_v51  ;;  %v2057_v22 = vsel %vm5025_vm4, %v4403_v33, %v2056_v53  ;;  %v2058_v57 = vrot.slane %v2056_v53, 4  ;;  %v4637_v41 = vpack.c.bf16 %v4812_v59, %v4812_v59  ;;  %v2580_v62 = vld [vmem:[#allocation2 + $0x30] sm:$0xe] }
 0x148   : > { %v861_v35 = vsel %vm5044_vm9, %v610_v19, %v860_v44  ;;  %v4554_v45 = vcombine.low %v2447_v26, %v2457_v42  ;;  %v1119_v51 = vshrl.u32 %v935_v61, 16  ;;  %v4621_v49 = vpack.c.bf16 %v4809_v40, %v4809_v40  ;;  %v5717_v19 = vpop.permute.xlu0 %3218  ;;  %v5723_v27 = vpop.permute.xlu1 %3298 }
 0x149   : > { %862 = vst [vmem:[#allocation2 + $0x60] sm:$0xf] %v861_v35  ;;  %v2060_v46 = vsel %vm5025_vm4, %v2058_v57, %v2059_v56  ;;  %v749_v11 = vshrl.u32 %v4637_v41, 16  ;;  %v752_v33 = vshll.u32 %v4637_v41, 16  ;;  %v1122_v44 = vshll.u32 %v935_v61, 16  ;;  %6975 = vst [vmem:[#allocation8_spill] sm:$0xff] %v5717_v19 }
 0x14a   : > { %3398 = vrot.lane.b32.xlu0 %v4554_v45, %s4910_s8  ;;  %v4515_v37 = vcombine.low %v2057_v22, %v2060_v46  ;;  %v1128_v26 = vshll.u32 %v5702_v23, 16  ;;  %v1121_v14 = vrot.slane %v1119_v51, 4  ;;  %v1132_v53 = vshrl.u32 %v5702_v23, 16  ;;  %v5720_v41 = vld [vmem:[#allocation2 + $0x38] sm:$0x1] }
 0x14b   : > { %v751_v39 = vrot.slane %v749_v11, 7  ;;  %v1138_v59 = vshll.u32 %v5707_v15, 16  ;;  %v613_v56 = vshrl.u32 %v4621_v49, 16  ;;  %v616_v42 = vshll.u32 %v4621_v49, 16 }
 0x14c   : > { %3208 = vrot.lane.b32.xlu1 %v4515_v37, %s4907_s29  ;;  %v1124_v57 = vrot.slane %v1122_v44, 5  ;;  %v1130_v22 = vrot.slane %v1128_v26, 5  ;;  %v1134_v45 = vrot.slane %v1132_v53, 4  ;;  %v4418_v51 = vrot.slane %v2580_v62, 9 }
 0x14d   : > { %v754_v61 = vor.u32 %v752_v33, %v751_v39  ;;  %v756_v35 = vrot.slane %v751_v39, 4  ;;  %v1140_v40 = vrot.slane %v1138_v59, 5  ;;  %v615_v46 = vrot.slane %v613_v56, 7  ;;  %v2583_v59 = vld [vmem:[#allocation2 + $0x54] sm:$0xe] }
 0x14e   : > { %v1125_v11 = vor.u32 %v1124_v57, %v1121_v14  ;;  %v2658_v38 = vrot.slane %v5584_v24, 5  ;;  %v1135_v44 = vor.u32 %v1134_v45, %v1130_v22  ;;  %v2661_v33 = vrot.slane %v5720_v41, 5  ;;  %v2157_v57 = vld [vmem:[#allocation2 + $0x58] sm:$0xf] }
 0x14f   : > { %v921_v37 = vsel %vm5060_vm13, %v756_v35, %v920_v58  ;;  %v755_v49 = vsel %vm5054_vm12, %v747_v20, %v754_v61  ;;  %v5732_v26 = vrot.slane %v2459_v18, 4  ;;  %v618_v39 = vor.u32 %v616_v42, %v615_v46  ;;  %v5741_v61 = vpop.permute.xlu0 %3220  ;;  %v5752_v35 = vld [vmem:[#allocation2 + $0x5c] sm:$0x1] }
 0x150   : > { %922 = vst [vmem:[#allocation2 + $0xc8] sm:$0x1] %v921_v37  ;;  %v620_v14 = vrot.slane %v615_v46, 4  ;;  %919 = vst.msk [vmem:[#allocation2 + $0xc4] sm:$0xf] %vm346_vm0, %v755_v49  ;;  %v1126_v53 = vrot.slane %v1125_v11, 4  ;;  %v2659_v20 = vsel %vm5025_vm4, %v4418_v51, %v2658_v38 }
 0x151   : > { %v5737_v58 = vrot.slane %v2462_v0, 5  ;;  %v1136_v62 = vrot.slane %v1135_v44, 4  ;;  %v2660_v56 = vrot.slane %v2658_v38, 4  ;;  %6976 = vst [vmem:[#allocation9_spill] sm:$0xff] %v5741_v61  ;;  %v2468_v18 = vshll.u32 %v5631_v3, 16  ;;  %v5764_v11 = vpop.permute.xlu1 %2868 }
 0x152   : > { %v619_v42 = vsel %vm5054_vm12, %v611_v43, %v618_v39  ;;  %v865_v5 = vsel %vm5060_vm13, %v620_v14, %v864_v60  ;;  %v1131_v0 = vsel %vm5034_vm7, %v1126_v53, %v1130_v22  ;;  %v5756_v38 = vrot.slane %v2246_v12, 5  ;;  %v937_v46 = vld [vmem:[#allocation2 + $0x54] sm:$0xf]  ;;  %v938_v51 = vld [vmem:[#allocation2 + $0x58] sm:$0xf] }
 0x153   : > { %863 = vst.msk [vmem:[#allocation2 + $0x64] sm:$0xf] %vm346_vm0, %v619_v42  ;;  %866 = vst [vmem:[#allocation2 + $0x68] sm:$0x1] %v865_v5  ;;  %v1141_v47 = vsel %vm5034_vm7, %v1136_v62, %v1140_v40  ;;  %v2662_v1 = vsel %vm5025_vm4, %v2660_v56, %v2661_v33  ;;  %v4421_v6 = vrot.slane %v2583_v59, 9  ;;  %v2679_v45 = vrot.slane %v2157_v57, 5  ;;  %v5783_v56 = vpop.permute.xlu0 %3314 }
 0x154   : > { %v4454_v43 = vcombine.low %v1131_v0, %v1141_v47  ;;  %v4562_v22 = vcombine.low %v2659_v20, %v2662_v1  ;;  %v2472_v7 = vshrl.u32 %v5631_v3, 16  ;;  %v2682_v12 = vrot.slane %v5752_v35, 5  ;;  %v962_v37 = vld [vmem:[#allocation2 + $0x5c] sm:$0x1]  ;;  %v5779_v53 = vld [vmem:[#allocation2 + $0x40] sm:$0xf] }
 0x155   : > { %v5770_v49 = vrot.slane %v2468_v18, 5  ;;  %v2680_v44 = vsel %vm5025_vm4, %v4421_v6, %v2679_v45  ;;  %v2681_v33 = vrot.slane %v2679_v45, 4  ;;  %v5776_v39 = vld [vmem:[#allocation2 + $0x3c] sm:$0xf]  ;;  %v1143_v62 = vshrl.u32 %v937_v46, 16  ;;  %6977 = vst [vmem:[#allocation10_spill] sm:$0xff] %v5783_v56 }
 0x156   : > { %2878 = vrot.lane.b32.xlu0 %v4454_v43, %s4905_s27  ;;  %3462 = vrot.lane.b32.xlu1 %v4562_v22, %s4911_s9  ;;  %v4531_v59 = vcombine.low %v5776_v39, %v5779_v53  ;;  %v1146_v20 = vshll.u32 %v937_v46, 16  ;;  %v1152_v18 = vshll.u32 %v938_v51, 16  ;;  %v1156_v42 = vshrl.u32 %v938_v51, 16  ;;  %v1364_v43 = vld [vmem:[#allocation2 + $0x48] sm:$0xe]  ;;  %v5792_v60 = vpop.permute.xlu1 %3122 }
 0x157   : > { %v2683_v57 = vsel %vm5025_vm4, %v2681_v33, %v2682_v12  ;;  %v1162_v5 = vshll.u32 %v962_v37, 16  ;;  %v5787_v0 = vrot.slane %v2472_v7, 4  ;;  %v1145_v1 = vrot.slane %v1143_v62, 4  ;;  %v1371_v56 = vld [vmem:[#allocation2 + $0x9c] sm:$0xe] }
 0x158   : > { %v4565_v47 = vcombine.low %v2680_v44, %v2683_v57  ;;  %v1148_v6 = vrot.slane %v1146_v20, 5  ;;  %v2267_v22 = vshrl.u32 %v5776_v39, 16  ;;  %v2270_v45 = vshll.u32 %v5776_v39, 16 }
 0x159   : > { %v1154_v46 = vrot.slane %v1152_v18, 5  ;;  %v1158_v14 = vrot.slane %v1156_v42, 4  ;;  %v1164_v51 = vrot.slane %v1162_v5, 5  ;;  %v1664_v7 = vor.u32 %v5635_v8, %v5614_v55 }
 0x15a   : > { %3304 = vrot.lane.b32.xlu1 %v4531_v59, %s4909_s7  ;;  %3468 = vrot.lane.b32.xlu0 %v4565_v47, %s4911_s9  ;;  %v1149_v12 = vor.u32 %v1148_v6, %v1145_v1  ;;  %v1667_v37 = vshll.u32 %v5556_v17, 16  ;;  %v6978_v33 = vshrl.u32 %v5556_v17, 16  ;;  %v1677_v20 = vshll.u32 %v5676_v16, 16  ;;  %v5802_v47 = vpop.permute.xlu0 %3316 }
 0x15b   : > { %v1159_v44 = vor.u32 %v1158_v14, %v1154_v46  ;;  %v4390_v59 = vrot.slane %v1364_v43, 9  ;;  %v1665_v18 = vrot.slane %v1664_v7, 4  ;;  %v1469_v40 = vrot.slane %v5702_v23, 5  ;;  %6979 = vst [vmem:[#allocation11_spill] sm:$0xff] %v5802_v47  ;;  %v949_v23 = vld [vmem:[#allocation2 + $0x9c] sm:$0xf] }
 0x15c   : > { %v1673_v62 = vrot.slane %v6978_v33, 4  ;;  %v1150_v57 = vrot.slane %v1149_v12, 4  ;;  %v1669_v42 = vrot.slane %v1667_v37, 5  ;;  %v1679_v1 = vrot.slane %v1677_v20, 5  ;;  %v5816_v37 = vld [vmem:[#allocation2 + $0xa0] sm:$0xf] }
 0x15d   : > { %v1160_v5 = vrot.slane %v1159_v44, 4  ;;  %v1472_v55 = vrot.slane %v5707_v15, 5  ;;  %v2249_v8 = vor.u32 %v5756_v38, %v5637_v29  ;;  %v1470_v6 = vsel %vm5025_vm4, %v4390_v59, %v1469_v40  ;;  %v5818_v29 = vpop.permute.xlu1 %2884 }
 0x15e   : > { %v1155_v17 = vsel %vm5034_vm7, %v1150_v57, %v1154_v46  ;;  %v1670_v16 = vsel %vm5034_vm7, %v1665_v18, %v1669_v42  ;;  %v1674_v14 = vor.u32 %v1673_v62, %v1669_v42  ;;  %v1471_v12 = vrot.slane %v1469_v40, 4  ;;  %6980 = vst [vmem:[#allocation12_spill] sm:$0xff] %v5818_v29 }
 0x15f   : > { %v1165_v43 = vsel %vm5034_vm7, %v1160_v5, %v1164_v51  ;;  %v2250_v7 = vrot.slane %v2249_v8, 4  ;;  %v2252_v15 = vshll.u32 %v5584_v24, 16  ;;  %v6981_v44 = vshrl.u32 %v5584_v24, 16  ;;  %v5829_v8 = vpop.permute.xlu0 %3394 }
 0x160   : > { %v4455_v38 = vcombine.low %v1155_v17, %v1165_v43  ;;  %v1675_v46 = vrot.slane %v1674_v14, 4  ;;  %v2262_v62 = vshll.u32 %v5720_v41, 16  ;;  %v1473_v20 = vsel %vm5025_vm4, %v1471_v12, %v1472_v55  ;;  %6982 = vst [vmem:[#allocation13_spill] sm:$0xff] %v5829_v8  ;;  %v5833_v55 = vld [vmem:[#allocation2 + $0xa4] sm:$0x1] }
 0x161   : > { %v2258_v33 = vrot.slane %v6981_v44, 4  ;;  %v2254_v59 = vrot.slane %v2252_v15, 5  ;;  %v1287_v51 = vshrl.u32 %v949_v23, 16  ;;  %v1290_v40 = vshll.u32 %v949_v23, 16 }
 0x162   : > { %2880 = vrot.lane.b32.xlu0 %v4455_v38, %s4905_s27  ;;  %v1680_v57 = vsel %vm5034_vm7, %v1675_v46, %v1679_v1  ;;  %v4470_v18 = vcombine.low %v1470_v6, %v1473_v20  ;;  %v2264_v42 = vrot.slane %v2262_v62, 5  ;;  %v1296_v5 = vshll.u32 %v5816_v37, 16  ;;  %v5837_v6 = vld [vmem:[#allocation2 + $0x8c] sm:$0x1]  ;;  %v5842_v38 = vld [vmem:[#allocation2 + $0x88] sm:$0xf]  ;;  %v5847_v62 = vpop.permute.xlu1 %3204 }
 0x163   : > { %v4499_v24 = vcombine.low %v1670_v16, %v1680_v57  ;;  %v2255_v41 = vsel %vm5034_vm7, %v2250_v7, %v2254_v59  ;;  %v2259_v17 = vor.u32 %v2258_v33, %v2254_v59  ;;  %v1289_v14 = vrot.slane %v1287_v51, 4  ;;  %v948_v33 = vld [vmem:[#allocation2 + $0x94] sm:$0xf] }
 0x164   : > { %v1292_v23 = vrot.slane %v1290_v40, 5  ;;  %v1298_v43 = vrot.slane %v1296_v5, 5  ;;  %v1300_v12 = vshrl.u32 %v5816_v37, 16  ;;  %v1306_v1 = vshll.u32 %v5833_v55, 16 }
 0x165   : > { %3128 = vrot.lane.b32.xlu1 %v4499_v24, %s4908_s30  ;;  %v2260_v15 = vrot.slane %v2259_v17, 4  ;;  %v2417_v16 = vor.u32 %v5538_v2, %v5522_v4  ;;  %v2420_v7 = vshll.u32 %v5842_v38, 16  ;;  %v6983_v46 = vshrl.u32 %v5282_v28, 16  ;;  %v1370_v4 = vld [vmem:[#allocation2 + $0x90] sm:$0xe] }
 0x166   : > { %v2269_v20 = vrot.slane %v2267_v22, 4  ;;  %2958 = vrot.lane.b32.xlu0 %v4470_v18, %s4904_s26  ;;  %v1293_v59 = vor.u32 %v1292_v23, %v1289_v14  ;;  %v1302_v51 = vrot.slane %v1300_v12, 4  ;;  %v2430_v40 = vshll.u32 %v5837_v6, 16  ;;  %v5857_v24 = vld [vmem:[#allocation2 + $0x98] sm:$0x1]  ;;  %v5859_v14 = vpop.permute.xlu0 %2874 }
 0x167   : > { %v2426_v44 = vrot.slane %v6983_v46, 4  ;;  %v2272_v2 = vrot.slane %v2270_v45, 5  ;;  %v2265_v28 = vsel %vm5034_vm7, %v2260_v15, %v2264_v42  ;;  %v2418_v57 = vrot.slane %v2417_v16, 4  ;;  %v2586_v18 = vld [vmem:[#allocation2 + $0x78] sm:$0xe] }
 0x168   : > { %v2422_v5 = vrot.slane %v2420_v7, 5  ;;  %v4546_v17 = vcombine.low %v2255_v41, %v2265_v28  ;;  %v1294_v46 = vrot.slane %v1293_v59, 4  ;;  %v1303_v22 = vor.u32 %v1302_v51, %v1298_v43  ;;  %v4858_v59 = vld [vmem:[#allocation2 + $0x7c] sm:$0xf]  ;;  %v4859_v28 = vld [vmem:[#allocation2 + $0x80] sm:$0x1] }
 0x169   : > { %v1308_v8 = vrot.slane %v1306_v1, 5  ;;  %v2432_v39 = vrot.slane %v2430_v40, 5  ;;  %v4396_v45 = vrot.slane %v1370_v4, 9  ;;  %v1511_v41 = vrot.slane %v948_v33, 5 }
 0x16a   : > { %v2423_v23 = vsel %vm5034_vm7, %v2418_v57, %v2422_v5  ;;  %v2427_v12 = vor.u32 %v2426_v44, %v2422_v5  ;;  %3382 = vrot.lane.b32.xlu1 %v4546_v17, %s4910_s8  ;;  %v1299_v42 = vsel %vm5034_vm7, %v1294_v46, %v1298_v43  ;;  %v1304_v15 = vrot.slane %v1303_v22, 4  ;;  %v5867_v57 = vpop.permute.xlu1 %3458 }
 0x16b   : > { %v1514_v16 = vrot.slane %v5857_v24, 5  ;;  %v4424_v7 = vrot.slane %v2586_v18, 9  ;;  %v2700_v51 = vrot.slane %v4858_v59, 5  ;;  %v2703_v19 = vrot.slane %v4859_v28, 5 }
 0x16c   : > { %v2428_v1 = vrot.slane %v2427_v12, 4  ;;  %v1309_v44 = vsel %vm5034_vm7, %v1304_v15, %v1308_v8  ;;  %v1512_v40 = vsel %vm5025_vm4, %v4396_v45, %v1511_v41  ;;  %v1513_v4 = vrot.slane %v1511_v41, 4  ;;  %v5881_v15 = vld [vmem:[#allocation2 + $0x9c] sm:$0xf]  ;;  %v5883_v45 = vpop.permute.xlu0 %3464  ;;  %v5889_v41 = vld [vmem:[#allocation2 + $0xa0] sm:$0xf] }
 0x16d   : > { %v4397_v43 = vrot.slane %v1371_v56, 9  ;;  %v4461_v5 = vcombine.low %v1299_v42, %v1309_v44  ;;  %v2701_v17 = vsel %vm5025_vm4, %v4424_v7, %v2700_v51  ;;  %v2702_v46 = vrot.slane %v2700_v51, 4  ;;  %6984 = vst [vmem:[#allocation14_spill] sm:$0xff] %v5883_v45  ;;  %v4860_v51 = vld [vmem:[#allocation2 + $0x44] sm:$0x1] }
 0x16e   : > { %v2433_v33 = vsel %vm5034_vm7, %v2428_v1, %v2432_v39  ;;  %v1515_v18 = vsel %vm5025_vm4, %v1513_v4, %v1514_v16  ;;  %v1518_v12 = vrot.slane %v5816_v37, 5  ;;  %v1521_v8 = vrot.slane %v5833_v55, 5 }
 0x16f   : > { %v4553_v22 = vcombine.low %v2423_v23, %v2433_v33  ;;  %2892 = vrot.lane.b32.xlu0 %v4461_v5, %s4905_s27  ;;  %v4476_v56 = vcombine.low %v1512_v40, %v1515_v18  ;;  %v2704_v39 = vsel %vm5025_vm4, %v2702_v46, %v2703_v19  ;;  %v2273_v42 = vor.u32 %v2272_v2, %v2269_v20  ;;  %v5896_v20 = vpop.permute.xlu1 %2950  ;;  %v4861_v5 = vld [vmem:[#allocation2 + $0x4] sm:$0xf]  ;;  %v4862_v33 = vld [vmem:[#allocation2] sm:$0xf] }
 0x170   : > { %v2276_v23 = vshll.u32 %v5779_v53, 16  ;;  %v4568_v37 = vcombine.low %v2701_v17, %v2704_v39  ;;  %v1519_v55 = vsel %vm5025_vm4, %v4397_v43, %v1518_v12  ;;  %v1520_v16 = vrot.slane %v1518_v12, 4  ;;  %v943_v43 = vld [vmem:[#allocation2 + $0x78] sm:$0xf]  ;;  %v5906_v39 = vpop.permute.xlu0 %2876  ;;  %v4864_v17 = vld [vmem:[#allocation2 + $0x80] sm:$0x1] }
 0x171   : > { %3396 = vrot.lane.b32.xlu1 %v4553_v22, %s4910_s8  ;;  %v2280_v1 = vshrl.u32 %v5779_v53, 16  ;;  %v2274_v7 = vrot.slane %v2273_v42, 4  ;;  %v2286_v28 = vshll.u32 %v4860_v51, 16  ;;  %v1874_v19 = vshrl.u32 %v5881_v15, 16  ;;  %6985 = vst [vmem:[#allocation15_spill] sm:$0xff] %v5906_v39 }
 0x172   : > { %v2278_v59 = vrot.slane %v2276_v23, 5  ;;  %v1522_v2 = vsel %vm5025_vm4, %v1520_v16, %v1521_v8  ;;  %v1877_v40 = vshll.u32 %v5881_v15, 16  ;;  %v1883_v4 = vshll.u32 %v5889_v41, 16  ;;  %v1563_v51 = vld [vmem:[#allocation2 + $0xa8] sm:$0xf] }
 0x173   : > { %v2282_v44 = vrot.slane %v2280_v1, 4  ;;  %v4432_v53 = vcombine.low %v4862_v33, %v4861_v5  ;;  %2970 = vrot.lane.b32.xlu0 %v4476_v56, %s4904_s26  ;;  %v1876_v46 = vrot.slane %v1874_v19, 4  ;;  %v2288_v18 = vrot.slane %v2286_v28, 5  ;;  %v4863_v19 = vld [vmem:[#allocation2 + $0x7c] sm:$0xf] }
 0x174   : > { %v1879_v12 = vrot.slane %v1877_v40, 5  ;;  %v1887_v8 = vshrl.u32 %v5889_v41, 16  ;;  %v4477_v42 = vcombine.low %v1519_v55, %v1522_v2  ;;  %v2279_v23 = vsel %vm5034_vm7, %v2274_v7, %v2278_v59  ;;  %v5913_v55 = vpop.permute.xlu1 %3300  ;;  %v5923_v25 = vpop.permute.xlu0 %2954 }
 0x175   : > { %3474 = vrot.lane.b32.xlu1 %v4568_v37, %s4911_s9  ;;  %v2283_v22 = vor.u32 %v2282_v44, %v2278_v59  ;;  %v1215_v16 = vshrl.u32 %v943_v43, 16  ;;  %v1218_v1 = vshll.u32 %v943_v43, 16  ;;  %v5910_v56 = vrot.slane %v1883_v4, 5 }
 0x176   : > { %v1880_v33 = vor.u32 %v1879_v12, %v1876_v46  ;;  %v1224_v37 = vshll.u32 %v4863_v19, 16  ;;  %v1228_v40 = vshrl.u32 %v4863_v19, 16  ;;  %v1234_v39 = vshll.u32 %v4864_v17, 16  ;;  %v2587_v46 = vld [vmem:[#allocation2 + $0x84] sm:$0xe] }
 0x177   : > { %v2284_v5 = vrot.slane %v2283_v22, 4  ;;  %2972 = vrot.lane.b32.xlu0 %v4477_v42, %s4904_s26  ;;  %v1217_v28 = vrot.slane %v1215_v16, 4  ;;  %v1220_v44 = vrot.slane %v1218_v1, 5  ;;  %v1889_v59 = vrot.slane %v1887_v8, 4 }
 0x178   : > { %v1226_v2 = vrot.slane %v1224_v37, 5  ;;  %v1898_v43 = vshrl.u32 %v1563_v51, 16  ;;  %v4492_v22 = vcombine.low %v5881_v15, %v5889_v41  ;;  %v1230_v42 = vrot.slane %v1228_v40, 4 }
 0x179   : > { %v2289_v7 = vsel %vm5034_vm7, %v2284_v5, %v2288_v18  ;;  %v1221_v12 = vor.u32 %v1220_v44, %v1217_v28  ;;  %v5921_v16 = vsel %vm3490_vm14, %v4432_v53, %v5628_v21  ;;  %v1881_v17 = vrot.slane %v1880_v33, 4  ;;  %v1363_v33 = vld [vmem:[#allocation2 + $0x3c] sm:$0xe] }
 0x17a   : > { %v4547_v4 = vcombine.low %v2279_v23, %v2289_v7  ;;  %v1236_v1 = vrot.slane %v1234_v39, 5  ;;  %v1901_v19 = vshll.u32 %v1563_v51, 16  ;;  %v1231_v8 = vor.u32 %v1230_v42, %v1226_v2  ;;  %v5927_v23 = vld [vmem:[#allocation2 + $0xac] sm:$0xf] }
 0x17b   : > { %3066 = vrot.lane.b32.xlu0 %v4492_v22, %s4906_s28  ;;  %v1222_v18 = vrot.slane %v1221_v12, 4  ;;  %v4425_v15 = vrot.slane %v2587_v46, 9  ;;  %v2707_v5 = vrot.slane %v5842_v38, 5  ;;  %v1900_v37 = vrot.slane %v1898_v43, 4  ;;  %v5937_v22 = vpop.permute.xlu1 %3046  ;;  %v4865_v12 = vld [vmem:[#allocation2 + $0x40] sm:$0xf] }
 0x17c   : > { %3384 = vrot.lane.b32.xlu1 %v4547_v4, %s4910_s8  ;;  %v4493_v21 = vcombine.low %v1563_v51, %v5927_v23  ;;  %v2710_v53 = vrot.slane %v5837_v6, 5  ;;  %v1890_v39 = vor.u32 %v1889_v59, %v5910_v56  ;;  %v1232_v44 = vrot.slane %v1231_v8, 4  ;;  %v5935_v4 = vld [vmem:[#allocation2 + $0xa4] sm:$0x1] }
 0x17d   : > { %v1227_v28 = vsel %vm5034_vm7, %v1222_v18, %v1226_v2  ;;  %v1903_v40 = vrot.slane %v1901_v19, 5  ;;  %v2709_v7 = vrot.slane %v2707_v5, 4  ;;  %v1911_v38 = vshrl.u32 %v5927_v23, 16 }
 0x17e   : > { %v1886_v51 = vsel %vm5034_vm7, %v1881_v17, %v5910_v56  ;;  %v1891_v6 = vrot.slane %v1890_v39, 4  ;;  %v1893_v59 = vshll.u32 %v5935_v4, 16  ;;  %v1237_v43 = vsel %vm5034_vm7, %v1232_v44, %v1236_v1  ;;  %v4866_v56 = vld [vmem:[#allocation2 + $0x44] sm:$0x1]  ;;  %v5951_v39 = vpop.permute.xlu0 %2888  ;;  %v5953_v44 = vld [vmem:[#allocation2 + $0xb0] sm:$0x1] }
 0x17f   : > { %3068 = vrot.lane.b32.xlu0 %v4493_v21, %s4906_s28  ;;  %v2708_v2 = vsel %vm5025_vm4, %v4425_v15, %v2707_v5  ;;  %v4389_v46 = vrot.slane %v1363_v33, 9  ;;  %v1462_v42 = vrot.slane %v4865_v12, 5  ;;  %v4458_v19 = vcombine.low %v1227_v28, %v1237_v43  ;;  %v4867_v43 = vld [vmem:[#allocation2 + $0x10] sm:$0xf]  ;;  %v4868_v12 = vld [vmem:[#allocation2 + $0xc] sm:$0xf]  ;;  %v5961_v47 = vpop.permute.xlu1 %3124 }
 0x180   : > { %v2711_v18 = vsel %vm5025_vm4, %v2709_v7, %v2710_v53  ;;  %v1895_v8 = vrot.slane %v1893_v59, 5  ;;  %v1465_v17 = vrot.slane %v4866_v56, 5  ;;  %vm3572_vm0 = vcmask 195584  }
 0x181   : > { %v1464_v1 = vrot.slane %v1462_v42, 4  ;;  %v1904_v21 = vor.u32 %v1903_v40, %v1900_v37  ;;  %2886 = vrot.lane.b32.xlu1 %v4458_v19, %s4905_s27  ;;  %v1907_v5 = vshll.u32 %v5927_v23, 16  ;;  %v1913_v33 = vrot.slane %v1911_v38, 4  ;;  %v5967_v38 = vld [vmem:[#allocation2 + $0x3c] sm:$0xf] }
 0x182   : > { %v1896_v15 = vsel %vm5034_vm7, %v1891_v6, %v1895_v8  ;;  %v1917_v53 = vshll.u32 %v5953_v44, 16  ;;  %v2119_v28 = vrot.slane %v5889_v41, 5  ;;  %v4569_v7 = vcombine.low %v2708_v2, %v2711_v18  ;;  %v1981_v8 = vld [vmem:[#allocation2 + $0x9c] sm:$0xe] }
 0x183   : > { %v4508_v59 = vcombine.low %v1886_v51, %v1896_v15  ;;  %v4433_v56 = vcombine.low %v4868_v12, %v4867_v43  ;;  %v1463_v37 = vsel %vm5025_vm4, %v4389_v46, %v1462_v42  ;;  %v1466_v40 = vsel %vm5025_vm4, %v1464_v1, %v1465_v17  ;;  %v1366_v42 = vld [vmem:[#allocation2 + $0x60] sm:$0xe]  ;;  %v963_v12 = vld [vmem:[#allocation2 + $0x68] sm:$0x1] }
 0x184   : > { %v1905_v6 = vrot.slane %v1904_v21, 4  ;;  %v1909_v19 = vrot.slane %v1907_v5, 5  ;;  %v6986_v41 = vor.u32 %v5737_v58, %v5732_v26  ;;  %v6987_v18 = vshll.u32 %v5752_v35, 16  ;;  %v5990_v1 = vld [vmem:[#allocation2 + $0x40] sm:$0xf]  ;;  %v5992_v5 = vpop.permute.xlu0 %2966 }
 0x185   : > { %v3541_v46 = vsel %vm3539_vm15, %v5921_v16, %v5544_v9  ;;  %3146 = vrot.lane.b32.xlu0 %v4508_v59, %s4908_s30  ;;  %3476 = vrot.lane.b32.xlu1 %v4569_v7, %s4911_s9  ;;  %v3496_v26 = vsel %vm3490_vm14, %v4433_v56, %v5764_v11  ;;  %v1919_v35 = vrot.slane %v1917_v53, 5  ;;  %v940_v21 = vld [vmem:[#allocation2 + $0x64] sm:$0xf]  ;;  %6988 = vst [vmem:[#allocation16_spill] sm:$0xff] %v5992_v5  ;;  %v1682_v16 = vshrl.u32 %v5967_v38, 16 }
 0x186   : > { %v5972_v51 = vrot.slane %v6986_v41, 4  ;;  %v5977_v15 = vrot.slane %v6987_v18, 5  ;;  %v5985_v17 = vsel %vm3572_vm0, %v3541_v46, %v5570_v34  ;;  %v1914_v58 = vor.u32 %v1913_v33, %v1909_v19  ;;  %v1982_v33 = vld [vmem:[#allocation2 + $0xa8] sm:$0xe]  ;;  %v939_v18 = vld [vmem:[#allocation2 + $0x60] sm:$0xf] }
 0x187   : > { %v4469_v9 = vcombine.low %v1463_v37, %v1466_v40  ;;  %v4412_v59 = vrot.slane %v1981_v8, 9  ;;  %v2121_v43 = vrot.slane %v2119_v28, 4  ;;  %v1910_v34 = vsel %vm5034_vm7, %v1905_v6, %v1909_v19  ;;  %v6005_v8 = vpop.permute.xlu1 %3378 }
 0x188   : > { %v1915_v7 = vrot.slane %v1914_v58, 4  ;;  %v2122_v41 = vrot.slane %v5935_v4, 5  ;;  %v4392_v11 = vrot.slane %v1366_v42, 9  ;;  %v6000_v53 = vsel %vm3539_vm15, %v3496_v26, %v5633_v63  ;;  %v4869_v42 = vld [vmem:[#allocation2 + $0x30] sm:$0xf] }
 0x189   : > { %v1685_v56 = vshll.u32 %v5967_v38, 16  ;;  %v2120_v37 = vsel %vm5025_vm4, %v4412_v59, %v2119_v28  ;;  %v1483_v40 = vrot.slane %v940_v21, 5  ;;  %2956 = vrot.lane.b32.xlu1 %v4469_v9, %s4904_s26  ;;  %v1486_v19 = vrot.slane %v963_v12, 5 }
 0x18a   : > { %v1920_v6 = vsel %vm5034_vm7, %v1915_v7, %v1919_v35  ;;  %v2123_v4 = vsel %vm5025_vm4, %v2121_v43, %v2122_v41  ;;  %v2126_v63 = vrot.slane %v5927_v23, 5  ;;  %v4484_v28 = vcombine.low %v5967_v38, %v5990_v1  ;;  %v6020_v7 = vpop.permute.xlu0 %2968 }
 0x18b   : > { %v4509_v46 = vcombine.low %v1910_v34, %v1920_v6  ;;  %v4413_v26 = vrot.slane %v1982_v33, 9  ;;  %v6016_v58 = vrot.slane %v1682_v16, 4  ;;  %v1484_v9 = vsel %vm5025_vm4, %v4392_v11, %v1483_v40  ;;  %v2170_v11 = vld [vmem:[#allocation2 + $0xa8] sm:$0xf] }
 0x18c   : > { %v1485_v35 = vrot.slane %v1483_v40, 4  ;;  %v2128_v59 = vrot.slane %v2126_v63, 4  ;;  %v4524_v23 = vcombine.low %v2120_v37, %v2123_v4  ;;  %v2129_v43 = vrot.slane %v5953_v44, 5  ;;  %v6029_v44 = vld [vmem:[#allocation2 + $0x48] sm:$0xf] }
 0x18d   : > { %3148 = vrot.lane.b32.xlu0 %v4509_v46, %s4908_s30  ;;  %v1167_v34 = vshrl.u32 %v939_v18, 16  ;;  %v1170_v41 = vshll.u32 %v939_v18, 16  ;;  %3050 = vrot.lane.b32.xlu1 %v4484_v28, %s4906_s28  ;;  %v1176_v16 = vshll.u32 %v940_v21, 16  ;;  %v1180_v33 = vshrl.u32 %v940_v21, 16  ;;  %v4870_v46 = vld [vmem:[#allocation2 + $0x34] sm:$0xf]  ;;  %v6031_v18 = vpop.permute.xlu1 %2870 }
 0x18e   : > { %v1487_v38 = vsel %vm5025_vm4, %v1485_v35, %v1486_v19  ;;  %v1186_v6 = vshll.u32 %v963_v12, 16  ;;  %v2127_v2 = vsel %vm5025_vm4, %v4413_v26, %v2126_v63  ;;  %v4436_v37 = vcombine.low %v4869_v42, %v4870_v46  ;;  %v6035_v12 = vld [vmem:[#allocation2 + $0xac] sm:$0xf] }
 0x18f   : > { %v4472_v40 = vcombine.low %v1484_v9, %v1487_v38  ;;  %v1169_v4 = vrot.slane %v1167_v34, 4  ;;  %v2130_v28 = vsel %vm5025_vm4, %v2128_v59, %v2129_v43  ;;  %v1172_v19 = vrot.slane %v1170_v41, 5  ;;  %v2172_v43 = vld [vmem:[#allocation2 + $0xb4] sm:$0xf]  ;;  %v6044_v41 = vpop.permute.xlu0 %3062 }
 0x190   : > { %v1178_v35 = vrot.slane %v1176_v16, 5  ;;  %v1182_v21 = vrot.slane %v1180_v33, 4  ;;  %v1687_v9 = vrot.slane %v1685_v56, 5  ;;  %v3505_v63 = vsel %vm3490_vm14, %v4436_v37, %v5859_v14  ;;  %6989 = vst [vmem:[#allocation17_spill] sm:$0xff] %v6044_v41 }
 0x191   : > { %3226 = vrot.lane.b32.xlu0 %v4524_v23, %s4907_s29  ;;  %v2483_v42 = vshrl.u32 %v2170_v11, 16  ;;  %v2486_v26 = vshll.u32 %v2170_v11, 16  ;;  %2962 = vrot.lane.b32.xlu1 %v4472_v40, %s4904_s26  ;;  %v1173_v34 = vor.u32 %v1172_v19, %v1169_v4  ;;  %v1188_v46 = vrot.slane %v1186_v6, 5  ;;  %v6049_v19 = vld [vmem:[#allocation2 + $0xb8] sm:$0xf]  ;;  %v6055_v61 = vpop.permute.xlu1 %3460 }
 0x192   : > { %v1183_v38 = vor.u32 %v1182_v21, %v1178_v35  ;;  %v1706_v59 = vshrl.u32 %v6029_v44, 16  ;;  %v4525_v56 = vcombine.low %v2127_v2, %v2130_v28  ;;  %v2496_v23 = vshrl.u32 %v6035_v12, 16 }
 0x193   : > { %v4540_v16 = vcombine.low %v2170_v11, %v6035_v12  ;;  %v1709_v14 = vshll.u32 %v6029_v44, 16  ;;  %v1174_v33 = vrot.slane %v1173_v34, 4  ;;  %v2485_v40 = vrot.slane %v2483_v42, 4 }
 0x194   : > { %v1184_v37 = vrot.slane %v1183_v38, 4  ;;  %v2488_v4 = vrot.slane %v2486_v26, 5  ;;  %v1708_v6 = vrot.slane %v1706_v59, 4  ;;  %v1719_v21 = vshrl.u32 %v6041_v32, 16 }
 0x195   : > { %3228 = vrot.lane.b32.xlu0 %v4525_v56, %s4907_s29  ;;  %v4485_v2 = vcombine.low %v6029_v44, %v6041_v32  ;;  %v2507_v28 = vshrl.u32 %v2172_v43, 16  ;;  %v1179_v11 = vsel %vm5034_vm7, %v1174_v33, %v1178_v35  ;;  %v1711_v26 = vrot.slane %v1709_v14, 5  ;;  %v6070_v14 = vpop.permute.xlu0 %3064 }
 0x196   : > { %v1189_v42 = vsel %vm5034_vm7, %v1184_v37, %v1188_v46  ;;  %v2510_v34 = vshll.u32 %v2172_v43, 16  ;;  %v2520_v59 = vshrl.u32 %v6049_v19, 16  ;;  %v4541_v56 = vcombine.low %v2172_v43, %v6049_v19  ;;  %v6074_v43 = vld [vmem:[#allocation2 + $0xb0] sm:$0x1] }
 0x197   : > { %v4456_v38 = vcombine.low %v1179_v11, %v1189_v42  ;;  %v1688_v44 = vor.u32 %v1687_v9, %v6016_v58  ;;  %v2509_v41 = vrot.slane %v2507_v28, 4  ;;  %v1691_v13 = vshll.u32 %v5990_v1, 16 }
 0x198   : > { %v6990_v35 = vshrl.u32 %v5990_v1, 16  ;;  %v1701_v46 = vshll.u32 %v6063_v50, 16  ;;  %v2489_v11 = vor.u32 %v2488_v4, %v2485_v40  ;;  %v2492_v58 = vshll.u32 %v6035_v12, 16 }
 0x199   : > { %2882 = vrot.lane.b32.xlu1 %v4456_v38, %s4905_s27  ;;  %3322 = vrot.lane.b32.xlu0 %v4540_v16, %s4909_s7  ;;  %v1689_v37 = vrot.slane %v1688_v44, 4  ;;  %v2498_v9 = vrot.slane %v2496_v23, 4  ;;  %v2512_v28 = vrot.slane %v2510_v34, 5  ;;  %v1693_v42 = vrot.slane %v1691_v13, 5  ;;  %v6083_v44 = vpop.permute.xlu1 %2952 }
 0x19a   : > { %v1697_v33 = vrot.slane %v6990_v35, 4  ;;  %v2502_v5 = vshll.u32 %v6074_v43, 16  ;;  %v6080_v35 = vsel %vm3539_vm15, %v3505_v63, %v5923_v25  ;;  %v2490_v31 = vrot.slane %v2489_v11, 4  ;;  %v6089_v63 = vld [vmem:[#allocation2 + $0x50] sm:$0x1] }
 0x19b   : > { %6991 = vst [vmem:[#allocation18_spill] sm:$0xff] %v6080_v35  ;;  %v2494_v29 = vrot.slane %v2492_v58, 5  ;;  %v1712_v38 = vor.u32 %v1711_v26, %v1708_v6  ;;  %v1715_v16 = vshll.u32 %v6041_v32, 16  ;;  %v1694_v40 = vsel %vm5034_vm7, %v1689_v37, %v1693_v42 }
 0x19c   : > { %v1698_v4 = vor.u32 %v1697_v33, %v1693_v42  ;;  %v1703_v23 = vrot.slane %v1701_v46, 5  ;;  %v1721_v34 = vrot.slane %v1719_v21, 4  ;;  %v2504_v25 = vrot.slane %v2502_v5, 5  ;;  %v6093_v33 = vpop.permute.xlu0 %3142 }
 0x19d   : > { %3052 = vrot.lane.b32.xlu1 %v4485_v2, %s4906_s28  ;;  %3324 = vrot.lane.b32.xlu0 %v4541_v56, %s4909_s7  ;;  %v2499_v13 = vor.u32 %v2498_v9, %v2494_v29  ;;  %v1713_v6 = vrot.slane %v1712_v38, 4  ;;  %v1717_v26 = vrot.slane %v1715_v16, 5  ;;  %v1725_v58 = vshll.u32 %v6089_v63, 16  ;;  %6992 = vst [vmem:[#allocation19_spill] sm:$0xff] %v6093_v33  ;;  %v1973_v9 = vld [vmem:[#allocation2 + $0x3c] sm:$0xe] }
 0x19e   : > { %v1699_v11 = vrot.slane %v1698_v4, 4  ;;  %v2513_v35 = vor.u32 %v2512_v28, %v2509_v41  ;;  %v2516_v37 = vshll.u32 %v6049_v19, 16  ;;  %v2495_v21 = vsel %vm5034_vm7, %v2490_v31, %v2494_v29  ;;  %v6099_v38 = vld [vmem:[#allocation2 + $0xbc] sm:$0x1]  ;;  %v6104_v31 = vpop.permute.xlu1 %3206 }
 0x19f   : > { %v2500_v2 = vrot.slane %v2499_v13, 4  ;;  %v1722_v46 = vor.u32 %v1721_v34, %v1717_v26  ;;  %v2522_v56 = vrot.slane %v2520_v59, 4  ;;  %v1727_v42 = vrot.slane %v1725_v58, 5  ;;  %v1974_v58 = vld [vmem:[#allocation2 + $0x48] sm:$0xe] }
 0x1a0   : > { %v1704_v5 = vsel %vm5034_vm7, %v1699_v11, %v1703_v23  ;;  %v2514_v16 = vrot.slane %v2513_v35, 4  ;;  %v2518_v4 = vrot.slane %v2516_v37, 5  ;;  %v2526_v45 = vshll.u32 %v6099_v38, 16  ;;  %v2590_v35 = vld [vmem:[#allocation2 + $0xa8] sm:$0xe] }
 0x1a1   : > { %v4500_v41 = vcombine.low %v1694_v40, %v1704_v5  ;;  %v2505_v28 = vsel %vm5034_vm7, %v2500_v2, %v2504_v25  ;;  %v1723_v33 = vrot.slane %v1722_v46, 4  ;;  %v3607_v29 = vsel %vm3605_vm1, %v5985_v17, %v5792_v60  ;;  %v4871_v37 = vld [vmem:[#allocation2 + $0x84] sm:$0xf]  ;;  %v6119_v2 = vpop.permute.xlu0 %3144 }
 0x1a2   : > { %v4556_v59 = vcombine.low %v2495_v21, %v2505_v28  ;;  %v1718_v23 = vsel %vm5034_vm7, %v1713_v6, %v1717_v26  ;;  %v2523_v34 = vor.u32 %v2522_v56, %v2518_v4  ;;  %v2528_v13 = vrot.slane %v2526_v45, 5  ;;  %v4872_v6 = vld [vmem:[#allocation2 + $0x88] sm:$0xf]  ;;  %v6132_v28 = vpop.permute.xlu1 %3048 }
 0x1a3   : > { %3130 = vrot.lane.b32.xlu1 %v4500_v41, %s4908_s30  ;;  %v1728_v40 = vsel %vm5034_vm7, %v1723_v33, %v1727_v42  ;;  %v4404_v25 = vrot.slane %v1973_v9, 9  ;;  %v2063_v11 = vrot.slane %v5990_v1, 5  ;;  %v2519_v60 = vsel %vm5034_vm7, %v2514_v16, %v2518_v4  ;;  %v2591_v16 = vld [vmem:[#allocation2 + $0xb4] sm:$0xe] }
 0x1a4   : > { %3402 = vrot.lane.b32.xlu0 %v4556_v59, %s4910_s8  ;;  %v2524_v17 = vrot.slane %v2523_v34, 4  ;;  %v4443_v26 = vcombine.low %v4871_v37, %v4872_v6  ;;  %v2066_v21 = vrot.slane %v6063_v50, 5  ;;  %v4501_v46 = vcombine.low %v1718_v23, %v1728_v40  ;;  %v6159_v6 = vld [vmem:[#allocation2 + $0xac] sm:$0xf] }
 0x1a5   : > { %v2065_v33 = vrot.slane %v2063_v11, 4  ;;  %v4428_v45 = vrot.slane %v2590_v35, 9  ;;  %v2728_v56 = vrot.slane %v6035_v12, 5  ;;  %v2064_v9 = vsel %vm5025_vm4, %v4404_v25, %v2063_v11  ;;  %v2154_v11 = vld [vmem:[#allocation2 + $0x48] sm:$0xf] }
 0x1a6   : > { %v2529_v1 = vsel %vm5034_vm7, %v2524_v17, %v2528_v13  ;;  %v2731_v5 = vrot.slane %v6074_v43, 5  ;;  %v4405_v42 = vrot.slane %v1974_v58, 9  ;;  %v3640_v59 = vsel %vm3638_vm2, %v3607_v29, %v5662_v48 }
 0x1a7   : > { %3132 = vrot.lane.b32.xlu1 %v4501_v46, %s4908_s30  ;;  %v4557_v50 = vcombine.low %v2519_v60, %v2529_v1  ;;  %v2067_v4 = vsel %vm5025_vm4, %v2065_v33, %v2066_v21  ;;  %v2729_v41 = vsel %vm5025_vm4, %v4428_v45, %v2728_v56  ;;  %v2730_v12 = vrot.slane %v2728_v56, 4  ;;  %v6168_v45 = vpop.permute.xlu1 %3302 }
 0x1a8   : > { %v3526_v43 = vsel %vm3490_vm14, %v4443_v26, %v5951_v39  ;;  %v2070_v23 = vrot.slane %v6041_v32, 5  ;;  %v2073_v34 = vrot.slane %v6089_v63, 5  ;;  %v4516_v35 = vcombine.low %v2064_v9, %v2067_v4  ;;  %v6147_v32 = vpop.permute.xlu0 %3222  ;;  %v1372_v26 = vld [vmem:[#allocation2 + $0xa8] sm:$0xe] }
 0x1a9   : > { %3404 = vrot.lane.b32.xlu0 %v4557_v50, %s4910_s8  ;;  %v2732_v40 = vsel %vm5025_vm4, %v2730_v12, %v2731_v5  ;;  %v4429_v13 = vrot.slane %v2591_v16, 9  ;;  %v2735_v25 = vrot.slane %v6049_v19, 5  ;;  %v2738_v39 = vrot.slane %v6099_v38, 5  ;;  %v6175_v5 = vld [vmem:[#allocation2 + $0x4c] sm:$0xf] }
 0x1aa   : > { %v4572_v58 = vcombine.low %v2729_v41, %v2732_v40  ;;  %v2071_v48 = vsel %vm5025_vm4, %v4405_v42, %v2070_v23  ;;  %v2072_v29 = vrot.slane %v2070_v23, 4  ;;  %v3576_v19 = vsel %vm3572_vm0, %v6000_v53, %v5709_v54  ;;  %v6166_v53 = vld [vmem:[#allocation2 + $0xb0] sm:$0x1]  ;;  %v2156_v42 = vld [vmem:[#allocation2 + $0x54] sm:$0xf] }
 0x1ab   : > { %3210 = vrot.lane.b32.xlu1 %v4516_v35, %s4907_s29  ;;  %v2736_v63 = vsel %vm5025_vm4, %v4429_v13, %v2735_v25  ;;  %v2737_v60 = vrot.slane %v2735_v25, 4  ;;  %v3563_v38 = vsel %vm3539_vm15, %v3526_v43, %v6020_v7  ;;  %v2291_v37 = vshrl.u32 %v2154_v11, 16  ;;  %v1565_v41 = vld [vmem:[#allocation2 + $0xb4] sm:$0xf]  ;;  %v6194_v25 = vld [vmem:[#allocation2 + $0xb8] sm:$0xf] }
 0x1ac   : > { %v2074_v17 = vsel %vm5025_vm4, %v2072_v29, %v2073_v34  ;;  %v3673_v33 = vsel %vm3671_vm3, %v3640_v59, %v5723_v27  ;;  %v2294_v54 = vshll.u32 %v2154_v11, 16  ;;  %v1282_v7 = vshll.u32 %v5857_v24, 16 }
 0x1ad   : > { %3482 = vrot.lane.b32.xlu0 %v4572_v58, %s4911_s9  ;;  %v4517_v21 = vcombine.low %v2071_v48, %v2074_v17  ;;  %v2739_v46 = vsel %vm5025_vm4, %v2737_v60, %v2738_v39  ;;  %v3609_v56 = vsel %vm3605_vm1, %v3576_v19, %v5961_v47  ;;  %v3706_v9 = vsel %vm3704_vm5, %v3673_v33, %v6005_v8  ;;  %v6181_v47 = vpop.permute.xlu0 %3224  ;;  %v6200_v39 = vpop.permute.xlu1 %3380  ;;  %v4873_v60 = vld [vmem:[#allocation2 + $0x58] sm:$0xf]  ;;  %v6208_v33 = vld [vmem:[#allocation2 + $0x50] sm:$0x1] }
 0x1ae   : > { %v4573_v1 = vcombine.low %v2736_v63, %v2739_v46  ;;  %v2293_v27 = vrot.slane %v2291_v37, 4  ;;  %v2296_v16 = vrot.slane %v2294_v54, 5  ;;  %v4398_v50 = vrot.slane %v1372_v26, 9  ;;  %v4837_v37 = vld [vmem:[%s6955_s3 + $0x20] ss:$0 sps:$4 sm:$0xff]  }
 0x1af   : > { %3212 = vrot.lane.b32.xlu1 %v4517_v21, %s4907_s29  ;;  %v1525_v4 = vrot.slane %v6159_v6, 5  ;;  %v4532_v12 = vcombine.low %v2154_v11, %v6175_v5  ;;  %v1528_v59 = vrot.slane %v6166_v53, 5  ;;  %v3739_v23 = vsel %vm3737_vm6, %v3706_v9, %v5867_v57 }
 0x1b0   : > { %v2315_v34 = vshrl.u32 %v2156_v42, 16  ;;  %v6190_v35 = vsel %vm3638_vm2, %v3609_v56, %v5847_v62  ;;  %v2304_v40 = vshrl.u32 %v6175_v5, 16  ;;  %4669 = vmatprep.mubr.msk.bf16.mxu0 %vm3813_vm8, %v3739_v23  ;;  %v2318_v13 = vshll.u32 %v2156_v42, 16  ;;  %v1983_v23 = vld [vmem:[#allocation2 + $0xb4] sm:$0xe] }
 0x1b1   : > { %3484 = vrot.lane.b32.xlu0 %v4573_v1, %s4911_s9  ;;  %v1526_v8 = vsel %vm5025_vm4, %v4398_v50, %v1525_v4  ;;  %v1527_v43 = vrot.slane %v1525_v4, 4  ;;  %v1922_v11 = vshrl.u32 %v1565_v41, 16  ;;  %v2672_v58 = vrot.slane %v6175_v5, 5  ;;  %v6213_v50 = vpop.permute.xlu0 %3318 }
 0x1b2   : > { %v2317_v48 = vrot.slane %v2315_v34, 4  ;;  %v1925_v29 = vshll.u32 %v1565_v41, 16  ;;  %v2320_v63 = vrot.slane %v2318_v13, 5  ;;  %v4533_v19 = vcombine.low %v2156_v42, %v4873_v60 }
 0x1b3   : > { %3306 = vrot.lane.b32.xlu1 %v4532_v12, %s4909_s7  ;;  %v1529_v57 = vsel %vm5025_vm4, %v1527_v43, %v1528_v59  ;;  %v1924_v17 = vrot.slane %v1922_v11, 4  ;;  %v1935_v21 = vshrl.u32 %v6194_v25, 16  ;;  %v3596_v46 = vsel %vm3572_vm0, %v3563_v38, %v6070_v14  ;;  %v1583_v14 = vld [vmem:[#allocation2 + $0xbc] sm:$0x1]  ;;  %v6224_v11 = vpop.permute.xlu1 %2872 }
 0x1b4   : > { %v4478_v62 = vcombine.low %v1526_v8, %v1529_v57  ;;  %v1927_v26 = vrot.slane %v1925_v29, 5  ;;  %v2297_v54 = vor.u32 %v2296_v16, %v2293_v27  ;;  %v2321_v56 = vor.u32 %v2320_v63, %v2317_v48  ;;  %v4838_v27 = vld [vmem:[%s6955_s3 + $0x18] sm:$0xff]  }
 0x1b5   : > { %v2300_v1 = vshll.u32 %v6175_v5, 16  ;;  %v2306_v9 = vrot.slane %v2304_v40, 4  ;;  %v2310_v42 = vshll.u32 %v6208_v33, 16  ;;  %v4494_v4 = vcombine.low %v1565_v41, %v6194_v25 }
 0x1b6   : > { %2974 = vrot.lane.b32.xlu0 %v4478_v62, %s4904_s26  ;;  %v2298_v12 = vrot.slane %v2297_v54, 4  ;;  %vm3846_vm9 = vcmask 1043456   ;;  %v1928_v38 = vor.u32 %v1927_v26, %v1924_v17  ;;  %v6220_v16 = vrot.slane %v2321_v56, 4 }
 0x1b7   : > { %3308 = vrot.lane.b32.xlu1 %v4533_v19, %s4909_s7  ;;  %v2302_v59 = vrot.slane %v2300_v1, 5  ;;  %v2675_v8 = vrot.slane %v6208_v33, 5  ;;  %4711 = vmatprep.subr.msk.bf16.mxu0 %vm3846_vm9, %v4837_v37  ;;  %v1931_v43 = vshll.u32 %v6194_v25, 16  ;;  %v1937_v41 = vrot.slane %v1935_v21, 4  ;;  %v2582_v1 = vld [vmem:[#allocation2 + $0x48] sm:$0xe] }
 0x1b8   : > { %4712 = vmatprep.subr.msk.bf16.mxu1 %vm3846_vm9, %v4837_v37  ;;  %v1929_v34 = vrot.slane %v1928_v38, 4  ;;  %v1941_v40 = vshll.u32 %v1583_v14, 16  ;;  %v3848_v13 = vsel %vm3846_vm9, %v4837_v37, 0  ;;  %v2312_v48 = vrot.slane %v2310_v42, 5  ;;  %v4839_v37 = vld [vmem:[%s6955_s3 + $0x10] sm:$0xff]  }
 0x1b9   : > { %v2307_v57 = vor.u32 %v2306_v9, %v2302_v59  ;;  %v1933_v29 = vrot.slane %v1931_v43, 5  ;;  %4660 = vmatpush3.bf16.msra.mxu0 %v3848_v13  ;;  %v2324_v62 = vshll.u32 %v4873_v60, 16  ;;  %v2303_v63 = vsel %vm5034_vm7, %v2298_v12, %v2302_v59  ;;  %4706 = vmatpush3.bf16.msra.mxu1 %v3848_v13  ;;  %v6233_v9 = vpop.permute.xlu0 %3320 }
 0x1ba   : > { %3070 = vrot.lane.b32.xlu0 %v4494_v4, %s4906_s28  ;;  %v2328_v19 = vshrl.u32 %v4873_v60, 16  ;;  %4661 = vmatprep.subr.bf16.mxu0 %v4838_v27  ;;  %v4414_v17 = vrot.slane %v1983_v23, 9  ;;  %v2133_v26 = vrot.slane %v6194_v25, 5  ;;  %v1943_v54 = vrot.slane %v1941_v40, 5  ;;  %v6237_v25 = vld [vmem:[#allocation2 + $0xc0] sm:$0xf] }
 0x1bb   : > { %v2308_v21 = vrot.slane %v2307_v57, 4  ;;  %v1938_v33 = vor.u32 %v1937_v41, %v1933_v29  ;;  %v2326_v56 = vrot.slane %v2324_v62, 5  ;;  %4702 = vmatprep.subr.bf16.mxu1 %v4838_v27  ;;  %v1934_v60 = vsel %vm5034_vm7, %v1929_v34, %v1933_v29  ;;  %v4841_v57 = vld [vmem:[%s6955_s3 + $0x8] sm:$0xff]  }
 0x1bc   : > { %v2330_v42 = vrot.slane %v2328_v19, 4  ;;  %v2135_v4 = vrot.slane %v2133_v26, 4  ;;  %v2136_v12 = vrot.slane %v1583_v14, 5  ;;  %v2134_v43 = vsel %vm5025_vm4, %v4414_v17, %v2133_v26  ;;  %v6247_v14 = vld [vmem:[#allocation2 + $0xc4] sm:$0xf] }
 0x1bd   : > { %v2313_v38 = vsel %vm5034_vm7, %v2308_v21, %v2312_v48  ;;  %v1939_v59 = vrot.slane %v1938_v33, 4  ;;  %4662 = vmatpush3.bf16.msra.mxu0 %v4838_v27  ;;  %v3629_v23 = vsel %vm3605_vm1, %v3596_v46, %v6119_v2  ;;  %v4420_v13 = vrot.slane %v2582_v1, 9  ;;  %v6252_v48 = vpop.permute.xlu1 %3126  ;;  %4707 = vmatpush3.bf16.msra.mxu1 %v4838_v27 }
 0x1be   : > { %v4548_v41 = vcombine.low %v2303_v63, %v2313_v38  ;;  %v2331_v40 = vor.u32 %v2330_v42, %v2326_v56  ;;  %v2137_v34 = vsel %vm5025_vm4, %v2135_v4, %v2136_v12  ;;  %4663 = vmatprep.subr.bf16.mxu0 %v4839_v37  ;;  %v2327_v2 = vsel %vm5034_vm7, %v6220_v16, %v2326_v56  ;;  %v4842_v42 = vld [vmem:[%s6955_s3] sm:$0xff]  }
 0x1bf   : > { %v1944_v29 = vsel %vm5034_vm7, %v1939_v59, %v1943_v54  ;;  %v2674_v46 = vrot.slane %v2672_v58, 4  ;;  %v2531_v62 = vshrl.u32 %v6237_v25, 16  ;;  %4703 = vmatprep.subr.bf16.mxu1 %v4839_v37  ;;  %v4526_v17 = vcombine.low %v2134_v43, %v2137_v34  ;;  %v6271_v54 = vpop.permute.xlu0 %3398 }
 0x1c0   : > { %3386 = vrot.lane.b32.xlu1 %v4548_v41, %s4910_s8  ;;  %v4510_v63 = vcombine.low %v1934_v60, %v1944_v29  ;;  %v2332_v19 = vrot.slane %v2331_v40, 4  ;;  %v2534_v27 = vshll.u32 %v6237_v25, 16  ;;  %v2673_v26 = vsel %vm5025_vm4, %v4420_v13, %v2672_v58  ;;  %v6279_v58 = vld [vmem:[#allocation2 + $0xa4] sm:$0x1]  ;;  %v2588_v60 = vld [vmem:[#allocation2 + $0x90] sm:$0xe] }
 0x1c1   : > { %v2676_v16 = vsel %vm5025_vm4, %v2674_v46, %v2675_v8  ;;  %v2533_v21 = vrot.slane %v2531_v62, 4  ;;  %v2544_v33 = vshrl.u32 %v6247_v14, 16  ;;  %4664 = vmatpush3.bf16.msra.mxu0 %v4839_v37  ;;  %v4542_v5 = vcombine.low %v6237_v25, %v6247_v14  ;;  %v2192_v25 = vld [vmem:[#allocation2 + $0xc8] sm:$0x1]  ;;  %4708 = vmatpush3.bf16.msra.mxu1 %v4839_v37  ;;  %v6296_v40 = vpop.permute.xlu1 %3208  ;;  %v2592_v29 = vld [vmem:[#allocation2 + $0xc0] sm:$0xe] }
 0x1c2   : > { %3150 = vrot.lane.b32.xlu0 %v4510_v63, %s4908_s30  ;;  %v2337_v56 = vsel %vm5034_vm7, %v2332_v19, %v5977_v15  ;;  %v2536_v1 = vrot.slane %v2534_v27, 5  ;;  %v2471_v8 = vsel %vm5034_vm7, %v5972_v51, %v5770_v49  ;;  %4665 = vmatprep.subr.bf16.mxu0 %v4841_v57  ;;  %v2475_v15 = vor.u32 %v5787_v0, %v5770_v49 }
 0x1c3   : > { %v4549_v4 = vcombine.low %v2327_v2, %v2337_v56  ;;  %v2478_v12 = vshll.u32 %v6279_v58, 16  ;;  %v2540_v38 = vshll.u32 %v6247_v14, 16  ;;  %v2546_v43 = vrot.slane %v2544_v33, 4  ;;  %4704 = vmatprep.subr.bf16.mxu1 %v4841_v57  ;;  %v6309_v33 = vld [vmem:[#allocation2 + $0x90] sm:$0xf] }
 0x1c4   : > { %v2537_v59 = vor.u32 %v2536_v1, %v2533_v21  ;;  %v2550_v41 = vshll.u32 %v2192_v25, 16  ;;  %v6294_v51 = vsel %vm3638_vm2, %v3629_v23, %v6181_v47  ;;  %v2476_v34 = vrot.slane %v2475_v15, 4 }
 0x1c5   : > { %3388 = vrot.lane.b32.xlu1 %v4549_v4, %s4910_s8  ;;  %v2480_v49 = vrot.slane %v2478_v12, 5  ;;  %v2542_v0 = vrot.slane %v2540_v38, 5  ;;  %4666 = vmatpush3.bf16.msra.mxu0 %v4841_v57  ;;  %v4426_v13 = vrot.slane %v2588_v60, 9  ;;  %v4564_v37 = vcombine.low %v2673_v26, %v2676_v16  ;;  %v6326_v12 = vld [vmem:[#allocation2 + $0x94] sm:$0xf] }
 0x1c6   : > { %3230 = vrot.lane.b32.xlu0 %v4526_v17, %s4907_s29  ;;  %v2538_v2 = vrot.slane %v2537_v59, 4  ;;  %v2552_v46 = vrot.slane %v2550_v41, 5  ;;  %v6993_v62 = vrot.slane %v5619_v52, 5  ;;  %4667 = vmatprep.subr.bf16.mxu0 %v4842_v42  ;;  %v2742_v21 = vrot.slane %v6247_v14, 5  ;;  %v4876_v41 = vld [vmem:[#allocation2 + $0x18] sm:$0xf] }
 0x1c7   : > { %v2481_v23 = vsel %vm5034_vm7, %v2476_v34, %v2480_v49  ;;  %v2547_v63 = vor.u32 %v2546_v43, %v2542_v0  ;;  %4709 = vmatpush3.bf16.msra.mxu1 %v4841_v57  ;;  %v6995_v56 = vrot.slane %v5669_v36, 5  ;;  %v4430_v52 = vrot.slane %v2592_v29, 9  ;;  %v4875_v43 = vld [vmem:[#allocation2 + $0x1c] sm:$0xf] }
 0x1c8   : > { %v2716_v47 = vrot.slane %v6993_v62, 4  ;;  %v6994_v19 = vmov %v6993_v62  ;;  %v6311_v17 = vpop.permute.xlu0 %2878  ;;  %v4555_v26 = vcombine.low %v2471_v8, %v2481_v23  ;;  %v2543_v16 = vsel %vm5034_vm7, %v2538_v2, %v2542_v0  ;;  %4705 = vmatprep.subr.bf16.mxu1 %v4842_v42  ;;  %v6329_v59 = vpop.permute.xlu1 %3462 }
 0x1c9   : > { %v2715_v27 = vsel %vm5025_vm4, %v4426_v13, %v6994_v19  ;;  %3466 = vrot.lane.b32.xlu1 %v4564_v37, %s4911_s9  ;;  %v2548_v60 = vrot.slane %v2547_v63, 4  ;;  %v2744_v4 = vrot.slane %v2742_v21, 4  ;;  %v2745_v15 = vrot.slane %v2192_v25, 5  ;;  %4668 = vmatpush3.bf16.msra.mxu0 %v4842_v42 }
 0x1ca   : > { %v2718_v1 = vsel %vm5025_vm4, %v2716_v47, %v6995_v56  ;;  %3326 = vrot.lane.b32.xlu0 %v4542_v5, %s4909_s7  ;;  %v3675_v57 = vsel %vm3671_vm3, %v6190_v35, %v5913_v55  ;;  %v1263_v36 = vshrl.u32 %v6309_v33, 16  ;;  %v1266_v8 = vshll.u32 %v6309_v33, 16  ;;  %v2589_v35 = vld [vmem:[#allocation2 + $0x9c] sm:$0xe]  ;;  %v6359_v56 = vld [vmem:[#allocation2 + $0x54] sm:$0xf] }
 0x1cb   : > { %v4570_v14 = vcombine.low %v2715_v27, %v2718_v1  ;;  %v1272_v38 = vshll.u32 %v6326_v12, 16  ;;  %v4434_v25 = vcombine.low %v4876_v41, %v4875_v43  ;;  %v2553_v5 = vsel %vm5034_vm7, %v2548_v60, %v2552_v46  ;;  %4710 = vmatpush3.bf16.msra.mxu1 %v4842_v42  ;;  %v6373_v60 = vld [vmem:[#allocation2 + $0x58] sm:$0xf] }
 0x1cc   : > { %v3708_v34 = vsel %vm3704_vm5, %v3675_v57, %v6200_v39  ;;  %v1276_v55 = vshrl.u32 %v6326_v12, 16  ;;  %v4558_v49 = vcombine.low %v2543_v16, %v2553_v5  ;;  %v2743_v0 = vsel %vm5025_vm4, %v4430_v52, %v2742_v21  ;;  %v6343_v62 = vpop.permute.xlu0 %3468  ;;  %v1365_v16 = vld [vmem:[#allocation2 + $0x54] sm:$0xe]  ;;  %v6361_v1 = vpop.permute.xlu1 %3304  ;;  %v6386_v5 = vld [vmem:[#allocation2 + $0x60] sm:$0xf] }
 0x1cd   : > { %v1265_v13 = vrot.slane %v1263_v36, 4  ;;  %v1268_v29 = vrot.slane %v1266_v8, 5  ;;  %3400 = vrot.lane.b32.xlu1 %v4555_v26, %s4910_s8  ;;  %v2746_v37 = vsel %vm5025_vm4, %v2744_v4, %v2745_v15  ;;  %v1274_v2 = vrot.slane %v1272_v38, 5  ;;  %v6376_v15 = vld [vmem:[#allocation2 + $0x58] sm:$0xf] }
 0x1ce   : > { %v1278_v46 = vrot.slane %v1276_v55, 4  ;;  %v3741_v39 = vsel %vm3737_vm6, %v3708_v34, %v6055_v61  ;;  %v1284_v42 = vrot.slane %v1282_v7, 5  ;;  %3406 = vrot.lane.b32.xlu0 %v4558_v49, %s4910_s8  ;;  %v6352_v23 = vsel %vm3671_vm3, %v6294_v51, %v6233_v9  ;;  %v4879_v55 = vld [vmem:[#allocation2 + $0x48] sm:$0xf] }
 0x1cf   : > { %v1269_v47 = vor.u32 %v1268_v29, %v1265_v13  ;;  %4670 = vmatmul.mubr.msk.bf16.vlgmr.msra.gmra.mxu0 %vm3813_vm8, %v3741_v39  ;;  %v4427_v63 = vrot.slane %v2589_v35, 9  ;;  %v3499_v19 = vsel %vm3490_vm14, %v4434_v25, %v6031_v18  ;;  %v6996_v27 = vrot.slane %v5631_v3, 5  ;;  %v4878_v3 = vld [vmem:[#allocation2 + $0x5c] sm:$0x1]  ;;  %v4880_v35 = vld [vmem:[#allocation2 + $0x4c] sm:$0xf] }
 0x1d0   : > { %v1279_v61 = vor.u32 %v1278_v46, %v1274_v2  ;;  %v2724_v24 = vrot.slane %v6279_v58, 5  ;;  %v4574_v7 = vcombine.low %v2743_v0, %v2746_v37  ;;  %v3545_v51 = vsel %vm3539_vm15, %v3499_v19, %v5896_v20  ;;  %v4881_v13 = vld [vmem:[#allocation2 + $0x28] sm:$0xf]  ;;  %v4882_v29 = vld [vmem:[#allocation2 + $0x24] sm:$0xf] }
 0x1d1   : > { %v2723_v21 = vrot.slane %v6996_v27, 4  ;;  %v1270_v26 = vrot.slane %v1269_v47, 4  ;;  %3478 = vrot.lane.b32.xlu1 %v4570_v14, %s4911_s9  ;;  %v6997_v58 = vmov %v6996_v27  ;;  %v1476_v4 = vrot.slane %v6373_v60, 5  ;;  %v6394_v39 = vld [vmem:[#allocation2 + $0x64] sm:$0xf] }
 0x1d2   : > { %v1280_v9 = vrot.slane %v1279_v61, 4  ;;  %3486 = vrot.lane.b32.xlu0 %v4574_v7, %s4911_s9  ;;  %v2722_v52 = vsel %vm5025_vm4, %v4427_v63, %v6997_v58  ;;  %v4391_v57 = vrot.slane %v1365_v16, 9  ;;  %v1730_v36 = vshrl.u32 %v6359_v56, 16 }
 0x1d3   : > { %v1275_v18 = vsel %vm5034_vm7, %v1270_v26, %v1274_v2  ;;  %v2725_v20 = vsel %vm5025_vm4, %v2723_v21, %v2724_v24  ;;  %v1479_v38 = vrot.slane %v4878_v3, 5  ;;  %v1478_v41 = vrot.slane %v1476_v4, 4 }
 0x1d4   : > { %v1285_v14 = vsel %vm5034_vm7, %v1280_v9, %v1284_v42  ;;  %v6383_v8 = vpop.permute.xlu0 %2880  ;;  %v1733_v25 = vshll.u32 %v6359_v56, 16  ;;  %v3578_v34 = vsel %vm3572_vm0, %v3545_v51, %v5937_v22  ;;  %v4438_v49 = vcombine.low %v4879_v55, %v4880_v35 }
 0x1d5   : > { %v4460_v43 = vcombine.low %v1275_v18, %v1285_v14  ;;  %v1743_v0 = vshrl.u32 %v6376_v15, 16  ;;  %v4435_v37 = vcombine.low %v4882_v29, %v4881_v13  ;;  %v4571_v2 = vcombine.low %v2722_v52, %v2725_v20  ;;  %v1575_v52 = vld [vmem:[#allocation2 + $0x5c] sm:$0x1] }
 0x1d6   : > { %v3611_v46 = vsel %vm3605_vm1, %v3578_v34, %v6252_v48  ;;  %v1477_v22 = vsel %vm5025_vm4, %v4391_v57, %v1476_v4  ;;  %v3511_v47 = vsel %vm3490_vm14, %v4438_v49, %v6311_v17  ;;  %v1732_v63 = vrot.slane %v1730_v36, 4  ;;  %v1576_v49 = vld [vmem:[#allocation2 + $0x68] sm:$0x1] }
 0x1d7   : > { %2890 = vrot.lane.b32.xlu1 %v4460_v43, %s4905_s27  ;;  %v3129_v42 = vpop.permute.xlu1 %3128  ;;  %v1754_v19 = vshrl.u32 %v6386_v5, 16  ;;  %v1480_v27 = vsel %vm5025_vm4, %v1478_v41, %v1479_v38  ;;  %v1735_v21 = vrot.slane %v1733_v25, 5  ;;  %v1757_v24 = vshll.u32 %v6386_v5, 16 }
 0x1d8   : > { %v2959_v61 = vpop.permute.xlu0 %2958  ;;  %v1739_v48 = vshll.u32 %v6376_v15, 16  ;;  %v3644_v7 = vsel %vm3638_vm2, %v3611_v46, %v6104_v31  ;;  %v1767_v26 = vshrl.u32 %v6394_v39, 16  ;;  %v1745_v16 = vrot.slane %v1743_v0, 4 }
 0x1d9   : > { %v6409_v17 = vsel %vm3539_vm15, %v3511_v47, %v2959_v61  ;;  %v3502_v51 = vsel %vm3490_vm14, %v4435_v37, %v6224_v11  ;;  %v4471_v18 = vcombine.low %v1477_v22, %v1480_v27  ;;  %v1756_v58 = vrot.slane %v1754_v19, 4  ;;  %v1975_v19 = vld [vmem:[#allocation2 + $0x54] sm:$0xe]  ;;  %v6442_v27 = vld [vmem:[#allocation2 + $0x60] sm:$0xf] }
 0x1da   : > { %v1741_v9 = vrot.slane %v1739_v48, 5  ;;  %v1763_v4 = vshll.u32 %v6394_v39, 16  ;;  %v1759_v20 = vrot.slane %v1757_v24, 5  ;;  %v1736_v31 = vor.u32 %v1735_v21, %v1732_v63 }
 0x1db   : > { %3480 = vrot.lane.b32.xlu1 %v4571_v2, %s4911_s9  ;;  %v1749_v57 = vshll.u32 %v1575_v52, 16  ;;  %v3677_v36 = vsel %vm3671_vm3, %v3644_v7, %v6168_v45  ;;  %v1769_v43 = vrot.slane %v1767_v26, 4  ;;  %v3547_v25 = vsel %vm3539_vm15, %v3502_v51, %v6083_v44 }
 0x1dc   : > { %v3383_v14 = vpop.permute.xlu1 %3382  ;;  %v1746_v3 = vor.u32 %v1745_v16, %v1741_v9  ;;  %v1765_v38 = vrot.slane %v1763_v4, 5  ;;  %v4486_v34 = vcombine.low %v6359_v56, %v6376_v15  ;;  %v1737_v55 = vrot.slane %v1736_v31, 4  ;;  %v6464_v31 = vld [vmem:[#allocation2 + $0x70] sm:$0xf] }
 0x1dd   : > { %v3710_v41 = vsel %vm3704_vm5, %v3677_v36, %v3383_v14  ;;  %v1751_v35 = vrot.slane %v1749_v57, 5  ;;  %v1760_v0 = vor.u32 %v1759_v20, %v1756_v58  ;;  %v1773_v29 = vshll.u32 %v1576_v49, 16 }
 0x1de   : > { %v3743_v11 = vsel %vm3737_vm6, %v3710_v41, %v6329_v59  ;;  %v1747_v45 = vrot.slane %v1746_v3, 4  ;;  %v1770_v13 = vor.u32 %v1769_v43, %v1765_v38  ;;  %v4487_v59 = vcombine.low %v6386_v5, %v6394_v39 }
 0x1df   : > { %2960 = vrot.lane.b32.xlu1 %v4471_v18, %s4904_s26  ;;  %4673 = vmatprep.mubr.msk.bf16.mxu0 %vm3813_vm8, %v3743_v11  ;;  %v1742_v44 = vsel %vm5034_vm7, %v1737_v55, %v1741_v9  ;;  %v3580_v56 = vsel %vm3572_vm0, %v3547_v25, %v6132_v28  ;;  %v2077_v2 = vrot.slane %v6376_v15, 5  ;;  %v1761_v22 = vrot.slane %v1760_v0, 4  ;;  %v6444_v15 = vld [vmem:[#allocation2 + $0x64] sm:$0xf]  ;;  %v1976_v9 = vld [vmem:[#allocation2 + $0x60] sm:$0xe] }
 0x1e0   : > { %v1752_v46 = vsel %vm5034_vm7, %v1747_v45, %v1751_v35  ;;  %v1771_v47 = vrot.slane %v1770_v13, 4  ;;  %v1775_v63 = vrot.slane %v1773_v29, 5  ;;  %v3613_v61 = vsel %vm3605_vm1, %v3580_v56, %v3129_v42  ;;  %v2160_v11 = vld [vmem:[#allocation2 + $0x6c] sm:$0xf]  ;;  %v6998_v25 = vld [vmem:[#allocation14_spill] sm:$0xff] }
 0x1e1   : > { %v4502_v21 = vcombine.low %v1742_v44, %v1752_v46  ;;  %v4406_v24 = vrot.slane %v1975_v19, 9  ;;  %v2079_v28 = vrot.slane %v2077_v2, 4  ;;  %v2080_v48 = vrot.slane %v1575_v52, 5  ;;  %v6478_v44 = vld [vmem:[#allocation2 + $0x68] sm:$0x1] }
 0x1e2   : > { %v3646_v7 = vsel %vm3638_vm2, %v3613_v61, %v6296_v40  ;;  %v1766_v26 = vsel %vm5034_vm7, %v1761_v22, %v1765_v38  ;;  %v1776_v16 = vsel %vm5034_vm7, %v1771_v47, %v1775_v63  ;;  %v2084_v42 = vrot.slane %v6394_v39, 5 }
 0x1e3   : > { %v6426_v37 = vpop.permute.xlu1 %3396  ;;  %3054 = vrot.lane.b32.xlu1 %v4486_v34, %s4906_s28  ;;  %v2339_v51 = vshrl.u32 %v6442_v27, 16  ;;  %v2342_v18 = vshll.u32 %v6442_v27, 16  ;;  %v2352_v58 = vshrl.u32 %v6444_v15, 16  ;;  %v2348_v52 = vshll.u32 %v6444_v15, 16 }
 0x1e4   : > { %v4503_v40 = vcombine.low %v1766_v26, %v1776_v16  ;;  %v2078_v4 = vsel %vm5025_vm4, %v4406_v24, %v2077_v2  ;;  %v2081_v14 = vsel %vm5025_vm4, %v2079_v28, %v2080_v48  ;;  %v3679_v39 = vsel %vm3671_vm3, %v3646_v7, %v6361_v1  ;;  %v6484_v28 = vld [vmem:[#allocation2 + $0x74] sm:$0x1]  ;;  %v4883_v48 = vld [vmem:[#allocation2 + $0x70] sm:$0xf]  ;;  %v4884_v7 = vld [vmem:[#allocation2 + $0x6c] sm:$0xf] }
 0x1e5   : > { %v4407_v57 = vrot.slane %v1976_v9, 9  ;;  %v2086_v36 = vrot.slane %v2084_v42, 4  ;;  %v2087_v3 = vrot.slane %v1576_v49, 5  ;;  %v2341_v43 = vrot.slane %v2339_v51, 4 }
 0x1e6   : > { %v2344_v41 = vrot.slane %v2342_v18, 5  ;;  %v2376_v55 = vshrl.u32 %v6464_v31, 16  ;;  %v2350_v1 = vrot.slane %v2348_v52, 5  ;;  %v2354_v35 = vrot.slane %v2352_v58, 4  ;;  %v6489_v18 = vld [vmem:[#allocation2 + $0xa8] sm:$0xf] }
 0x1e7   : > { %3056 = vrot.lane.b32.xlu1 %v4487_v59, %s4906_s28  ;;  %v6440_v5 = vpop.permute.xlu1 %3474  ;;  %v2372_v45 = vshll.u32 %v6464_v31, 16  ;;  %v4518_v0 = vcombine.low %v2078_v4, %v2081_v14  ;;  %v2085_v49 = vsel %vm5025_vm4, %v4407_v57, %v2084_v42  ;;  %v2088_v13 = vsel %vm5025_vm4, %v2086_v36, %v2087_v3  ;;  %v6999_v52 = vld [vmem:[#allocation12_spill] sm:$0xff] }
 0x1e8   : > { %v2363_v29 = vshrl.u32 %v2160_v11, 16  ;;  %v2366_v59 = vshll.u32 %v2160_v11, 16  ;;  %v2345_v56 = vor.u32 %v2344_v41, %v2341_v43  ;;  %v2355_v46 = vor.u32 %v2354_v35, %v2350_v1 }
 0x1e9   : > { %v2358_v22 = vshll.u32 %v6478_v44, 16  ;;  %v6481_v47 = vrot.slane %v2372_v45, 5  ;;  %v2378_v63 = vrot.slane %v2376_v55, 4  ;;  %v4519_v19 = vcombine.low %v2085_v49, %v2088_v13  ;;  %v6509_v45 = vld [vmem:[#allocation2 + $0xb4] sm:$0xf] }
 0x1ea   : > { %v2365_v61 = vrot.slane %v2363_v29, 4  ;;  %v2346_v24 = vrot.slane %v2345_v56, 4  ;;  %v4441_v26 = vcombine.low %v4884_v7, %v4883_v48  ;;  %v2356_v16 = vrot.slane %v2355_v46, 4  ;;  %v6516_v56 = vpop.permute.xlu0 %2892  ;;  %v2584_v46 = vld [vmem:[#allocation2 + $0x60] sm:$0xe] }
 0x1eb   : > { %3134 = vrot.lane.b32.xlu1 %v4502_v21, %s4908_s30  ;;  %v2368_v21 = vrot.slane %v2366_v59, 5  ;;  %v2360_v42 = vrot.slane %v2358_v22, 5  ;;  %v2379_v51 = vor.u32 %v2378_v63, %v6481_v47  ;;  %v4534_v58 = vcombine.low %v6442_v27, %v6444_v15  ;;  %v6514_v59 = vld [vmem:[#allocation2 + $0xb8] sm:$0xf]  ;;  %v7001_v63 = vld [vmem:[#allocation16_spill] sm:$0xff] }
 0x1ec   : > { %v2382_v14 = vshll.u32 %v6484_v28, 16  ;;  %v2351_v36 = vsel %vm5034_vm7, %v2346_v24, %v2350_v1  ;;  %v1311_v3 = vshrl.u32 %v6489_v18, 16  ;;  %v4535_v55 = vcombine.low %v2160_v11, %v6464_v31  ;;  %v7000_v1 = vld [vmem:[#allocation6_spill] sm:$0xff] }
 0x1ed   : > { %v2369_v4 = vor.u32 %v2368_v21, %v2365_v61  ;;  %v2361_v27 = vsel %vm5034_vm7, %v2356_v16, %v2360_v42  ;;  %v2380_v43 = vrot.slane %v2379_v51, 4  ;;  %v2686_v29 = vrot.slane %v6444_v15, 5 }
 0x1ee   : > { %v3385_v20 = vpop.permute.xlu1 %3384  ;;  %v2384_v13 = vrot.slane %v2382_v14, 5  ;;  %v2693_v11 = vrot.slane %v6464_v31, 5  ;;  %v1335_v48 = vshrl.u32 %v6509_v45, 16  ;;  %v1338_v7 = vshll.u32 %v6509_v45, 16 }
 0x1ef   : > { %v3712_v38 = vsel %vm3704_vm5, %v3679_v39, %v3385_v20  ;;  %3136 = vrot.lane.b32.xlu1 %v4503_v40, %s4908_s30  ;;  %v3520_v40 = vsel %vm3490_vm14, %v4441_v26, %v6999_v52  ;;  %v4885_v39 = vld [vmem:[#allocation2 + $0x7c] sm:$0xf]  ;;  %v4886_v20 = vld [vmem:[#allocation2 + $0x78] sm:$0xf]  ;;  %v2370_v49 = vrot.slane %v2369_v4, 4  ;;  %v1344_v26 = vshll.u32 %v6514_v59, 16 }
 0x1f0   : > { %v3745_v34 = vsel %vm3737_vm6, %v3712_v38, %v6998_v25  ;;  %v4442_v57 = vcombine.low %v4886_v20, %v4885_v39  ;;  %v1314_v38 = vshll.u32 %v6489_v18, 16  ;;  %v1320_v25 = vshll.u32 %v6159_v6, 16  ;;  %v7002_v52 = vld [vmem:[#allocation4_spill] sm:$0xff]  ;;  %v7003_v39 = vld [vmem:[#allocation17_spill] sm:$0xff] }
 0x1f1   : > { %4674 = vmatmul.mubr.msk.bf16.gmra.mxu0 %vm3813_vm8, %v3745_v34  ;;  %v1324_v34 = vshrl.u32 %v6159_v6, 16  ;;  %v4550_v6 = vcombine.low %v2351_v36, %v2361_v27  ;;  %v2385_v61 = vsel %vm5034_vm7, %v2380_v43, %v2384_v13  ;;  %v1348_v31 = vshrl.u32 %v6514_v59, 16 }
 0x1f2   : > { %v1316_v22 = vrot.slane %v1314_v38, 5  ;;  %v6526_v15 = vrot.slane %v1320_v25, 5  ;;  %v2375_v16 = vsel %vm5034_vm7, %v2370_v49, %v6481_v47  ;;  %v4422_v42 = vrot.slane %v2584_v46, 9  ;;  %v6543_v38 = vpop.permute.xlu0 %2970 }
 0x1f3   : > { %3214 = vrot.lane.b32.xlu1 %v4518_v0, %s4907_s29  ;;  %v2887_v2 = vpop.permute.xlu1 %2886  ;;  %v3559_v0 = vsel %vm3539_vm15, %v3520_v40, %v7000_v1  ;;  %v1326_v24 = vrot.slane %v1324_v34, 4  ;;  %v2688_v51 = vrot.slane %v2686_v29, 4  ;;  %v4551_v4 = vcombine.low %v2375_v16, %v2385_v61  ;;  %v4887_v16 = vld [vmem:[#allocation2 + $0x64] sm:$0xf] }
 0x1f4   : > { %v3523_v35 = vsel %vm3490_vm14, %v4442_v57, %v2887_v2  ;;  %v1313_v2 = vrot.slane %v1311_v3, 4  ;;  %v3592_v40 = vsel %vm3572_vm0, %v3559_v0, %v7002_v52  ;;  %v2585_v57 = vld [vmem:[#allocation2 + $0x6c] sm:$0xe]  ;;  %v2695_v36 = vrot.slane %v2693_v11, 4  ;;  %v7004_v0 = vld [vmem:[#allocation7_spill] sm:$0xff] }
 0x1f5   : > { %v1327_v3 = vor.u32 %v1326_v24, %v6526_v15  ;;  %v1330_v47 = vshll.u32 %v6166_v53, 16  ;;  %v1340_v43 = vrot.slane %v1338_v7, 5  ;;  %v6545_v25 = vrot.slane %v1344_v26, 5  ;;  %v7005_v53 = vld [vmem:[#allocation19_spill] sm:$0xff]  ;;  %v7006_v7 = vld [vmem:[#allocation9_spill] sm:$0xff] }
 0x1f6   : > { %v1317_v14 = vor.u32 %v1316_v22, %v1313_v2  ;;  %v1350_v34 = vrot.slane %v1348_v31, 4  ;;  %v2696_v1 = vrot.slane %v6484_v28, 5  ;;  %v3625_v49 = vsel %vm3605_vm1, %v3592_v40, %v7004_v0  ;;  %v6557_v2 = vld [vmem:[#allocation2 + $0xbc] sm:$0x1]  ;;  %v6571_v52 = vpop.permute.xlu0 %2972 }
 0x1f7   : > { %3216 = vrot.lane.b32.xlu1 %v4519_v19, %s4907_s29  ;;  %v6486_v9 = vpop.permute.xlu1 %3476  ;;  %v3561_v19 = vsel %vm3539_vm15, %v3523_v35, %v7001_v63  ;;  %v1328_v22 = vrot.slane %v1327_v3, 4  ;;  %v1332_v63 = vrot.slane %v1330_v47, 5  ;;  %v3658_v26 = vsel %vm3638_vm2, %v3625_v49, %v7006_v7  ;;  %v1373_v3 = vld [vmem:[#allocation2 + $0xb4] sm:$0xe]  ;;  %v7008_v49 = vld [vmem:[#allocation11_spill] sm:$0xff] }
 0x1f8   : > { %v3594_v20 = vsel %vm3572_vm0, %v3561_v19, %v7003_v39  ;;  %v1318_v46 = vrot.slane %v1317_v14, 4  ;;  %v1354_v19 = vshll.u32 %v6557_v2, 16  ;;  %v1351_v24 = vor.u32 %v1350_v34, %v6545_v25 }
 0x1f9   : > { %v3627_v13 = vsel %vm3605_vm1, %v3594_v20, %v7005_v53  ;;  %v1532_v39 = vrot.slane %v6514_v59, 5  ;;  %v6578_v20 = vld [vmem:[#allocation2 + $0xc4] sm:$0xf]  ;;  %v4447_v0 = vcombine.low %v6509_v45, %v6514_v59  ;;  %v3691_v53 = vsel %vm3671_vm3, %v3658_v26, %v7008_v49  ;;  %v7011_v26 = vld [vmem:[#allocation10_spill] sm:$0xff] }
 0x1fb   : > { %3310 = vrot.lane.b32.xlu1 %v4534_v58, %s4909_s7  ;;  %v6503_v41 = vpop.permute.xlu1 %2956  ;;  %v2689_v58 = vrot.slane %v6478_v44, 5  ;;  %v1337_v44 = vrot.slane %v1335_v48, 4  ;;  %v6563_v48 = vld [vmem:[#allocation2 + $0xc0] sm:$0xf] }
 0x1fc   : > { %v1946_v47 = vshrl.u32 %v6563_v48, 16  ;;  %v1949_v34 = vshll.u32 %v6563_v48, 16 }
 0x1fd   : > { %v2690_v35 = vsel %vm5025_vm4, %v2688_v51, %v2689_v58  ;;  %v1341_v61 = vor.u32 %v1340_v43, %v1337_v44  ;;  %v3660_v58 = vsel %vm3638_vm2, %v3627_v13, %v6147_v32  ;;  %v1333_v32 = vsel %vm5034_vm7, %v1328_v22, %v1332_v63 }
 0x1fe   : > { %v1352_v43 = vrot.slane %v1351_v24, 4  ;;  %v1534_v22 = vrot.slane %v1532_v39, 4  ;;  %v1535_v63 = vrot.slane %v6557_v2, 5  ;;  %v1951_v2 = vrot.slane %v1949_v34, 5 }
 0x1ff   : > { %3312 = vrot.lane.b32.xlu1 %v4535_v55, %s4909_s7  ;;  %v6524_v21 = vpop.permute.xlu1 %3050  ;;  %v2687_v55 = vsel %vm5025_vm4, %v4422_v42, %v2686_v29  ;;  %v2697_v29 = vsel %vm5025_vm4, %v2695_v36, %v2696_v1  ;;  %v4888_v42 = vld [vmem:[#allocation2 + $0x60] sm:$0xf]  ;;  %v1356_v36 = vrot.slane %v1354_v19, 5  ;;  %v1342_v44 = vrot.slane %v1341_v61, 4  ;;  %v6606_v61 = vpop.permute.xlu0 %3066 }
 0x200   : > { %v4566_v28 = vcombine.low %v2687_v55, %v2690_v35  ;;  %v4440_v51 = vcombine.low %v4888_v42, %v4887_v16  ;;  %v7007_v55 = vld [vmem:[#allocation3_spill] sm:$0xff]  ;;  %v1955_v1 = vshll.u32 %v6578_v20, 16  ;;  %v7010_v19 = vld [vmem:[#allocation8_spill] sm:$0xff]  ;;  %v1948_v16 = vrot.slane %v1946_v47, 4  ;;  %v7012_v42 = vld [vmem:[#allocation13_spill] sm:$0xff] }
 0x201   : > { %v1347_v24 = vsel %vm5034_vm7, %v1342_v44, %v6545_v25  ;;  %v1357_v7 = vsel %vm5034_vm7, %v1352_v43, %v1356_v36  ;;  %v2177_v47 = vld [vmem:[#allocation2 + $0xd0] sm:$0xf] }
 0x203   : > { %3390 = vrot.lane.b32.xlu1 %v4550_v6, %s4910_s8  ;;  %v2963_v27 = vpop.permute.xlu1 %2962  ;;  %v4423_v6 = vrot.slane %v2585_v57, 9 }
 0x205   : > { %v2694_v31 = vsel %vm5025_vm4, %v4423_v6, %v2693_v11  ;;  %v6582_v11 = vsel %vm3671_vm3, %v3660_v58, %v6213_v50  ;;  %v1959_v50 = vshrl.u32 %v6578_v20, 16  ;;  %v1957_v58 = vrot.slane %v1955_v1, 5 }
 0x206   : > { %v4567_v40 = vcombine.low %v2694_v31, %v2697_v29 }
 0x207   : > { %3392 = vrot.lane.b32.xlu1 %v4551_v4, %s4910_s8  ;;  %v1323_v4 = vsel %vm5034_vm7, %v1318_v46, %v6526_v15  ;;  %v4399_v46 = vrot.slane %v1373_v3, 9  ;;  %v1584_v3 = vld [vmem:[#allocation2 + $0xc8] sm:$0x1] }
 0x208   : > { %v4462_v29 = vcombine.low %v1323_v4, %v1333_v32  ;;  %v3724_v4 = vsel %vm3704_vm5, %v3691_v53, %v6426_v37  ;;  %v4463_v32 = vcombine.low %v1347_v24, %v1357_v7  ;;  %v2176_v37 = vld [vmem:[#allocation2 + $0xcc] sm:$0xf]  ;;  %v1965_v43 = vshll.u32 %v1584_v3, 16 }
 0x209   : > { %v2555_v34 = vshrl.u32 %v2176_v37, 16  ;;  %v4495_v24 = vcombine.low %v6563_v48, %v6578_v20 }
 0x20b   : > { %3470 = vrot.lane.b32.xlu1 %v4566_v28, %s4911_s9  ;;  %v2883_v14 = vpop.permute.xlu1 %2882 }
 0x20c   : > { %v3517_v57 = vsel %vm3490_vm14, %v4440_v51, %v2883_v14  ;;  %v3757_v14 = vsel %vm3737_vm6, %v3724_v4, %v6486_v9  ;;  %v6632_v9 = vpop.permute.xlu0 %3068 }
 0x20d   : > { %v3557_v15 = vsel %vm3539_vm15, %v3517_v57, %v2963_v27  ;;  %v7009_v27 = vld [vmem:[#allocation5_spill] sm:$0xff]  ;;  %v1533_v57 = vsel %vm5025_vm4, %v4399_v46, %v1532_v39  ;;  %v2568_v39 = vshrl.u32 %v2177_v47, 16  ;;  %v2140_v46 = vrot.slane %v6578_v20, 5 }
 0x20e   : > { %v3590_v35 = vsel %vm3572_vm0, %v3557_v15, %v7007_v55  ;;  %v1536_v15 = vsel %vm5025_vm4, %v1534_v22, %v1535_v63  ;;  %v2558_v55 = vshll.u32 %v2176_v37, 16 }
 0x20f   : > { %3472 = vrot.lane.b32.xlu1 %v4567_v40, %s4911_s9  ;;  %v3623_v13 = vsel %vm3605_vm1, %v3590_v35, %v7009_v27  ;;  %v6601_v6 = vpop.permute.xlu1 %3052  ;;  %v1961_v40 = vrot.slane %v1959_v50, 4  ;;  %v2564_v35 = vshll.u32 %v2177_v47, 16  ;;  %v4479_v50 = vcombine.low %v1533_v57, %v1536_v15 }
 0x210   : > { %v3656_v28 = vsel %vm3638_vm2, %v3623_v13, %v7010_v19  ;;  %v1967_v27 = vrot.slane %v1965_v43, 5  ;;  %v1984_v13 = vld [vmem:[#allocation2 + $0xc0] sm:$0xe]  ;;  %v2560_v22 = vrot.slane %v2558_v55, 5  ;;  %v2570_v19 = vrot.slane %v2568_v39, 4 }
 0x211   : > { %v3689_v31 = vsel %vm3671_vm3, %v3656_v28, %v7011_v26  ;;  %v1962_v44 = vor.u32 %v1961_v40, %v1957_v58  ;;  %v2566_v63 = vrot.slane %v2564_v35, 5  ;;  %v6639_v28 = vpop.permute.xlu0 %3146  ;;  %v4415_v26 = vrot.slane %v1984_v13, 9 }
 0x212   : > { %v3722_v51 = vsel %vm3704_vm5, %v3689_v31, %v7012_v42  ;;  %v2193_v31 = vld [vmem:[#allocation2 + $0xd4] sm:$0x1] }
 0x213   : > { %2894 = vrot.lane.b32.xlu1 %v4462_v29, %s4905_s27  ;;  %v3755_v25 = vsel %vm3737_vm6, %v3722_v51, %v6440_v5  ;;  %v1952_v5 = vor.u32 %v1951_v2, %v1948_v16  ;;  %v1963_v53 = vrot.slane %v1962_v44, 4  ;;  %v2557_v29 = vrot.slane %v2555_v34, 4 }
 0x214   : > { %4685 = vmatprep.mubr.msk.bf16.mxu1 %vm3813_vm8, %v3755_v25  ;;  %v2142_v51 = vrot.slane %v2140_v46, 4  ;;  %v2143_v2 = vrot.slane %v1584_v3, 5  ;;  %v2571_v4 = vor.u32 %v2570_v19, %v2566_v63  ;;  %v2574_v25 = vshll.u32 %v2193_v31, 16 }
 0x215   : > { %v6627_v36 = vpop.permute.xlu1 %3130  ;;  %4686 = vmatmul.mubr.msk.bf16.vlgmr.msra.gmra.mxu1 %vm3813_vm8, %v3757_v14  ;;  %v1953_v49 = vrot.slane %v1952_v5, 4  ;;  %v1968_v42 = vsel %vm5034_vm7, %v1963_v53, %v1967_v27  ;;  %v2561_v40 = vor.u32 %v2560_v22, %v2557_v29  ;;  %v2141_v48 = vsel %vm5025_vm4, %v4415_v26, %v2140_v46  ;;  %v6652_v57 = vpop.permute.xlu0 %3148  ;;  %v2593_v5 = vld [vmem:[#allocation2 + $0xcc] sm:$0xe]  ;;  %v7013_v26 = vld [vmem:[#allocation15_spill] sm:$0xff] }
 0x216   : > { %v2144_v20 = vsel %vm5025_vm4, %v2142_v51, %v2143_v2  ;;  %v2572_v15 = vrot.slane %v2571_v4, 4  ;;  %v2576_v3 = vrot.slane %v2574_v25, 5  ;;  %v2749_v44 = vrot.slane %v2177_v47, 5  ;;  %v7014_v51 = vld [vmem:[#allocation18_spill] sm:$0xff] }
 0x217   : > { %2896 = vrot.lane.b32.xlu1 %v4463_v32, %s4905_s27  ;;  %v1958_v16 = vsel %vm5034_vm7, %v1953_v49, %v1957_v58  ;;  %v2562_v58 = vrot.slane %v2561_v40, 4  ;;  %v4527_v43 = vcombine.low %v2141_v48, %v2144_v20  ;;  %v4543_v34 = vcombine.low %v2176_v37, %v2177_v47 }
 0x218   : > { %v4511_v14 = vcombine.low %v1958_v16, %v1968_v42  ;;  %v4431_v39 = vrot.slane %v2593_v5, 9  ;;  %v2751_v49 = vrot.slane %v2749_v44, 4  ;;  %v2752_v53 = vrot.slane %v2193_v31, 5 }
 0x219   : > { %v6635_v1 = vpop.permute.xlu1 %3132  ;;  %v2567_v35 = vsel %vm5034_vm7, %v2562_v58, %v2566_v63  ;;  %v3227_v27 = vpop.permute.xlu0 %3226  ;;  %v4889_v63 = vld [vmem:[#allocation2 + $0x3c] sm:$0xf]  ;;  %v3582_v2 = vsel %vm3572_vm0, %v7014_v51, %v6524_v21 }
 0x21a   : > { %v2750_v46 = vsel %vm5025_vm4, %v4431_v39, %v2749_v44  ;;  %v2753_v37 = vsel %vm5025_vm4, %v2751_v49, %v2752_v53  ;;  %v4437_v19 = vcombine.low %v4889_v63, %v4890_v30  ;;  %v3615_v25 = vsel %vm3605_vm1, %v3582_v2, %v6627_v36 }
 0x21b   : > { %2976 = vrot.lane.b32.xlu1 %v4479_v50, %s4904_s26  ;;  %v2577_v50 = vsel %vm5034_vm7, %v2572_v15, %v2576_v3  ;;  %v4575_v22 = vcombine.low %v2750_v46, %v2753_v37  ;;  %v3726_v3 = vsel %vm3704_vm5, %v6582_v11, %v6271_v54  ;;  %v4892_v54 = vld [vmem:[#allocation2 + $0xa0] sm:$0xf]  ;;  %vm4080_vm4 = vcmask 253952   ;;  %s4605_s26 = sshll.u32 %s7016_s1, 5 }
 0x21c   : > { %v4559_v13 = vcombine.low %v2567_v35, %v2577_v50  ;;  %v3508_v31 = vsel %vm3490_vm14, %v4437_v19, %v7013_v26  ;;  %v4891_v50 = vld [vmem:[#allocation2 + $0x9c] sm:$0xf] }
 0x21d   : > { %v3211_v7 = vpop.permute.xlu1 %3210  ;;  %v3229_v29 = vpop.permute.xlu0 %3228  ;;  %v3551_v42 = vsel %vm3539_vm15, %v3508_v31, %v6503_v41  ;;  %v4445_v11 = vcombine.low %v4891_v50, %v4892_v54 }
 0x21e   : > { %v3584_v10 = vsel %vm3572_vm0, %v3551_v42, %v6601_v6  ;;  %v3648_v48 = vsel %vm3638_vm2, %v3615_v25, %v3211_v7 }
 0x21f   : > { %3072 = vrot.lane.b32.xlu1 %v4495_v24, %s4906_s28  ;;  %v3617_v40 = vsel %vm3605_vm1, %v3584_v10, %v6635_v1 }
 0x221   : > { %v3213_v32 = vpop.permute.xlu1 %3212  ;;  %v3323_v16 = vpop.permute.xlu0 %3322 }
 0x223   : > { %3152 = vrot.lane.b32.xlu1 %v4511_v14, %s4908_s30  ;;  %v3650_v14 = vsel %vm3638_vm2, %v3617_v40, %v3213_v32 }
 0x225   : > { %v3307_v55 = vpop.permute.xlu1 %3306  ;;  %v3325_v20 = vpop.permute.xlu0 %3324 }
 0x226   : > { %v3681_v6 = vsel %vm3671_vm3, %v3648_v48, %v3307_v55 }
 0x227   : > { %3232 = vrot.lane.b32.xlu1 %v4527_v43, %s4907_s29  ;;  %s258_s29 = scalar_lea.vmem %s6957_s5, %s4605_s26 }
 0x229   : > { %v3309_v47 = vpop.permute.xlu1 %3308  ;;  %v3403_v32 = vpop.permute.xlu0 %3402 }
 0x22a   : > { %v3683_v41 = vsel %vm3671_vm3, %v3650_v14, %v3309_v47 }
 0x22b   : > { %3328 = vrot.lane.b32.xlu1 %v4543_v34, %s4909_s7  ;;  %v4444_v34 = vcombine.low %v6309_v33, %v6326_v12 }
 0x22d   : > { %v3405_v43 = vpop.permute.xlu0 %3404 }
 0x22f   : > { %3408 = vrot.lane.b32.xlu1 %v4559_v13, %s4910_s8 }
 0x231   : > { %v3483_v49 = vpop.permute.xlu0 %3482 }
 0x232   : > { %v3387_v24 = vpop.permute.xlu1 %3386 }
 0x233   : > { %3488 = vrot.lane.b32.xlu1 %v4575_v22, %s4911_s9  ;;  %v3714_v21 = vsel %vm3704_vm5, %v3681_v6, %v3387_v24 }
 0x235   : > { %v3485_v63 = vpop.permute.xlu0 %3484 }
 0x237   : > { %v3389_v4 = vpop.permute.xlu1 %3388 }
 0x238   : > { %v3716_v58 = vsel %vm3704_vm5, %v3683_v41, %v3389_v4  ;;  %v4893_v4 = vld [vmem:[#allocation2 + $0x54] sm:$0xf] }
 0x239   : > { %v3749_v36 = vsel %vm3737_vm6, %v3716_v58, %v6343_v62  ;;  %v2975_v42 = vpop.permute.xlu0 %2974  ;;  %v4439_v25 = vcombine.low %v4893_v4, %v6373_v60 }
 0x23b   : > { %v3467_v15 = vpop.permute.xlu1 %3466  ;;  %v3514_v6 = vsel %vm3490_vm14, %v4439_v25, %v6383_v8 }
 0x23c   : > { %v3747_v1 = vsel %vm3737_vm6, %v3714_v21, %v3467_v15 }
 0x23d   : > { %4677 = vmatprep.mubr.msk.bf16.mxu0 %vm3813_vm8, %v3747_v1  ;;  %v3071_v51 = vpop.permute.xlu0 %3070 }
 0x23e   : > { %4678 = vmatmul.mubr.msk.bf16.gmra.mxu0 %vm3813_vm8, %v3749_v36 }
 0x23f   : > { %v3401_v7 = vpop.permute.xlu1 %3400 }
 0x240   : > { %v3728_v53 = vsel %vm3704_vm5, %v6352_v23, %v3401_v7 }
 0x243   : > { %v3479_v5 = vpop.permute.xlu1 %3478 }
 0x244   : > { %v3759_v44 = vsel %vm3737_vm6, %v3726_v3, %v3479_v5 }
 0x245   : > { %4689 = vmatprep.mubr.msk.bf16.mxu1 %vm3813_vm8, %v3759_v44 }
 0x249   : > { %v2891_v55 = vpop.permute.xlu1 %2890 }
 0x24a   : > { %v3529_v62 = vsel %vm3490_vm14, %v4444_v34, %v2891_v55  ;;  %v4894_v34 = vld [vmem:[#allocation2 + $0xac] sm:$0xf] }
 0x24b   : > { %v3565_v39 = vsel %vm3539_vm15, %v3529_v62, %v6543_v38  ;;  %v3532_v38 = vsel %vm3490_vm14, %v4445_v11, %v6516_v56  ;;  %v4446_v55 = vcombine.low %v6489_v18, %v4894_v34 }
 0x24c   : > { %v3598_v35 = vsel %vm3572_vm0, %v3565_v39, %v6606_v61  ;;  %v3567_v37 = vsel %vm3539_vm15, %v3532_v38, %v6571_v52 }
 0x24d   : > { %v3631_v13 = vsel %vm3605_vm1, %v3598_v35, %v6639_v28  ;;  %v3481_v33 = vpop.permute.xlu1 %3480  ;;  %v3600_v28 = vsel %vm3572_vm0, %v3567_v37, %v6632_v9  ;;  %v6759_v37 = vld [vmem:[%s6956_s4] ss:$0 sm:$0xff] }
 0x24e   : > { %v3761_v12 = vsel %vm3737_vm6, %v3728_v53, %v3481_v33  ;;  %v3664_v46 = vsel %vm3638_vm2, %v3631_v13, %v3227_v27  ;;  %v3633_v27 = vsel %vm3605_vm1, %v3600_v28, %v6652_v57 }
 0x24f   : > { %4690 = vmatmul.mubr.msk.bf16.gmra.mxu1 %vm3813_vm8, %v3761_v12  ;;  %v3697_v61 = vsel %vm3671_vm3, %v3664_v46, %v3323_v16  ;;  %v3666_v56 = vsel %vm3638_vm2, %v3633_v27, %v3229_v29  ;;  %v3151_v29 = vpop.permute.xlu0 %3150 }
 0x250   : > { %v3730_v23 = vsel %vm3704_vm5, %v3697_v61, %v3403_v32  ;;  %v3699_v30 = vsel %vm3671_vm3, %v3666_v56, %v3325_v20 }
 0x251   : > { %v2961_v47 = vpop.permute.xlu1 %2960  ;;  %v3763_v22 = vsel %vm3737_vm6, %v3730_v23, %v3483_v49  ;;  %v3732_v52 = vsel %vm3704_vm5, %v3699_v30, %v3405_v43 }
 0x252   : > { %4693 = vmatprep.mubr.msk.bf16.mxu1 %vm3813_vm8, %v3763_v22  ;;  %v3765_v24 = vsel %vm3737_vm6, %v3732_v52, %v3485_v63  ;;  %v3555_v21 = vsel %vm3539_vm15, %v3514_v6, %v2961_v47 }
 0x253   : > { %v3231_v41 = vpop.permute.xlu0 %3230 }
 0x255   : > { %v3055_v19 = vpop.permute.xlu1 %3054 }
 0x256   : > { %v3586_v14 = vsel %vm3572_vm0, %v6409_v17, %v3055_v19 }
 0x257   : > { %4694 = vmatmul.mubr.msk.bf16.gmra.mxu1 %vm3813_vm8, %v3765_v24  ;;  %v3327_v8 = vpop.permute.xlu0 %3326 }
 0x259   : > { %v3057_v9 = vpop.permute.xlu1 %3056 }
 0x25a   : > { %v3588_v1 = vsel %vm3572_vm0, %v3555_v21, %v3057_v9 }
 0x25b   : > { %v3407_v39 = vpop.permute.xlu0 %3406 }
 0x25d   : > { %v3135_v26 = vpop.permute.xlu1 %3134 }
 0x25e   : > { %v3619_v20 = vsel %vm3605_vm1, %v3586_v14, %v3135_v26 }
 0x25f   : > { %v3487_v33 = vpop.permute.xlu0 %3486 }
 0x261   : > { %v3137_v31 = vpop.permute.xlu1 %3136 }
 0x262   : > { %v3621_v17 = vsel %vm3605_vm1, %v3588_v1, %v3137_v31 }
 0x265   : > { %v3215_v16 = vpop.permute.xlu1 %3214 }
 0x266   : > { %v3652_v58 = vsel %vm3638_vm2, %v3619_v20, %v3215_v16 }
 0x269   : > { %v3217_v57 = vpop.permute.xlu1 %3216 }
 0x26a   : > { %v3654_v32 = vsel %vm3638_vm2, %v3621_v17, %v3217_v57 }
 0x26d   : > { %v3311_v10 = vpop.permute.xlu1 %3310 }
 0x26e   : > { %v3685_v15 = vsel %vm3671_vm3, %v3652_v58, %v3311_v10 }
 0x271   : > { %v3313_v2 = vpop.permute.xlu1 %3312 }
 0x272   : > { %v3687_v3 = vsel %vm3671_vm3, %v3654_v32, %v3313_v2 }
 0x275   : > { %v3391_v40 = vpop.permute.xlu1 %3390 }
 0x276   : > { %v3718_v60 = vsel %vm3704_vm5, %v3685_v15, %v3391_v40 }
 0x279   : > { %v3393_v48 = vpop.permute.xlu1 %3392 }
 0x27a   : > { %v3720_v5 = vsel %vm3704_vm5, %v3687_v3, %v3393_v48 }
 0x27d   : > { %v3471_v36 = vpop.permute.xlu1 %3470 }
 0x27e   : > { %v3751_v7 = vsel %vm3737_vm6, %v3718_v60, %v3471_v36 }
 0x27f   : > { %4681 = vmatprep.mubr.msk.bf16.mxu0 %vm3813_vm8, %v3751_v7 }
 0x281   : > { %v3473_v44 = vpop.permute.xlu1 %3472 }
 0x282   : > { %v3753_v43 = vsel %vm3737_vm6, %v3720_v5, %v3473_v44 }
 0x283   : > { %4682 = vmatmul.mubr.msk.bf16.gmra.mxu0 %vm3813_vm8, %v3753_v43 }
 0x285   : > { %v2895_v62 = vpop.permute.xlu1 %2894 }
 0x286   : > { %v3535_v35 = vsel %vm3490_vm14, %v4446_v55, %v2895_v62 }
 0x287   : > { %v3569_v50 = vsel %vm3539_vm15, %v3535_v35, %v2975_v42 }
 0x288   : > { %v3602_v54 = vsel %vm3572_vm0, %v3569_v50, %v3071_v51 }
 0x289   : > { %v3635_v11 = vsel %vm3605_vm1, %v3602_v54, %v3151_v29  ;;  %v2897_v49 = vpop.permute.xlu1 %2896 }
 0x28a   : > { %v3668_v53 = vsel %vm3638_vm2, %v3635_v11, %v3231_v41  ;;  %v3538_v6 = vsel %vm3490_vm14, %v4447_v0, %v2897_v49 }
 0x28b   : > { %v3701_v13 = vsel %vm3671_vm3, %v3668_v53, %v3327_v8 }
 0x28c   : > { %v3734_v12 = vsel %vm3704_vm5, %v3701_v13, %v3407_v39 }
 0x28d   : > { %v2977_v46 = vpop.permute.xlu1 %2976  ;;  %v3767_v18 = vsel %vm3737_vm6, %v3734_v12, %v3487_v33 }
 0x28e   : > { %4697 = vmatprep.mubr.msk.bf16.mxu1 %vm3813_vm8, %v3767_v18  ;;  %v3571_v21 = vsel %vm3539_vm15, %v3538_v6, %v2977_v46 }
 0x28f   : > { %v4671_v38 = vpop.f32.mrf.mxu0 }
 0x290   : > { %v3893_v22 = vadd.f32 %v4671_v38, %v6759_v37 }
 0x291   : > { %v3073_v61 = vpop.permute.xlu1 %3072  ;;  %v3884_v23 = vpop.f32.mrf.mxu0 }
 0x292   : > { %v3885_v28 = vadd.f32 %v6759_v37, %v3884_v23  ;;  %v4084_v19 = vmul.f32 %v3893_v22, %v3893_v22  ;;  %v4014_v57 = vsel %vm3605_vm1, %v3893_v22, 0.0  ;;  %v3604_v1 = vsel %vm3572_vm0, %v3571_v21, %v3073_v61 }
 0x293   : > { %v4672_v47 = vpop.f32.mrf.mxu0 }
 0x294   : > { %v4082_v63 = vmul.f32 %v3885_v28, %v3885_v28  ;;  %v3896_v30 = vadd.f32 %v4672_v47, %v6759_v37  ;;  %v4011_v9 = vsel %vm3605_vm1, %v3885_v28, 0.0  ;;  %v4117_v4 = vsel %vm3605_vm1, %v4084_v19, 0.0 }
 0x295   : > { %v3153_v27 = vpop.permute.xlu1 %3152  ;;  %v3887_v56 = vpop.f32.mrf.mxu0 }
 0x296   : > { %v3888_v52 = vadd.f32 %v6759_v37, %v3887_v56  ;;  %v4114_v10 = vsel %vm3605_vm1, %v4082_v63, 0.0  ;;  %v4085_v51 = vmul.f32 %v3896_v30, %v3896_v30  ;;  %v4016_v25 = vsel %vm3605_vm1, %v3896_v30, 0.0 }
 0x297   : > { %v4185_v14 = vpack.c.bf16 %v3896_v30, %v3893_v22  ;;  %v3637_v36 = vsel %vm3605_vm1, %v3604_v1, %v3153_v27 }
 0x298   : > { %v4012_v26 = vsel %vm3605_vm1, %v3888_v52, 0.0  ;;  %v4083_v31 = vmul.f32 %v3888_v52, %v3888_v52  ;;  %v4184_v16 = vpack.c.bf16 %v3888_v52, %v3885_v28  ;;  %v4119_v58 = vsel %vm3605_vm1, %v4085_v51, 0.0 }
 0x299   : > { %v3233_v24 = vpop.permute.xlu1 %3232  ;;  %v4013_v42 = vadd.f32 %v4012_v26, %v4011_v9 }
 0x29a   : > { %v4115_v2 = vsel %vm3605_vm1, %v4083_v31, 0.0  ;;  %4200 = vxpose.xlu0.c.b16.start [1/8] (narrow) %v4184_v16, 32  ;;  %v3670_v17 = vsel %vm3638_vm2, %v3637_v36, %v3233_v24 }
 0x29b   : > { %v4015_v29 = vadd.f32 %v4014_v57, %v4013_v42  ;;  %v4116_v40 = vadd.f32 %v4115_v2, %v4114_v10 }
 0x29d   : > { %v3329_v48 = vpop.permute.xlu1 %3328  ;;  %v4118_v41 = vadd.f32 %v4117_v4, %v4116_v40  ;;  %v4017_v20 = vadd.f32 %v4016_v25, %v4015_v29 }
 0x29e   : > { %4201 = vxpose.xlu0.c.b16.cont [2/8] (narrow) %v4185_v14, 32  ;;  %v3703_v7 = vsel %vm3671_vm3, %v3670_v17, %v3329_v48 }
 0x29f   : > { %v4120_v15 = vadd.f32 %v4119_v58, %v4118_v41 }
 0x2a1   : > { %v3409_v60 = vpop.permute.xlu1 %3408 }
 0x2a2   : > { %v3736_v32 = vsel %vm3704_vm5, %v3703_v7, %v3409_v60 }
 0x2a5   : > { %v3489_v45 = vpop.permute.xlu1 %3488 }
 0x2a6   : > { %v3769_v59 = vsel %vm3737_vm6, %v3736_v32, %v3489_v45 }
 0x2a7   : > { %4698 = vmatmul.mubr.msk.bf16.gmra.mxu1 %vm3813_vm8, %v3769_v59 }
 0x2b1   : > { %v4675_v0 = vpop.f32.mrf.mxu0 }
 0x2b2   : > { %v3909_v34 = vadd.f32 %v4675_v0, %v6759_v37 }
 0x2b3   : > { %v3900_v8 = vpop.f32.mrf.mxu0 }
 0x2b4   : > { %v3901_v3 = vadd.f32 %v6759_v37, %v3900_v8  ;;  %v4088_v11 = vmul.f32 %v3909_v34, %v3909_v34  ;;  %v4022_v12 = vsel %vm3605_vm1, %v3909_v34, 0.0 }
 0x2b5   : > { %v4676_v5 = vpop.f32.mrf.mxu0 }
 0x2b6   : > { %v4018_v44 = vsel %vm3605_vm1, %v3901_v3, 0.0  ;;  %v4086_v43 = vmul.f32 %v3901_v3, %v3901_v3  ;;  %v3912_v50 = vadd.f32 %v4676_v5, %v6759_v37  ;;  %v4125_v23 = vsel %vm3605_vm1, %v4088_v11, 0.0 }
 0x2b7   : > { %v4019_v55 = vadd.f32 %v4018_v44, %v4017_v20  ;;  %v3903_v62 = vpop.f32.mrf.mxu0 }
 0x2b8   : > { %v4121_v39 = vsel %vm3605_vm1, %v4086_v43, 0.0  ;;  %v3904_v54 = vadd.f32 %v6759_v37, %v3903_v62  ;;  %v4089_v46 = vmul.f32 %v3912_v50, %v3912_v50  ;;  %v4024_v28 = vsel %vm3605_vm1, %v3912_v50, 0.0 }
 0x2b9   : > { %v4122_v35 = vadd.f32 %v4121_v39, %v4120_v15  ;;  %v4187_v47 = vpack.c.bf16 %v3912_v50, %v3909_v34 }
 0x2ba   : > { %v4020_v49 = vsel %vm3605_vm1, %v3904_v54, 0.0  ;;  %v4087_v53 = vmul.f32 %v3904_v54, %v3904_v54  ;;  %v4186_v13 = vpack.c.bf16 %v3904_v54, %v3901_v3  ;;  %v4127_v56 = vsel %vm3605_vm1, %v4089_v46, 0.0 }
 0x2bb   : > { %v4021_v33 = vadd.f32 %v4020_v49, %v4019_v55 }
 0x2bc   : > { %v4123_v18 = vsel %vm3605_vm1, %v4087_v53, 0.0  ;;  %4202 = vxpose.xlu0.c.b16.cont [3/8] (narrow) %v4186_v13, 32 }
 0x2bd   : > { %v4023_v38 = vadd.f32 %v4022_v12, %v4021_v33  ;;  %v4124_v61 = vadd.f32 %v4123_v18, %v4122_v35 }
 0x2bf   : > { %v4126_v22 = vadd.f32 %v4125_v23, %v4124_v61  ;;  %v4025_v27 = vadd.f32 %v4024_v28, %v4023_v38 }
 0x2c0   : > { %4203 = vxpose.xlu0.c.b16.cont [4/8] (narrow) %v4187_v47, 32 }
 0x2c1   : > { %v4128_v63 = vadd.f32 %v4127_v56, %v4126_v22 }
 0x2d5   : > { %v4687_v30 = vpop.f32.mrf.mxu1 }
 0x2d6   : > { %v6809_v42 = vadd.f32 %v4687_v30, %v6759_v37 }
 0x2d7   : > { %v3948_v52 = vpop.f32.mrf.mxu1 }
 0x2d8   : > { %v6798_v9 = vadd.f32 %v6759_v37, %v3948_v52 }
 0x2d9   : > { %v4688_v19 = vpop.f32.mrf.mxu1 }
 0x2da   : > { %v6804_v31 = vadd.f32 %v4688_v19, %v6759_v37 }
 0x2db   : > { %v3951_v24 = vpop.f32.mrf.mxu1 }
 0x2dc   : > { %v6801_v26 = vadd.f32 %v6759_v37, %v3951_v24  ;;  %v4193_v57 = vpack.c.bf16 %v6804_v31, %v6809_v42 }
 0x2de   : > { %v4192_v16 = vpack.c.bf16 %v6801_v26, %v6798_v9 }
 0x2e0   : > { %4216 = vxpose.xlu1.c.b16.start [1/8] (narrow) %v4192_v16, 32 }
 0x2e4   : > { %4217 = vxpose.xlu1.c.b16.cont [2/8] (narrow) %v4193_v57, 32 }
 0x2fe   : > { %v4679_v10 = vpop.f32.mrf.mxu0 }
 0x2ff   : > { %v3925_v4 = vadd.f32 %v4679_v10, %v6759_v37 }
 0x300   : > { %v3916_v51 = vpop.f32.mrf.mxu0 }
 0x301   : > { %v3917_v2 = vadd.f32 %v6759_v37, %v3916_v51  ;;  %v4092_v58 = vmul.f32 %v3925_v4, %v3925_v4  ;;  %v4030_v17 = vsel %vm3605_vm1, %v3925_v4, 0.0 }
 0x302   : > { %v4680_v29 = vpop.f32.mrf.mxu0 }
 0x303   : > { %v4090_v40 = vmul.f32 %v3917_v2, %v3917_v2  ;;  %v4026_v25 = vsel %vm3605_vm1, %v3917_v2, 0.0  ;;  %v3928_v41 = vadd.f32 %v4680_v29, %v6759_v37  ;;  %v4133_v0 = vsel %vm3605_vm1, %v4092_v58, 0.0 }
 0x304   : > { %v3919_v14 = vpop.f32.mrf.mxu0  ;;  %v4027_v6 = vadd.f32 %v4026_v25, %v4025_v27 }
 0x305   : > { %v4129_v48 = vsel %vm3605_vm1, %v4090_v40, 0.0  ;;  %v3920_v20 = vadd.f32 %v6759_v37, %v3919_v14  ;;  %v4093_v7 = vmul.f32 %v3928_v41, %v3928_v41  ;;  %v4032_v8 = vsel %vm3605_vm1, %v3928_v41, 0.0 }
 0x306   : > { %v4130_v60 = vadd.f32 %v4129_v48, %v4128_v63  ;;  %v4189_v3 = vpack.c.bf16 %v3928_v41, %v3925_v4 }
 0x307   : > { %v4028_v21 = vsel %vm3605_vm1, %v3920_v20, 0.0  ;;  %v4091_v15 = vmul.f32 %v3920_v20, %v3920_v20  ;;  %v4188_v1 = vpack.c.bf16 %v3920_v20, %v3917_v2  ;;  %v4135_v43 = vsel %vm3605_vm1, %v4093_v7, 0.0 }
 0x308   : > { %v4029_v36 = vadd.f32 %v4028_v21, %v4027_v6 }
 0x309   : > { %v4131_v32 = vsel %vm3605_vm1, %v4091_v15, 0.0  ;;  %4204 = vxpose.xlu0.c.b16.cont [5/8] (narrow) %v4188_v1, 32  ;;  %v4098_v15 = vmul.f32 %v6798_v9, %v6798_v9 }
 0x30a   : > { %v4031_v45 = vadd.f32 %v4030_v17, %v4029_v36  ;;  %v4132_v59 = vadd.f32 %v4131_v32, %v4130_v60  ;;  %v4042_v32 = vsel %vm3605_vm1, %v6798_v9, 0.0  ;;  %v4046_v9 = vsel %vm3605_vm1, %v6809_v42, 0.0 }
 0x30c   : > { %v4134_v5 = vadd.f32 %v4133_v0, %v4132_v59  ;;  %v4033_v44 = vadd.f32 %v4032_v8, %v4031_v45  ;;  %v4099_v45 = vmul.f32 %v6801_v26, %v6801_v26 }
 0x30d   : > { %4205 = vxpose.xlu0.c.b16.cont [6/8] (narrow) %v4189_v3, 32  ;;  %v4100_v3 = vmul.f32 %v6809_v42, %v6809_v42 }
 0x30e   : > { %v4136_v55 = vadd.f32 %v4135_v43, %v4134_v5  ;;  %v4145_v5 = vsel %vm3605_vm1, %v4098_v15, 0.0 }
 0x30f   : > { %v4691_v34 = vpop.f32.mrf.mxu1 }
 0x310   : > { %v6837_v33 = vadd.f32 %v4691_v34, %v6759_v37 }
 0x311   : > { %v3964_v62 = vpop.f32.mrf.mxu1 }
 0x312   : > { %v6829_v54 = vadd.f32 %v6759_v37, %v3964_v62  ;;  %v4147_v62 = vsel %vm3605_vm1, %v4099_v45, 0.0 }
 0x313   : > { %v4692_v39 = vpop.f32.mrf.mxu1 }
 0x314   : > { %v6832_v49 = vadd.f32 %v4692_v39, %v6759_v37  ;;  %v4050_v42 = vsel %vm3605_vm1, %v6829_v54, 0.0 }
 0x315   : > { %v3967_v35 = vpop.f32.mrf.mxu1 }
 0x316   : > { %v6826_v50 = vadd.f32 %v6759_v37, %v3967_v35  ;;  %v4195_v18 = vpack.c.bf16 %v6832_v49, %v6837_v33 }
 0x317   : > { %v4695_v11 = vpop.f32.mrf.mxu1 }
 0x318   : > { %v4194_v13 = vpack.c.bf16 %v6826_v50, %v6829_v54  ;;  %v6853_v47 = vadd.f32 %v4695_v11, %v6759_v37  ;;  %v4149_v11 = vsel %vm3605_vm1, %v4100_v3, 0.0 }
 0x319   : > { %v3980_v53 = vpop.f32.mrf.mxu1 }
 0x31a   : > { %4218 = vxpose.xlu1.c.b16.cont [3/8] (narrow) %v4194_v13, 32  ;;  %v6842_v38 = vadd.f32 %v6759_v37, %v3980_v53  ;;  %v4048_v53 = vsel %vm3605_vm1, %v6804_v31, 0.0 }
 0x31b   : > { %v4696_v12 = vpop.f32.mrf.mxu1 }
 0x31c   : > { %v6850_v28 = vadd.f32 %v4696_v12, %v6759_v37 }
 0x31d   : > { %v3983_v46 = vpop.f32.mrf.mxu1 }
 0x31e   : > { %v6845_v61 = vadd.f32 %v6759_v37, %v3983_v46  ;;  %4219 = vxpose.xlu1.c.b16.cont [4/8] (narrow) %v4195_v18, 32  ;;  %v4197_v22 = vpack.c.bf16 %v6850_v28, %v6853_v47  ;;  %v4103_v18 = vmul.f32 %v6826_v50, %v6826_v50 }
 0x320   : > { %v4196_v23 = vpack.c.bf16 %v6845_v61, %v6842_v38 }
 0x322   : > { %4220 = vxpose.xlu1.c.b16.cont [5/8] (narrow) %v4196_v23, 32 }
 0x326   : > { %4221 = vxpose.xlu1.c.b16.cont [6/8] (narrow) %v4197_v22, 32 }
 0x343   : > { %v4683_v27 = vpop.f32.mrf.mxu0 }
 0x344   : > { %v3941_v19 = vadd.f32 %v4683_v27, %v6759_v37  ;;  %v4104_v27 = vmul.f32 %v6837_v33, %v6837_v33 }
 0x345   : > { %v3932_v56 = vpop.f32.mrf.mxu0 }
 0x346   : > { %v3933_v63 = vadd.f32 %v6759_v37, %v3932_v56  ;;  %v4096_v29 = vmul.f32 %v3941_v19, %v3941_v19  ;;  %v4038_v41 = vsel %vm3605_vm1, %v3941_v19, 0.0  ;;  %v4052_v56 = vsel %vm3605_vm1, %v6826_v50, 0.0 }
 0x347   : > { %v4684_v30 = vpop.f32.mrf.mxu0  ;;  %v4106_v50 = vmul.f32 %v6842_v38, %v6842_v38 }
 0x348   : > { %v4094_v52 = vmul.f32 %v3933_v63, %v3933_v63  ;;  %v4034_v24 = vsel %vm3605_vm1, %v3933_v63, 0.0  ;;  %v3944_v10 = vadd.f32 %v4684_v30, %v6759_v37  ;;  %v4141_v1 = vsel %vm3605_vm1, %v4096_v29, 0.0 }
 0x349   : > { %v3935_v16 = vpop.f32.mrf.mxu0  ;;  %v4035_v2 = vadd.f32 %v4034_v24, %v4033_v44  ;;  %v4044_v44 = vsel %vm3605_vm1, %v6801_v26, 0.0  ;;  %v4102_v26 = vmul.f32 %v6829_v54, %v6829_v54  ;;  %v4105_v54 = vmul.f32 %v6832_v49, %v6832_v49 }
 0x34a   : > { %v4137_v57 = vsel %vm3605_vm1, %v4094_v52, 0.0  ;;  %v3936_v51 = vadd.f32 %v6759_v37, %v3935_v16  ;;  %v4097_v20 = vmul.f32 %v3944_v10, %v3944_v10  ;;  %v4040_v60 = vsel %vm3605_vm1, %v3944_v10, 0.0 }
 0x34b   : > { %v4138_v14 = vadd.f32 %v4137_v57, %v4136_v55  ;;  %v4191_v36 = vpack.c.bf16 %v3944_v10, %v3941_v19  ;;  %v4101_v55 = vmul.f32 %v6804_v31, %v6804_v31  ;;  %v4153_v31 = vsel %vm3605_vm1, %v4102_v26, 0.0 }
 0x34c   : > { %v4036_v40 = vsel %vm3605_vm1, %v3936_v51, 0.0  ;;  %v4095_v4 = vmul.f32 %v3936_v51, %v3936_v51  ;;  %v4190_v25 = vpack.c.bf16 %v3936_v51, %v3933_v63  ;;  %v4143_v59 = vsel %vm3605_vm1, %v4097_v20, 0.0 }
 0x34d   : > { %v4037_v48 = vadd.f32 %v4036_v40, %v4035_v2  ;;  %v4151_v46 = vsel %vm3605_vm1, %v4101_v55, 0.0  ;;  %v4054_v52 = vsel %vm3605_vm1, %v6837_v33, 0.0  ;;  %v4155_v19 = vsel %vm3605_vm1, %v4103_v18, 0.0 }
 0x34e   : > { %v4139_v6 = vsel %vm3605_vm1, %v4095_v4, 0.0  ;;  %4206 = vxpose.xlu0.c.b16.cont [7/8] (narrow) %v4190_v25, 32  ;;  %v4157_v57 = vsel %vm3605_vm1, %v4104_v27, 0.0  ;;  %v4056_v10 = vsel %vm3605_vm1, %v6832_v49, 0.0  ;;  %v4159_v29 = vsel %vm3605_vm1, %v4105_v54, 0.0 }
 0x34f   : > { %v4039_v58 = vadd.f32 %v4038_v41, %v4037_v48  ;;  %v4140_v21 = vadd.f32 %v4139_v6, %v4138_v14  ;;  %v4058_v33 = vsel %vm3605_vm1, %v6842_v38, 0.0  ;;  %v4107_v40 = vmul.f32 %v6845_v61, %v6845_v61 }
 0x350   : > { %v4161_v14 = vsel %vm3605_vm1, %v4106_v50, 0.0  ;;  %v4060_v49 = vsel %vm3605_vm1, %v6845_v61, 0.0  ;;  %v4108_v48 = vmul.f32 %v6853_v47, %v6853_v47  ;;  %v4062_v6 = vsel %vm3605_vm1, %v6853_v47, 0.0 }
 0x351   : > { %v4041_v17 = vadd.f32 %v4040_v60, %v4039_v58  ;;  %v4142_v7 = vadd.f32 %v4141_v1, %v4140_v21  ;;  %v4163_v38 = vsel %vm3605_vm1, %v4107_v40, 0.0  ;;  %v4109_v21 = vmul.f32 %v6850_v28, %v6850_v28 }
 0x352   : > { %4207 = vxpose.xlu0.c.b16.end [8/8] (narrow) %v4191_v36, 32  ;;  %v4064_v60 = vsel %vm3605_vm1, %v6850_v28, 0.0  ;;  %v4165_v36 = vsel %vm3605_vm1, %v4108_v48, 0.0 }
 0x353   : > { %v4043_v0 = vadd.f32 %v4042_v32, %v4041_v17  ;;  %v4144_v8 = vadd.f32 %v4143_v59, %v4142_v7  ;;  %v4167_v47 = vsel %vm3605_vm1, %v4109_v21, 0.0 }
 0x355   : > { %v4045_v43 = vadd.f32 %v4044_v44, %v4043_v0  ;;  %v4146_v34 = vadd.f32 %v4145_v5, %v4144_v8 }
 0x357   : > { %v4047_v39 = vadd.f32 %v4046_v9, %v4045_v43  ;;  %v4148_v35 = vadd.f32 %v4147_v62, %v4146_v34 }
 0x359   : > { %v4049_v13 = vadd.f32 %v4048_v53, %v4047_v39  ;;  %v4150_v12 = vadd.f32 %v4149_v11, %v4148_v35 }
 0x35b   : > { %v4051_v23 = vadd.f32 %v4050_v42, %v4049_v13  ;;  %v4152_v22 = vadd.f32 %v4151_v46, %v4150_v12 }
 0x35d   : > { %v4154_v63 = vadd.f32 %v4153_v31, %v4152_v22  ;;  %v4053_v30 = vadd.f32 %v4052_v56, %v4051_v23 }
 0x35f   : > { %v4055_v24 = vadd.f32 %v4054_v52, %v4053_v30  ;;  %v4156_v16 = vadd.f32 %v4155_v19, %v4154_v63 }
 0x361   : > { %v4057_v51 = vadd.f32 %v4056_v10, %v4055_v24  ;;  %v4158_v2 = vadd.f32 %v4157_v57, %v4156_v16 }
 0x363   : > { %v4059_v4 = vadd.f32 %v4058_v33, %v4057_v51  ;;  %v4160_v25 = vadd.f32 %v4159_v29, %v4158_v2 }
 0x365   : > { %v4061_v41 = vadd.f32 %v4060_v49, %v4059_v4  ;;  %v4162_v20 = vadd.f32 %v4161_v14, %v4160_v25 }
 0x367   : > { %v4699_v58 = vpop.f32.mrf.mxu1  ;;  %v4063_v15 = vadd.f32 %v4062_v6, %v4061_v41  ;;  %v4164_v1 = vadd.f32 %v4163_v38, %v4162_v20 }
 0x368   : > { %v4005_v59 = vadd.f32 %v4699_v58, %v6759_v37 }
 0x369   : > { %v3996_v61 = vpop.f32.mrf.mxu1  ;;  %v4065_v7 = vadd.f32 %v4064_v60, %v4063_v15  ;;  %v4166_v32 = vadd.f32 %v4165_v36, %v4164_v1 }
 0x36a   : > { %v3997_v17 = vadd.f32 %v6759_v37, %v3996_v61  ;;  %v4112_v9 = vmul.f32 %v4005_v59, %v4005_v59  ;;  %v4070_v53 = vsel %vm3605_vm1, %v4005_v59, 0.0 }
 0x36b   : > { %v4700_v45 = vpop.f32.mrf.mxu1  ;;  %v4168_v3 = vadd.f32 %v4167_v47, %v4166_v32 }
 0x36c   : > { %v4066_v0 = vsel %vm3605_vm1, %v3997_v17, 0.0  ;;  %v4110_v8 = vmul.f32 %v3997_v17, %v3997_v17  ;;  %v4008_v28 = vadd.f32 %v4700_v45, %v6759_v37  ;;  %v4173_v42 = vsel %vm3605_vm1, %v4112_v9, 0.0 }
 0x36d   : > { %v3999_v5 = vpop.f32.mrf.mxu1  ;;  %v4067_v34 = vadd.f32 %v4066_v0, %v4065_v7 }
 0x36e   : > { %v4169_v44 = vsel %vm3605_vm1, %v4110_v8, 0.0  ;;  %v4000_v43 = vadd.f32 %v6759_v37, %v3999_v5  ;;  %v4113_v26 = vmul.f32 %v4008_v28, %v4008_v28  ;;  %v4072_v37 = vsel %vm3605_vm1, %v4008_v28, 0.0 }
 0x36f   : > { %v4170_v35 = vadd.f32 %v4169_v44, %v4168_v3  ;;  %v4199_v18 = vpack.c.bf16 %v4008_v28, %v4005_v59 }
 0x370   : > { %v4068_v55 = vsel %vm3605_vm1, %v4000_v43, 0.0  ;;  %v4111_v62 = vmul.f32 %v4000_v43, %v4000_v43  ;;  %v4198_v39 = vpack.c.bf16 %v4000_v43, %v3997_v17  ;;  %v4175_v27 = vsel %vm3605_vm1, %v4113_v26, 0.0 }
 0x371   : > { %v4069_v11 = vadd.f32 %v4068_v55, %v4067_v34 }
 0x372   : > { %v4171_v13 = vsel %vm3605_vm1, %v4111_v62, 0.0  ;;  %4222 = vxpose.xlu1.c.b16.cont [7/8] (narrow) %v4198_v39, 32 }
 0x373   : > { %v4071_v12 = vadd.f32 %v4070_v53, %v4069_v11  ;;  %v4172_v46 = vadd.f32 %v4171_v13, %v4170_v35 }
 0x375   : > { %v4073_v23 = vadd.f32 %v4072_v37, %v4071_v12  ;;  %v4174_v22 = vadd.f32 %v4173_v42, %v4172_v46 }
 0x376   : > { %4223 = vxpose.xlu1.c.b16.end [8/8] (narrow) %v4199_v18, 32 }
 0x377   : > { %v4074_v31 = vrot.slane %v4073_v23, 4  ;;  %v4176_v56 = vadd.f32 %v4175_v27, %v4174_v22 }
 0x379   : > { %v4075_v63 = vadd.f32 %v4074_v31, %v4073_v23  ;;  %v4177_v30 = vrot.slane %v4176_v56, 4 }
 0x37b   : > { %v4076_v52 = vrot.slane %v4075_v63, 2  ;;  %v4178_v54 = vadd.f32 %v4177_v30, %v4176_v56 }
 0x37d   : > { %v4077_v19 = vadd.f32 %v4076_v52, %v4075_v63  ;;  %v4179_v24 = vrot.slane %v4178_v54, 2 }
 0x37f   : > { %v4078_v16 = vrot.slane %v4077_v19, 1  ;;  %v4180_v57 = vadd.f32 %v4179_v24, %v4178_v54 }
 0x381   : > { %v4079_v10 = vadd.f32 %v4078_v16, %v4077_v19  ;;  %v4181_v50 = vrot.slane %v4180_v57, 1 }
 0x383   : > { %4081 = vst.msk [vmem:[%s262_s25] sm:$0x1] %vm4080_vm4, %v4079_v10  ;;  %v4182_v51 = vadd.f32 %v4181_v50, %v4180_v57 }
 0x385   : > { %4183 = vst.msk [vmem:[%s262_s25 + $0x1] sm:$0x1] %vm4080_vm4, %v4182_v51 }
 0x398   : > { %v4208_v2 = vpop.trf.xlu0 }
 0x39c   : > { %v4209_v4 = vpop.trf.xlu0 }
 0x3bc   : > { %v4224_v29 = vpop.trf.xlu1 }
 0x3bd   : > { %v4598_v33 = vcombine.low %v4208_v2, %v4224_v29  ;;  %v4599_v40 = vcombine.high %v4208_v2, %v4224_v29 }
 0x3bf   : > { %4252 = vst [vmem:[%s258_s29] sm:$0xff] %v4598_v33  ;;  %4253 = vst [vmem:[%s258_s29 + $0x8] sm:$0xff] %v4599_v40 }
 0x3c0   : > { %v4225_v25 = vpop.trf.xlu1 }
 0x3c1   : > { %v4600_v14 = vcombine.low %v4209_v4, %v4225_v25  ;;  %v4601_v49 = vcombine.high %v4209_v4, %v4225_v25 }
 0x3c3   : > { %4254 = vst [vmem:[%s258_s29 + $0x10] sm:$0xff] %v4600_v14  ;;  %4255 = vst [vmem:[%s258_s29 + $0x18] sm:$0xff] %v4601_v49 }
 0x3c4 PF: > { %s17_s21 = sadd.s32 1, %s4901_s21  }
 0x3c5   : > { %p14_p4 = scmp.ge.s32.totalorder %s17_s21, 4  }
 0x3c7   :  { %16 = sbr.rel (!%p14_p4) target bundleno = 1 (0x1), region = 84 }

// kernel: conv_block_forward.5
= control target key start
LH: loop header
LB: loop body
LE: loop exit
PB: predicated region body
PF: predicated region fallthrough
CT: control target
= control target key end

     0   :  { %s5266_s21 = smov 0   ;;  %s7631_s0 = inlined_call_operand.vmem [shape: bf16[2,32,256], index: 0, kind: input, shape index: {}]   ;;  %s7632_s1 = inlined_call_operand.vmem [shape: f32[32,1], index: 1, kind: input, shape index: {}]   ;;  %s7633_s2 = inlined_call_operand.vmem [shape: f32[32,1], index: 2, kind: input, shape index: {}]   ;;  %s7634_s3 = inlined_call_operand.vmem [shape: bf16[288,32], index: 3, kind: input, shape index: {}]   ;;  %s7635_s4 = inlined_call_operand.vmem [shape: f32[1,32], index: 4, kind: input, shape index: {}]   ;;  %s7636_s5 = inlined_call_operand.vmem [shape: bf16[2,32,256], index: 5, kind: output, shape index: {0}]   ;;  %s7637_s6 = inlined_call_operand.vmem [shape: f32[2,2,32], index: 6, kind: output, shape index: {1}]  }
   0x1 LB: > { %s4618_s22 = sadd.s32 4294967295, %s5223_s21   ;;  %p4622_p0 = scmp.ge.s32.totalorder %s5223_s21, 1  ;;  %s5223_s21 = sphi %s5266_s21, %s17_s21  }
   0x2   : > { %p215_p1 = scmp.lt.s32.totalorder %s5223_s21, 3 }
   0x4   : > { %p216_p2 = pnand %p4622_p0, %p215_p1 }
   0x6   : > { %219 = sbr.rel (%p216_p2) target bundleno = 971 (0x3cb), region = 40 }
   0xb   : > { %v5277_v0 = vld [vmem:[%s7633_s2] sm:$0xff]  ;;  %v5282_v1 = vld [vmem:[%s7633_s2 + $0x8] sm:$0xff]  ;;  %vm428_vm0 = vcmask 257024   ;;  %vm431_vm1 = vcmask 253952   ;;  %v5225_v3 = vmov 0   ;;  %v5299_v6 = vld [vmem:[%s7633_s2 + $0x10] sm:$0xff] }
   0xc   : > { %v5287_v2 = vld [vmem:[%s7632_s1] sm:$0xff]  ;;  %5096 = vset.pattern.permute.xlu1 %v5225_v3  ;;  %5095 = vset.pattern.permute.xlu0 %v5225_v3  ;;  %v278_v4 = vpack.c.bf16 %v5282_v1, %v5277_v0  ;;  %v269_v5 = vld [vmem:[%s7632_s1 + $0x8] sm:$0xff]  ;;  %v5304_v7 = vld [vmem:[%s7633_s2 + $0x18] sm:$0xff]  ;;  %429 = vst.msk [vmem:[#allocation2] sm:$0xf] %vm428_vm0, %v5225_v3  ;;  %vm1504_vm4 = vcmask 1042432  }
   0xd   : > { %430 = vst.msk [vmem:[#allocation2 + $0x4] sm:$0xf] %vm428_vm0, %v5225_v3  ;;  %433 = vst.msk [vmem:[#allocation2 + $0xc] sm:$0xf] %vm428_vm0, %v5225_v3  ;;  %v272_v8 = vpack.c.bf16 %v269_v5, %v5287_v2  ;;  %v270_v9 = vld [vmem:[%s7632_s1 + $0x10] sm:$0xff]  ;;  %v271_v10 = vld [vmem:[%s7632_s1 + $0x18] sm:$0xff]  ;;  %v279_v11 = vpack.c.bf16 %v5304_v7, %v5299_v6 }
   0xe   : > { %432 = vst.msk [vmem:[#allocation2 + $0x8] sm:$0x1] %vm431_vm1, %v5225_v3  ;;  %435 = vst.msk [vmem:[#allocation2 + $0x14] sm:$0x1] %vm431_vm1, %v5225_v3  ;;  %328 = vperm.xlu1 %5096, %v278_v4   ;;  %v273_v12 = vpack.c.bf16 %v271_v10, %v270_v9  ;;  %vm1053_vm2 = vsmask.f32 3328  ;;  %v293_v4 = vlaneseq }
   0xf   : > { %434 = vst.msk [vmem:[#allocation2 + $0x10] sm:$0xf] %vm428_vm0, %v5225_v3  ;;  %436 = vst.msk [vmem:[#allocation2 + $0x18] sm:$0xf] %vm428_vm0, %v5225_v3  ;;  %282 = vperm.xlu0 %5095, %v272_v8   ;;  %vm1054_vm3 = vsmask.f32 7440 }
  0x10   : > { %437 = vst.msk [vmem:[#allocation2 + $0x1c] sm:$0xf] %vm428_vm0, %v5225_v3  ;;  %439 = vst.msk [vmem:[#allocation2 + $0x24] sm:$0xf] %vm428_vm0, %v5225_v3  ;;  %vm1505_vm5 = vcmask 1046532   ;;  %s5226_s15 = smov 64  }
  0x11   : > { %438 = vst.msk [vmem:[#allocation2 + $0x20] sm:$0x1] %vm431_vm1, %v5225_v3  ;;  %441 = vst.msk [vmem:[#allocation2 + $0x2c] sm:$0x1] %vm431_vm1, %v5225_v3  ;;  %s5227_s16 = smov 32   ;;  %s5228_s17 = smov 96  }
  0x12   : > { %440 = vst.msk [vmem:[#allocation2 + $0x28] sm:$0xf] %vm428_vm0, %v5225_v3  ;;  %442 = vst.msk [vmem:[#allocation2 + $0x30] sm:$0xf] %vm428_vm0, %v5225_v3  ;;  %332 = vperm.xlu1 %5096, %v279_v11   ;;  %p249_p3 = scmp.lt.s32.totalorder %s4618_s22, 1  ;;  %v294_v8 = vshrl.u32 %v293_v4, 7 }
  0x13   : > { %443 = vst.msk [vmem:[#allocation2 + $0x34] sm:$0xf] %vm428_vm0, %v5225_v3  ;;  %445 = vst.msk [vmem:[#allocation2 + $0x3c] sm:$0xf] %vm428_vm0, %v5225_v3  ;;  %286 = vperm.xlu0 %5095, %v273_v12   ;;  %v5423_v13 = vld [vmem:[#allocation2] sm:$0xf] }
  0x14   : > { %444 = vst.msk [vmem:[#allocation2 + $0x38] sm:$0x1] %vm431_vm1, %v5225_v3  ;;  %447 = vst.msk [vmem:[#allocation2 + $0x44] sm:$0x1] %vm431_vm1, %v5225_v3  ;;  %v5425_v14 = vld [vmem:[#allocation2 + $0x4] sm:$0xf] }
  0x15   : > { %446 = vst.msk [vmem:[#allocation2 + $0x40] sm:$0xf] %vm428_vm0, %v5225_v3  ;;  %448 = vst.msk [vmem:[#allocation2 + $0x48] sm:$0xf] %vm428_vm0, %v5225_v3  ;;  %v1037_v15 = vld [vmem:[#allocation2 + $0x8] sm:$0x1] }
  0x16   : > { %449 = vst.msk [vmem:[#allocation2 + $0x4c] sm:$0xf] %vm428_vm0, %v5225_v3  ;;  %451 = vst.msk [vmem:[#allocation2 + $0x54] sm:$0xf] %vm428_vm0, %v5225_v3  ;;  %v1057_v16 = vshrl.u32 %v5423_v13, 16  ;;  %v1060_v17 = vshll.u32 %v5423_v13, 16 }
  0x17   : > { %450 = vst.msk [vmem:[#allocation2 + $0x50] sm:$0x1] %vm431_vm1, %v5225_v3  ;;  %453 = vst.msk [vmem:[#allocation2 + $0x5c] sm:$0x1] %vm431_vm1, %v5225_v3  ;;  %v1066_v18 = vshll.u32 %v5425_v14, 16  ;;  %v1070_v19 = vshrl.u32 %v5425_v14, 16 }
  0x18   : > { %452 = vst.msk [vmem:[#allocation2 + $0x58] sm:$0xf] %vm428_vm0, %v5225_v3  ;;  %454 = vst.msk [vmem:[#allocation2 + $0x60] sm:$0xf] %vm428_vm0, %v5225_v3  ;;  %v1440_v20 = vld [vmem:[#allocation2] sm:$0xe] }
  0x19   : > { %455 = vst.msk [vmem:[#allocation2 + $0x64] sm:$0xf] %vm428_vm0, %v5225_v3  ;;  %457 = vst.msk [vmem:[#allocation2 + $0x6c] sm:$0xf] %vm428_vm0, %v5225_v3  ;;  %v1076_v21 = vshll.u32 %v1037_v15, 16  ;;  %v4664_v22 = vrot.slane %v1440_v20, 9 }
  0x1a   : > { %456 = vst.msk [vmem:[#allocation2 + $0x68] sm:$0x1] %vm431_vm1, %v5225_v3  ;;  %459 = vst.msk [vmem:[#allocation2 + $0x74] sm:$0x1] %vm431_vm1, %v5225_v3  ;;  %v1509_v23 = vrot.slane %v5425_v14, 5  ;;  %v1059_v25 = vrot.slane %v1057_v16, 4 }
  0x1b   : > { %458 = vst.msk [vmem:[#allocation2 + $0x70] sm:$0xf] %vm428_vm0, %v5225_v3  ;;  %460 = vst.msk [vmem:[#allocation2 + $0x78] sm:$0xf] %vm428_vm0, %v5225_v3  ;;  %v1062_v26 = vrot.slane %v1060_v17, 5  ;;  %v1068_v27 = vrot.slane %v1066_v18, 5 }
  0x1c   : > { %461 = vst.msk [vmem:[#allocation2 + $0x7c] sm:$0xf] %vm428_vm0, %v5225_v3  ;;  %463 = vst.msk [vmem:[#allocation2 + $0x84] sm:$0xf] %vm428_vm0, %v5225_v3  ;;  %v1072_v28 = vrot.slane %v1070_v19, 4  ;;  %v1078_v30 = vrot.slane %v1076_v21, 5 }
  0x1d   : > { %462 = vst.msk [vmem:[#allocation2 + $0x80] sm:$0x1] %vm431_vm1, %v5225_v3  ;;  %465 = vst.msk [vmem:[#allocation2 + $0x8c] sm:$0x1] %vm431_vm1, %v5225_v3  ;;  %v1511_v31 = vrot.slane %v1509_v23, 4  ;;  %v1512_v32 = vrot.slane %v1037_v15, 5  ;;  %v1063_v34 = vor.u32 %v1062_v26, %v1059_v25 }
  0x1e   : > { %464 = vst.msk [vmem:[#allocation2 + $0x88] sm:$0xf] %vm428_vm0, %v5225_v3  ;;  %466 = vst.msk [vmem:[#allocation2 + $0x90] sm:$0xf] %vm428_vm0, %v5225_v3  ;;  %v1073_v35 = vor.u32 %v1072_v28, %v1068_v27  ;;  %v5229_v1 = vmov 839922192  }
  0x1f   : > { %467 = vst.msk [vmem:[#allocation2 + $0x94] sm:$0xf] %vm428_vm0, %v5225_v3  ;;  %469 = vst.msk [vmem:[#allocation2 + $0x9c] sm:$0xf] %vm428_vm0, %v5225_v3  ;;  %v1064_v43 = vrot.slane %v1063_v34, 4  ;;  %v291_v2 = vunpack.c.l.s4 %v5229_v1  ;;  %s7860_s22 = smov (!%p249_p3, %s4618_s22), 1 }
  0x20   : > { %468 = vst.msk [vmem:[#allocation2 + $0x98] sm:$0x1] %vm431_vm1, %v5225_v3  ;;  %471 = vst.msk [vmem:[#allocation2 + $0xa4] sm:$0x1] %vm431_vm1, %v5225_v3  ;;  %v1074_v44 = vrot.slane %v1073_v35, 4  ;;  %s4897_s18 = sshll.u32 %s7860_s22, 5 }
  0x21   : > { %470 = vst.msk [vmem:[#allocation2 + $0xa0] sm:$0xf] %vm428_vm0, %v5225_v3  ;;  %472 = vst.msk [vmem:[#allocation2 + $0xa8] sm:$0xf] %vm428_vm0, %v5225_v3  ;;  %v5230_v5 = vmov 1985246804   ;;  %v292_v7 = vunpack.c.0.s8 %v291_v2  ;;  %s253_s23 = scalar_lea.vmem %s7631_s0, %s4897_s18  ;;  %s258_s7 = scalar_lea.vmem %s7636_s5, %s4897_s18 }
  0x22   : > { %473 = vst.msk [vmem:[#allocation2 + $0xac] sm:$0xf] %vm428_vm0, %v5225_v3  ;;  %475 = vst.msk [vmem:[#allocation2 + $0xb4] sm:$0xf] %vm428_vm0, %v5225_v3  ;;  %v298_v6 = vunpack.c.l.s4 %v5230_v5  ;;  %v264_v16 = vld [vmem:[%s253_s23] sm:$0xff]  ;;  %v265_v17 = vld [vmem:[%s253_s23 + $0x8] sm:$0xff] }
  0x23   : > { %474 = vst.msk [vmem:[#allocation2 + $0xb0] sm:$0x1] %vm431_vm1, %v5225_v3  ;;  %477 = vst.msk [vmem:[#allocation2 + $0xbc] sm:$0x1] %vm431_vm1, %v5225_v3  ;;  %v295_v10 = vsub.s32 %v292_v7, %v294_v8  ;;  %v266_v26 = vld [vmem:[%s253_s23 + $0x10] sm:$0xff]  ;;  %vm3508_vm14 = vcmask 261120  }
  0x24   : > { %476 = vst.msk [vmem:[#allocation2 + $0xb8] sm:$0xf] %vm428_vm0, %v5225_v3  ;;  %478 = vst.msk [vmem:[#allocation2 + $0xc0] sm:$0xf] %vm428_vm0, %v5225_v3  ;;  %v299_v9 = vunpack.c.0.s8 %v298_v6  ;;  %vm564_vm8 = vsmask.f32 256 }
  0x25   : > { %479 = vst.msk [vmem:[#allocation2 + $0xc4] sm:$0xf] %vm428_vm0, %v5225_v3  ;;  %481 = vst.msk [vmem:[#allocation2 + $0xcc] sm:$0xf] %vm428_vm0, %v5225_v3  ;;  %vm565_vm9 = vsmask.f32 4368 }
  0x26   : > { %480 = vst.msk [vmem:[#allocation2 + $0xc8] sm:$0x1] %vm431_vm1, %v5225_v3  ;;  %483 = vst.msk [vmem:[#allocation2 + $0xd4] sm:$0x1] %vm431_vm1, %v5225_v3  ;;  %v302_v11 = vsub.s32 %v299_v9, %v294_v8  ;;  %vm889_vm10 = vsmask.f32 7938 }
  0x27   : > { %482 = vst.msk [vmem:[#allocation2 + $0xd0] sm:$0xf] %vm428_vm0, %v5225_v3  ;;  %vm5434_vm6 = vmor %vm1504_vm4, %vm1505_vm5  ;;  %vm3557_vm15 = vcmask 523264   ;;  %s4627_s25 = sshll.u32 %s7860_s22, 1 }
  0x28   : > { %vm5440_vm7 = vmor %vm1053_vm2, %vm1054_vm3  ;;  %v1510_v46 = vsel %vm5434_vm6, %v4664_v22, %v1509_v23  ;;  %v1513_v52 = vsel %vm5434_vm6, %v1511_v31, %v1512_v32  ;;  %s262_s28 = scalar_lea.vmem %s7637_s6, %s4627_s25 }
  0x29   : > { %v1069_v50 = vsel %vm5440_vm7, %v1064_v43, %v1068_v27  ;;  %v1079_v51 = vsel %vm5440_vm7, %v1074_v44, %v1078_v30  ;;  %v4744_v58 = vcombine.low %v1510_v46, %v1513_v52  ;;  %v267_v27 = vld [vmem:[%s253_s23 + $0x18] sm:$0xff]  ;;  %vm5488_vm11 = vmand %vm431_vm1, %vm564_vm8 }
  0x2a   : > { %v4728_v54 = vcombine.low %v1069_v50, %v1079_v51  ;;  %vm5493_vm12 = vmor %vm564_vm8, %vm565_vm9 }
  0x2b   : > { %vm5499_vm13 = vmand %vm428_vm0, %vm889_vm10 }
  0x2c   : > { %v2258_v24 = vld [vmem:[#allocation2 + $0xcc] sm:$0xf]  ;;  %2948 = vrot.lane.b32.xlu1 %v4728_v54, %s5227_s16 }
  0x2d   : > { %v2637_v33 = vshrl.u32 %v2258_v24, 16  ;;  %v2640_v37 = vshll.u32 %v2258_v24, 16  ;;  %v2275_v39 = vld [vmem:[#allocation2 + $0xd4] sm:$0x1] }
  0x2e   : > { %v2259_v29 = vld [vmem:[#allocation2 + $0xd0] sm:$0xf]  ;;  %v2656_v49 = vshll.u32 %v2275_v39, 16 }
  0x2f   : > { %v2650_v38 = vshrl.u32 %v2259_v29, 16  ;;  %v2639_v41 = vrot.slane %v2637_v33, 4  ;;  %v4823_v42 = vcombine.low %v2258_v24, %v2259_v29  ;;  %v2642_v45 = vrot.slane %v2640_v37, 5 }
  0x30   : > { %v2646_v47 = vshll.u32 %v2259_v29, 16  ;;  %v2658_v60 = vrot.slane %v2656_v49, 5  ;;  %3028 = vrot.lane.b32.xlu1 %v4744_v58, %s5226_s15 }
  0x31   : > { %3378 = vrot.lane.b32.xlu0 %v4823_v42, %s5226_s15  ;;  %v2652_v48 = vrot.slane %v2650_v38, 4  ;;  %v2643_v53 = vor.u32 %v2642_v45, %v2639_v41 }
  0x32   : > { %v2648_v55 = vrot.slane %v2646_v47, 5 }
  0x33   : > { %v2644_v57 = vrot.slane %v2643_v53, 4 }
  0x34   : > { %v2653_v59 = vor.u32 %v2652_v48, %v2648_v55 }
  0x35   : > { %v2649_v61 = vsel %vm5440_vm7, %v2644_v57, %v2648_v55 }
  0x36   : > { %v2654_v62 = vrot.slane %v2653_v59, 4 }
  0x38   : > { %v2659_v63 = vsel %vm5440_vm7, %v2654_v62, %v2658_v60 }
  0x39   : > { %v4839_v0 = vcombine.low %v2649_v61, %v2659_v63 }
  0x3b   : > { %3458 = vrot.lane.b32.xlu0 %v4839_v0, %s5228_s17 }
  0x89   : > { %v329_v12 = vpop.permute.xlu1 %328 }
  0x8a   : > { %v283_v15 = vpop.permute.xlu0 %282  ;;  %v342_v18 = vrot.slane %v329_v12, %v295_v10  ;;  %v349_v19 = vrot.slane %v329_v12, %v302_v11  ;;  %v891_v12 = vld [vmem:[#allocation2 + $0xc] sm:$0xf] }
  0x8b   : > { %v296_v20 = vrot.slane %v283_v15, %v295_v10  ;;  %v303_v21 = vrot.slane %v283_v15, %v302_v11  ;;  %v897_v15 = vld [vmem:[#allocation2 + $0x14] sm:$0x1] }
  0x8d   : > { %v322_v22 = vmul.bf16 %v296_v20, %v264_v16  ;;  %v323_v23 = vmul.bf16 %v303_v21, %v265_v17  ;;  %v333_v24 = vpop.permute.xlu1 %332 }
  0x8e   : > { %v287_v25 = vpop.permute.xlu0 %286  ;;  %v356_v32 = vrot.slane %v333_v24, %v295_v10  ;;  %v363_v33 = vrot.slane %v333_v24, %v302_v11 }
  0x8f   : > { %v368_v28 = vadd.bf16 %v342_v18, %v322_v22  ;;  %v369_v29 = vadd.bf16 %v349_v19, %v323_v23  ;;  %v310_v30 = vrot.slane %v287_v25, %v295_v10  ;;  %v317_v31 = vrot.slane %v287_v25, %v302_v11 }
  0x91   : > { %v324_v34 = vmul.bf16 %v310_v30, %v266_v26  ;;  %v325_v35 = vmul.bf16 %v317_v31, %v267_v27  ;;  %v372_v37 = vmax.bf16 %v5225_v3, %v368_v28  ;;  %v373_v38 = vmax.bf16 %v5225_v3, %v369_v29 }
  0x93   : > { %v370_v39 = vadd.bf16 %v356_v32, %v324_v34  ;;  %v371_v41 = vadd.bf16 %v363_v33, %v325_v35  ;;  %v4629_v42 = vcombine.high %v372_v37, %v373_v38  ;;  %v4628_v43 = vcombine.low %v372_v37, %v373_v38  ;;  %v900_v33 = vld [vmem:[#allocation2 + $0x18] sm:$0xf] }
  0x95   : > { %412 = vxpose.xlu1.c.b16.start [1/2] (short) %v4629_v42, 128  ;;  %396 = vxpose.xlu0.c.b16.start [1/2] (short) %v4628_v43, 128  ;;  %v374_v44 = vmax.bf16 %v5225_v3, %v370_v39  ;;  %v375_v45 = vmax.bf16 %v5225_v3, %v371_v41  ;;  %v904_v39 = vld [vmem:[#allocation2 + $0x20] sm:$0x1] }
  0x97   : > { %v4631_v46 = vcombine.high %v374_v44, %v375_v45  ;;  %v4630_v47 = vcombine.low %v374_v44, %v375_v45 }
  0x99   : > { %413 = vxpose.xlu1.c.b16.end [2/2] (short) %v4631_v46, 128  ;;  %397 = vxpose.xlu0.c.b16.end [2/2] (short) %v4630_v47, 128 }
  0x9e   : > { %v5480_v49 = vpop.permute.xlu1 %2948 }
  0xa2   : > { %v5484_v51 = vpop.permute.xlu1 %3028 }
  0xa3   : > { %v5478_v48 = vpop.permute.xlu0 %3378 }
  0xa4   : > { %7679 = vst [vmem:[#allocation3_spill] sm:$0xff] %v5478_v48 }
  0xad   : > { %v5482_v50 = vpop.permute.xlu0 %3458 }
  0xae   : > { %7680 = vst [vmem:[#allocation4_spill] sm:$0xff] %v5482_v50 }
  0xf7   : > { %v404_v52 = vpop.trf.xlu0  ;;  %v420_v53 = vpop.trf.xlu1 }
  0xf8   : > { %v4632_v54 = vcombine.low %v404_v52, %v404_v52  ;;  %v4633_v55 = vcombine.high %v404_v52, %v404_v52  ;;  %v4648_v57 = vcombine.low %v420_v53, %v420_v53  ;;  %v4649_v58 = vcombine.high %v420_v53, %v420_v53  ;;  %v949_v53 = vld [vmem:[#allocation2 + $0x6c] sm:$0xf] }
  0xfa   : > { %v568_v3 = vshrl.u32 %v4632_v54, 16  ;;  %v571_v59 = vshll.u32 %v4632_v54, 16  ;;  %v576_v60 = vshrl.u32 %v4633_v55, 16  ;;  %v579_v61 = vshll.u32 %v4633_v55, 16 }
  0xfb   : > { %v405_v63 = vpop.trf.xlu0  ;;  %v704_v0 = vshrl.u32 %v4648_v57, 16  ;;  %v707_v1 = vshll.u32 %v4648_v57, 16  ;;  %v712_v2 = vshrl.u32 %v4649_v58, 16  ;;  %v715_v4 = vshll.u32 %v4649_v58, 16  ;;  %v421_v5 = vpop.trf.xlu1  ;;  %v953_v58 = vld [vmem:[#allocation2 + $0x74] sm:$0x1] }
  0xfc   : > { %v570_v7 = vrot.slane %v568_v3, 7  ;;  %v578_v8 = vrot.slane %v576_v60, 7  ;;  %v4634_v9 = vcombine.low %v405_v63, %v405_v63  ;;  %v4635_v10 = vcombine.high %v405_v63, %v405_v63 }
  0xfd   : > { %v706_v16 = vrot.slane %v704_v0, 7  ;;  %v714_v17 = vrot.slane %v712_v2, 7  ;;  %v5503_v18 = vcombine.low %v421_v5, %v421_v5  ;;  %v5505_v19 = vcombine.high %v421_v5, %v421_v5  ;;  %v907_v0 = vld [vmem:[#allocation2 + $0x24] sm:$0xf] }
  0xfe   : > { %v573_v20 = vor.u32 %v571_v59, %v570_v7  ;;  %v574_v21 = vrot.slane %v570_v7, 4  ;;  %v581_v22 = vor.u32 %v579_v61, %v578_v8  ;;  %v583_v23 = vrot.slane %v578_v8, 4  ;;  %v911_v8 = vld [vmem:[#allocation2 + $0x2c] sm:$0x1] }
  0xff   : > { %v585_v24 = vshrl.u32 %v4634_v9, 16  ;;  %v588_v25 = vshll.u32 %v4634_v9, 16  ;;  %v593_v26 = vshrl.u32 %v4635_v10, 16  ;;  %v596_v27 = vshll.u32 %v4635_v10, 16  ;;  %v406_v28 = vpop.trf.xlu0 }
 0x100   : > { %v582_v29 = vsel %vm5493_vm12, %v574_v21, %v581_v22  ;;  %v892_v30 = vsel %vm5499_vm13, %v573_v20, %v891_v12  ;;  %v898_v31 = vsel %vm5488_vm11, %v583_v23, %v897_v15  ;;  %v4636_v32 = vcombine.low %v406_v28, %v406_v28 }
 0x101   : > { %893 = vst [vmem:[#allocation2 + $0xc] sm:$0xf] %v892_v30  ;;  %894 = vst.msk [vmem:[#allocation2 + $0x10] sm:$0xf] %vm428_vm0, %v582_v29  ;;  %v587_v34 = vrot.slane %v585_v24, 7  ;;  %v595_v35 = vrot.slane %v593_v26, 7  ;;  %v4637_v37 = vcombine.high %v406_v28, %v406_v28  ;;  %v709_v38 = vor.u32 %v707_v1, %v706_v16 }
 0x102   : > { %899 = vst [vmem:[#allocation2 + $0x14] sm:$0x1] %v898_v31  ;;  %v602_v41 = vshrl.u32 %v4636_v32, 16  ;;  %v605_v42 = vshll.u32 %v4636_v32, 16  ;;  %v710_v43 = vrot.slane %v706_v16, 4  ;;  %v717_v44 = vor.u32 %v715_v4, %v714_v17 }
 0x103   : > { %v590_v45 = vor.u32 %v588_v25, %v587_v34  ;;  %v591_v46 = vrot.slane %v587_v34, 4  ;;  %v598_v47 = vor.u32 %v596_v27, %v595_v35  ;;  %v600_v52 = vrot.slane %v595_v35, 4  ;;  %v407_v59 = vpop.trf.xlu0  ;;  %v914_v28 = vld [vmem:[#allocation2 + $0x30] sm:$0xf]  ;;  %v918_v29 = vld [vmem:[#allocation2 + $0x38] sm:$0x1] }
 0x104   : > { %v604_v54 = vrot.slane %v602_v41, 7  ;;  %v610_v55 = vshrl.u32 %v4637_v37, 16  ;;  %v613_v57 = vshll.u32 %v4637_v37, 16  ;;  %v718_v3 = vsel %vm5493_vm12, %v710_v43, %v717_v44 }
 0x105   : > { %v599_v60 = vsel %vm5493_vm12, %v591_v46, %v598_v47  ;;  %v901_v61 = vsel %vm5499_vm13, %v590_v45, %v900_v33  ;;  %v905_v63 = vsel %vm5488_vm11, %v600_v52, %v904_v39  ;;  %v719_v1 = vrot.slane %v714_v17, 4  ;;  %952 = vst.msk [vmem:[#allocation2 + $0x70] sm:$0xf] %vm428_vm0, %v718_v3  ;;  %v956_v33 = vld [vmem:[#allocation2 + $0x78] sm:$0xf] }
 0x106   : > { %902 = vst [vmem:[#allocation2 + $0x18] sm:$0xf] %v901_v61  ;;  %903 = vst.msk [vmem:[#allocation2 + $0x1c] sm:$0xf] %vm428_vm0, %v599_v60  ;;  %v607_v2 = vor.u32 %v605_v42, %v604_v54  ;;  %v608_v4 = vrot.slane %v604_v54, 4  ;;  %v612_v5 = vrot.slane %v610_v55, 7  ;;  %v950_v7 = vsel %vm5499_vm13, %v709_v38, %v949_v53  ;;  %v422_v54 = vpop.trf.xlu1 }
 0x107   : > { %906 = vst [vmem:[#allocation2 + $0x20] sm:$0x1] %v905_v63  ;;  %951 = vst [vmem:[#allocation2 + $0x6c] sm:$0xf] %v950_v7  ;;  %v954_v9 = vsel %vm5488_vm11, %v719_v1, %v953_v58  ;;  %v4638_v10 = vcombine.low %v407_v59, %v407_v59  ;;  %v4639_v12 = vcombine.high %v407_v59, %v407_v59  ;;  %v721_v15 = vshrl.u32 %v5503_v18, 16 }
 0x108   : > { %v615_v16 = vor.u32 %v613_v57, %v612_v5  ;;  %v617_v17 = vrot.slane %v612_v5, 4  ;;  %v908_v20 = vsel %vm5499_vm13, %v607_v2, %v907_v0  ;;  %955 = vst [vmem:[#allocation2 + $0x74] sm:$0x1] %v954_v9  ;;  %v724_v21 = vshll.u32 %v5503_v18, 16  ;;  %v5539_v39 = vld [vmem:[#allocation2 + $0xc] sm:$0xf] }
 0x109   : > { %909 = vst [vmem:[#allocation2 + $0x24] sm:$0xf] %v908_v20  ;;  %v619_v22 = vshrl.u32 %v4638_v10, 16  ;;  %v622_v23 = vshll.u32 %v4638_v10, 16  ;;  %v627_v24 = vshrl.u32 %v4639_v12, 16  ;;  %v630_v25 = vshll.u32 %v4639_v12, 16 }
 0x10a   : > { %v616_v26 = vsel %vm5493_vm12, %v608_v4, %v615_v16  ;;  %v912_v27 = vsel %vm5488_vm11, %v617_v17, %v911_v8  ;;  %v723_v30 = vrot.slane %v721_v15, 7  ;;  %v729_v31 = vshrl.u32 %v5505_v19, 16  ;;  %v5541_v41 = vld [vmem:[#allocation2 + $0x10] sm:$0xf]  ;;  %v960_v46 = vld [vmem:[#allocation2 + $0x80] sm:$0x1]  ;;  %v423_v16 = vpop.trf.xlu1 }
 0x10b   : > { %910 = vst.msk [vmem:[#allocation2 + $0x28] sm:$0xf] %vm428_vm0, %v616_v26  ;;  %913 = vst [vmem:[#allocation2 + $0x2c] sm:$0x1] %v912_v27  ;;  %v621_v18 = vrot.slane %v619_v22, 7  ;;  %v629_v32 = vrot.slane %v627_v24, 7  ;;  %v4760_v58 = vcombine.low %v5539_v39, %v5541_v41  ;;  %v4652_v63 = vcombine.low %v422_v54, %v422_v54 }
 0x10c   : > { %v732_v34 = vshll.u32 %v5505_v19, 16  ;;  %v726_v35 = vor.u32 %v724_v21, %v723_v30  ;;  %v727_v37 = vrot.slane %v723_v30, 4  ;;  %v731_v38 = vrot.slane %v729_v31, 7  ;;  %v963_v17 = vld [vmem:[#allocation2 + $0x84] sm:$0xf] }
 0x10d   : > { %v624_v42 = vor.u32 %v622_v23, %v621_v18  ;;  %v625_v43 = vrot.slane %v621_v18, 4  ;;  %v632_v44 = vor.u32 %v630_v25, %v629_v32  ;;  %v634_v45 = vrot.slane %v629_v32, 4  ;;  %v5553_v3 = vld [vmem:[#allocation2 + $0x18] sm:$0xf]  ;;  %v5555_v59 = vld [vmem:[#allocation2 + $0x1c] sm:$0xf]  ;;  %3124 = vrot.lane.b32.xlu1 %v4760_v58, %s5228_s17  ;;  %v408_v25 = vpop.trf.xlu0 }
 0x10e   : > { %v734_v47 = vor.u32 %v732_v34, %v731_v38  ;;  %v736_v52 = vrot.slane %v731_v38, 4  ;;  %v957_v53 = vsel %vm5499_vm13, %v726_v35, %v956_v33  ;;  %v4653_v0 = vcombine.high %v422_v54, %v422_v54  ;;  %v5566_v2 = vld [vmem:[#allocation2 + $0x18] sm:$0xf]  ;;  %v5568_v4 = vld [vmem:[#allocation2 + $0x1c] sm:$0xf] }
 0x10f   : > { %v633_v19 = vsel %vm5493_vm12, %v625_v43, %v632_v44  ;;  %v915_v55 = vsel %vm5499_vm13, %v624_v42, %v914_v28  ;;  %v919_v57 = vsel %vm5488_vm11, %v634_v45, %v918_v29  ;;  %958 = vst [vmem:[#allocation2 + $0x78] sm:$0xf] %v957_v53  ;;  %v4808_v1 = vcombine.low %v5553_v3, %v5555_v59  ;;  %v967_v20 = vld [vmem:[#allocation2 + $0x8c] sm:$0x1]  ;;  %v970_v33 = vld [vmem:[#allocation2 + $0x90] sm:$0xf] }
 0x110   : > { %916 = vst [vmem:[#allocation2 + $0x30] sm:$0xf] %v915_v55  ;;  %917 = vst.msk [vmem:[#allocation2 + $0x34] sm:$0xf] %vm428_vm0, %v633_v19  ;;  %v735_v60 = vsel %vm5493_vm12, %v727_v37, %v734_v47  ;;  %v961_v61 = vsel %vm5488_vm11, %v736_v52, %v960_v46  ;;  %v738_v5 = vshrl.u32 %v4652_v63, 16  ;;  %v741_v7 = vshll.u32 %v4652_v63, 16 }
 0x111   : > { %920 = vst [vmem:[#allocation2 + $0x38] sm:$0x1] %v919_v57  ;;  %959 = vst.msk [vmem:[#allocation2 + $0x7c] sm:$0xf] %vm428_vm0, %v735_v60  ;;  %v746_v8 = vshrl.u32 %v4653_v0, 16  ;;  %v749_v9 = vshll.u32 %v4653_v0, 16  ;;  %3348 = vrot.lane.b32.xlu0 %v4808_v1, %s5226_s15  ;;  %v4761_v15 = vcombine.low %v5566_v2, %v5568_v4  ;;  %v4654_v26 = vcombine.low %v423_v16, %v423_v16 }
 0x112   : > { %962 = vst [vmem:[#allocation2 + $0x80] sm:$0x1] %v961_v61  ;;  %v740_v10 = vrot.slane %v738_v5, 7  ;;  %v4655_v30 = vcombine.high %v423_v16, %v423_v16  ;;  %v4640_v32 = vcombine.low %v408_v25, %v408_v25  ;;  %v4641_v37 = vcombine.high %v408_v25, %v408_v25  ;;  %v974_v38 = vld [vmem:[#allocation2 + $0x98] sm:$0x1] }
 0x113   : > { %v748_v12 = vrot.slane %v746_v8, 7  ;;  %3126 = vrot.lane.b32.xlu1 %v4761_v15, %s5228_s17  ;;  %v755_v31 = vshrl.u32 %v4654_v26, 16  ;;  %v758_v18 = vshll.u32 %v4654_v26, 16  ;;  %v2051_v45 = vld [vmem:[#allocation2 + $0xc] sm:$0xe]  ;;  %v2117_v58 = vrot.slane %v5541_v41, 5  ;;  %v424_v15 = vpop.trf.xlu1 }
 0x114   : > { %v743_v21 = vor.u32 %v741_v7, %v740_v10  ;;  %v744_v22 = vrot.slane %v740_v10, 4  ;;  %v763_v34 = vshrl.u32 %v4655_v30, 16  ;;  %v766_v35 = vshll.u32 %v4655_v30, 16  ;;  %v921_v47 = vld [vmem:[#allocation2 + $0x3c] sm:$0xf] }
 0x115   : > { %v751_v23 = vor.u32 %v749_v9, %v748_v12  ;;  %v753_v24 = vrot.slane %v748_v12, 4  ;;  %v757_v42 = vrot.slane %v755_v31, 7  ;;  %v636_v43 = vshrl.u32 %v4640_v32, 16  ;;  %v5581_v54 = vld [vmem:[#allocation2 + $0x14] sm:$0x1] }
 0x116   : > { %v964_v28 = vsel %vm5499_vm13, %v743_v21, %v963_v17  ;;  %v639_v44 = vshll.u32 %v4640_v32, 16  ;;  %v765_v46 = vrot.slane %v763_v34, 7  ;;  %v644_v52 = vshrl.u32 %v4641_v37, 16  ;;  %v5584_v60 = vld [vmem:[#allocation2 + $0x10] sm:$0xf] }
 0x117   : > { %v752_v27 = vsel %vm5493_vm12, %v744_v22, %v751_v23  ;;  %v968_v29 = vsel %vm5488_vm11, %v753_v24, %v967_v20  ;;  %965 = vst [vmem:[#allocation2 + $0x84] sm:$0xf] %v964_v28  ;;  %v647_v53 = vshll.u32 %v4641_v37, 16  ;;  %v760_v19 = vor.u32 %v758_v18, %v757_v42  ;;  %v1441_v5 = vld [vmem:[#allocation2 + $0xc] sm:$0xe] }
 0x118   : > { %966 = vst.msk [vmem:[#allocation2 + $0x88] sm:$0xf] %vm428_vm0, %v752_v27  ;;  %969 = vst [vmem:[#allocation2 + $0x8c] sm:$0x1] %v968_v29  ;;  %v761_v55 = vrot.slane %v757_v42, 4  ;;  %v638_v57 = vrot.slane %v636_v43, 7  ;;  %v768_v61 = vor.u32 %v766_v35, %v765_v46  ;;  %v4656_v30 = vcombine.low %v424_v15, %v424_v15 }
 0x119   : > { %v770_v63 = vrot.slane %v765_v46, 4  ;;  %v646_v0 = vrot.slane %v644_v52, 7  ;;  %v4680_v1 = vrot.slane %v2051_v45, 9  ;;  %v971_v7 = vsel %vm5499_vm13, %v760_v19, %v970_v33  ;;  %v925_v8 = vld [vmem:[#allocation2 + $0x44] sm:$0x1] }
 0x11a   : > { %v641_v9 = vor.u32 %v639_v44, %v638_v57  ;;  %v642_v10 = vrot.slane %v638_v57, 4  ;;  %v2120_v12 = vrot.slane %v5581_v54, 5  ;;  %v769_v16 = vsel %vm5493_vm12, %v761_v55, %v768_v61  ;;  %972 = vst [vmem:[#allocation2 + $0x90] sm:$0xf] %v971_v7  ;;  %v5593_v22 = vld [vmem:[#allocation2 + $0x14] sm:$0x1] }
 0x11b   : > { %v975_v17 = vsel %vm5488_vm11, %v770_v63, %v974_v38  ;;  %v649_v20 = vor.u32 %v647_v53, %v646_v0  ;;  %v651_v21 = vrot.slane %v646_v0, 4  ;;  %973 = vst.msk [vmem:[#allocation2 + $0x94] sm:$0xf] %vm428_vm0, %v769_v16  ;;  %v2119_v24 = vrot.slane %v2117_v58, 4  ;;  %v977_v46 = vld [vmem:[#allocation2 + $0x9c] sm:$0xf]  ;;  %v425_v63 = vpop.trf.xlu1 }
 0x11c   : > { %976 = vst [vmem:[#allocation2 + $0x98] sm:$0x1] %v975_v17  ;;  %v922_v23 = vsel %vm5499_vm13, %v641_v9, %v921_v47  ;;  %v4665_v25 = vrot.slane %v1441_v5, 9  ;;  %v1516_v26 = vrot.slane %v5584_v60, 5  ;;  %v2118_v29 = vsel %vm5434_vm6, %v4680_v1, %v2117_v58  ;;  %v5614_v53 = vld [vmem:[#allocation2 + $0x24] sm:$0xf] }
 0x11d   : > { %v650_v27 = vsel %vm5493_vm12, %v642_v10, %v649_v20  ;;  %923 = vst [vmem:[#allocation2 + $0x3c] sm:$0xf] %v922_v23  ;;  %v926_v28 = vsel %vm5488_vm11, %v651_v21, %v925_v8  ;;  %v2121_v31 = vsel %vm5434_vm6, %v2119_v24, %v2120_v12  ;;  %v1519_v32 = vrot.slane %v5593_v22, 5  ;;  %v5616_v19 = vld [vmem:[#allocation2 + $0x28] sm:$0xf] }
 0x11e   : > { %924 = vst.msk [vmem:[#allocation2 + $0x40] sm:$0xf] %vm428_vm0, %v650_v27  ;;  %927 = vst [vmem:[#allocation2 + $0x44] sm:$0x1] %v926_v28  ;;  %v1518_v18 = vrot.slane %v1516_v26, 4  ;;  %v4657_v33 = vcombine.high %v424_v15, %v424_v15  ;;  %v4792_v34 = vcombine.low %v2118_v29, %v2121_v31  ;;  %v772_v35 = vshrl.u32 %v4656_v30, 16 }
 0x11f   : > { %v775_v37 = vshll.u32 %v4656_v30, 16  ;;  %v1517_v38 = vsel %vm5434_vm6, %v4665_v25, %v1516_v26  ;;  %7687 = vst [vmem:[#allocation5_spill] sm:$0xff] %v5616_v19  ;;  %v981_v55 = vld [vmem:[#allocation2 + $0xa4] sm:$0x1]  ;;  %v4809_v61 = vcombine.low %v5614_v53, %v5616_v19  ;;  %v5623_v7 = vld [vmem:[#allocation2 + $0x28] sm:$0xf]  ;;  %v4658_v16 = vcombine.low %v425_v63, %v425_v63 }
 0x120   : > { %v1520_v42 = vsel %vm5434_vm6, %v1518_v18, %v1519_v32  ;;  %v780_v43 = vshrl.u32 %v4657_v33, 16  ;;  %v783_v44 = vshll.u32 %v4657_v33, 16  ;;  %3252 = vrot.lane.b32.xlu0 %v4792_v34, %s5227_s16  ;;  %v774_v47 = vrot.slane %v772_v35, 7  ;;  %v5621_v5 = vld [vmem:[#allocation2 + $0x24] sm:$0xf]  ;;  %7688 = vst [vmem:[#allocation6_spill] sm:$0xff] %v5623_v7 }
 0x121   : > { %v4745_v45 = vcombine.low %v1517_v38, %v1520_v42  ;;  %v4762_v9 = vcombine.low %v5621_v5, %v5623_v7  ;;  %v2052_v10 = vld [vmem:[#allocation2 + $0x18] sm:$0xe]  ;;  %v1681_v17 = vshrl.u32 %v5541_v41, 16  ;;  %v1668_v20 = vshrl.u32 %v5539_v39, 16  ;;  %v1007_v24 = vld [vmem:[#allocation2 + $0xc] sm:$0xf] }
 0x122   : > { %v782_v52 = vrot.slane %v780_v43, 7  ;;  %v777_v57 = vor.u32 %v775_v37, %v774_v47  ;;  %v778_v58 = vrot.slane %v774_v47, 4  ;;  %v1671_v21 = vshll.u32 %v5539_v39, 16  ;;  %v5640_v28 = vld [vmem:[#allocation2 + $0x20] sm:$0x1] }
 0x123   : > { %3030 = vrot.lane.b32.xlu1 %v4745_v45, %s5226_s15  ;;  %v4659_v23 = vcombine.high %v425_v63, %v425_v63  ;;  %v2290_v25 = vshrl.u32 %v5555_v59, 16  ;;  %v789_v26 = vshrl.u32 %v4658_v16, 16  ;;  %v792_v27 = vshll.u32 %v4658_v16, 16  ;;  %7689 = vst [vmem:[#allocation7_spill] sm:$0xff] %v5640_v28  ;;  %v984_v37 = vld [vmem:[#allocation2 + $0xa8] sm:$0xf]  ;;  %v409_v63 = vpop.trf.xlu0 }
 0x124   : > { %v785_v0 = vor.u32 %v783_v44, %v782_v52  ;;  %v787_v1 = vrot.slane %v782_v52, 4  ;;  %v978_v8 = vsel %vm5499_vm13, %v777_v57, %v977_v46  ;;  %3350 = vrot.lane.b32.xlu0 %v4809_v61, %s5226_s15  ;;  %v4681_v29 = vrot.slane %v2052_v10, 9  ;;  %v988_v45 = vld [vmem:[#allocation2 + $0xb0] sm:$0x1]  ;;  %v5654_v10 = vld [vmem:[#allocation2 + $0x1c] sm:$0xf] }
 0x125   : > { %979 = vst [vmem:[#allocation2 + $0x9c] sm:$0xf] %v978_v8  ;;  %v2277_v30 = vshrl.u32 %v5553_v3, 16  ;;  %v797_v31 = vshrl.u32 %v4659_v23, 16  ;;  %v800_v18 = vshll.u32 %v4659_v23, 16  ;;  %v2124_v39 = vrot.slane %v5568_v4, 5 }
 0x126   : > { %v786_v12 = vsel %vm5493_vm12, %v778_v58, %v785_v0  ;;  %v982_v15 = vsel %vm5488_vm11, %v787_v1, %v981_v55  ;;  %v2280_v32 = vshll.u32 %v5553_v3, 16  ;;  %v791_v33 = vrot.slane %v789_v26, 7  ;;  %v5212_v36 = vld [vmem:[#allocation2 + $0x6c] sm:$0xf] }
 0x127   : > { %980 = vst.msk [vmem:[#allocation2 + $0xa0] sm:$0xf] %vm428_vm0, %v786_v12  ;;  %983 = vst [vmem:[#allocation2 + $0xa4] sm:$0x1] %v982_v15  ;;  %3128 = vrot.lane.b32.xlu1 %v4762_v9, %s5228_s17  ;;  %v1081_v34 = vshrl.u32 %v1007_v24, 16  ;;  %v1084_v35 = vshll.u32 %v1007_v24, 16  ;;  %v2125_v52 = vsel %vm5434_vm6, %v4681_v29, %v2124_v39  ;;  %v4642_v26 = vcombine.low %v409_v63, %v409_v63 }
 0x128   : > { %v799_v38 = vrot.slane %v797_v31, 7  ;;  %v2126_v42 = vrot.slane %v2124_v39, 4  ;;  %v2127_v43 = vrot.slane %v5640_v28, 5  ;;  %v1090_v44 = vshll.u32 %v5584_v60, 16  ;;  %v5665_v39 = vld [vmem:[#allocation2 + $0x20] sm:$0x1] }
 0x129   : > { %v794_v46 = vor.u32 %v792_v27, %v791_v33  ;;  %v795_v47 = vrot.slane %v791_v33, 4  ;;  %v1083_v55 = vrot.slane %v1081_v34, 4  ;;  %v1086_v61 = vrot.slane %v1084_v35, 5 }
 0x12a   : > { %v802_v57 = vor.u32 %v800_v18, %v799_v38  ;;  %v804_v58 = vrot.slane %v799_v38, 4  ;;  %v2128_v3 = vsel %vm5434_vm6, %v2126_v42, %v2127_v43  ;;  %v1092_v8 = vrot.slane %v1090_v44, 5 }
 0x12b   : > { %v985_v0 = vsel %vm5499_vm13, %v794_v46, %v984_v37  ;;  %v4793_v1 = vcombine.low %v2125_v52, %v2128_v3  ;;  %v1094_v9 = vshrl.u32 %v5584_v60, 16  ;;  %v1087_v16 = vor.u32 %v1086_v61, %v1083_v55  ;;  %v1442_v37 = vld [vmem:[#allocation2 + $0x18] sm:$0xe]  ;;  %v5672_v52 = vld [vmem:[#allocation2 + $0x34] sm:$0xf] }
 0x12c   : > { %v803_v12 = vsel %vm5493_vm12, %v795_v47, %v802_v57  ;;  %986 = vst [vmem:[#allocation2 + $0xa8] sm:$0xf] %v985_v0  ;;  %v989_v15 = vsel %vm5488_vm11, %v804_v58, %v988_v45  ;;  %v1100_v23 = vshll.u32 %v5593_v22, 16  ;;  %v5661_v24 = vrot.slane %v1668_v20, 4  ;;  %v5670_v45 = vld [vmem:[#allocation2 + $0x30] sm:$0xf] }
 0x12d   : > { %987 = vst.msk [vmem:[#allocation2 + $0xac] sm:$0xf] %vm428_vm0, %v803_v12  ;;  %990 = vst [vmem:[#allocation2 + $0xb0] sm:$0x1] %v989_v15  ;;  %3254 = vrot.lane.b32.xlu0 %v4793_v1, %s5227_s16  ;;  %v1096_v60 = vrot.slane %v1094_v9, 4  ;;  %v4643_v27 = vcombine.high %v409_v63, %v409_v63  ;;  %v1673_v29 = vrot.slane %v1671_v21, 5 }
 0x12e   : > { %v2279_v31 = vrot.slane %v2277_v30, 4  ;;  %v1088_v18 = vrot.slane %v1087_v16, 4  ;;  %v1523_v33 = vrot.slane %v5654_v10, 5  ;;  %v653_v35 = vshrl.u32 %v4642_v26, 16  ;;  %v928_v57 = vld [vmem:[#allocation2 + $0x48] sm:$0xf] }
 0x12f   : > { %v1097_v34 = vor.u32 %v1096_v60, %v1092_v8  ;;  %v656_v22 = vshll.u32 %v4642_v26, 16  ;;  %v661_v20 = vshrl.u32 %v4643_v27, 16  ;;  %v2282_v38 = vrot.slane %v2280_v32, 5  ;;  %v932_v63 = vld [vmem:[#allocation2 + $0x50] sm:$0x1] }
 0x130   : > { %v1093_v42 = vsel %vm5440_vm7, %v1088_v18, %v1092_v8  ;;  %v1102_v43 = vrot.slane %v1100_v23, 5  ;;  %v664_v44 = vshll.u32 %v4643_v27, 16  ;;  %v655_v30 = vrot.slane %v653_v35, 7  ;;  %v2260_v23 = vld [vmem:[#allocation2 + $0x20] sm:$0x1] }
 0x131   : > { %v1098_v21 = vrot.slane %v1097_v34, 4  ;;  %v663_v46 = vrot.slane %v661_v20, 7  ;;  %v1525_v47 = vrot.slane %v1523_v33, 4  ;;  %v1674_v55 = vor.u32 %v1673_v29, %v5661_v24 }
 0x132   : > { %v4666_v58 = vrot.slane %v1442_v37, 9  ;;  %v1526_v3 = vrot.slane %v5665_v39, 5  ;;  %v4810_v32 = vcombine.low %v5670_v45, %v5672_v52  ;;  %v658_v0 = vor.u32 %v656_v22, %v655_v30  ;;  %v2053_v37 = vld [vmem:[#allocation2 + $0x24] sm:$0xe] }
 0x133   : > { %v1103_v61 = vsel %vm5440_vm7, %v1098_v21, %v1102_v43  ;;  %v659_v1 = vrot.slane %v655_v30, 4  ;;  %v666_v8 = vor.u32 %v664_v44, %v663_v46  ;;  %v1692_v9 = vshrl.u32 %v5566_v2, 16  ;;  %v5704_v44 = vld [vmem:[#allocation2 + $0x2c] sm:$0x1]  ;;  %v1009_v21 = vld [vmem:[#allocation2 + $0x18] sm:$0xf] }
 0x134   : > { %v1695_v12 = vshll.u32 %v5566_v2, 16  ;;  %v4729_v15 = vcombine.low %v1093_v42, %v1103_v61  ;;  %v668_v16 = vrot.slane %v663_v46, 4  ;;  %3352 = vrot.lane.b32.xlu0 %v4810_v32, %s5226_s15  ;;  %v929_v60 = vsel %vm5499_vm13, %v658_v0, %v928_v57  ;;  %7690 = vst [vmem:[#allocation8_spill] sm:$0xff] %v5704_v44 }
 0x135   : > { %v667_v24 = vsel %vm5493_vm12, %v659_v1, %v666_v8  ;;  %v1527_v26 = vsel %vm5434_vm6, %v1525_v47, %v1526_v3  ;;  %v2283_v27 = vor.u32 %v2282_v38, %v2279_v31  ;;  %930 = vst [vmem:[#allocation2 + $0x48] sm:$0xf] %v929_v60  ;;  %v2286_v18 = vshll.u32 %v5555_v59, 16  ;;  %v5710_v47 = vld [vmem:[#allocation2 + $0x30] sm:$0xf] }
 0x136   : > { %2950 = vrot.lane.b32.xlu1 %v4729_v15, %s5227_s16  ;;  %931 = vst.msk [vmem:[#allocation2 + $0x4c] sm:$0xf] %vm428_vm0, %v667_v24  ;;  %v933_v2 = vsel %vm5488_vm11, %v668_v16, %v932_v63  ;;  %v2292_v34 = vrot.slane %v2290_v25, 4  ;;  %v5699_v35 = vrot.slane %v1681_v17, 4  ;;  %v1524_v22 = vsel %vm5434_vm6, %v4666_v58, %v1523_v33  ;;  %v5712_v33 = vld [vmem:[#allocation2 + $0x34] sm:$0xf] }
 0x137   : > { %934 = vst [vmem:[#allocation2 + $0x50] sm:$0x1] %v933_v2  ;;  %v2296_v20 = vshll.u32 %v2260_v23, 16  ;;  %v4746_v38 = vcombine.low %v1524_v22, %v1527_v26  ;;  %v2284_v42 = vrot.slane %v2283_v27, 4  ;;  %v2288_v43 = vrot.slane %v2286_v18, 5  ;;  %7691 = vst [vmem:[#allocation9_spill] sm:$0xff] %v5712_v33 }
 0x138   : > { %v5706_v59 = vrot.slane %v1674_v55, 4  ;;  %v1705_v25 = vshrl.u32 %v5568_v4, 16  ;;  %v1694_v17 = vrot.slane %v1692_v9, 4  ;;  %v1697_v30 = vrot.slane %v1695_v12, 5  ;;  %v5119_v9 = vld [vmem:[%s7634_s3 + $0x78] sm:$0xff]  }
 0x139   : > { %v2293_v46 = vor.u32 %v2292_v34, %v2288_v43  ;;  %v4682_v57 = vrot.slane %v2053_v37, 9  ;;  %v2131_v58 = vrot.slane %v5623_v7, 5  ;;  %v2298_v3 = vrot.slane %v2296_v20, 5  ;;  %v5120_v12 = vld [vmem:[%s7634_s3 + $0x38] sm:$0xff]   ;;  %v5730_v26 = vld [vmem:[#allocation2 + $0x24] sm:$0xe]  ;;  %4899 = vmatprep.subr.bf16.mxu0 %v5119_v9  ;;  %5065 = vmatprep.subr.bf16.mxu1 %v5119_v9 }
 0x13a   : > { %3032 = vrot.lane.b32.xlu1 %v4746_v38, %s5226_s15  ;;  %v4763_v32 = vcombine.low %v5710_v47, %v5712_v33  ;;  %v2134_v55 = vrot.slane %v5704_v44, 5  ;;  %v1105_v61 = vshrl.u32 %v1009_v21, 16  ;;  %v2289_v63 = vsel %vm5440_vm7, %v2284_v42, %v2288_v43  ;;  %7693 = vst [vmem:[#allocation11_spill] sm:$0xff] %v5730_v26  ;;  %v5737_v34 = vld [vmem:[#allocation2 + $0x28] sm:$0xf]  ;;  %4900 = vmatpush3.bf16.msra.mxu0 %v5120_v12  ;;  %v5122_v9 = vld [vmem:[%s7634_s3 + $0x30] sm:$0xff]  }
 0x13b   : > { %v2294_v0 = vrot.slane %v2293_v46, 4  ;;  %v2133_v1 = vrot.slane %v2131_v58, 4  ;;  %v1108_v8 = vshll.u32 %v1009_v21, 16  ;;  %v1698_v15 = vor.u32 %v1697_v30, %v1694_v17  ;;  %v5743_v21 = vld [vmem:[#allocation2 + $0x2c] sm:$0x1]  ;;  %v426_v17 = vpop.trf.xlu1  ;;  %5073 = vmatpush3.bf16.msra.mxu1 %v5120_v12 }
 0x13c   : > { %v1107_v16 = vrot.slane %v1105_v61, 4  ;;  %v1114_v23 = vshll.u32 %v5654_v10, 16  ;;  %v1118_v24 = vshrl.u32 %v5654_v10, 16  ;;  %v5728_v60 = vrot.slane %v1705_v25, 4  ;;  %v1443_v25 = vld [vmem:[#allocation2 + $0x24] sm:$0xe] }
 0x13d   : > { %v2299_v27 = vsel %vm5440_vm7, %v2294_v0, %v2298_v3  ;;  %v2132_v2 = vsel %vm5434_vm6, %v4682_v57, %v2131_v58  ;;  %v1110_v18 = vrot.slane %v1108_v8, 5  ;;  %v2135_v10 = vsel %vm5434_vm6, %v2133_v1, %v2134_v55  ;;  %v5121_v8 = vld [vmem:[%s7634_s3 + $0x70] sm:$0xff]   ;;  %v5858_v38 = vld [vmem:[#allocation2 + $0x98] sm:$0x1]  ;;  %v6009_v11 = vld [vmem:[#allocation2 + $0x4c] sm:$0xf] }
 0x13e   : > { %7692 = vst [vmem:[#allocation10_spill] sm:$0xff] %v5728_v60  ;;  %3130 = vrot.lane.b32.xlu1 %v4763_v32, %s5228_s17  ;;  %v4824_v22 = vcombine.low %v2289_v63, %v2299_v27  ;;  %v1116_v20 = vrot.slane %v1114_v23, 5  ;;  %v1124_v37 = vshll.u32 %v5665_v39, 16  ;;  %v1120_v43 = vrot.slane %v1118_v24, 4  ;;  %4901 = vmatprep.subr.bf16.mxu0 %v5121_v8  ;;  %v1029_v26 = vld [vmem:[#allocation2 + $0x90] sm:$0xf] }
 0x13f   : > { %v1111_v42 = vor.u32 %v1110_v18, %v1107_v16  ;;  %v5745_v30 = vrot.slane %v1698_v15, 4  ;;  %v2314_v46 = vshrl.u32 %v5616_v19, 16  ;;  %v1530_v39 = vrot.slane %v5737_v34, 5  ;;  %4902 = vmatpush3.bf16.msra.mxu0 %v5122_v9  ;;  %5066 = vmatprep.subr.bf16.mxu1 %v5121_v8  ;;  %v2054_v8 = vld [vmem:[#allocation2 + $0x30] sm:$0xe]  ;;  %7707 = vst [vmem:[#allocation23_spill] sm:$0xff] %v6009_v11 }
 0x140   : > { %3428 = vrot.lane.b32.xlu0 %v4824_v22, %s5228_s17  ;;  %v7638_v58 = vrot.slane %v5616_v19, 5  ;;  %v4794_v3 = vcombine.low %v2132_v2, %v2135_v10  ;;  %v1121_v55 = vor.u32 %v1120_v43, %v1116_v20  ;;  %v1126_v61 = vrot.slane %v1124_v37, 5  ;;  %v5766_v10 = vld [vmem:[#allocation2 + $0x3c] sm:$0xf]  ;;  %v5768_v37 = vld [vmem:[#allocation2 + $0x40] sm:$0xf]  ;;  %5074 = vmatpush3.bf16.msra.mxu1 %v5122_v9 }
 0x141   : > { %v1112_v32 = vrot.slane %v1111_v42, 4  ;;  %v4667_v63 = vrot.slane %v1443_v25, 9  ;;  %v1533_v0 = vrot.slane %v5743_v21, 5  ;;  %v4660_v1 = vcombine.low %v426_v17, %v426_v17 }
 0x142   : > { %v1122_v15 = vrot.slane %v1121_v55, 4  ;;  %v1532_v16 = vrot.slane %v1530_v39, 4  ;;  %v4661_v23 = vcombine.high %v426_v17, %v426_v17  ;;  %v1716_v24 = vshrl.u32 %v5621_v5, 16  ;;  %v991_v17 = vld [vmem:[#allocation2 + $0xb4] sm:$0xf] }
 0x143   : > { %v1117_v12 = vsel %vm5440_vm7, %v1112_v32, %v1116_v20  ;;  %v1719_v27 = vshll.u32 %v5621_v5, 16  ;;  %v806_v2 = vshrl.u32 %v4660_v1, 16  ;;  %v809_v18 = vshll.u32 %v4660_v1, 16 }
 0x144   : > { %3256 = vrot.lane.b32.xlu0 %v4794_v3, %s5227_s16  ;;  %v1127_v22 = vsel %vm5440_vm7, %v1122_v15, %v1126_v61  ;;  %v814_v20 = vshrl.u32 %v4661_v23, 16  ;;  %v817_v42 = vshll.u32 %v4661_v23, 16  ;;  %v2301_v43 = vshrl.u32 %v5614_v53, 16  ;;  %v995_v3 = vld [vmem:[#allocation2 + $0xbc] sm:$0x1]  ;;  %v5124_v23 = vld [vmem:[%s7634_s3 + $0x28] sm:$0xff]  }
 0x145   : > { %v4730_v25 = vcombine.low %v1117_v12, %v1127_v22  ;;  %v4811_v5 = vcombine.low %v5766_v10, %v5768_v37  ;;  %v808_v32 = vrot.slane %v806_v2, 7  ;;  %v2304_v55 = vshll.u32 %v5614_v53, 16  ;;  %v5123_v12 = vld [vmem:[%s7634_s3 + $0x68] sm:$0xff]  }
 0x146   : > { %v1531_v61 = vsel %vm5434_vm6, %v4667_v63, %v1530_v39  ;;  %v1534_v1 = vsel %vm5434_vm6, %v1532_v16, %v1533_v0  ;;  %v816_v15 = vrot.slane %v814_v20, 7  ;;  %v1718_v2 = vrot.slane %v1716_v24, 4  ;;  %v5786_v63 = vld [vmem:[#allocation2 + $0x38] sm:$0x1]  ;;  %v410_v0 = vpop.trf.xlu0  ;;  %4903 = vmatprep.subr.bf16.mxu0 %v5123_v12  ;;  %5067 = vmatprep.subr.bf16.mxu1 %v5123_v12 }
 0x147   : > { %v1721_v9 = vrot.slane %v1719_v27, 5  ;;  %2952 = vrot.lane.b32.xlu1 %v4730_v25, %s5227_s16  ;;  %v811_v53 = vor.u32 %v809_v18, %v808_v32  ;;  %v812_v39 = vrot.slane %v808_v32, 4  ;;  %7694 = vst [vmem:[#allocation12_spill] sm:$0xff] %v5786_v63  ;;  %v1729_v22 = vshrl.u32 %v5623_v7, 16  ;;  %4904 = vmatpush3.bf16.msra.mxu0 %v5124_v23  ;;  %v427_v7 = vpop.trf.xlu1 }
 0x148   : > { %3354 = vrot.lane.b32.xlu0 %v4811_v5, %s5226_s15  ;;  %v819_v20 = vor.u32 %v817_v42, %v816_v15  ;;  %v821_v57 = vrot.slane %v816_v15, 4  ;;  %v4747_v31 = vcombine.low %v1531_v61, %v1534_v1  ;;  %v4683_v27 = vrot.slane %v2054_v8, 9  ;;  %5075 = vmatpush3.bf16.msra.mxu1 %v5124_v23  ;;  %v5802_v61 = vld [vmem:[#allocation2 + $0xa0] sm:$0xf] }
 0x149   : > { %v992_v24 = vsel %vm5499_vm13, %v811_v53, %v991_v17  ;;  %v2138_v25 = vrot.slane %v5712_v33, 5  ;;  %v2141_v42 = vrot.slane %v5786_v63, 5  ;;  %v4644_v32 = vcombine.low %v410_v0, %v410_v0  ;;  %v5800_v17 = vld [vmem:[#allocation2 + $0x9c] sm:$0xf]  ;;  %7695 = vst [vmem:[#allocation13_spill] sm:$0xff] %v5802_v61 }
 0x14a   : > { %v820_v18 = vsel %vm5493_vm12, %v812_v39, %v819_v20  ;;  %993 = vst [vmem:[#allocation2 + $0xb4] sm:$0xf] %v992_v24  ;;  %v996_v5 = vsel %vm5488_vm11, %v821_v57, %v995_v3  ;;  %v1722_v15 = vor.u32 %v1721_v9, %v1718_v2  ;;  %v4645_v12 = vcombine.high %v410_v0, %v410_v0  ;;  %v5125_v2 = vld [vmem:[%s7634_s3 + $0x60] sm:$0xff]   ;;  %v935_v0 = vld [vmem:[#allocation2 + $0x54] sm:$0xf] }
 0x14b   : > { %3034 = vrot.lane.b32.xlu1 %v4747_v31, %s5226_s15  ;;  %994 = vst.msk [vmem:[#allocation2 + $0xb8] sm:$0xf] %vm428_vm0, %v820_v18  ;;  %997 = vst [vmem:[#allocation2 + $0xbc] sm:$0x1] %v996_v5  ;;  %v2139_v1 = vsel %vm5434_vm6, %v4683_v27, %v2138_v25  ;;  %v2140_v8 = vrot.slane %v2138_v25, 4  ;;  %v5808_v57 = vrot.slane %v7638_v58, 4  ;;  %v4772_v53 = vcombine.low %v5800_v17, %v5802_v61 }
 0x14c   : > { %v2325_v3 = vshrl.u32 %v5670_v45, 16  ;;  %v670_v23 = vshrl.u32 %v4644_v32, 16  ;;  %v673_v31 = vshll.u32 %v4644_v32, 16  ;;  %v5126_v9 = vld [vmem:[%s7634_s3 + $0x20] sm:$0xff]   ;;  %v678_v20 = vshrl.u32 %v4645_v12, 16  ;;  %4905 = vmatprep.subr.bf16.mxu0 %v5125_v2  ;;  %5068 = vmatprep.subr.bf16.mxu1 %v5125_v2 }
 0x14d   : > { %v2142_v39 = vsel %vm5434_vm6, %v2140_v8, %v2141_v42  ;;  %v681_v24 = vshll.u32 %v4645_v12, 16  ;;  %v2303_v27 = vrot.slane %v2301_v43, 4  ;;  %v2306_v25 = vrot.slane %v2304_v55, 5  ;;  %v939_v5 = vld [vmem:[#allocation2 + $0x5c] sm:$0x1]  ;;  %4906 = vmatpush3.bf16.msra.mxu0 %v5126_v9  ;;  %5076 = vmatpush3.bf16.msra.mxu1 %v5126_v9 }
 0x14e   : > { %v4795_v18 = vcombine.low %v2139_v1, %v2142_v39  ;;  %v672_v32 = vrot.slane %v670_v23, 7  ;;  %v5821_v58 = vrot.slane %v1729_v22, 4  ;;  %v5823_v16 = vrot.slane %v1722_v15, 4  ;;  %v5827_v42 = vld [vmem:[#allocation2 + $0x3c] sm:$0xf] }
 0x14f   : > { %3148 = vrot.lane.b32.xlu1 %v4772_v53, %s5228_s17  ;;  %v680_v29 = vrot.slane %v678_v20, 7  ;;  %v5830_v55 = vrot.slane %v2325_v3, 4  ;;  %v5833_v22 = vld [vmem:[#allocation2 + $0x40] sm:$0xf]  ;;  %v2328_v15 = vshll.u32 %v5670_v45, 16  ;;  %v2310_v9 = vshll.u32 %v5616_v19, 16 }
 0x150   : > { %7696 = vst [vmem:[#allocation14_spill] sm:$0xff] %v5821_v58  ;;  %7697 = vst [vmem:[#allocation15_spill] sm:$0xff] %v5823_v16  ;;  %3258 = vrot.lane.b32.xlu0 %v4795_v18, %s5227_s16  ;;  %v675_v1 = vor.u32 %v673_v31, %v672_v32  ;;  %v676_v8 = vrot.slane %v672_v32, 4  ;;  %v5836_v2 = vld [vmem:[#allocation2 + $0xa8] sm:$0xf]  ;;  %v4764_v39 = vcombine.low %v5827_v42, %v5833_v22  ;;  %v1740_v45 = vshrl.u32 %v5710_v47, 16 }
 0x151   : > { %7698 = vst [vmem:[#allocation16_spill] sm:$0xff] %v5833_v22  ;;  %v683_v12 = vor.u32 %v681_v24, %v680_v29  ;;  %v685_v23 = vrot.slane %v680_v29, 4  ;;  %v5838_v53 = vld [vmem:[#allocation2 + $0xac] sm:$0xf]  ;;  %v2307_v18 = vor.u32 %v2306_v25, %v2303_v27  ;;  %v1743_v29 = vshll.u32 %v5710_v47, 16 }
 0x152   : > { %v936_v3 = vsel %vm5499_vm13, %v675_v1, %v935_v0  ;;  %v4820_v31 = vcombine.low %v5836_v2, %v5838_v53  ;;  %v2261_v20 = vld [vmem:[#allocation2 + $0x2c] sm:$0x1]  ;;  %v1452_v0 = vld [vmem:[#allocation2 + $0x90] sm:$0xe]  ;;  %v2312_v25 = vrot.slane %v2310_v9, 5  ;;  %v2316_v47 = vrot.slane %v2314_v46, 4 }
 0x153   : > { %v684_v24 = vsel %vm5493_vm12, %v676_v8, %v683_v12  ;;  %937 = vst [vmem:[#allocation2 + $0x54] sm:$0xf] %v936_v3  ;;  %v940_v32 = vsel %vm5488_vm11, %v685_v23, %v939_v5  ;;  %3132 = vrot.lane.b32.xlu1 %v4764_v39, %s5228_s17  ;;  %v2308_v27 = vrot.slane %v2307_v18, 4  ;;  %v2320_v1 = vshll.u32 %v2261_v20, 16  ;;  %v5860_v12 = vld [vmem:[#allocation2 + $0x48] sm:$0xf] }
 0x154   : > { %938 = vst.msk [vmem:[#allocation2 + $0x58] sm:$0xf] %vm428_vm0, %v684_v24  ;;  %941 = vst [vmem:[#allocation2 + $0x5c] sm:$0x1] %v940_v32  ;;  %3372 = vrot.lane.b32.xlu0 %v4820_v31, %s5226_s15  ;;  %v2736_v8 = vrot.slane %v2261_v20, 5  ;;  %v5127_v23 = vld [vmem:[%s7634_s3 + $0x58] sm:$0xff]   ;;  %v2317_v3 = vor.u32 %v2316_v47, %v2312_v25 }
 0x155   : > { %v5862_v5 = vld [vmem:[#allocation2 + $0x4c] sm:$0xf]  ;;  %v5867_v39 = vrot.slane %v2328_v15, 5  ;;  %v2322_v31 = vrot.slane %v2320_v1, 5  ;;  %v2063_v46 = vld [vmem:[#allocation2 + $0x9c] sm:$0xe]  ;;  %v2313_v56 = vsel %vm5440_vm7, %v2308_v27, %v2312_v25  ;;  %4907 = vmatprep.subr.bf16.mxu0 %v5127_v23  ;;  %5069 = vmatprep.subr.bf16.mxu1 %v5127_v23 }
 0x156   : > { %v4812_v18 = vcombine.low %v5860_v12, %v5862_v5  ;;  %v1011_v9 = vld [vmem:[#allocation2 + $0x24] sm:$0xf]  ;;  %v5128_v20 = vld [vmem:[%s7634_s3 + $0x18] sm:$0xff]   ;;  %v5881_v15 = vsel %vm5434_vm6, %v5808_v57, %v2736_v8  ;;  %v1030_v47 = vld [vmem:[#allocation2 + $0x94] sm:$0xf]  ;;  %v2318_v43 = vrot.slane %v2317_v3, 4 }
 0x157   : > { %7699 = vst [vmem:[#allocation17_spill] sm:$0xff] %v5881_v15  ;;  %v5130_v1 = vld [vmem:[%s7634_s3 + $0x50] sm:$0xff]   ;;  %v4676_v24 = vrot.slane %v1452_v0, 9  ;;  %v1593_v32 = vrot.slane %v1030_v47, 5  ;;  %v1596_v50 = vrot.slane %v5858_v38, 5  ;;  %4908 = vmatpush3.bf16.msra.mxu0 %v5128_v20  ;;  %v5890_v25 = vrot.slane %v1740_v45, 4  ;;  %5077 = vmatpush3.bf16.msra.mxu1 %v5128_v20 }
 0x158   : > { %3356 = vrot.lane.b32.xlu0 %v4812_v18, %s5226_s15  ;;  %v5888_v27 = vld [vmem:[#allocation2 + $0xa4] sm:$0x1]  ;;  %v5892_v57 = vrot.slane %v1743_v29, 5  ;;  %v4692_v48 = vrot.slane %v2063_v46, 9  ;;  %4909 = vmatprep.subr.bf16.mxu0 %v5130_v1  ;;  %v5131_v23 = vld [vmem:[%s7634_s3 + $0x10] sm:$0xff]   ;;  %v2323_v0 = vsel %vm5440_vm7, %v2318_v43, %v2322_v31  ;;  %v2201_v45 = vrot.slane %v5802_v61, 5 }
 0x159   : > { %7700 = vst [vmem:[#allocation18_spill] sm:$0xff] %v5888_v27  ;;  %v1594_v3 = vsel %vm5434_vm6, %v4676_v24, %v1593_v32  ;;  %v1595_v18 = vrot.slane %v1593_v32, 4  ;;  %5070 = vmatprep.subr.bf16.mxu1 %v5130_v1  ;;  %v4825_v29 = vcombine.low %v2313_v56, %v2323_v0  ;;  %v2204_v8 = vrot.slane %v5888_v27, 5 }
 0x15a   : > { %v1129_v46 = vshrl.u32 %v1011_v9, 16  ;;  %v1132_v15 = vshll.u32 %v1011_v9, 16  ;;  %v2202_v20 = vsel %vm5434_vm6, %v4692_v48, %v2201_v45  ;;  %v2203_v43 = vrot.slane %v2201_v45, 4 }
 0x15b   : > { %v1597_v19 = vsel %vm5434_vm6, %v1595_v18, %v1596_v50  ;;  %v1138_v31 = vshll.u32 %v5737_v34, 16  ;;  %4910 = vmatpush3.bf16.msra.mxu0 %v5131_v23  ;;  %3430 = vrot.lane.b32.xlu1 %v4825_v29, %s5228_s17  ;;  %v1142_v1 = vshrl.u32 %v5737_v34, 16  ;;  %v1148_v50 = vshll.u32 %v5743_v21, 16  ;;  %v5133_v21 = vld [vmem:[%s7634_s3 + $0x48] sm:$0xff]  }
 0x15c   : > { %v4756_v24 = vcombine.low %v1594_v3, %v1597_v19  ;;  %v1131_v32 = vrot.slane %v1129_v46, 4  ;;  %v1134_v56 = vrot.slane %v1132_v15, 5  ;;  %5078 = vmatpush3.bf16.msra.mxu1 %v5131_v23  ;;  %v2205_v9 = vsel %vm5434_vm6, %v2203_v43, %v2204_v8  ;;  %4911 = vmatprep.subr.bf16.mxu0 %v5133_v21 }
 0x15d   : > { %v1140_v0 = vrot.slane %v1138_v31, 5  ;;  %v1345_v18 = vshrl.u32 %v1029_v26, 16  ;;  %v4804_v48 = vcombine.low %v2202_v20, %v2205_v9  ;;  %v1144_v58 = vrot.slane %v1142_v1, 4  ;;  %v1444_v31 = vld [vmem:[#allocation2 + $0x30] sm:$0xe]  ;;  %5071 = vmatprep.subr.bf16.mxu1 %v5133_v21 }
 0x15e   : > { %v1135_v45 = vor.u32 %v1134_v56, %v1131_v32  ;;  %v1348_v16 = vshll.u32 %v1029_v26, 16  ;;  %v1150_v28 = vrot.slane %v1148_v50, 5  ;;  %v1354_v19 = vshll.u32 %v1030_v47, 16  ;;  %v5925_v50 = vld [vmem:[#allocation2 + $0x38] sm:$0x1] }
 0x15f   : > { %v1347_v29 = vrot.slane %v1345_v18, 4  ;;  %v1358_v3 = vshrl.u32 %v1030_v47, 16  ;;  %3052 = vrot.lane.b32.xlu1 %v4756_v24, %s5226_s15  ;;  %3276 = vrot.lane.b32.xlu0 %v4804_v48, %s5227_s16  ;;  %v1145_v15 = vor.u32 %v1144_v58, %v1140_v0  ;;  %v1364_v23 = vshll.u32 %v5858_v38, 16  ;;  %v5134_v47 = vld [vmem:[%s7634_s3 + $0x8] sm:$0xff]   ;;  %v998_v48 = vld [vmem:[#allocation2 + $0xc0] sm:$0xf] }
 0x160   : > { %v1136_v34 = vrot.slane %v1135_v45, 4  ;;  %v1350_v8 = vrot.slane %v1348_v16, 5  ;;  %v1356_v46 = vrot.slane %v1354_v19, 5  ;;  %v4662_v20 = vcombine.low %v427_v7, %v427_v7  ;;  %4912 = vmatpush3.bf16.msra.mxu0 %v5134_v47  ;;  %5079 = vmatpush3.bf16.msra.mxu1 %v5134_v47  ;;  %v5136_v19 = vld [vmem:[%s7634_s3] sm:$0xff]   ;;  %v1002_v47 = vld [vmem:[#allocation2 + $0xc8] sm:$0x1] }
 0x161   : > { %v1360_v26 = vrot.slane %v1358_v3, 4  ;;  %v4663_v43 = vcombine.high %v427_v7, %v427_v7  ;;  %v1146_v58 = vrot.slane %v1145_v15, 4  ;;  %v1366_v32 = vrot.slane %v1364_v23, 5  ;;  %v5135_v7 = vld [vmem:[%s7634_s3 + $0x40] sm:$0xff]   ;;  %v5935_v23 = vld [vmem:[#allocation2 + $0x34] sm:$0xf] }
 0x162   : > { %v1141_v24 = vsel %vm5440_vm7, %v1136_v34, %v1140_v0  ;;  %v1351_v16 = vor.u32 %v1350_v8, %v1347_v29  ;;  %v823_v56 = vshrl.u32 %v4662_v20, 16  ;;  %v826_v1 = vshll.u32 %v4662_v20, 16  ;;  %4913 = vmatprep.subr.bf16.mxu0 %v5135_v7  ;;  %5072 = vmatprep.subr.bf16.mxu1 %v5135_v7 }
 0x163   : > { %v1361_v38 = vor.u32 %v1360_v26, %v1356_v46  ;;  %v831_v9 = vshrl.u32 %v4663_v43, 16  ;;  %v1151_v0 = vsel %vm5440_vm7, %v1146_v58, %v1150_v28  ;;  %v834_v45 = vshll.u32 %v4663_v43, 16  ;;  %v2055_v43 = vld [vmem:[#allocation2 + $0x3c] sm:$0xe] }
 0x164   : > { %v1352_v18 = vrot.slane %v1351_v16, 4  ;;  %v4668_v29 = vrot.slane %v1444_v31, 9  ;;  %v4731_v3 = vcombine.low %v1141_v24, %v1151_v0  ;;  %v825_v15 = vrot.slane %v823_v56, 7  ;;  %v411_v56 = vpop.trf.xlu0  ;;  %4914 = vmatpush3.bf16.msra.mxu0 %v5136_v19  ;;  %5080 = vmatpush3.bf16.msra.mxu1 %v5136_v19 }
 0x165   : > { %v1362_v34 = vrot.slane %v1361_v38, 4  ;;  %v833_v8 = vrot.slane %v831_v9, 7  ;;  %v1959_v21 = vshll.u32 %v5800_v17, 16  ;;  %v1537_v26 = vrot.slane %v5935_v23, 5  ;;  %v5945_v38 = vld [vmem:[#allocation2 + $0x44] sm:$0x1] }
 0x166   : > { %v1357_v28 = vsel %vm5440_vm7, %v1352_v18, %v1356_v46  ;;  %v1540_v20 = vrot.slane %v5925_v50, 5  ;;  %2954 = vrot.lane.b32.xlu1 %v4731_v3, %s5227_s16  ;;  %v828_v24 = vor.u32 %v826_v1, %v825_v15  ;;  %v829_v58 = vrot.slane %v825_v15, 4  ;;  %7701 = vst [vmem:[#allocation19_spill] sm:$0xff] %v5945_v38 }
 0x167   : > { %v1367_v31 = vsel %vm5440_vm7, %v1362_v34, %v1366_v32  ;;  %v836_v16 = vor.u32 %v834_v45, %v833_v8  ;;  %v838_v46 = vrot.slane %v833_v8, 4  ;;  %v1538_v7 = vsel %vm5434_vm6, %v4668_v29, %v1537_v26 }
 0x168   : > { %v4740_v9 = vcombine.low %v1357_v28, %v1367_v31  ;;  %v1539_v0 = vrot.slane %v1537_v26, 4  ;;  %v999_v32 = vsel %vm5499_vm13, %v828_v24, %v998_v48  ;;  %v4684_v1 = vrot.slane %v2055_v43, 9  ;;  %v1050_v43 = vld [vmem:[#allocation2 + $0xa4] sm:$0x1] }
 0x169   : > { %v837_v18 = vsel %vm5493_vm12, %v829_v58, %v836_v16  ;;  %v2145_v45 = vrot.slane %v5833_v22, 5  ;;  %1000 = vst [vmem:[#allocation2 + $0xc0] sm:$0xf] %v999_v32  ;;  %v1003_v3 = vsel %vm5488_vm11, %v838_v46, %v1002_v47  ;;  %v2148_v19 = vrot.slane %v5945_v38, 5 }
 0x16a   : > { %2972 = vrot.lane.b32.xlu0 %v4740_v9, %s5227_s16  ;;  %1001 = vst.msk [vmem:[#allocation2 + $0xc4] sm:$0xf] %vm428_vm0, %v837_v18  ;;  %v1541_v29 = vsel %vm5434_vm6, %v1539_v0, %v1540_v20  ;;  %v4646_v34 = vcombine.low %v411_v56, %v411_v56  ;;  %1004 = vst [vmem:[#allocation2 + $0xc8] sm:$0x1] %v1003_v3  ;;  %v4647_v28 = vcombine.high %v411_v56, %v411_v56  ;;  %v5970_v9 = vld [vmem:[#allocation2 + $0xa8] sm:$0xf] }
 0x16b   : > { %v4748_v15 = vcombine.low %v1538_v7, %v1541_v29  ;;  %v2146_v48 = vsel %vm5434_vm6, %v4684_v1, %v2145_v45  ;;  %v2147_v8 = vrot.slane %v2145_v45, 4  ;;  %v1746_v26 = vor.u32 %v5892_v57, %v5890_v25  ;;  %v5974_v0 = vld [vmem:[#allocation2 + $0xac] sm:$0xf]  ;;  %v942_v45 = vld [vmem:[#allocation2 + $0x60] sm:$0xf] }
 0x16c   : > { %v687_v31 = vshrl.u32 %v4646_v34, 16  ;;  %v690_v47 = vshll.u32 %v4646_v34, 16  ;;  %v2349_v24 = vshrl.u32 %v5766_v10, 16  ;;  %v695_v58 = vshrl.u32 %v4647_v28, 16  ;;  %7703 = vst [vmem:[#allocation20_spill] sm:$0xff] %v5974_v0 }
 0x16d   : > { %3036 = vrot.lane.b32.xlu1 %v4748_v15, %s5226_s15  ;;  %v2149_v20 = vsel %vm5434_vm6, %v2147_v8, %v2148_v19  ;;  %v698_v16 = vshll.u32 %v4647_v28, 16  ;;  %v7702_v56 = vshrl.u32 %v5800_v17, 16  ;;  %v1961_v7 = vrot.slane %v1959_v21, 5  ;;  %v946_v21 = vld [vmem:[#allocation2 + $0x68] sm:$0x1] }
 0x16e   : > { %v4796_v25 = vcombine.low %v2146_v48, %v2149_v20  ;;  %v689_v57 = vrot.slane %v687_v31, 7  ;;  %v7704_v18 = vshrl.u32 %v5712_v33, 16  ;;  %v2352_v1 = vshll.u32 %v5766_v10, 16 }
 0x16f   : > { %v1958_v46 = vrot.slane %v7702_v56, 4  ;;  %v697_v3 = vrot.slane %v695_v58, 7  ;;  %v4773_v29 = vcombine.low %v5970_v9, %v5974_v0  ;;  %v5983_v19 = vrot.slane %v1746_v26, 4  ;;  %v5995_v56 = vld [vmem:[#allocation2 + $0xb4] sm:$0xf] }
 0x170   : > { %v5978_v32 = vrot.slane %v7704_v18, 4  ;;  %v1969_v17 = vshrl.u32 %v5802_v61, 16  ;;  %3260 = vrot.lane.b32.xlu0 %v4796_v25, %s5227_s16  ;;  %v692_v34 = vor.u32 %v690_v47, %v689_v57  ;;  %v693_v15 = vrot.slane %v689_v57, 4  ;;  %v5997_v47 = vld [vmem:[#allocation2 + $0xb8] sm:$0xf] }
 0x171   : > { %7706 = vst [vmem:[#allocation22_spill] sm:$0xff] %v5983_v19  ;;  %v1764_v48 = vshrl.u32 %v5827_v42, 16  ;;  %v1767_v8 = vshll.u32 %v5827_v42, 16  ;;  %v700_v28 = vor.u32 %v698_v16, %v697_v3  ;;  %v702_v10 = vrot.slane %v697_v3, 4  ;;  %3150 = vrot.lane.b32.xlu1 %v4773_v29, %s5228_s17  ;;  %v2262_v29 = vld [vmem:[#allocation2 + $0x38] sm:$0x1] }
 0x172   : > { %7705 = vst [vmem:[#allocation21_spill] sm:$0xff] %v5978_v32  ;;  %v5991_v20 = vrot.slane %v2349_v24, 4  ;;  %v1962_v26 = vor.u32 %v1961_v7, %v1958_v46  ;;  %v943_v58 = vsel %vm5499_vm13, %v692_v34, %v942_v45  ;;  %v5999_v25 = vrot.slane %v2352_v1, 5  ;;  %v6007_v46 = vld [vmem:[#allocation2 + $0x48] sm:$0xf] }
 0x173   : > { %v701_v42 = vsel %vm5493_vm12, %v693_v15, %v700_v28  ;;  %944 = vst [vmem:[#allocation2 + $0x60] sm:$0xf] %v943_v58  ;;  %v947_v16 = vsel %vm5488_vm11, %v702_v10, %v946_v21  ;;  %v4821_v24 = vcombine.low %v5995_v56, %v5997_v47  ;;  %v2565_v57 = vshrl.u32 %v5836_v2, 16  ;;  %v6029_v34 = vld [vmem:[#allocation2 + $0x54] sm:$0xf] }
 0x174   : > { %v2568_v18 = vshll.u32 %v5836_v2, 16  ;;  %945 = vst.msk [vmem:[#allocation2 + $0x64] sm:$0xf] %vm428_vm0, %v701_v42  ;;  %948 = vst [vmem:[#allocation2 + $0x68] sm:$0x1] %v947_v16  ;;  %v4765_v62 = vcombine.low %v6007_v46, %v6009_v11  ;;  %v6017_v6 = vrot.slane %v1969_v17, 4 }
 0x175   : > { %v6020_v45 = vrot.slane %v1764_v48, 4  ;;  %v6022_v3 = vrot.slane %v1767_v8, 5  ;;  %3374 = vrot.lane.b32.xlu0 %v4821_v24, %s5226_s15  ;;  %v6025_v21 = vrot.slane %v1962_v26, 4  ;;  %v6031_v15 = vld [vmem:[#allocation2 + $0x58] sm:$0xf]  ;;  %v2331_v48 = vor.u32 %v5867_v39, %v5830_v55 }
 0x176   : > { %7708 = vst [vmem:[#allocation24_spill] sm:$0xff] %v6017_v6  ;;  %3134 = vrot.lane.b32.xlu1 %v4765_v62, %s5228_s17  ;;  %v4813_v17 = vcombine.low %v6029_v34, %v6031_v15  ;;  %v2334_v8 = vshll.u32 %v5672_v52, 16  ;;  %v7710_v28 = vshrl.u32 %v5672_v52, 16  ;;  %v6040_v26 = vld [vmem:[#allocation2 + $0xb0] sm:$0x1]  ;;  %v6042_v42 = vrot.slane %v2565_v57, 4 }
 0x177   : > { %7709 = vst [vmem:[#allocation25_spill] sm:$0xff] %v6025_v21  ;;  %v2064_v58 = vld [vmem:[#allocation2 + $0xa8] sm:$0xe]  ;;  %v6044_v16 = vrot.slane %v2568_v18, 5  ;;  %v2344_v62 = vshll.u32 %v2262_v29, 16  ;;  %v2332_v52 = vrot.slane %v2331_v48, 4 }
 0x178   : > { %v2340_v10 = vrot.slane %v7710_v28, 4  ;;  %v1032_v7 = vld [vmem:[#allocation2 + $0xa0] sm:$0xf]  ;;  %v1453_v1 = vld [vmem:[#allocation2 + $0x9c] sm:$0xe]  ;;  %v2336_v28 = vrot.slane %v2334_v8, 5 }
 0x179   : > { %3358 = vrot.lane.b32.xlu0 %v4813_v17, %s5226_s15  ;;  %v4693_v31 = vrot.slane %v2064_v58, 9  ;;  %v2208_v18 = vrot.slane %v5974_v0, 5  ;;  %v2211_v2 = vrot.slane %v6040_v26, 5  ;;  %v1031_v29 = vld [vmem:[#allocation2 + $0x9c] sm:$0xf]  ;;  %v2346_v55 = vrot.slane %v2344_v62, 5 }
 0x17a   : > { %v2337_v24 = vsel %vm5440_vm7, %v2332_v52, %v2336_v28  ;;  %v2341_v6 = vor.u32 %v2340_v10, %v2336_v28  ;;  %v4677_v21 = vrot.slane %v1453_v1, 9  ;;  %v1600_v8 = vrot.slane %v1032_v7, 5  ;;  %v1013_v62 = vld [vmem:[#allocation2 + $0x30] sm:$0xf] }
 0x17b   : > { %v2209_v17 = vsel %vm5434_vm6, %v4693_v31, %v2208_v18  ;;  %v2210_v48 = vrot.slane %v2208_v18, 4  ;;  %v1603_v39 = vrot.slane %v1050_v43, 5  ;;  %v1369_v57 = vshrl.u32 %v1031_v29, 16 }
 0x17c   : > { %v2342_v61 = vrot.slane %v2341_v6, 4  ;;  %v1372_v58 = vshll.u32 %v1031_v29, 16  ;;  %v1378_v32 = vshll.u32 %v1032_v7, 16  ;;  %v1601_v63 = vsel %vm5434_vm6, %v4677_v21, %v1600_v8 }
 0x17d   : > { %v2212_v19 = vsel %vm5434_vm6, %v2210_v48, %v2211_v2  ;;  %v1602_v52 = vrot.slane %v1600_v8, 4  ;;  %v1382_v10 = vshrl.u32 %v1032_v7, 16  ;;  %v1371_v28 = vrot.slane %v1369_v57, 4 }
 0x17e   : > { %v2347_v1 = vsel %vm5440_vm7, %v2342_v61, %v2346_v55  ;;  %v4805_v31 = vcombine.low %v2209_v17, %v2212_v19  ;;  %v1374_v18 = vrot.slane %v1372_v58, 5  ;;  %v1380_v29 = vrot.slane %v1378_v32, 5  ;;  %v1445_v17 = vld [vmem:[#allocation2 + $0x3c] sm:$0xe] }
 0x17f   : > { %v4826_v33 = vcombine.low %v2337_v24, %v2347_v1  ;;  %v1604_v6 = vsel %vm5434_vm6, %v1602_v52, %v1603_v39  ;;  %v1384_v44 = vrot.slane %v1382_v10, 4  ;;  %v1388_v21 = vshll.u32 %v1050_v43, 16  ;;  %v2056_v24 = vld [vmem:[#allocation2 + $0x48] sm:$0xe]  ;;  %v6071_v10 = vld [vmem:[#allocation2 + $0x50] sm:$0x1] }
 0x180   : > { %3278 = vrot.lane.b32.xlu0 %v4805_v31, %s5227_s16  ;;  %v4757_v2 = vcombine.low %v1601_v63, %v1604_v6  ;;  %v1375_v48 = vor.u32 %v1374_v18, %v1371_v28  ;;  %v1153_v8 = vshrl.u32 %v1013_v62, 16  ;;  %v1156_v60 = vshll.u32 %v1013_v62, 16  ;;  %7711 = vst [vmem:[#allocation26_spill] sm:$0xff] %v6071_v10  ;;  %v6080_v28 = vld [vmem:[#allocation2 + $0x40] sm:$0xf] }
 0x181   : > { %3432 = vrot.lane.b32.xlu1 %v4826_v33, %s5228_s17  ;;  %v1385_v7 = vor.u32 %v1384_v44, %v1380_v29  ;;  %v1162_v61 = vshll.u32 %v5935_v23, 16  ;;  %v1166_v19 = vshrl.u32 %v5935_v23, 16  ;;  %v1390_v39 = vrot.slane %v1388_v21, 5  ;;  %v6082_v18 = vld [vmem:[#allocation2 + $0x44] sm:$0x1] }
 0x182   : > { %v1376_v55 = vrot.slane %v1375_v48, 4  ;;  %v1155_v32 = vrot.slane %v1153_v8, 4  ;;  %v1172_v57 = vshll.u32 %v5925_v50, 16  ;;  %v1158_v58 = vrot.slane %v1156_v60, 5 }
 0x183   : > { %v1386_v63 = vrot.slane %v1385_v7, 4  ;;  %v1164_v43 = vrot.slane %v1162_v61, 5  ;;  %v1168_v52 = vrot.slane %v1166_v19, 4  ;;  %v1983_v44 = vshll.u32 %v5970_v9, 16 }
 0x184   : > { %v1381_v33 = vsel %vm5440_vm7, %v1376_v55, %v1380_v29  ;;  %v1174_v23 = vrot.slane %v1172_v57, 5  ;;  %v4685_v62 = vrot.slane %v2056_v24, 9  ;;  %v1159_v50 = vor.u32 %v1158_v58, %v1155_v32 }
 0x185   : > { %3054 = vrot.lane.b32.xlu1 %v4757_v2, %s5226_s15  ;;  %v1391_v1 = vsel %vm5440_vm7, %v1386_v63, %v1390_v39  ;;  %v1169_v31 = vor.u32 %v1168_v52, %v1164_v43  ;;  %v2152_v60 = vrot.slane %v6009_v11, 5  ;;  %v2155_v48 = vrot.slane %v6071_v10, 5 }
 0x186   : > { %v4741_v6 = vcombine.low %v1381_v33, %v1391_v1  ;;  %v4669_v29 = vrot.slane %v1445_v17, 9  ;;  %v1544_v21 = vrot.slane %v6080_v28, 5  ;;  %v1160_v8 = vrot.slane %v1159_v50, 4 }
 0x187   : > { %v1170_v2 = vrot.slane %v1169_v31, 4  ;;  %v2153_v7 = vsel %vm5434_vm6, %v4685_v62, %v2152_v60  ;;  %v2154_v61 = vrot.slane %v2152_v60, 4  ;;  %v7712_v19 = vshrl.u32 %v5970_v9, 16 }
 0x188   : > { %v1985_v55 = vrot.slane %v1983_v44, 5  ;;  %2974 = vrot.lane.b32.xlu0 %v4741_v6, %s5227_s16  ;;  %v1546_v39 = vrot.slane %v1544_v21, 4  ;;  %v1547_v32 = vrot.slane %v6082_v18, 5  ;;  %v2376_v57 = vshll.u32 %v5860_v12, 16  ;;  %v1454_v6 = vld [vmem:[#allocation2 + $0xa8] sm:$0xe] }
 0x189   : > { %v1982_v24 = vrot.slane %v7712_v19, 4  ;;  %v1165_v17 = vsel %vm5440_vm7, %v1160_v8, %v1164_v43  ;;  %v1175_v63 = vsel %vm5440_vm7, %v1170_v2, %v1174_v23  ;;  %v2156_v58 = vsel %vm5434_vm6, %v2154_v61, %v2155_v48  ;;  %v6132_v61 = vld [vmem:[#allocation2 + $0xc4] sm:$0xf] }
 0x18a   : > { %v7713_v52 = vshrl.u32 %v5833_v22, 16  ;;  %v4732_v33 = vcombine.low %v1165_v17, %v1175_v63  ;;  %v4797_v62 = vcombine.low %v2153_v7, %v2156_v58  ;;  %v1993_v1 = vshrl.u32 %v5974_v0, 16  ;;  %v6130_v7 = vld [vmem:[#allocation2 + $0xc0] sm:$0xf] }
 0x18b   : > { %v2589_v50 = vshrl.u32 %v5995_v56, 16  ;;  %v1545_v43 = vsel %vm5434_vm6, %v4669_v29, %v1544_v21  ;;  %v1548_v23 = vsel %vm5434_vm6, %v1546_v39, %v1547_v32  ;;  %v7715_v31 = vor.u32 %v6022_v3, %v6020_v45 }
 0x18c   : > { %v6102_v44 = vrot.slane %v7713_v52, 4  ;;  %v1986_v48 = vor.u32 %v1985_v55, %v1982_v24  ;;  %v2592_v8 = vshll.u32 %v5995_v56, 16  ;;  %2956 = vrot.lane.b32.xlu1 %v4732_v33, %s5227_s16  ;;  %3262 = vrot.lane.b32.xlu0 %v4797_v62, %s5227_s16  ;;  %v7717_v29 = vcombine.low %v5423_v13, %v5425_v14  ;;  %v6134_v56 = vpop.permute.xlu1 %3124  ;;  %v2272_v14 = vld [vmem:[#allocation2 + $0xb0] sm:$0x1]  ;;  %v6156_v33 = vld [vmem:[#allocation2 + $0xb8] sm:$0xf] }
 0x18d   : > { %v6113_v60 = vrot.slane %v7715_v31, 4  ;;  %v7718_v2 = vshrl.u32 %v5860_v12, 16  ;;  %v6128_v3 = vrot.slane %v2376_v57, 5  ;;  %v4749_v55 = vcombine.low %v1545_v43, %v1548_v23  ;;  %v6146_v57 = vld [vmem:[#allocation2 + $0xb4] sm:$0xf] }
 0x18e   : > { %7714 = vst [vmem:[#allocation27_spill] sm:$0xff] %v6102_v44  ;;  %v3511_v21 = vsel %vm3508_vm14, %v7717_v29, %v5480_v49  ;;  %v4822_v13 = vcombine.low %v6130_v7, %v6132_v61  ;;  %v6141_v12 = vrot.slane %v1993_v1, 4  ;;  %v6143_v39 = vrot.slane %v2589_v50, 4  ;;  %v6164_v43 = vld [vmem:[#allocation2 + $0x60] sm:$0xf] }
 0x18f   : > { %7716 = vst [vmem:[#allocation28_spill] sm:$0xff] %v6113_v60  ;;  %v6126_v45 = vrot.slane %v7718_v2, 4  ;;  %v1801_v32 = vshrl.u32 %v6009_v11, 16  ;;  %v6148_v17 = vrot.slane %v1986_v48, 4  ;;  %v6150_v63 = vrot.slane %v2592_v8, 5 }
 0x190   : > { %7719 = vst [vmem:[#allocation29_spill] sm:$0xff] %v6141_v12  ;;  %3038 = vrot.lane.b32.xlu1 %v4749_v55, %s5226_s15  ;;  %3376 = vrot.lane.b32.xlu0 %v4822_v13, %s5226_s15  ;;  %v6160_v62 = vsel %vm3557_vm15, %v3511_v21, %v5484_v51  ;;  %v1788_v1 = vshrl.u32 %v6007_v46, 16  ;;  %v1791_v50 = vshll.u32 %v6007_v46, 16  ;;  %v6166_v23 = vld [vmem:[#allocation2 + $0x64] sm:$0xf]  ;;  %v2571_v31 = vor.u32 %v6044_v16, %v6042_v42  ;;  %v6182_v49 = vpop.permute.xlu1 %3126 }
 0x191   : > { %7720 = vst [vmem:[#allocation30_spill] sm:$0xff] %v6148_v17  ;;  %v4774_v48 = vcombine.low %v6146_v57, %v6156_v33  ;;  %v4814_v8 = vcombine.low %v6164_v43, %v6166_v23  ;;  %v2574_v51 = vshll.u32 %v5838_v53, 16  ;;  %v7721_v29 = vshrl.u32 %v5838_v53, 16  ;;  %v2263_v2 = vld [vmem:[#allocation2 + $0x44] sm:$0x1] }
 0x192   : > { %v2065_v46 = vld [vmem:[#allocation2 + $0xb4] sm:$0xe]  ;;  %v6177_v55 = vrot.slane %v1801_v32, 4  ;;  %v2572_v42 = vrot.slane %v2571_v31, 4  ;;  %v2584_v16 = vshll.u32 %v2272_v14, 16  ;;  %v2358_v32 = vshll.u32 %v5768_v37, 16  ;;  %v6195_v14 = vpop.permute.xlu0 %3348 }
 0x193   : > { %v2580_v21 = vrot.slane %v7721_v29, 4  ;;  %v6180_v52 = vld [vmem:[#allocation2 + $0x54] sm:$0xf]  ;;  %v6186_v24 = vld [vmem:[#allocation2 + $0x58] sm:$0xf]  ;;  %v2576_v53 = vrot.slane %v2574_v51, 5  ;;  %v2355_v29 = vor.u32 %v5999_v25, %v5991_v20 }
 0x194   : > { %7722 = vst [vmem:[#allocation31_spill] sm:$0xff] %v6177_v55  ;;  %3152 = vrot.lane.b32.xlu1 %v4774_v48, %s5228_s17  ;;  %3360 = vrot.lane.b32.xlu0 %v4814_v8, %s5226_s15  ;;  %7723 = vst [vmem:[#allocation32_spill] sm:$0xff] %v6186_v24  ;;  %v7724_v9 = vshrl.u32 %v5768_v37, 16  ;;  %v6193_v13 = vld [vmem:[#allocation2 + $0xb0] sm:$0x1]  ;;  %v6197_v31 = vrot.slane %v1788_v1, 4  ;;  %v4766_v8 = vcombine.low %v6180_v52, %v6186_v24 }
 0x195   : > { %v2368_v51 = vshll.u32 %v2263_v2, 16  ;;  %v2581_v58 = vor.u32 %v2580_v21, %v2576_v53  ;;  %v2586_v20 = vrot.slane %v2584_v16, 5  ;;  %v2356_v25 = vrot.slane %v2355_v29, 4  ;;  %v6202_v11 = vld [vmem:[#allocation2 + $0xbc] sm:$0x1] }
 0x196   : > { %v2364_v19 = vrot.slane %v7724_v9, 4  ;;  %v2360_v55 = vrot.slane %v2358_v32, 5  ;;  %v2577_v9 = vsel %vm5440_vm7, %v2572_v42, %v2576_v53  ;;  %v4694_v12 = vrot.slane %v2065_v46, 9  ;;  %v1034_v16 = vld [vmem:[#allocation2 + $0xac] sm:$0xf]  ;;  %v6213_v42 = vpop.permute.xlu1 %3030 }
 0x197   : > { %v2370_v1 = vrot.slane %v2368_v51, 5  ;;  %v2582_v48 = vrot.slane %v2581_v58, 4  ;;  %v2215_v21 = vrot.slane %v6156_v33, 5  ;;  %v1033_v29 = vld [vmem:[#allocation2 + $0xa8] sm:$0xf]  ;;  %v2218_v32 = vrot.slane %v6202_v11, 5 }
 0x198   : > { %3136 = vrot.lane.b32.xlu1 %v4766_v8, %s5228_s17  ;;  %v2361_v2 = vsel %vm5440_vm7, %v2356_v25, %v2360_v55  ;;  %v2365_v17 = vor.u32 %v2364_v19, %v2360_v55  ;;  %v4678_v0 = vrot.slane %v1454_v6, 9  ;;  %v1607_v37 = vrot.slane %v1034_v16, 5  ;;  %v6219_v55 = vpop.permute.xlu0 %3252 }
 0x199   : > { %v1610_v38 = vrot.slane %v6193_v13, 5  ;;  %v2587_v46 = vsel %vm5440_vm7, %v2582_v48, %v2586_v20  ;;  %v2216_v53 = vsel %vm5434_vm6, %v4694_v12, %v2215_v21  ;;  %v2217_v19 = vrot.slane %v2215_v21, 4 }
 0x19a   : > { %v2366_v58 = vrot.slane %v2365_v17, 4  ;;  %v6221_v8 = vrot.slane %v1791_v50, 5  ;;  %v4836_v51 = vcombine.low %v2577_v9, %v2587_v46  ;;  %v1609_v25 = vrot.slane %v1607_v37, 4  ;;  %v1015_v17 = vld [vmem:[#allocation2 + $0x3c] sm:$0xf] }
 0x19b   : > { %v1393_v6 = vshrl.u32 %v1033_v29, 16  ;;  %v2219_v60 = vsel %vm5434_vm6, %v2217_v19, %v2218_v32  ;;  %v1396_v22 = vshll.u32 %v1033_v29, 16  ;;  %v1402_v48 = vshll.u32 %v1034_v16, 16 }
 0x19c   : > { %v2371_v44 = vsel %vm5440_vm7, %v2366_v58, %v2370_v1  ;;  %3452 = vrot.lane.b32.xlu0 %v4836_v51, %s5228_s17  ;;  %v4806_v20 = vcombine.low %v2216_v53, %v2219_v60  ;;  %v1608_v50 = vsel %vm5434_vm6, %v4678_v0, %v1607_v37  ;;  %v1611_v9 = vsel %vm5434_vm6, %v1609_v25, %v1610_v38  ;;  %v2057_v38 = vld [vmem:[#allocation2 + $0x54] sm:$0xe]  ;;  %v1657_v25 = vld [vmem:[#allocation2 + $0x5c] sm:$0x1] }
 0x19d   : > { %v4827_v12 = vcombine.low %v2361_v2, %v2371_v44  ;;  %v1395_v21 = vrot.slane %v1393_v6, 4  ;;  %v1398_v46 = vrot.slane %v1396_v22, 5  ;;  %v1404_v27 = vrot.slane %v1402_v48, 5  ;;  %v6235_v44 = vpop.permute.xlu1 %3128  ;;  %v6239_v22 = vpop.permute.xlu0 %3350 }
 0x19e   : > { %v1406_v1 = vshrl.u32 %v1034_v16, 16  ;;  %v1412_v29 = vshll.u32 %v6193_v13, 16  ;;  %v1177_v32 = vshrl.u32 %v1015_v17, 16  ;;  %v1180_v58 = vshll.u32 %v1015_v17, 16  ;;  %7725 = vst [vmem:[#allocation33_spill] sm:$0xff] %v6235_v44 }
 0x19f   : > { %3434 = vrot.lane.b32.xlu1 %v4827_v12, %s5228_s17  ;;  %v1186_v19 = vshll.u32 %v6080_v28, 16  ;;  %v1399_v60 = vor.u32 %v1398_v46, %v1395_v21  ;;  %v1190_v0 = vshrl.u32 %v6080_v28, 16  ;;  %v1196_v37 = vshll.u32 %v6082_v18, 16  ;;  %v1446_v21 = vld [vmem:[#allocation2 + $0x48] sm:$0xe] }
 0x1a0   : > { %v1408_v2 = vrot.slane %v1406_v1, 4  ;;  %3280 = vrot.lane.b32.xlu0 %v4806_v20, %s5227_s16  ;;  %v4758_v16 = vcombine.low %v1608_v50, %v1611_v9  ;;  %v1179_v53 = vrot.slane %v1177_v32, 4  ;;  %v1182_v13 = vrot.slane %v1180_v58, 5  ;;  %v6244_v44 = vld [vmem:[#allocation2 + $0x50] sm:$0x1] }
 0x1a1   : > { %v1188_v51 = vrot.slane %v1186_v19, 5  ;;  %v1400_v6 = vrot.slane %v1399_v60, 4  ;;  %v1414_v17 = vrot.slane %v1412_v29, 5  ;;  %v1192_v12 = vrot.slane %v1190_v0, 4  ;;  %v6250_v60 = vld [vmem:[#allocation2 + $0x4c] sm:$0xf] }
 0x1a2   : > { %v1409_v48 = vor.u32 %v1408_v2, %v1404_v27  ;;  %v1183_v28 = vor.u32 %v1182_v13, %v1179_v53  ;;  %v1198_v46 = vrot.slane %v1196_v37, 5  ;;  %v4686_v18 = vrot.slane %v2057_v38, 9  ;;  %v6258_v53 = vpop.permute.xlu0 %3254 }
 0x1a3   : > { %3056 = vrot.lane.b32.xlu1 %v4758_v16, %s5226_s15  ;;  %v2159_v1 = vrot.slane %v6186_v24, 5  ;;  %v1405_v20 = vsel %vm5440_vm7, %v1400_v6, %v1404_v27  ;;  %v1193_v9 = vor.u32 %v1192_v12, %v1188_v51  ;;  %v2162_v32 = vrot.slane %v1657_v25, 5  ;;  %v2273_v25 = vld [vmem:[#allocation2 + $0xbc] sm:$0x1] }
 0x1a4   : > { %v1410_v50 = vrot.slane %v1409_v48, 4  ;;  %v1794_v29 = vor.u32 %v6221_v8, %v6197_v31  ;;  %v1184_v58 = vrot.slane %v1183_v28, 4  ;;  %v4670_v2 = vrot.slane %v1446_v21, 9 }
 0x1a5   : > { %v2161_v19 = vrot.slane %v2159_v1, 4  ;;  %v1194_v38 = vrot.slane %v1193_v9, 4  ;;  %v1551_v16 = vrot.slane %v6250_v60, 5  ;;  %v1554_v27 = vrot.slane %v6244_v44, 5 }
 0x1a6   : > { %v1415_v37 = vsel %vm5440_vm7, %v1410_v50, %v1414_v17  ;;  %v2613_v13 = vshrl.u32 %v6130_v7, 16  ;;  %v1189_v8 = vsel %vm5440_vm7, %v1184_v58, %v1188_v51  ;;  %v2595_v6 = vor.u32 %v6150_v63, %v6143_v39 }
 0x1a7   : > { %v4742_v31 = vcombine.low %v1405_v20, %v1415_v37  ;;  %v1199_v48 = vsel %vm5440_vm7, %v1194_v38, %v1198_v46  ;;  %v2160_v17 = vsel %vm5434_vm6, %v4686_v18, %v2159_v1  ;;  %v2163_v12 = vsel %vm5434_vm6, %v2161_v19, %v2162_v32  ;;  %v2066_v38 = vld [vmem:[#allocation2 + $0xc0] sm:$0xe] }
 0x1a8   : > { %v6252_v0 = vpop.permute.xlu1 %2950  ;;  %v1553_v21 = vrot.slane %v1551_v16, 4  ;;  %v2616_v28 = vshll.u32 %v6130_v7, 16  ;;  %v4733_v20 = vcombine.low %v1189_v8, %v1199_v48  ;;  %v2598_v51 = vshll.u32 %v5997_v47, 16  ;;  %v6284_v7 = vld [vmem:[#allocation2 + $0xc8] sm:$0x1] }
 0x1a9   : > { %2976 = vrot.lane.b32.xlu0 %v4742_v31, %s5227_s16  ;;  %v7726_v50 = vshrl.u32 %v5997_v47, 16  ;;  %v7727_v63 = vshrl.u32 %v6029_v34, 16  ;;  %v1552_v18 = vsel %vm5434_vm6, %v4670_v2, %v1551_v16  ;;  %v2608_v9 = vshll.u32 %v2273_v25, 16  ;;  %v6299_v25 = vpop.permute.xlu0 %3352  ;;  %v1052_v16 = vld [vmem:[#allocation2 + $0xbc] sm:$0x1] }
 0x1aa   : > { %v1555_v1 = vsel %vm5434_vm6, %v1553_v21, %v1554_v27  ;;  %v7728_v32 = vshll.u32 %v6029_v34, 16  ;;  %2958 = vrot.lane.b32.xlu1 %v4733_v20, %s5227_s16  ;;  %v4798_v47 = vcombine.low %v2160_v17, %v2163_v12  ;;  %v2596_v19 = vrot.slane %v2595_v6, 4  ;;  %7731 = vst [vmem:[#allocation36_spill] sm:$0xff] %v6299_v25  ;;  %v6304_v12 = vld [vmem:[#allocation2 + $0xc4] sm:$0xf] }
 0x1ab   : > { %v2604_v39 = vrot.slane %v7726_v50, 4  ;;  %v6278_v46 = vrot.slane %v7727_v63, 4  ;;  %v2600_v37 = vrot.slane %v2598_v51, 5  ;;  %v6293_v8 = vrot.slane %v1794_v29, 4  ;;  %v2264_v21 = vld [vmem:[#allocation2 + $0x50] sm:$0x1] }
 0x1ac   : > { %v6288_v58 = vrot.slane %v7728_v32, 5  ;;  %v6291_v31 = vpop.permute.xlu1 %3032  ;;  %v6297_v27 = vrot.slane %v2613_v13, 4  ;;  %v6301_v34 = vrot.slane %v2616_v28, 5  ;;  %v4750_v48 = vcombine.low %v1552_v18, %v1555_v1  ;;  %v1035_v18 = vld [vmem:[#allocation2 + $0xb4] sm:$0xf] }
 0x1ad   : > { %7729 = vst [vmem:[#allocation34_spill] sm:$0xff] %v6291_v31  ;;  %7730 = vst [vmem:[#allocation35_spill] sm:$0xff] %v6293_v8  ;;  %3264 = vrot.lane.b32.xlu0 %v4798_v47, %s5227_s16  ;;  %v2605_v6 = vor.u32 %v2604_v39, %v2600_v37  ;;  %v2610_v17 = vrot.slane %v2608_v9, 5  ;;  %v4695_v20 = vrot.slane %v2066_v38, 9  ;;  %v2222_v51 = vrot.slane %v6304_v12, 5 }
 0x1ae   : > { %v2225_v13 = vrot.slane %v6284_v7, 5  ;;  %3040 = vrot.lane.b32.xlu1 %v4750_v48, %s5226_s15  ;;  %v2601_v28 = vsel %vm5440_vm7, %v2596_v19, %v2600_v37  ;;  %v2379_v39 = vor.u32 %v6128_v3, %v6126_v45  ;;  %v2382_v63 = vshll.u32 %v5862_v5, 16  ;;  %v6315_v1 = vld [vmem:[#allocation2 + $0xc0] sm:$0xf] }
 0x1af   : > { %v2606_v50 = vrot.slane %v2605_v6, 4  ;;  %v2223_v9 = vsel %vm5434_vm6, %v4695_v20, %v2222_v51  ;;  %v2224_v32 = vrot.slane %v2222_v51, 4  ;;  %v7732_v47 = vshrl.u32 %v5862_v5, 16  ;;  %v1036_v6 = vld [vmem:[#allocation2 + $0xb8] sm:$0xf] }
 0x1b0   : > { %v2392_v48 = vshll.u32 %v2264_v21, 16  ;;  %v4775_v37 = vcombine.low %v6315_v1, %v6304_v12  ;;  %v2380_v45 = vrot.slane %v2379_v39, 4  ;;  %v2384_v3 = vrot.slane %v2382_v63, 5  ;;  %v6325_v2 = vpop.permute.xlu1 %3130  ;;  %v1455_v21 = vld [vmem:[#allocation2 + $0xb4] sm:$0xe] }
 0x1b1   : > { %v2388_v38 = vrot.slane %v7732_v47, 4  ;;  %v2611_v19 = vsel %vm5440_vm7, %v2606_v50, %v2610_v17  ;;  %7733 = vst [vmem:[#allocation37_spill] sm:$0xff] %v6325_v2  ;;  %v2226_v5 = vsel %vm5434_vm6, %v2224_v32, %v2225_v13  ;;  %v1417_v63 = vshrl.u32 %v1035_v18, 16  ;;  %v5149_v13 = vld [vmem:[%s7634_s3 + $0x88] sm:$0xff]  }
 0x1b2   : > { %v4837_v20 = vcombine.low %v2601_v28, %v2611_v19  ;;  %v2394_v51 = vrot.slane %v2392_v48, 5  ;;  %v6330_v47 = vpop.permute.xlu0 %3428  ;;  %3154 = vrot.lane.b32.xlu1 %v4775_v37, %s5228_s17  ;;  %v4807_v17 = vcombine.low %v2223_v9, %v2226_v5  ;;  %v2385_v50 = vsel %vm5440_vm7, %v2380_v45, %v2384_v3  ;;  %5029 = vmatprep.subr.bf16.mxu1 %v5149_v13 }
 0x1b3   : > { %v2389_v39 = vor.u32 %v2388_v38, %v2384_v3  ;;  %v1420_v2 = vshll.u32 %v1035_v18, 16  ;;  %v1426_v29 = vshll.u32 %v1036_v6, 16  ;;  %v1430_v28 = vshrl.u32 %v1036_v6, 16  ;;  %v2265_v38 = vld [vmem:[#allocation2 + $0x5c] sm:$0x1] }
 0x1b4   : > { %3454 = vrot.lane.b32.xlu0 %v4837_v20, %s5228_s17  ;;  %v1436_v19 = vshll.u32 %v1052_v16, 16  ;;  %v1419_v48 = vrot.slane %v1417_v63, 4  ;;  %v4679_v8 = vrot.slane %v1455_v21, 9  ;;  %v1614_v37 = vrot.slane %v1036_v6, 5 }
 0x1b5   : > { %v2390_v32 = vrot.slane %v2389_v39, 4  ;;  %v1422_v9 = vrot.slane %v1420_v2, 5  ;;  %v1428_v5 = vrot.slane %v1426_v29, 5  ;;  %v1432_v10 = vrot.slane %v1430_v28, 4  ;;  %v1017_v39 = vld [vmem:[#allocation2 + $0x48] sm:$0xf] }
 0x1b6   : > { %v1438_v45 = vrot.slane %v1436_v19, 5  ;;  %v1615_v3 = vsel %vm5434_vm6, %v4679_v8, %v1614_v37  ;;  %v1616_v20 = vrot.slane %v1614_v37, 4  ;;  %v1617_v31 = vrot.slane %v1052_v16, 5  ;;  %v6348_v63 = vpop.permute.xlu0 %3256 }
 0x1b7   : > { %v2395_v18 = vsel %vm5440_vm7, %v2390_v32, %v2394_v51  ;;  %v1423_v6 = vor.u32 %v1422_v9, %v1419_v48  ;;  %v1433_v2 = vor.u32 %v1432_v10, %v1428_v5  ;;  %v2403_v29 = vor.u32 %v6288_v58, %v6278_v46 }
 0x1b8   : > { %3282 = vrot.lane.b32.xlu0 %v4807_v17, %s5227_s16  ;;  %v4828_v21 = vcombine.low %v2385_v50, %v2395_v18  ;;  %v1618_v51 = vsel %vm5434_vm6, %v1616_v20, %v1617_v31  ;;  %v2406_v8 = vshll.u32 %v6031_v15, 16  ;;  %v7734_v16 = vshrl.u32 %v6031_v15, 16 }
 0x1b9   : > { %v6343_v25 = vpop.permute.xlu1 %2952  ;;  %v2416_v19 = vshll.u32 %v2265_v38, 16  ;;  %v2007_v17 = vshll.u32 %v6146_v57, 16  ;;  %v1424_v10 = vrot.slane %v1423_v6, 4  ;;  %v1434_v50 = vrot.slane %v1433_v2, 4  ;;  %v2274_v6 = vld [vmem:[#allocation2 + $0xc8] sm:$0x1] }
 0x1ba   : > { %v2412_v28 = vrot.slane %v7734_v16, 4  ;;  %3436 = vrot.lane.b32.xlu1 %v4828_v21, %s5228_s17  ;;  %v2404_v13 = vrot.slane %v2403_v29, 4  ;;  %v4759_v46 = vcombine.low %v1615_v3, %v1618_v51  ;;  %v2408_v58 = vrot.slane %v2406_v8, 5 }
 0x1bb   : > { %v2418_v32 = vrot.slane %v2416_v19, 5  ;;  %v1201_v48 = vshrl.u32 %v1017_v39, 16  ;;  %v1429_v31 = vsel %vm5440_vm7, %v1424_v10, %v1428_v5  ;;  %v1439_v37 = vsel %vm5440_vm7, %v1434_v50, %v1438_v45 }
 0x1bc   : > { %v1204_v15 = vshll.u32 %v1017_v39, 16  ;;  %v1210_v9 = vshll.u32 %v6250_v60, 16  ;;  %v4743_v38 = vcombine.low %v1429_v31, %v1439_v37  ;;  %v2409_v18 = vsel %vm5440_vm7, %v2404_v13, %v2408_v58  ;;  %v6369_v39 = vpop.permute.xlu0 %3354  ;;  %v1019_v31 = vld [vmem:[#allocation2 + $0x54] sm:$0xf] }
 0x1bd   : > { %v2413_v20 = vor.u32 %v2412_v28, %v2408_v58  ;;  %v1203_v21 = vrot.slane %v1201_v48, 4  ;;  %v6364_v3 = vpop.permute.xlu1 %3034  ;;  %v1214_v5 = vshrl.u32 %v6250_v60, 16  ;;  %v1220_v45 = vshll.u32 %v6244_v44, 16 }
 0x1be   : > { %7735 = vst [vmem:[#allocation38_spill] sm:$0xff] %v6364_v3  ;;  %3058 = vrot.lane.b32.xlu1 %v4759_v46, %s5226_s15  ;;  %v1206_v2 = vrot.slane %v1204_v15, 5  ;;  %v1212_v29 = vrot.slane %v1210_v9, 5  ;;  %2978 = vrot.lane.b32.xlu0 %v4743_v38, %s5227_s16  ;;  %v2619_v8 = vor.u32 %v6301_v34, %v6297_v27  ;;  %v2622_v16 = vshll.u32 %v6132_v61, 16  ;;  %v6380_v9 = vld [vmem:[#allocation2 + $0x58] sm:$0xf] }
 0x1bf   : > { %v2414_v51 = vrot.slane %v2413_v20, 4  ;;  %v7736_v28 = vshrl.u32 %v6132_v61, 16  ;;  %v1216_v13 = vrot.slane %v1214_v5, 4  ;;  %v2632_v60 = vshll.u32 %v2274_v6, 16 }
 0x1c0   : > { %v1207_v50 = vor.u32 %v1206_v2, %v1203_v21  ;;  %v1222_v46 = vrot.slane %v1220_v45, 5  ;;  %v2620_v58 = vrot.slane %v2619_v8, 4  ;;  %v2624_v48 = vrot.slane %v2622_v16, 5 }
 0x1c1   : > { %v2628_v19 = vrot.slane %v7736_v28, 4  ;;  %v2419_v44 = vsel %vm5440_vm7, %v2414_v51, %v2418_v32  ;;  %v1217_v27 = vor.u32 %v1216_v13, %v1212_v29  ;;  %v2634_v34 = vrot.slane %v2632_v60, 5  ;;  %v6388_v2 = vpop.permute.xlu1 %3148  ;;  %v1044_v28 = vld [vmem:[#allocation2 + $0x5c] sm:$0x1] }
 0x1c2   : > { %v4829_v37 = vcombine.low %v2409_v18, %v2419_v44  ;;  %v1208_v15 = vrot.slane %v1207_v50, 4  ;;  %v2625_v61 = vsel %vm5440_vm7, %v2620_v58, %v2624_v48  ;;  %v7737_v20 = vshll.u32 %v5541_v41, 16  ;;  %v6393_v8 = vpop.permute.xlu0 %3258  ;;  %v2058_v44 = vld [vmem:[#allocation2 + $0x60] sm:$0xe] }
 0x1c3   : > { %v2629_v38 = vor.u32 %v2628_v19, %v2624_v48  ;;  %v7738_v6 = vshll.u32 %v5581_v54, 16  ;;  %v1218_v5 = vrot.slane %v1217_v27, 4  ;;  %v1225_v45 = vshrl.u32 %v1019_v31, 16 }
 0x1c4   : > { %v1679_v21 = vrot.slane %v7737_v20, 5  ;;  %3438 = vrot.lane.b32.xlu0 %v4829_v37, %s5228_s17  ;;  %v1213_v18 = vsel %vm5440_vm7, %v1208_v15, %v1212_v29  ;;  %v1228_v51 = vshll.u32 %v1019_v31, 16  ;;  %v1234_v19 = vshll.u32 %v6380_v9, 16  ;;  %v1658_v20 = vld [vmem:[#allocation2 + $0x68] sm:$0x1] }
 0x1c5   : > { %v1689_v32 = vrot.slane %v7738_v6, 5  ;;  %v2630_v16 = vrot.slane %v2629_v38, 4  ;;  %v1223_v50 = vsel %vm5440_vm7, %v1218_v5, %v1222_v46  ;;  %v1227_v13 = vrot.slane %v1225_v45, 4  ;;  %v6405_v38 = vld [vmem:[#allocation2 + $0x64] sm:$0xf]  ;;  %v6412_v5 = vpop.permute.xlu1 %3132 }
 0x1c6   : > { %v1680_v41 = vsel %vm5440_vm7, %v5706_v59, %v1679_v21  ;;  %v1684_v54 = vor.u32 %v5699_v35, %v1679_v21  ;;  %v1230_v29 = vrot.slane %v1228_v51, 5  ;;  %v1238_v60 = vshrl.u32 %v6380_v9, 16  ;;  %7739 = vst [vmem:[#allocation39_spill] sm:$0xff] %v6412_v5  ;;  %v6487_v5 = vld [vmem:[#allocation2 + $0x64] sm:$0xf] }
 0x1c7   : > { %v4734_v58 = vcombine.low %v1213_v18, %v1223_v50  ;;  %v2635_v48 = vsel %vm5440_vm7, %v2630_v16, %v2634_v34  ;;  %v1236_v37 = vrot.slane %v1234_v19, 5  ;;  %v1244_v27 = vshll.u32 %v1044_v28, 16  ;;  %v1447_v34 = vld [vmem:[#allocation2 + $0x54] sm:$0xe]  ;;  %v6417_v19 = vpop.permute.xlu0 %3372  ;;  %v6456_v50 = vld [vmem:[#allocation2 + $0x70] sm:$0xf] }
 0x1c8   : > { %v1685_v31 = vrot.slane %v1684_v54, 4  ;;  %v4838_v59 = vcombine.low %v2625_v61, %v2635_v48  ;;  %v1231_v15 = vor.u32 %v1230_v29, %v1227_v13  ;;  %v1240_v35 = vrot.slane %v1238_v60, 4  ;;  %v2242_v54 = vld [vmem:[#allocation2 + $0x6c] sm:$0xf]  ;;  %v2243_v48 = vld [vmem:[#allocation2 + $0x70] sm:$0xf] }
 0x1c9   : > { %v2017_v46 = vshrl.u32 %v6156_v33, 16  ;;  %2960 = vrot.lane.b32.xlu1 %v4734_v58, %s5227_s16  ;;  %v4687_v6 = vrot.slane %v2058_v44, 9  ;;  %v2166_v18 = vrot.slane %v6405_v38, 5  ;;  %v1246_v16 = vrot.slane %v1244_v27, 5 }
 0x1ca   : > { %v1690_v21 = vsel %vm5440_vm7, %v1685_v31, %v1689_v32  ;;  %3456 = vrot.lane.b32.xlu0 %v4838_v59, %s5228_s17  ;;  %v1232_v45 = vrot.slane %v1231_v15, 4  ;;  %v1241_v51 = vor.u32 %v1240_v35, %v1236_v37  ;;  %v2169_v29 = vrot.slane %v1658_v20, 5 }
 0x1cb   : > { %v6415_v61 = vcombine.low %v1680_v41, %v1690_v21  ;;  %v2167_v32 = vsel %vm5434_vm6, %v4687_v6, %v2166_v18  ;;  %v2168_v13 = vrot.slane %v2166_v18, 4  ;;  %v4671_v58 = vrot.slane %v1447_v34, 9 }
 0x1cc   : > { %v1237_v60 = vsel %vm5440_vm7, %v1232_v45, %v1236_v37  ;;  %v1242_v44 = vrot.slane %v1241_v51, 4  ;;  %v1558_v41 = vrot.slane %v6380_v9, 5  ;;  %v1561_v59 = vrot.slane %v1044_v28, 5  ;;  %v2267_v51 = vld [vmem:[#allocation2 + $0x74] sm:$0x1] }
 0x1cd   : > { %v2170_v31 = vsel %vm5434_vm6, %v2168_v13, %v2169_v29  ;;  %v2445_v15 = vshrl.u32 %v2242_v54, 16  ;;  %v2448_v35 = vshll.u32 %v2242_v54, 16  ;;  %v7740_v27 = vshrl.u32 %v6146_v57, 16  ;;  %v6433_v10 = vpop.permute.xlu1 %3430  ;;  %v6445_v29 = vpop.permute.xlu0 %3356 }
 0x1ce   : > { %v1247_v20 = vsel %vm5440_vm7, %v1242_v44, %v1246_v16  ;;  %v4799_v6 = vcombine.low %v2167_v32, %v2170_v31  ;;  %v1560_v37 = vrot.slane %v1558_v41, 4  ;;  %v2458_v9 = vshrl.u32 %v2243_v48, 16  ;;  %7741 = vst [vmem:[#allocation40_spill] sm:$0xff] %v6445_v29 }
 0x1cf   : > { %v6429_v21 = vrot.slane %v7740_v27, 4  ;;  %v4735_v18 = vcombine.low %v1237_v60, %v1247_v20  ;;  %v2447_v34 = vrot.slane %v2445_v15, 4  ;;  %v2450_v45 = vrot.slane %v2448_v35, 5 }
 0x1d0   : > { %v6437_v28 = vrot.slane %v2007_v17, 5  ;;  %v2421_v13 = vshrl.u32 %v6164_v43, 16  ;;  %3266 = vrot.lane.b32.xlu0 %v4799_v6, %s5227_s16  ;;  %v1559_v16 = vsel %vm5434_vm6, %v4671_v58, %v1558_v41  ;;  %v1562_v32 = vsel %vm5434_vm6, %v1560_v37, %v1561_v59  ;;  %v7743_v59 = vld [vmem:[#allocation10_spill] sm:$0xff] }
 0x1d1   : > { %v1812_v60 = vshrl.u32 %v6180_v52, 16  ;;  %v1815_v44 = vshll.u32 %v6180_v52, 16  ;;  %2962 = vrot.lane.b32.xlu1 %v4735_v18, %s5227_s16  ;;  %v7742_v57 = vshll.u32 %v5568_v4, 16  ;;  %v2451_v31 = vor.u32 %v2450_v45, %v2447_v34  ;;  %7744 = vst [vmem:[#allocation10_spill] sm:$0xff] %v6456_v50  ;;  %v6458_v52 = vld [vmem:[#allocation2 + $0x74] sm:$0x1] }
 0x1d2   : > { %v4815_v15 = vcombine.low %v2242_v54, %v2243_v48  ;;  %v2454_v35 = vshll.u32 %v2243_v48, 16  ;;  %v2460_v27 = vrot.slane %v2458_v9, 4  ;;  %v2464_v20 = vshll.u32 %v2267_v51, 16  ;;  %7745 = vst [vmem:[#allocation41_spill] sm:$0xff] %v6458_v52  ;;  %v2059_v34 = vld [vmem:[#allocation2 + $0x6c] sm:$0xe] }
 0x1d3   : > { %v1703_v17 = vrot.slane %v7742_v57, 5  ;;  %v4751_v58 = vcombine.low %v1559_v16, %v1562_v32  ;;  %v2452_v37 = vrot.slane %v2451_v31, 4  ;;  %v6460_v18 = vrot.slane %v2017_v46, 4  ;;  %v7746_v51 = vld [vmem:[#allocation7_spill] sm:$0xff]  ;;  %v6468_v57 = vld [vmem:[#allocation2 + $0x60] sm:$0xf]  ;;  %v6470_v46 = vpop.permute.xlu1 %3052 }
 0x1d4   : > { %v2424_v4 = vshll.u32 %v6164_v43, 16  ;;  %3362 = vrot.lane.b32.xlu0 %v4815_v15, %s5226_s15  ;;  %v2456_v48 = vrot.slane %v2454_v35, 5  ;;  %v1814_v45 = vrot.slane %v1812_v60, 4  ;;  %v1817_v9 = vrot.slane %v1815_v44, 5  ;;  %v1448_v35 = vld [vmem:[#allocation2 + $0x60] sm:$0xe] }
 0x1d5   : > { %v1704_v41 = vsel %vm5440_vm7, %v5745_v30, %v1703_v17  ;;  %v1708_v6 = vor.u32 %v7743_v59, %v1703_v17  ;;  %3042 = vrot.lane.b32.xlu1 %v4751_v58, %s5226_s15  ;;  %v7747_v16 = vshll.u32 %v7746_v51, 16  ;;  %v1825_v43 = vshrl.u32 %v6186_v24, 16  ;;  %v6474_v59 = vpop.permute.xlu0 %3276  ;;  %v6482_v51 = vld [vmem:[#allocation2 + $0x68] sm:$0x1] }
 0x1d6   : > { %v2461_v17 = vor.u32 %v2460_v27, %v2456_v48  ;;  %v2466_v31 = vrot.slane %v2464_v20, 5  ;;  %v2173_v15 = vrot.slane %v6456_v50, 5  ;;  %v2457_v44 = vsel %vm5440_vm7, %v2452_v37, %v2456_v48 }
 0x1d7   : > { %v1709_v30 = vrot.slane %v1708_v6, 4  ;;  %v1713_v32 = vrot.slane %v7747_v16, 5  ;;  %v4767_v58 = vcombine.low %v6468_v57, %v6405_v38  ;;  %v4688_v6 = vrot.slane %v2059_v34, 9 }
 0x1d8   : > { %v2462_v27 = vrot.slane %v2461_v17, 4  ;;  %v2175_v20 = vrot.slane %v2173_v15, 4  ;;  %v2176_v54 = vrot.slane %v6458_v52, 5  ;;  %v4672_v37 = vrot.slane %v1448_v35, 9 }
 0x1d9   : > { %v1714_v60 = vsel %vm5440_vm7, %v1709_v30, %v1713_v32  ;;  %v2010_v30 = vor.u32 %v6437_v28, %v6429_v21  ;;  %v1818_v32 = vor.u32 %v1817_v9, %v1814_v45  ;;  %3138 = vrot.lane.b32.xlu1 %v4767_v58, %s5228_s17  ;;  %v1565_v38 = vrot.slane %v6487_v5, 5  ;;  %v6500_v28 = vpop.permute.xlu1 %2954 }
 0x1da   : > { %v6484_v16 = vcombine.low %v1704_v41, %v1714_v60  ;;  %v2028_v48 = vshrl.u32 %v6315_v1, 16  ;;  %v2031_v41 = vshll.u32 %v6315_v1, 16  ;;  %v2467_v34 = vsel %vm5440_vm7, %v2462_v27, %v2466_v31  ;;  %v2244_v60 = vld [vmem:[#allocation2 + $0x78] sm:$0xf] }
 0x1db   : > { %v1568_v17 = vrot.slane %v6482_v51, 5  ;;  %v2423_v52 = vrot.slane %v2421_v13, 4  ;;  %v2426_v29 = vrot.slane %v2424_v4, 5  ;;  %v6498_v24 = vrot.slane %v1825_v43, 4 }
 0x1dc   : > { %v4831_v21 = vcombine.low %v2457_v44, %v2467_v34  ;;  %v2174_v45 = vsel %vm5434_vm6, %v4688_v6, %v2173_v15  ;;  %v2177_v9 = vsel %vm5434_vm6, %v2175_v20, %v2176_v54  ;;  %v1566_v1 = vsel %vm5434_vm6, %v4672_v37, %v1565_v38  ;;  %v6508_v35 = vpop.permute.xlu0 %2972  ;;  %v6527_v37 = vld [vmem:[#allocation2 + $0x10] sm:$0xf] }
 0x1dd   : > { %7748 = vst [vmem:[#allocation7_spill] sm:$0xff] %v6498_v24  ;;  %v1567_v31 = vrot.slane %v1565_v38, 4  ;;  %v6510_v58 = vrot.slane %v2010_v30, 4  ;;  %v6512_v13 = vrot.slane %v1818_v32, 4  ;;  %v3641_v4 = vsel %vm3508_vm14, %v6415_v61, %v6219_v55  ;;  %v6525_v30 = vld [vmem:[#allocation2 + $0x7c] sm:$0xf] }
 0x1de   : > { %3442 = vrot.lane.b32.xlu0 %v4831_v21, %s5228_s17  ;;  %v2469_v43 = vshrl.u32 %v2244_v60, 16  ;;  %v6519_v54 = vrot.slane %v2028_v48, 4  ;;  %v6521_v44 = vrot.slane %v2031_v41, 5  ;;  %v4800_v27 = vcombine.low %v2174_v45, %v2177_v9  ;;  %7750 = vst [vmem:[#allocation43_spill] sm:$0xff] %v6525_v30  ;;  %v6529_v55 = vld [vmem:[#allocation2 + $0xc] sm:$0xf] }
 0x1df   : > { %7749 = vst [vmem:[#allocation42_spill] sm:$0xff] %v6512_v13  ;;  %v1569_v6 = vsel %vm5434_vm6, %v1567_v31, %v1568_v17  ;;  %v2472_v32 = vshll.u32 %v2244_v60, 16  ;;  %vm3590_vm0 = vcmask 785408   ;;  %v4816_v38 = vcombine.low %v2244_v60, %v6525_v30  ;;  %v7751_v41 = vld [vmem:[#allocation6_spill] sm:$0xff]  ;;  %v2266_v21 = vld [vmem:[#allocation2 + $0x68] sm:$0x1] }
 0x1e0   : > { %v4752_v20 = vcombine.low %v1566_v1, %v1569_v6  ;;  %v3688_v48 = vsel %vm3557_vm15, %v3641_v4, %v6195_v14  ;;  %v7752_v34 = vshll.u32 %v7751_v41, 16  ;;  %v2471_v45 = vrot.slane %v2469_v43, 4  ;;  %v1023_v31 = vld [vmem:[#allocation2 + $0x6c] sm:$0xf]  ;;  %v6545_v6 = vpop.permute.xlu1 %3036  ;;  %v7755_v4 = vld [vmem:[#allocation15_spill] sm:$0xff]  ;;  %v7757_v41 = vld [vmem:[#allocation8_spill] sm:$0xff] }
 0x1e1   : > { %v3720_v9 = vsel %vm3590_vm0, %v3688_v48, %v6330_v47  ;;  %v3592_v1 = vsel %vm3590_vm0, %v6160_v62, %v6134_v56  ;;  %v2427_v60 = vor.u32 %v2426_v29, %v2423_v52  ;;  %7753 = vst [vmem:[#allocation6_spill] sm:$0xff] %v6545_v6  ;;  %v6547_v14 = vld [vmem:[#allocation2 + $0x6c] sm:$0xf]  ;;  %v2430_v48 = vshll.u32 %v6166_v23, 16  ;;  %v6556_v15 = vld [vmem:[#allocation2 + $0x70] sm:$0xf] }
 0x1e2   : > { %v1727_v17 = vrot.slane %v7752_v34, 5  ;;  %3268 = vrot.lane.b32.xlu0 %v4800_v27, %s5227_s16  ;;  %3044 = vrot.lane.b32.xlu1 %v4752_v20, %s5226_s15  ;;  %7754 = vst [vmem:[#allocation44_spill] sm:$0xff] %v6547_v14  ;;  %v7756_v20 = vld [vmem:[#allocation14_spill] sm:$0xff]  ;;  %v7758_v34 = vshll.u32 %v7757_v41, 16  ;;  %v6558_v56 = vpop.permute.xlu0 %3260  ;;  %v2474_v62 = vrot.slane %v2472_v32, 5  ;;  %v4768_v29 = vcombine.low %v6547_v14, %v6456_v50 }
 0x1e3   : > { %3998 = vmatprep.mubr.bf16.mxu0 %v3720_v9  ;;  %7759 = vst [vmem:[#allocation15_spill] sm:$0xff] %v6558_v56  ;;  %v7760_v52 = vshrl.u32 %v6166_v23, 16  ;;  %v1273_v41 = vshrl.u32 %v1023_v31, 16  ;;  %v1046_v6 = vld [vmem:[#allocation2 + $0x74] sm:$0x1]  ;;  %v1276_v32 = vshll.u32 %v1023_v31, 16 }
 0x1e4   : > { %v1728_v27 = vsel %vm5440_vm7, %v7755_v4, %v1727_v17  ;;  %v1732_v43 = vor.u32 %v7756_v20, %v1727_v17  ;;  %v1737_v47 = vrot.slane %v7758_v34, 5  ;;  %3999 = vmatmul.mubr.bf16.vlgmr.msra.gmra.mxu0 %v3592_v1  ;;  %v2440_v4 = vshll.u32 %v2266_v21, 16 }
 0x1e5   : > { %v2436_v9 = vrot.slane %v7760_v52, 4  ;;  %v2428_v17 = vrot.slane %v2427_v60, 4  ;;  %v2432_v20 = vrot.slane %v2430_v48, 5  ;;  %v2482_v34 = vshrl.u32 %v6525_v30, 16 }
 0x1e6   : > { %v1733_v61 = vrot.slane %v1732_v43, 4  ;;  %3364 = vrot.lane.b32.xlu0 %v4816_v38, %s5226_s15  ;;  %3140 = vrot.lane.b32.xlu1 %v4768_v29, %s5228_s17  ;;  %v1282_v24 = vshll.u32 %v6556_v15, 16  ;;  %v1286_v1 = vshrl.u32 %v6556_v15, 16  ;;  %v2442_v43 = vrot.slane %v2440_v4, 5  ;;  %v6573_v38 = vpop.permute.xlu1 %3150  ;;  %v6580_v4 = vld [vmem:[#allocation2 + $0x80] sm:$0x1] }
 0x1e7   : > { %v2437_v21 = vor.u32 %v2436_v9, %v2432_v20  ;;  %v1275_v60 = vrot.slane %v1273_v41, 4  ;;  %v1278_v52 = vrot.slane %v1276_v32, 5  ;;  %v2433_v31 = vsel %vm5440_vm7, %v2428_v17, %v2432_v20  ;;  %v6577_v3 = vpop.permute.xlu0 %3374  ;;  %7761 = vst [vmem:[#allocation14_spill] sm:$0xff] %v6580_v4 }
 0x1e8   : > { %v1738_v23 = vsel %vm5440_vm7, %v1733_v61, %v1737_v47  ;;  %v1284_v50 = vrot.slane %v1282_v24, 5  ;;  %v1288_v14 = vrot.slane %v1286_v1, 4  ;;  %v1292_v13 = vshll.u32 %v1046_v6, 16  ;;  %v1449_v24 = vld [vmem:[#allocation2 + $0x6c] sm:$0xe] }
 0x1e9   : > { %v6571_v48 = vcombine.low %v1728_v27, %v1738_v23  ;;  %v2438_v29 = vrot.slane %v2437_v21, 4  ;;  %v2475_v56 = vor.u32 %v2474_v62, %v2471_v45  ;;  %v1279_v47 = vor.u32 %v1278_v52, %v1275_v60  ;;  %v2060_v52 = vld [vmem:[#allocation2 + $0x78] sm:$0xe] }
 0x1ea   : > { %v1289_v9 = vor.u32 %v1288_v14, %v1284_v50  ;;  %v2478_v27 = vshll.u32 %v6525_v30, 16  ;;  %v1294_v32 = vrot.slane %v1292_v13, 5  ;;  %v2484_v17 = vrot.slane %v2482_v34, 4 }
 0x1eb   : > { %v2443_v41 = vsel %vm5440_vm7, %v2438_v29, %v2442_v43  ;;  %v2476_v1 = vrot.slane %v2475_v56, 4  ;;  %v1280_v23 = vrot.slane %v1279_v47, 4  ;;  %v1575_v21 = vrot.slane %v1046_v6, 5  ;;  %v1660_v43 = vld [vmem:[#allocation2 + $0x80] sm:$0x1] }
 0x1ec   : > { %v4830_v20 = vcombine.low %v2433_v31, %v2443_v41  ;;  %v1290_v45 = vrot.slane %v1289_v9, 4  ;;  %v2480_v62 = vrot.slane %v2478_v27, 5  ;;  %v2488_v61 = vshll.u32 %v6580_v4, 16  ;;  %v1021_v6 = vld [vmem:[#allocation2 + $0x60] sm:$0xf]  ;;  %v6594_v31 = vpop.permute.xlu1 %3134  ;;  %v6598_v27 = vpop.permute.xlu0 %3358 }
 0x1ed   : > { %v4673_v60 = vrot.slane %v1449_v24, 9  ;;  %v1572_v14 = vrot.slane %v6556_v15, 5  ;;  %v1285_v30 = vsel %vm5440_vm7, %v1280_v23, %v1284_v50  ;;  %7762 = vst [vmem:[#allocation8_spill] sm:$0xff] %v6594_v31  ;;  %7763 = vst [vmem:[#allocation45_spill] sm:$0xff] %v6598_v27  ;;  %v7764_v24 = vld [vmem:[#allocation9_spill] sm:$0xff]  ;;  %v1252_v31 = vshll.u32 %v1021_v6, 16 }
 0x1ee   : > { %3440 = vrot.lane.b32.xlu0 %v4830_v20, %s5228_s17  ;;  %v1295_v13 = vsel %vm5440_vm7, %v1290_v45, %v1294_v32  ;;  %v2481_v56 = vsel %vm5440_vm7, %v2476_v1, %v2480_v62  ;;  %v2485_v34 = vor.u32 %v2484_v17, %v2480_v62  ;;  %v2490_v47 = vrot.slane %v2488_v61, 5  ;;  %v7766_v20 = vld [vmem:[#allocation12_spill] sm:$0xff]  ;;  %v6604_v17 = vld [vmem:[#allocation2 + $0x7c] sm:$0xf] }
 0x1ef   : > { %v4737_v29 = vcombine.low %v1285_v30, %v1295_v13  ;;  %v1573_v15 = vsel %vm5434_vm6, %v4673_v60, %v1572_v14  ;;  %v1574_v9 = vrot.slane %v1572_v14, 4  ;;  %v7765_v41 = vshll.u32 %v7764_v24, 16 }
 0x1f0   : > { %v2486_v50 = vrot.slane %v2485_v34, 4  ;;  %v7767_v23 = vshll.u32 %v7766_v20, 16  ;;  %v4689_v45 = vrot.slane %v2060_v52, 9  ;;  %v2180_v61 = vrot.slane %v6604_v17, 5  ;;  %v7768_v34 = vld [vmem:[#allocation22_spill] sm:$0xff] }
 0x1f1   : > { %v1751_v32 = vrot.slane %v7765_v41, 5  ;;  %2966 = vrot.lane.b32.xlu1 %v4737_v29, %s5227_s16  ;;  %v1576_v30 = vsel %vm5434_vm6, %v1574_v9, %v1575_v21  ;;  %v2183_v62 = vrot.slane %v1660_v43, 5  ;;  %v1249_v60 = vshrl.u32 %v1021_v6, 16  ;;  %v7769_v41 = vld [vmem:[#allocation21_spill] sm:$0xff]  ;;  %v2246_v52 = vld [vmem:[#allocation2 + $0x84] sm:$0xf] }
 0x1f2   : > { %v1761_v1 = vrot.slane %v7767_v23, 5  ;;  %v2491_v14 = vsel %vm5440_vm7, %v2486_v50, %v2490_v47  ;;  %v4753_v13 = vcombine.low %v1573_v15, %v1576_v30  ;;  %v2247_v23 = vld [vmem:[#allocation2 + $0x88] sm:$0xf]  ;;  %v2181_v21 = vsel %vm5434_vm6, %v4689_v45, %v2180_v61  ;;  %v6626_v30 = vpop.permute.xlu0 %3278 }
 0x1f3   : > { %v1752_v24 = vsel %vm5440_vm7, %v7768_v34, %v1751_v32  ;;  %v1756_v20 = vor.u32 %v7769_v41, %v1751_v32  ;;  %v4832_v29 = vcombine.low %v2481_v56, %v2491_v14  ;;  %v2182_v9 = vrot.slane %v2180_v61, 4  ;;  %v6620_v15 = vpop.permute.xlu1 %3432 }
 0x1f4   : > { %v1251_v4 = vrot.slane %v1249_v60, 4  ;;  %v1258_v27 = vshll.u32 %v6487_v5, 16  ;;  %v1262_v47 = vshrl.u32 %v6487_v5, 16  ;;  %v2493_v50 = vshrl.u32 %v2246_v52, 16 }
 0x1f5   : > { %v1757_v43 = vrot.slane %v1756_v20, 4  ;;  %3444 = vrot.lane.b32.xlu0 %v4832_v29, %s5228_s17  ;;  %3046 = vrot.lane.b32.xlu1 %v4753_v13, %s5226_s15  ;;  %v2184_v56 = vsel %vm5434_vm6, %v2182_v9, %v2183_v62  ;;  %v2496_v32 = vshll.u32 %v2246_v52, 16  ;;  %v2506_v45 = vshrl.u32 %v2247_v23, 16 }
 0x1f6   : > { %v4801_v61 = vcombine.low %v2181_v21, %v2184_v56  ;;  %v1254_v60 = vrot.slane %v1252_v31, 5  ;;  %v1260_v5 = vrot.slane %v1258_v27, 5  ;;  %v1264_v34 = vrot.slane %v1262_v47, 4  ;;  %v2269_v21 = vld [vmem:[#allocation2 + $0x8c] sm:$0x1] }
 0x1f7   : > { %v1762_v6 = vsel %vm5440_vm7, %v1757_v43, %v1761_v1  ;;  %v2495_v41 = vrot.slane %v2493_v50, 4  ;;  %v2498_v20 = vrot.slane %v2496_v32, 5  ;;  %v2041_v62 = vshrl.u32 %v6304_v12, 16  ;;  %v6646_v47 = vld [vmem:[#allocation2 + $0x78] sm:$0xf]  ;;  %v6648_v32 = vpop.permute.xlu1 %3054 }
 0x1f8   : > { %v6630_v14 = vcombine.low %v1752_v24, %v1762_v6  ;;  %v7770_v29 = vcombine.low %v6529_v55, %v6527_v37  ;;  %v1255_v1 = vor.u32 %v1254_v60, %v1251_v4  ;;  %v3644_v31 = vsel %vm3508_vm14, %v6484_v16, %v6258_v53  ;;  %7772 = vst [vmem:[#allocation9_spill] sm:$0xff] %v6646_v47  ;;  %v1025_v50 = vld [vmem:[#allocation2 + $0x78] sm:$0xf]  ;;  %v6652_v6 = vld [vmem:[#allocation2 + $0x7c] sm:$0xf] }
 0x1f9   : > { %v7771_v27 = vshll.u32 %v6482_v51, 16  ;;  %3270 = vrot.lane.b32.xlu0 %v4801_v61, %s5227_s16  ;;  %v1265_v43 = vor.u32 %v1264_v34, %v1260_v5  ;;  %v2499_v56 = vor.u32 %v2498_v20, %v2495_v41  ;;  %v4769_v55 = vcombine.low %v6646_v47, %v6604_v17  ;;  %v6658_v20 = vld [vmem:[#allocation2 + $0x80] sm:$0x1]  ;;  %v1451_v47 = vld [vmem:[#allocation2 + $0x84] sm:$0xe] }
 0x1fa   : > { %v3514_v9 = vsel %vm3508_vm14, %v7770_v29, %v6252_v0  ;;  %v1256_v37 = vrot.slane %v1255_v1, 4  ;;  %v4817_v0 = vcombine.low %v2246_v52, %v2247_v23  ;;  %v2502_v4 = vshll.u32 %v2247_v23, 16  ;;  %v6654_v61 = vpop.permute.xlu0 %2974 }
 0x1fb   : > { %v1270_v24 = vrot.slane %v7771_v27, 5  ;;  %v1266_v53 = vrot.slane %v1265_v43, 4  ;;  %v2500_v51 = vrot.slane %v2499_v56, 4  ;;  %v2508_v16 = vrot.slane %v2506_v45, 4 }
 0x1fc   : > { %v2512_v60 = vshll.u32 %v2269_v21, 16  ;;  %v1261_v34 = vsel %vm5440_vm7, %v1256_v37, %v1260_v5  ;;  %v2504_v41 = vrot.slane %v2502_v4, 5  ;;  %v1297_v29 = vshrl.u32 %v1025_v50, 16 }
 0x1fd   : > { %v1300_v52 = vshll.u32 %v1025_v50, 16  ;;  %v1271_v17 = vsel %vm5440_vm7, %v1266_v53, %v1270_v24  ;;  %3366 = vrot.lane.b32.xlu0 %v4817_v0, %s5226_s15  ;;  %v1306_v1 = vshll.u32 %v6652_v6, 16  ;;  %v1310_v45 = vshrl.u32 %v6652_v6, 16 }
 0x1fe   : > { %v2514_v23 = vrot.slane %v2512_v60, 5  ;;  %v4736_v21 = vcombine.low %v1261_v34, %v1271_v17  ;;  %v2505_v27 = vsel %vm5440_vm7, %v2500_v51, %v2504_v41  ;;  %v2509_v5 = vor.u32 %v2508_v16, %v2504_v41  ;;  %v6668_v13 = vpop.permute.xlu1 %2956  ;;  %v6670_v24 = vpop.permute.xlu0 %3262  ;;  %v7773_v16 = vld [vmem:[#allocation13_spill] sm:$0xff] }
 0x1ff   : > { %v1299_v43 = vrot.slane %v1297_v29, 4  ;;  %v1302_v56 = vrot.slane %v1300_v52, 5  ;;  %v1308_v37 = vrot.slane %v1306_v1, 5  ;;  %v1312_v4 = vrot.slane %v1310_v45, 4  ;;  %v1661_v1 = vld [vmem:[#allocation2 + $0x8c] sm:$0x1] }
 0x200   : > { %v1316_v50 = vshll.u32 %v6658_v20, 16  ;;  %2964 = vrot.lane.b32.xlu1 %v4736_v21, %s5227_s16  ;;  %v2510_v0 = vrot.slane %v2509_v5, 4  ;;  %v3690_v53 = vsel %vm3557_vm15, %v3644_v31, %v6239_v22  ;;  %v3561_v51 = vsel %vm3557_vm15, %v3514_v9, %v6213_v42  ;;  %v2061_v45 = vld [vmem:[#allocation2 + $0x84] sm:$0xe]  ;;  %v7775_v31 = vld [vmem:[#allocation25_spill] sm:$0xff] }
 0x201   : > { %v7774_v60 = vshll.u32 %v7773_v16, 16  ;;  %v1303_v41 = vor.u32 %v1302_v56, %v1299_v43  ;;  %v1313_v29 = vor.u32 %v1312_v4, %v1308_v37  ;;  %v3723_v17 = vsel %vm3590_vm0, %v3690_v53, %v6433_v10  ;;  %v7776_v9 = vld [vmem:[#allocation24_spill] sm:$0xff]  ;;  %v1450_v43 = vld [vmem:[#allocation2 + $0x78] sm:$0xe]  ;;  %v7777_v10 = vld [vmem:[#allocation18_spill] sm:$0xff] }
 0x202   : > { %v1318_v52 = vrot.slane %v1316_v50, 5  ;;  %v2515_v21 = vsel %vm5440_vm7, %v2510_v0, %v2514_v23  ;;  %4006 = vmatprep.mubr.bf16.mxu0 %v3723_v17  ;;  %v3595_v22 = vsel %vm3590_vm0, %v3561_v51, %v6182_v49  ;;  %v7778_v53 = vshll.u32 %v7777_v10, 16  ;;  %v6693_v23 = vpop.permute.xlu1 %3038 }
 0x203   : > { %v1967_v34 = vrot.slane %v7774_v60, 5  ;;  %v4833_v56 = vcombine.low %v2505_v27, %v2515_v21  ;;  %v1304_v4 = vrot.slane %v1303_v41, 4  ;;  %v1314_v50 = vrot.slane %v1313_v29, 4  ;;  %4007 = vmatmul.mubr.bf16.gmra.mxu0 %v3595_v22  ;;  %v6691_v60 = vld [vmem:[#allocation2 + $0x88] sm:$0xf] }
 0x204   : > { %v1977_v16 = vrot.slane %v7778_v53, 5  ;;  %7779 = vst [vmem:[#allocation12_spill] sm:$0xff] %v6691_v60  ;;  %3142 = vrot.lane.b32.xlu1 %v4769_v55, %s5228_s17  ;;  %v4690_v0 = vrot.slane %v2061_v45, 9  ;;  %v2187_v51 = vrot.slane %v6691_v60, 5  ;;  %v2190_v17 = vrot.slane %v1661_v1, 5  ;;  %v7793_v53 = vld [vmem:[#allocation27_spill] sm:$0xff] }
 0x205   : > { %v1968_v42 = vsel %vm5440_vm7, %v7775_v31, %v1967_v34  ;;  %v1972_v5 = vor.u32 %v7776_v9, %v1967_v34  ;;  %v6697_v34 = vpop.permute.xlu0 %3376  ;;  %3446 = vrot.lane.b32.xlu0 %v4833_v56, %s5228_s17  ;;  %v1309_v27 = vsel %vm5440_vm7, %v1304_v4, %v1308_v37  ;;  %v1319_v41 = vsel %vm5440_vm7, %v1314_v50, %v1318_v52  ;;  %v2248_v22 = vld [vmem:[#allocation2 + $0x90] sm:$0xf]  ;;  %v6723_v50 = vld [vmem:[#allocation2 + $0x94] sm:$0xf] }
 0x206   : > { %7780 = vst [vmem:[#allocation22_spill] sm:$0xff] %v6697_v34  ;;  %v4674_v29 = vrot.slane %v1450_v43, 9  ;;  %v1579_v21 = vrot.slane %v6652_v6, 5  ;;  %v4738_v55 = vcombine.low %v1309_v27, %v1319_v41  ;;  %v2188_v1 = vsel %vm5434_vm6, %v4690_v0, %v2187_v51  ;;  %v6714_v43 = vpop.permute.xlu1 %3152  ;;  %v6716_v6 = vld [vmem:[#allocation2 + $0x5c] sm:$0x1]  ;;  %7782 = vst [vmem:[#allocation13_spill] sm:$0xff] %v6723_v50 }
 0x207   : > { %v1973_v49 = vrot.slane %v1972_v5, 4  ;;  %v2189_v31 = vrot.slane %v2187_v51, 4  ;;  %v1582_v52 = vrot.slane %v6658_v20, 5  ;;  %7781 = vst [vmem:[#allocation21_spill] sm:$0xff] %v6714_v43  ;;  %v2517_v10 = vshrl.u32 %v2248_v22, 16 }
 0x208   : > { %v1580_v37 = vsel %vm5434_vm6, %v4674_v29, %v1579_v21  ;;  %v1581_v5 = vrot.slane %v1579_v21, 4  ;;  %2968 = vrot.lane.b32.xlu1 %v4738_v55, %s5227_s16  ;;  %v6730_v0 = vrot.slane %v2041_v62, 4  ;;  %v5160_v51 = vld [vmem:[#allocation2 + $0x1c] sm:$0xf]  ;;  %v5161_v27 = vld [vmem:[#allocation2 + $0x18] sm:$0xf]  ;;  %v7784_v55 = vor.u32 %v6521_v44, %v6519_v54 }
 0x209   : > { %v1978_v45 = vsel %vm5440_vm7, %v1973_v49, %v1977_v16  ;;  %v2520_v49 = vshll.u32 %v2248_v22, 16  ;;  %v4714_v41 = vcombine.low %v5161_v27, %v5160_v51  ;;  %v2519_v21 = vrot.slane %v2517_v10, 4  ;;  %v6751_v44 = vld [vmem:[#allocation2 + $0x84] sm:$0xf] }
 0x20a   : > { %v6709_v9 = vcombine.low %v1968_v42, %v1978_v45  ;;  %v2191_v42 = vsel %vm5434_vm6, %v2189_v31, %v2190_v17  ;;  %v1583_v20 = vsel %vm5434_vm6, %v1581_v5, %v1582_v52  ;;  %v6732_v17 = vpop.permute.xlu0 %3360  ;;  %v6737_v45 = vrot.slane %v7784_v55, 4  ;;  %v6742_v5 = vld [vmem:[#allocation2 + $0x98] sm:$0x1]  ;;  %7786 = vst [vmem:[#allocation18_spill] sm:$0xff] %v6751_v44  ;;  %v6762_v55 = vld [vmem:[#allocation2 + $0x88] sm:$0xf] }
 0x20b   : > { %v4802_v16 = vcombine.low %v2188_v1, %v2191_v42  ;;  %v4754_v29 = vcombine.low %v1580_v37, %v1583_v20  ;;  %7783 = vst [vmem:[#allocation25_spill] sm:$0xff] %v6732_v17  ;;  %v2522_v31 = vrot.slane %v2520_v49, 5  ;;  %v2530_v62 = vshrl.u32 %v6723_v50, 16  ;;  %7785 = vst [vmem:[#allocation24_spill] sm:$0xff] %v6742_v5  ;;  %v7787_v42 = vld [vmem:[#allocation16_spill] sm:$0xff]  ;;  %v6757_v49 = vpop.permute.xlu1 %3136 }
 0x20c   : > { %v6747_v37 = vsel %vm3508_vm14, %v4714_v41, %v6343_v25  ;;  %v4818_v54 = vcombine.low %v2248_v22, %v6723_v50  ;;  %v7788_v10 = vshll.u32 %v7787_v42, 16  ;;  %v6755_v20 = vld [vmem:[#allocation2 + $0x84] sm:$0xf]  ;;  %7790 = vst [vmem:[#allocation46_spill] sm:$0xff] %v6757_v49  ;;  %v4770_v51 = vcombine.low %v6751_v44, %v6691_v60  ;;  %7791 = vst [vmem:[#allocation47_spill] sm:$0xff] %v6762_v55 }
 0x20d   : > { %3272 = vrot.lane.b32.xlu0 %v4802_v16, %s5227_s16  ;;  %3048 = vrot.lane.b32.xlu1 %v4754_v29, %s5226_s15  ;;  %7789 = vst [vmem:[#allocation16_spill] sm:$0xff] %v6755_v20  ;;  %v2523_v27 = vor.u32 %v2522_v31, %v2519_v21  ;;  %v2526_v25 = vshll.u32 %v6723_v50, 16  ;;  %v2532_v41 = vrot.slane %v2530_v62, 4  ;;  %v7792_v29 = vld [vmem:[#allocation28_spill] sm:$0xff]  ;;  %v2536_v52 = vshll.u32 %v6742_v5, 16 }
 0x20e   : > { %v1775_v16 = vrot.slane %v7788_v10, 5  ;;  %v7794_v10 = vld [vmem:[#allocation19_spill] sm:$0xff]  ;;  %v6772_v31 = vld [vmem:[#allocation2 + $0x8c] sm:$0x1]  ;;  %v1321_v62 = vshrl.u32 %v6755_v20, 16  ;;  %v1324_v60 = vshll.u32 %v6755_v20, 16 }
 0x20f   : > { %v7795_v4 = vshll.u32 %v7794_v10, 16  ;;  %v2524_v1 = vrot.slane %v2523_v27, 4  ;;  %v2528_v21 = vrot.slane %v2526_v25, 5  ;;  %v2538_v44 = vrot.slane %v2536_v52, 5  ;;  %v6779_v10 = vpop.permute.xlu0 %3452  ;;  %v6783_v50 = vld [vmem:[#allocation2 + $0x98] sm:$0x1] }
 0x210   : > { %v1776_v22 = vsel %vm5440_vm7, %v7792_v29, %v1775_v16  ;;  %v1780_v42 = vor.u32 %v7793_v53, %v1775_v16  ;;  %v1330_v53 = vshll.u32 %v6762_v55, 16  ;;  %v2062_v16 = vld [vmem:[#allocation2 + $0x90] sm:$0xe]  ;;  %v1323_v25 = vrot.slane %v1321_v62, 4  ;;  %7796 = vst [vmem:[#allocation28_spill] sm:$0xff] %v6783_v50 }
 0x211   : > { %v1785_v56 = vrot.slane %v7795_v4, 5  ;;  %3368 = vrot.lane.b32.xlu0 %v4818_v54, %s5226_s15  ;;  %3144 = vrot.lane.b32.xlu1 %v4770_v51, %s5228_s17  ;;  %v1334_v4 = vshrl.u32 %v6762_v55, 16  ;;  %v2529_v54 = vsel %vm5440_vm7, %v2524_v1, %v2528_v21  ;;  %v2533_v27 = vor.u32 %v2532_v41, %v2528_v21  ;;  %v6788_v20 = vpop.permute.xlu1 %3434  ;;  %v6792_v1 = vld [vmem:[#allocation2 + $0x94] sm:$0xf] }
 0x212   : > { %v1781_v29 = vrot.slane %v1780_v42, 4  ;;  %v1326_v5 = vrot.slane %v1324_v60, 5  ;;  %v1332_v42 = vrot.slane %v1330_v53, 5  ;;  %v1340_v49 = vshll.u32 %v6772_v31, 16 }
 0x213   : > { %v1336_v52 = vrot.slane %v1334_v4, 4  ;;  %v2534_v34 = vrot.slane %v2533_v27, 4  ;;  %v4691_v41 = vrot.slane %v2062_v16, 9  ;;  %v2194_v62 = vrot.slane %v6792_v1, 5 }
 0x214   : > { %v1786_v51 = vsel %vm5440_vm7, %v1781_v29, %v1785_v56  ;;  %v1327_v17 = vor.u32 %v1326_v5, %v1323_v25  ;;  %v1342_v21 = vrot.slane %v1340_v49, 5  ;;  %v2197_v56 = vrot.slane %v6783_v50, 5  ;;  %v6796_v29 = vld [vmem:[#allocation2 + $0x9c] sm:$0xf] }
 0x215   : > { %v6790_v43 = vcombine.low %v1776_v22, %v1786_v51  ;;  %v1337_v60 = vor.u32 %v1336_v52, %v1332_v42  ;;  %v3647_v53 = vsel %vm3508_vm14, %v6571_v48, %v6348_v63  ;;  %v2539_v22 = vsel %vm5440_vm7, %v2534_v34, %v2538_v44  ;;  %v6805_v51 = vpop.permute.xlu0 %3280  ;;  %v6811_v48 = vld [vmem:[#allocation2 + $0xa0] sm:$0xf] }
 0x216   : > { %v1328_v4 = vrot.slane %v1327_v17, 4  ;;  %v4675_v5 = vrot.slane %v1451_v47, 9  ;;  %v4834_v27 = vcombine.low %v2529_v54, %v2539_v22  ;;  %v2195_v49 = vsel %vm5434_vm6, %v4691_v41, %v2194_v62  ;;  %v5163_v41 = vld [vmem:[#allocation2 + $0x24] sm:$0xf] }
 0x217   : > { %v1338_v25 = vrot.slane %v1337_v60, 4  ;;  %v2196_v16 = vrot.slane %v2194_v62, 4  ;;  %v1586_v50 = vrot.slane %v6762_v55, 5  ;;  %v1589_v63 = vrot.slane %v6772_v31, 5  ;;  %v6825_v31 = vpop.permute.xlu1 %3056 }
 0x218   : > { %v1333_v52 = vsel %vm5440_vm7, %v1328_v4, %v1332_v42  ;;  %v2541_v34 = vshrl.u32 %v6796_v29, 16  ;;  %v6817_v47 = vsel %vm3508_vm14, %v6630_v14, %v6393_v8  ;;  %3448 = vrot.lane.b32.xlu0 %v4834_v27, %s5228_s17  ;;  %v2544_v54 = vshll.u32 %v6796_v29, 16  ;;  %v5162_v42 = vld [vmem:[#allocation2 + $0x28] sm:$0xf] }
 0x219   : > { %v1343_v17 = vsel %vm5440_vm7, %v1338_v25, %v1342_v21  ;;  %v2198_v44 = vsel %vm5434_vm6, %v2196_v16, %v2197_v56  ;;  %v4715_v60 = vcombine.low %v5163_v41, %v5162_v42  ;;  %v1587_v8 = vsel %vm5434_vm6, %v4675_v5, %v1586_v50  ;;  %v5164_v25 = vld [vmem:[#allocation2 + $0x94] sm:$0xf]  ;;  %v5165_v16 = vld [vmem:[#allocation2 + $0x90] sm:$0xf]  ;;  %v7801_v41 = vld [vmem:[#allocation29_spill] sm:$0xff] }
 0x21a   : > { %v4739_v62 = vcombine.low %v1333_v52, %v1343_v17  ;;  %v1588_v14 = vrot.slane %v1586_v50, 4  ;;  %v4803_v22 = vcombine.low %v2195_v49, %v2198_v44  ;;  %v2543_v4 = vrot.slane %v2541_v34, 4  ;;  %v7797_v17 = vld [vmem:[#allocation20_spill] sm:$0xff]  ;;  %v7800_v42 = vld [vmem:[#allocation30_spill] sm:$0xff] }
 0x21b   : > { %v2546_v27 = vrot.slane %v2544_v54, 5  ;;  %v2554_v21 = vshrl.u32 %v6811_v48, 16  ;;  %v3677_v56 = vsel %vm3508_vm14, %v6709_v9, %v6474_v59  ;;  %v4724_v55 = vcombine.low %v5165_v16, %v5164_v25  ;;  %v6838_v49 = vld [vmem:[#allocation2 + $0xa4] sm:$0x1]  ;;  %v6847_v54 = vpop.permute.xlu0 %2976 }
 0x21c   : > { %2970 = vrot.lane.b32.xlu1 %v4739_v62, %s5227_s16  ;;  %v1590_v52 = vsel %vm5434_vm6, %v1588_v14, %v1589_v63  ;;  %v7798_v5 = vshll.u32 %v7797_v17, 16  ;;  %7799 = vst [vmem:[#allocation27_spill] sm:$0xff] %v6838_v49  ;;  %v6842_v34 = vsel %vm3508_vm14, %v4715_v60, %v6500_v28  ;;  %3274 = vrot.lane.b32.xlu0 %v4803_v22, %s5227_s16  ;;  %v7802_v14 = vshll.u32 %v6040_v26, 16  ;;  %v7803_v16 = vld [vmem:[#allocation36_spill] sm:$0xff] }
 0x21d   : > { %v4755_v59 = vcombine.low %v1587_v8, %v1590_v52  ;;  %v4819_v9 = vcombine.low %v6796_v29, %v6811_v48  ;;  %v2547_v44 = vor.u32 %v2546_v27, %v2543_v4  ;;  %v2550_v28 = vshll.u32 %v6811_v48, 16  ;;  %v6859_v4 = vpop.permute.xlu1 %2958  ;;  %v6862_v27 = vld [vmem:[#allocation2 + $0x90] sm:$0xf] }
 0x21e   : > { %v1991_v50 = vrot.slane %v7798_v5, 5  ;;  %v2001_v25 = vrot.slane %v7802_v14, 5  ;;  %v2556_v22 = vrot.slane %v2554_v21, 4  ;;  %v2560_v8 = vshll.u32 %v6838_v49, 16  ;;  %v7804_v5 = vld [vmem:[#allocation34_spill] sm:$0xff]  ;;  %v7807_v14 = vld [vmem:[#allocation23_spill] sm:$0xff] }
 0x21f   : > { %v2548_v60 = vrot.slane %v2547_v44, 4  ;;  %v3692_v29 = vsel %vm3557_vm15, %v3647_v53, %v7803_v16  ;;  %v2552_v17 = vrot.slane %v2550_v28, 5  ;;  %v3563_v21 = vsel %vm3557_vm15, %v6747_v37, %v7804_v5 }
 0x220   : > { %v1992_v63 = vsel %vm5440_vm7, %v7800_v42, %v1991_v50  ;;  %v1996_v62 = vor.u32 %v7801_v41, %v1991_v50  ;;  %3050 = vrot.lane.b32.xlu1 %v4755_v59, %s5226_s15  ;;  %v3726_v26 = vsel %vm3590_vm0, %v3692_v29, %v6620_v15  ;;  %v7805_v50 = vshrl.u32 %v6468_v57, 16  ;;  %3370 = vrot.lane.b32.xlu0 %v4819_v9, %s5226_s15  ;;  %v7806_v42 = vld [vmem:[#allocation33_spill] sm:$0xff]  ;;  %v6884_v29 = vpop.permute.xlu0 %3264  ;;  %v5166_v9 = vld [vmem:[#allocation2 + $0xa0] sm:$0xf] }
 0x221   : > { %v3547_v53 = vsel %vm3508_vm14, %v4724_v55, %v6508_v35  ;;  %v4771_v59 = vcombine.low %v6862_v27, %v6792_v1  ;;  %4014 = vmatprep.mubr.bf16.mxu0 %v3726_v26  ;;  %v3598_v15 = vsel %vm3590_vm0, %v3563_v21, %v7806_v42  ;;  %v2557_v37 = vor.u32 %v2556_v22, %v2552_v17  ;;  %v5167_v26 = vld [vmem:[#allocation2 + $0x9c] sm:$0xf]  ;;  %v6890_v49 = vpop.permute.xlu1 %3040 }
 0x222   : > { %v1997_v52 = vrot.slane %v1996_v62, 4  ;;  %v6871_v44 = vrot.slane %v7805_v50, 4  ;;  %v2562_v62 = vrot.slane %v2560_v8, 5  ;;  %4015 = vmatmul.mubr.bf16.gmra.mxu0 %v3598_v15  ;;  %v7808_v28 = vshll.u32 %v7807_v14, 16  ;;  %v7809_v50 = vld [vmem:[#allocation26_spill] sm:$0xff]  ;;  %v7811_v22 = vld [vmem:[#allocation35_spill] sm:$0xff] }
 0x223   : > { %v2553_v55 = vsel %vm5440_vm7, %v2548_v60, %v2552_v17  ;;  %v4725_v5 = vcombine.low %v5167_v26, %v5166_v9  ;;  %v7810_v21 = vshll.u32 %v7809_v50, 16  ;;  %v3712_v60 = vsel %vm3557_vm15, %v3677_v56, %v6417_v19  ;;  %v7815_v9 = vld [vmem:[#allocation38_spill] sm:$0xff] }
 0x224   : > { %v2002_v41 = vsel %vm5440_vm7, %v1997_v52, %v2001_v25  ;;  %v1799_v16 = vrot.slane %v7808_v28, 5  ;;  %3146 = vrot.lane.b32.xlu1 %v4771_v59, %s5228_s17  ;;  %v2558_v25 = vrot.slane %v2557_v37, 4  ;;  %v7812_v52 = vld [vmem:[#allocation31_spill] sm:$0xff]  ;;  %v3756_v15 = vsel %vm3590_vm0, %v3712_v60, %v6779_v10  ;;  %v5152_v10 = vld [vmem:[%s7634_s3 + $0x80] sm:$0xff]  }
 0x225   : > { %v4789_v35 = vcombine.low %v1992_v63, %v2002_v41  ;;  %v1809_v42 = vrot.slane %v7810_v21, 5  ;;  %v3583_v41 = vsel %vm3557_vm15, %v3547_v53, %v6470_v46  ;;  %v7813_v59 = vshll.u32 %v6156_v33, 16  ;;  %4094 = vmatprep.mubr.bf16.mxu1 %v3756_v15  ;;  %v6930_v50 = vpop.permute.xlu1 %3154 }
 0x226   : > { %v1800_v8 = vsel %vm5440_vm7, %v7811_v22, %v1799_v16  ;;  %v1804_v63 = vor.u32 %v7812_v52, %v1799_v16  ;;  %v2563_v14 = vsel %vm5440_vm7, %v2558_v25, %v2562_v62  ;;  %v3628_v19 = vsel %vm3590_vm0, %v3583_v41, %v6388_v2  ;;  %v5168_v2 = vld [vmem:[#allocation2 + $0x34] sm:$0xf]  ;;  %v5169_v62 = vld [vmem:[#allocation2 + $0x30] sm:$0xf]  ;;  %v7818_v22 = vld [vmem:[#allocation15_spill] sm:$0xff] }
 0x227   : > { %v3680_v17 = vsel %vm3508_vm14, %v4789_v35, %v6626_v30  ;;  %v2015_v37 = vrot.slane %v7813_v59, 5  ;;  %v7814_v56 = vshll.u32 %v6202_v11, 16  ;;  %v4835_v16 = vcombine.low %v2553_v55, %v2563_v14  ;;  %4095 = vmatmul.mubr.bf16.vlgmr.msra.gmra.mxu1 %v3628_v19 }
 0x228   : > { %v1805_v28 = vrot.slane %v1804_v63, 4  ;;  %v3694_v53 = vsel %vm3557_vm15, %v6817_v47, %v6369_v39  ;;  %v4716_v11 = vcombine.low %v5169_v62, %v5168_v2  ;;  %v3565_v26 = vsel %vm3557_vm15, %v6842_v34, %v7815_v9  ;;  %v5170_v39 = vld [vmem:[%s7634_s3 + $0x88] sm:$0xff]   ;;  %v7819_v63 = vld [vmem:[#allocation32_spill] sm:$0xff] }
 0x229   : > { %v2025_v30 = vrot.slane %v7814_v56, 5  ;;  %v2016_v33 = vsel %vm5440_vm7, %v6510_v58, %v2015_v37  ;;  %v2020_v46 = vor.u32 %v6460_v18, %v2015_v37  ;;  %v3729_v55 = vsel %vm3590_vm0, %v3694_v53, %v6788_v20  ;;  %v3455_v58 = vpop.permute.xlu0 %3454  ;;  %5030 = vmatpush3.bf16.msra.mxu1 %v5170_v39  ;;  %3450 = vrot.lane.b32.xlu0 %v4835_v16, %s5228_s17  ;;  %v7816_v20 = vld [vmem:[#allocation37_spill] sm:$0xff]  ;;  %v7822_v37 = vld [vmem:[#allocation42_spill] sm:$0xff]  ;;  %v7824_v56 = vld [vmem:[#allocation44_spill] sm:$0xff] }
 0x22a   : > { %v1810_v35 = vsel %vm5440_vm7, %v1805_v28, %v1809_v42  ;;  %v3550_v18 = vsel %vm3508_vm14, %v4725_v5, %v6654_v61  ;;  %4022 = vmatprep.mubr.bf16.mxu0 %v3729_v55  ;;  %v3601_v42 = vsel %vm3590_vm0, %v3565_v26, %v7816_v20  ;;  %v7817_v34 = vshll.u32 %v6468_v57, 16  ;;  %5031 = vmatprep.subr.bf16.mxu1 %v5152_v10  ;;  %v7823_v28 = vld [vmem:[#allocation7_spill] sm:$0xff] }
 0x22b   : > { %v4781_v47 = vcombine.low %v1800_v8, %v1810_v35  ;;  %v2021_v21 = vrot.slane %v2020_v46, 4  ;;  %v3653_v52 = vsel %vm3508_vm14, %v6790_v43, %v7818_v22  ;;  %4023 = vmatmul.mubr.bf16.gmra.mxu0 %v3601_v42  ;;  %v7820_v60 = vshll.u32 %v7819_v63, 16  ;;  %v7827_v35 = vld [vmem:[#allocation6_spill] sm:$0xff]  ;;  %v5172_v42 = vld [vmem:[#allocation2 + $0x20] sm:$0x1] }
 0x22c   : > { %v1841_v25 = vrot.slane %v7817_v34, 5  ;;  %v3714_v61 = vsel %vm3557_vm15, %v3680_v17, %v6577_v3  ;;  %v3523_v5 = vsel %vm3508_vm14, %v4716_v11, %v6668_v13  ;;  %v7821_v57 = vshll.u32 %v6716_v6, 16  ;;  %v5171_v17 = vld [vmem:[#allocation2 + $0x1c] sm:$0xf]  ;;  %v3437_v62 = vpop.permute.xlu1 %3436  ;;  %v7826_v11 = vld [vmem:[#allocation40_spill] sm:$0xff] }
 0x22d   : > { %v1823_v15 = vrot.slane %v7820_v60, 5  ;;  %v2026_v8 = vsel %vm5440_vm7, %v2021_v21, %v2025_v30  ;;  %v3759_v59 = vsel %vm3590_vm0, %v3714_v61, %v3455_v58  ;;  %v3585_v13 = vsel %vm3557_vm15, %v3550_v18, %v6648_v32  ;;  %v6968_v46 = vpop.permute.xlu0 %3282  ;;  %5032 = vmatpush3.bf16.msra.mxu1 %v5152_v10  ;;  %v7831_v18 = vld [vmem:[#allocation11_spill] sm:$0xff] }
 0x22e   : > { %v1833_v41 = vrot.slane %v7821_v57, 5  ;;  %v6956_v43 = vcombine.low %v2016_v33, %v2026_v8  ;;  %4102 = vmatprep.mubr.bf16.mxu1 %v3759_v59  ;;  %v2726_v19 = vrot.slane %v5171_v17, 5  ;;  %v1860_v30 = vshrl.u32 %v7824_v56, 16  ;;  %v5175_v8 = vld [vmem:[#allocation2 + $0x68] sm:$0x1] }
 0x22f   : > { %v1824_v14 = vsel %vm5440_vm7, %v7822_v37, %v1823_v15  ;;  %v1828_v3 = vor.u32 %v7823_v28, %v1823_v15  ;;  %v1863_v6 = vshll.u32 %v7824_v56, 16  ;;  %v7825_v16 = vshll.u32 %v6304_v12, 16  ;;  %v7833_v15 = vld [vmem:[#allocation39_spill] sm:$0xff]  ;;  %v5176_v28 = vld [vmem:[#allocation2 + $0x64] sm:$0xf]  ;;  %v7834_v17 = vld [vmem:[#allocation41_spill] sm:$0xff] }
 0x230   : > { %v3631_v2 = vsel %vm3590_vm0, %v3585_v13, %v6573_v38  ;;  %v3696_v32 = vsel %vm3557_vm15, %v3653_v52, %v7826_v11  ;;  %v3567_v55 = vsel %vm3557_vm15, %v3523_v5, %v7827_v35  ;;  %v7828_v10 = vshll.u32 %v6284_v7, 16  ;;  %v7829_v38 = vld [vmem:[#allocation5_spill] sm:$0xff]  ;;  %v5173_v7 = vld [vmem:[#allocation2 + $0x40] sm:$0xf]  ;;  %v2660_v5 = vld [vmem:[#allocation2 + $0x18] sm:$0xe] }
 0x231   : > { %v2039_v33 = vrot.slane %v7825_v16, 5  ;;  %v1829_v53 = vrot.slane %v1828_v3, 4  ;;  %4103 = vmatmul.mubr.bf16.gmra.mxu1 %v3631_v2  ;;  %v3732_v58 = vsel %vm3590_vm0, %v3696_v32, %v3437_v62  ;;  %v7830_v39 = vrot.slane %v7829_v38, 5  ;;  %v7002_v3 = vpop.permute.xlu0 %2978  ;;  %v7835_v62 = vld [vmem:[#allocation10_spill] sm:$0xff]  ;;  %v5178_v32 = vld [vmem:[#allocation2 + $0xa8] sm:$0xf] }
 0x232   : > { %v2049_v26 = vrot.slane %v7828_v10, 5  ;;  %v7832_v21 = vrot.slane %v7831_v18, 9  ;;  %v2729_v34 = vrot.slane %v5172_v42, 5  ;;  %v1842_v22 = vor.u32 %v1841_v25, %v6871_v44  ;;  %4030 = vmatprep.mubr.bf16.mxu0 %v3732_v58  ;;  %v7836_v35 = vld [vmem:[#allocation45_spill] sm:$0xff]  ;;  %v5179_v42 = vld [vmem:[#allocation2 + $0x70] sm:$0xf] }
 0x233   : > { %v2040_v12 = vsel %vm5440_vm7, %v6737_v45, %v2039_v33  ;;  %v2044_v9 = vor.u32 %v6730_v0, %v2039_v33  ;;  %v1834_v0 = vsel %vm5440_vm7, %v1829_v53, %v1833_v41  ;;  %v5174_v45 = vld [vmem:[#allocation2 + $0x3c] sm:$0xf]  ;;  %v3604_v61 = vsel %vm3590_vm0, %v3567_v55, %v7833_v15 }
 0x234   : > { %v6989_v20 = vsel %vm5434_vm6, %v7832_v21, %v7830_v39  ;;  %v4717_v52 = vcombine.low %v5174_v45, %v5173_v7  ;;  %v4782_v63 = vcombine.low %v1824_v14, %v1834_v0  ;;  %v1855_v57 = vshll.u32 %v5175_v8, 16  ;;  %4031 = vmatmul.mubr.bf16.gmra.mxu0 %v3604_v61  ;;  %v7837_v7 = vld [vmem:[#allocation17_spill] sm:$0xff] }
 0x235   : > { %v2045_v60 = vrot.slane %v2044_v9, 4  ;;  %v1862_v59 = vrot.slane %v1860_v30, 4  ;;  %v1865_v37 = vrot.slane %v1863_v6, 5  ;;  %v1845_v44 = vshll.u32 %v5176_v28, 16  ;;  %v7839_v8 = vld [vmem:[#allocation25_spill] sm:$0xff] }
 0x236   : > { %v3656_v25 = vsel %vm3508_vm14, %v4781_v47, %v6670_v24  ;;  %v3526_v41 = vsel %vm3508_vm14, %v4717_v52, %v6859_v4  ;;  %v1849_v13 = vshrl.u32 %v5176_v28, 16  ;;  %v1879_v56 = vshll.u32 %v7834_v17, 16  ;;  %v5177_v47 = vld [vmem:[#allocation2 + $0xac] sm:$0xf]  ;;  %v3439_v39 = vpop.permute.xlu0 %3438  ;;  %v7838_v52 = vld [vmem:[#allocation8_spill] sm:$0xff]  ;;  %v3059_v28 = vpop.permute.xlu1 %3058 }
 0x237   : > { %v2050_v14 = vsel %vm5440_vm7, %v2045_v60, %v2049_v26  ;;  %v1847_v30 = vrot.slane %v1845_v44, 5  ;;  %v4696_v6 = vrot.slane %v2660_v5, 9  ;;  %v1843_v33 = vrot.slane %v1842_v22, 4 }
 0x238   : > { %v4791_v16 = vcombine.low %v2040_v12, %v2050_v14  ;;  %v1851_v53 = vrot.slane %v1849_v13, 4  ;;  %v2728_v2 = vrot.slane %v2726_v19, 4  ;;  %v1869_v11 = vshll.u32 %v7835_v62, 16 }
 0x239   : > { %v1866_v24 = vor.u32 %v1865_v37, %v1862_v59  ;;  %v4726_v4 = vcombine.low %v5178_v32, %v5177_v47  ;;  %v3698_v55 = vsel %vm3557_vm15, %v3656_v25, %v7836_v35  ;;  %v3569_v9 = vsel %vm3557_vm15, %v3526_v41, %v6693_v23  ;;  %v7841_v25 = vld [vmem:[#allocation3_spill] sm:$0xff]  ;;  %v2667_v32 = vld [vmem:[#allocation2 + $0x6c] sm:$0xe] }
 0x23a   : > { %v1852_v10 = vor.u32 %v1851_v53, %v1847_v30  ;;  %v1857_v26 = vrot.slane %v1855_v57, 5  ;;  %v7012_v12 = vsel %vm5434_vm6, %v4696_v6, %v2726_v19  ;;  %v7016_v58 = vsel %vm5434_vm6, %v2728_v2, %v2729_v34  ;;  %v5180_v53 = vld [vmem:[#allocation2 + $0xb4] sm:$0xf]  ;;  %v5181_v2 = vld [vmem:[#allocation2 + $0xb8] sm:$0xf] }
 0x23b   : > { %v3659_v38 = vsel %vm3508_vm14, %v4782_v63, %v6884_v29  ;;  %v4840_v18 = vcombine.low %v7012_v12, %v7016_v58  ;;  %v1871_v21 = vrot.slane %v1869_v11, 5  ;;  %v1873_v23 = vshrl.u32 %v5179_v42, 16  ;;  %v5182_v11 = vld [vmem:[#allocation2 + $0x70] sm:$0xf]  ;;  %v7061_v47 = vpop.permute.xlu1 %2960  ;;  %v7111_v58 = vld [vmem:[#allocation2 + $0xb8] sm:$0xf] }
 0x23c   : > { %v3735_v22 = vsel %vm3590_vm0, %v3698_v55, %v3439_v39  ;;  %v1848_v19 = vsel %vm5440_vm7, %v1843_v33, %v1847_v30  ;;  %v1853_v0 = vrot.slane %v1852_v10, 4  ;;  %v4841_v34 = vcombine.low %v6989_v20, %v7837_v7  ;;  %v7843_v30 = vld [vmem:[#allocation4_spill] sm:$0xff]  ;;  %v5183_v10 = vld [vmem:[#allocation2 + $0x34] sm:$0xf] }
 0x23d   : > { %v1867_v45 = vrot.slane %v1866_v24, 4  ;;  %v3553_v29 = vsel %vm3508_vm14, %v4726_v4, %v6847_v54  ;;  %4038 = vmatprep.mubr.bf16.mxu0 %v3735_v22  ;;  %v3607_v63 = vsel %vm3590_vm0, %v3569_v9, %v7838_v52  ;;  %v1875_v60 = vrot.slane %v1873_v23, 4  ;;  %v7844_v4 = vld [vmem:[#allocation43_spill] sm:$0xff]  ;;  %v7069_v23 = vld [vmem:[#allocation2 + $0x40] sm:$0xf] }
 0x23e   : > { %v3683_v15 = vsel %vm3508_vm14, %v6956_v43, %v6805_v51  ;;  %v3686_v61 = vsel %vm3508_vm14, %v4791_v16, %v6968_v46  ;;  %4039 = vmatmul.mubr.bf16.gmra.mxu0 %v3607_v63  ;;  %v1858_v5 = vsel %vm5440_vm7, %v1853_v0, %v1857_v26  ;;  %v7040_v57 = vsel %vm3557_vm15, %v3659_v38, %v7839_v8  ;;  %v3457_v51 = vpop.permute.xlu0 %3456  ;;  %v7840_v43 = vld [vmem:[#allocation22_spill] sm:$0xff]  ;;  %v7842_v16 = vld [vmem:[#allocation21_spill] sm:$0xff]  ;;  %v2668_v9 = vld [vmem:[#allocation2 + $0x78] sm:$0xe] }
 0x23f   : > { %v7042_v54 = vcombine.low %v1848_v19, %v1858_v5  ;;  %v1876_v59 = vor.u32 %v1875_v60, %v1871_v21  ;;  %v1881_v37 = vrot.slane %v1879_v56, 5  ;;  %v3587_v44 = vsel %vm3557_vm15, %v3553_v29, %v6825_v31  ;;  %v5184_v38 = vld [vmem:[#allocation2 + $0x74] sm:$0x1] }
 0x240   : > { %v3716_v46 = vsel %vm3557_vm15, %v3683_v15, %v7840_v43  ;;  %v3718_v41 = vsel %vm3557_vm15, %v3686_v61, %v7841_v25  ;;  %v1872_v14 = vsel %vm5440_vm7, %v1867_v45, %v1871_v21  ;;  %v3634_v56 = vsel %vm3590_vm0, %v3587_v44, %v7842_v16  ;;  %v7845_v19 = vld [vmem:[#allocation14_spill] sm:$0xff]  ;;  %v5186_v15 = vld [vmem:[#allocation2 + $0x38] sm:$0x1]  ;;  %v5188_v25 = vld [vmem:[#allocation2 + $0x4c] sm:$0xf] }
 0x241   : > { %v1877_v13 = vrot.slane %v1876_v59, 4  ;;  %v3762_v17 = vsel %vm3590_vm0, %v3716_v46, %v3457_v51  ;;  %v3765_v6 = vsel %vm3590_vm0, %v3718_v41, %v7843_v30  ;;  %v4727_v62 = vcombine.low %v5180_v53, %v5181_v2  ;;  %v2662_v45 = vld [vmem:[#allocation2 + $0x30] sm:$0xe]  ;;  %v2663_v51 = vld [vmem:[#allocation2 + $0x3c] sm:$0xe] }
 0x242   : > { %4110 = vmatprep.mubr.bf16.mxu1 %v3762_v17  ;;  %v2775_v24 = vrot.slane %v5182_v11, 5  ;;  %v2782_v35 = vrot.slane %v7844_v4, 5  ;;  %v2740_v26 = vrot.slane %v5183_v10, 5  ;;  %v2778_v39 = vrot.slane %v5184_v38, 5  ;;  %v7067_v42 = vpop.permute.xlu0 %3266  ;;  %v7104_v16 = vld [vmem:[#allocation2 + $0xd4] sm:$0x1] }
 0x243   : > { %v1882_v31 = vsel %vm5440_vm7, %v1877_v13, %v1881_v37  ;;  %4111 = vmatmul.mubr.bf16.gmra.mxu1 %v3634_v56  ;;  %v3556_v55 = vsel %vm3508_vm14, %v4727_v62, %v7002_v3  ;;  %v2747_v22 = vrot.slane %v7069_v23, 5  ;;  %v2785_v0 = vrot.slane %v7845_v19, 5  ;;  %v7081_v37 = vpop.permute.xlu1 %2962  ;;  %v5191_v53 = vld [vmem:[#allocation2 + $0x44] sm:$0x1]  ;;  %v7122_v10 = vld [vmem:[#allocation2 + $0x58] sm:$0xf] }
 0x244   : > { %v7059_v33 = vcombine.low %v1872_v14, %v1882_v31  ;;  %4118 = vmatprep.mubr.bf16.mxu1 %v3765_v6  ;;  %v3589_v21 = vsel %vm3557_vm15, %v3556_v55, %v3059_v28  ;;  %v4703_v29 = vrot.slane %v2667_v32, 9  ;;  %v1932_v52 = vshrl.u32 %v6862_v27, 16  ;;  %v2664_v14 = vld [vmem:[#allocation2 + $0x48] sm:$0xe]  ;;  %v7847_v55 = vld [vmem:[#allocation16_spill] sm:$0xff] }
 0x245   : > { %v1935_v3 = vshll.u32 %v6862_v27, 16  ;;  %v2777_v63 = vrot.slane %v2775_v24, 4  ;;  %v4704_v60 = vrot.slane %v2668_v9, 9  ;;  %v2743_v61 = vrot.slane %v5186_v15, 5  ;;  %v5194_v19 = vld [vmem:[#allocation2 + $0x50] sm:$0x1] }
 0x246   : > { %v3637_v5 = vsel %vm3590_vm0, %v3589_v21, %v6930_v50  ;;  %v7079_v8 = vsel %vm5434_vm6, %v4703_v29, %v2775_v24  ;;  %v2784_v59 = vrot.slane %v2782_v35, 4  ;;  %v4698_v28 = vrot.slane %v2662_v45, 9  ;;  %v7091_v50 = vld [vmem:[#allocation2 + $0xd0] sm:$0xf]  ;;  %v7107_v6 = vpop.permute.xlu0 %3362  ;;  %v7128_v29 = vld [vmem:[#allocation2 + $0x64] sm:$0xf] }
 0x247   : > { %v2742_v44 = vrot.slane %v2740_v26, 4  ;;  %v7085_v27 = vsel %vm5434_vm6, %v2777_v63, %v2778_v39  ;;  %v7089_v43 = vsel %vm5434_vm6, %v4704_v60, %v2782_v35  ;;  %v2831_v46 = vrot.slane %v7091_v50, 5  ;;  %v7846_v35 = vld [vmem:[#allocation47_spill] sm:$0xff]  ;;  %v7125_v39 = vld [vmem:[#allocation2 + $0xc4] sm:$0xf]  ;;  %v7134_v15 = vpop.permute.xlu1 %3042 }
 0x248   : > { %v2754_v41 = vrot.slane %v5188_v25, 5  ;;  %v7102_v17 = vsel %vm5434_vm6, %v2784_v59, %v2785_v0  ;;  %v2834_v56 = vrot.slane %v7104_v16, 5  ;;  %v1934_v31 = vrot.slane %v1932_v52, 4  ;;  %v5196_v52 = vld [vmem:[#allocation2 + $0xbc] sm:$0x1] }
 0x249   : > { %v1937_v30 = vrot.slane %v1935_v3, 5  ;;  %v2750_v2 = vrot.slane %v5191_v53, 5  ;;  %v4699_v62 = vrot.slane %v2663_v51, 9  ;;  %v2749_v11 = vrot.slane %v2747_v22, 4  ;;  %v7131_v63 = vld [vmem:[#allocation2 + $0x5c] sm:$0x1] }
 0x24a   : > { %v2741_v24 = vsel %vm5434_vm6, %v4698_v28, %v2740_v26  ;;  %v2744_v32 = vsel %vm5434_vm6, %v2742_v44, %v2743_v61  ;;  %v4700_v4 = vrot.slane %v2664_v14, 9  ;;  %v2761_v38 = vrot.slane %v7122_v10, 5  ;;  %v7848_v44 = vld [vmem:[#allocation28_spill] sm:$0xff]  ;;  %v2671_v25 = vld [vmem:[#allocation2 + $0x9c] sm:$0xe] }
 0x24b   : > { %4119 = vmatmul.mubr.bf16.gmra.mxu1 %v3637_v5  ;;  %v2824_v21 = vrot.slane %v7125_v39, 5  ;;  %v2757_v0 = vrot.slane %v5194_v19, 5  ;;  %v2756_v45 = vrot.slane %v2754_v41, 4  ;;  %v2768_v26 = vrot.slane %v7128_v29, 5  ;;  %v5198_v14 = vld [vmem:[#allocation2 + $0xc8] sm:$0x1] }
 0x24c   : > { %5033 = vmatprep.mubr.msk.bf16.mxu1 %vm3508_vm14, %v4840_v18  ;;  %v2817_v18 = vrot.slane %v7111_v58, 5  ;;  %v2820_v3 = vrot.slane %v5196_v52, 5  ;;  %v2764_v60 = vrot.slane %v7131_v63, 5  ;;  %v1938_v61 = vor.u32 %v1937_v30, %v1934_v31  ;;  %v2665_v23 = vld [vmem:[#allocation2 + $0x54] sm:$0xe]  ;;  %v7850_v63 = vld [vmem:[#allocation9_spill] sm:$0xff] }
 0x24d   : > { %v4842_v5 = vcombine.low %v2741_v24, %v2744_v32  ;;  %v1941_v59 = vshll.u32 %v6792_v1, 16  ;;  %v1945_v28 = vshrl.u32 %v6792_v1, 16  ;;  %v1951_v51 = vshll.u32 %v7848_v44, 16 }
 0x24e   : > { %v2827_v53 = vrot.slane %v5198_v14, 5  ;;  %v2748_v31 = vsel %vm5434_vm6, %v4699_v62, %v2747_v22  ;;  %v2751_v1 = vsel %vm5434_vm6, %v2749_v11, %v2750_v2  ;;  %v2755_v30 = vsel %vm5434_vm6, %v4700_v4, %v2754_v41  ;;  %v2673_v14 = vld [vmem:[#allocation2 + $0xb4] sm:$0xe]  ;;  %v5200_v22 = vld [vmem:[#allocation2 + $0x4c] sm:$0xf] }
 0x24f   : > { %v2758_v24 = vsel %vm5434_vm6, %v2756_v45, %v2757_v0  ;;  %v1939_v32 = vrot.slane %v1938_v61, 4  ;;  %v1943_v20 = vrot.slane %v1941_v59, 5  ;;  %v1947_v7 = vrot.slane %v1945_v28, 4  ;;  %v5201_v62 = vld [vmem:[#allocation2 + $0x48] sm:$0xf]  ;;  %v7849_v28 = vld [vmem:[#allocation27_spill] sm:$0xff] }
 0x250   : > { %v7139_v19 = vpop.permute.xlu0 %3442  ;;  %v4707_v44 = vrot.slane %v2671_v25, 9  ;;  %v4718_v9 = vcombine.low %v5201_v62, %v5200_v22  ;;  %v2666_v2 = vld [vmem:[#allocation2 + $0x60] sm:$0xe]  ;;  %v1953_v4 = vrot.slane %v1951_v51, 5  ;;  %v4843_v45 = vcombine.low %v2748_v31, %v2751_v1  ;;  %v2675_v1 = vld [vmem:[#allocation2 + $0xcc] sm:$0xe] }
 0x251   : > { %v1944_v41 = vsel %vm5440_vm7, %v1939_v32, %v1943_v20  ;;  %v1948_v11 = vor.u32 %v1947_v7, %v1943_v20  ;;  %v4844_v61 = vcombine.low %v2755_v30, %v2758_v24  ;;  %v2803_v59 = vrot.slane %v6811_v48, 5  ;;  %v2674_v62 = vld [vmem:[#allocation2 + $0xc0] sm:$0xe] }
 0x252   : > { %v2806_v25 = vrot.slane %v7849_v28, 5  ;;  %v4709_v13 = vrot.slane %v2673_v14, 9  ;;  %v2819_v22 = vrot.slane %v2817_v18, 4  ;;  %v2763_v51 = vrot.slane %v2761_v38, 4 }
 0x253   : > { %5034 = vmatmul.mubr.msk.bf16.vlgmr.msra.gmra.mxu1 %vm3508_vm14, %v4841_v34  ;;  %v5199_v34 = vld [vmem:[#allocation2 + $0x68] sm:$0x1]  ;;  %v1949_v12 = vrot.slane %v1948_v11, 4  ;;  %v4702_v32 = vrot.slane %v2666_v2, 9  ;;  %v7170_v20 = vsel %vm5434_vm6, %v4707_v44, %v2803_v59  ;;  %v2805_v31 = vrot.slane %v2803_v59, 4 }
 0x254   : > { %5037 = vmatprep.mubr.msk.bf16.mxu1 %vm3508_vm14, %v4842_v5  ;;  %v2771_v52 = vrot.slane %v5199_v34, 5  ;;  %v7158_v5 = vpop.permute.xlu1 %3138  ;;  %v7160_v0 = vpop.permute.xlu0 %3268  ;;  %v4701_v34 = vrot.slane %v2665_v23, 9  ;;  %v2770_v48 = vrot.slane %v2768_v26, 4  ;;  %v7180_v24 = vsel %vm5434_vm6, %v4709_v13, %v2817_v18 }
 0x255   : > { %v1954_v30 = vsel %vm5440_vm7, %v1949_v12, %v1953_v4  ;;  %v7184_v7 = vsel %vm5434_vm6, %v2819_v22, %v2820_v3  ;;  %v7191_v44 = vsel %vm5434_vm6, %v2805_v31, %v2806_v25  ;;  %v4710_v58 = vrot.slane %v2674_v62, 9 }
 0x256   : > { %v7187_v23 = vcombine.low %v1944_v41, %v1954_v30  ;;  %v4853_v12 = vcombine.low %v7180_v24, %v7184_v7  ;;  %v4851_v13 = vcombine.low %v7170_v20, %v7191_v44  ;;  %v2826_v18 = vrot.slane %v2824_v21, 4  ;;  %v7852_v30 = vld [vmem:[#allocation13_spill] sm:$0xff] }
 0x257   : > { %v4711_v3 = vrot.slane %v2675_v1, 9  ;;  %v3529_v14 = vsel %vm3508_vm14, %v4718_v9, %v7061_v47  ;;  %v7210_v11 = vsel %vm5434_vm6, %v4710_v58, %v2824_v21  ;;  %v2833_v4 = vrot.slane %v2831_v46, 4 }
 0x258   : > { %v7202_v2 = vpop.permute.xlu1 %3044  ;;  %v7204_v41 = vpop.permute.xlu0 %3364  ;;  %v2765_v47 = vsel %vm5434_vm6, %v2763_v51, %v2764_v60  ;;  %v7224_v9 = vsel %vm5434_vm6, %v2826_v18, %v2827_v53  ;;  %v2769_v10 = vsel %vm5434_vm6, %v4702_v32, %v2768_v26  ;;  %v1884_v29 = vshrl.u32 %v7850_v63, 16  ;;  %v7851_v51 = vld [vmem:[#allocation46_spill] sm:$0xff] }
 0x259   : > { %v7230_v39 = vsel %vm5434_vm6, %v4711_v3, %v2831_v46  ;;  %v4854_v21 = vcombine.low %v7210_v11, %v7224_v9  ;;  %v7244_v50 = vsel %vm5434_vm6, %v2833_v4, %v2834_v56  ;;  %v1887_v60 = vshll.u32 %v7850_v63, 16  ;;  %v2670_v18 = vld [vmem:[#allocation2 + $0x90] sm:$0xe]  ;;  %v5204_v3 = vld [vmem:[#allocation2 + $0x54] sm:$0xf] }
 0x25a   : > { %v4855_v46 = vcombine.low %v7230_v39, %v7244_v50  ;;  %v3571_v53 = vsel %vm3557_vm15, %v3529_v14, %v6890_v49  ;;  %v3662_v56 = vsel %vm3508_vm14, %v7042_v54, %v7067_v42  ;;  %v1886_v22 = vrot.slane %v1884_v29, 4  ;;  %v5203_v42 = vld [vmem:[#allocation2 + $0x88] sm:$0xf] }
 0x25b   : > { %5038 = vmatmul.mubr.msk.bf16.gmra.mxu1 %vm3508_vm14, %v4843_v45  ;;  %v2762_v45 = vsel %vm5434_vm6, %v4701_v34, %v2761_v38  ;;  %v2772_v38 = vsel %vm5434_vm6, %v2770_v48, %v2771_v52  ;;  %v5202_v52 = vld [vmem:[#allocation2 + $0x7c] sm:$0xf]  ;;  %v1889_v49 = vrot.slane %v1887_v60, 5  ;;  %v3702_v62 = vsel %vm3557_vm15, %v3662_v56, %v7107_v6  ;;  %v2669_v48 = vld [vmem:[#allocation2 + $0x84] sm:$0xe] }
 0x25c   : > { %5041 = vmatprep.mubr.msk.bf16.mxu1 %vm3508_vm14, %v4844_v61  ;;  %v4845_v26 = vcombine.low %v2762_v45, %v2765_v47  ;;  %v1893_v61 = vshll.u32 %v5202_v52, 16  ;;  %v1897_v59 = vshrl.u32 %v5202_v52, 16  ;;  %v4846_v28 = vcombine.low %v2769_v10, %v2772_v38  ;;  %v7252_v16 = vpop.permute.xlu1 %3140  ;;  %v5205_v6 = vld [vmem:[#allocation2 + $0x58] sm:$0xf]  ;;  %v5206_v47 = vld [vmem:[#allocation2 + $0x80] sm:$0x1] }
 0x25d   : > { %v3610_v32 = vsel %vm3590_vm0, %v3571_v53, %v7851_v51  ;;  %v3741_v31 = vsel %vm3590_vm0, %v3702_v62, %v7139_v19  ;;  %v2796_v58 = vrot.slane %v7852_v30, 5  ;;  %v4719_v14 = vcombine.low %v5204_v3, %v5205_v6  ;;  %v5207_v60 = vld [vmem:[#allocation2 + $0x8c] sm:$0x1] }
 0x25e   : > { %v7267_v1 = vrot.slane %v1893_v61, 5  ;;  %v1899_v54 = vrot.slane %v1897_v59, 4  ;;  %v1890_v45 = vor.u32 %v1889_v49, %v1886_v22  ;;  %v1903_v10 = vshll.u32 %v5206_v47, 16 }
 0x25f   : > { %v4705_v63 = vrot.slane %v2669_v48, 9  ;;  %v3532_v53 = vsel %vm3508_vm14, %v4719_v14, %v7081_v37  ;;  %v7853_v52 = vcombine.low %v7079_v8, %v7085_v27  ;;  %v4706_v61 = vrot.slane %v2670_v18, 9  ;;  %v5208_v37 = vld [vmem:[#allocation2 + $0xac] sm:$0xf]  ;;  %v5211_v14 = vld [vmem:[#allocation2 + $0x60] sm:$0xf] }
 0x260   : > { %v3441_v25 = vpop.permute.xlu0 %3440  ;;  %v1900_v19 = vor.u32 %v1899_v54, %v7267_v1  ;;  %v2798_v59 = vrot.slane %v2796_v58, 4  ;;  %v3573_v56 = vsel %vm3557_vm15, %v3532_v53, %v7134_v15  ;;  %v7855_v22 = vcombine.low %v7089_v43, %v7102_v17 }
 0x261   : > { %v3738_v34 = vsel %vm3590_vm0, %v7040_v57, %v3441_v25  ;;  %v2789_v57 = vrot.slane %v5203_v42, 5  ;;  %v2810_v8 = vrot.slane %v5208_v37, 5  ;;  %v3613_v49 = vsel %vm3590_vm0, %v3573_v56, %v7158_v5  ;;  %v5209_v42 = vld [vmem:[#allocation2 + $0xb0] sm:$0x1] }
 0x262   : > { %4046 = vmatprep.mubr.bf16.mxu0 %v3738_v34  ;;  %v3665_v34 = vsel %vm3508_vm14, %v7059_v33, %v7160_v0  ;;  %v1891_v62 = vrot.slane %v1890_v45, 4  ;;  %v1901_v0 = vrot.slane %v1900_v19, 4  ;;  %v2813_v48 = vrot.slane %v5209_v42, 5 }
 0x263   : > { %5042 = vmatmul.mubr.msk.bf16.gmra.mxu1 %vm3508_vm14, %v4845_v26  ;;  %4047 = vmatmul.mubr.bf16.gmra.mxu0 %v3610_v32  ;;  %v7270_v4 = vpop.permute.xlu1 %2966  ;;  %v2791_v29 = vrot.slane %v2789_v57, 4  ;;  %v2792_v26 = vrot.slane %v5207_v60, 5  ;;  %v3704_v27 = vsel %vm3557_vm15, %v3665_v34, %v7204_v41  ;;  %v2790_v33 = vsel %vm5434_vm6, %v4705_v63, %v2789_v57  ;;  %v7857_v60 = vld [vmem:[#allocation12_spill] sm:$0xff] }
 0x264   : > { %5045 = vmatprep.mubr.msk.bf16.mxu1 %vm3508_vm14, %v4846_v28  ;;  %4054 = vmatprep.mubr.bf16.mxu0 %v3741_v31  ;;  %v7854_v28 = vld [vmem:[#allocation24_spill] sm:$0xff]  ;;  %v1905_v32 = vrot.slane %v1903_v10, 5  ;;  %v2797_v41 = vsel %vm5434_vm6, %v4706_v61, %v2796_v58  ;;  %v2672_v31 = vld [vmem:[#allocation2 + $0xa8] sm:$0xe]  ;;  %v1896_v57 = vsel %vm5440_vm7, %v1891_v62, %v7267_v1  ;;  %v2812_v6 = vrot.slane %v2810_v8, 4  ;;  %v7856_v10 = vld [vmem:[#allocation18_spill] sm:$0xff] }
 0x265   : > { %v2799_v25 = vrot.slane %v7854_v28, 5  ;;  %v2793_v43 = vsel %vm5434_vm6, %v2791_v29, %v2792_v26  ;;  %v4708_v3 = vrot.slane %v2672_v31, 9  ;;  %v5210_v58 = vld [vmem:[#allocation2 + $0x64] sm:$0xf]  ;;  %v1911_v63 = vshll.u32 %v7856_v10, 16 }
 0x266   : > { %v4849_v54 = vcombine.low %v2790_v33, %v2793_v43  ;;  %v1906_v18 = vsel %vm5440_vm7, %v1901_v0, %v1905_v32  ;;  %v4720_v45 = vcombine.low %v5211_v14, %v5210_v58  ;;  %v1917_v26 = vshll.u32 %v7857_v60, 16 }
 0x267   : > { %v3445_v38 = vpop.permute.xlu0 %3444  ;;  %v3047_v17 = vpop.permute.xlu1 %3046  ;;  %v2800_v5 = vsel %vm5434_vm6, %v2798_v59, %v2799_v25  ;;  %v4785_v29 = vcombine.low %v1896_v57, %v1906_v18  ;;  %v2811_v61 = vsel %vm5434_vm6, %v4708_v3, %v2810_v8  ;;  %v2814_v59 = vsel %vm5434_vm6, %v2812_v6, %v2813_v48  ;;  %v5215_v18 = vld [vmem:[#allocation2 + $0x78] sm:$0xf]  ;;  %v5216_v3 = vld [vmem:[#allocation2 + $0x7c] sm:$0xf] }
 0x268   : > { %v3744_v15 = vsel %vm3590_vm0, %v3704_v27, %v3445_v38  ;;  %v4850_v30 = vcombine.low %v2797_v41, %v2800_v5  ;;  %v1908_v38 = vshrl.u32 %v7856_v10, 16  ;;  %v1913_v27 = vrot.slane %v1911_v63, 5  ;;  %v5214_v41 = vld [vmem:[#allocation2 + $0x8c] sm:$0x1] }
 0x269   : > { %v1919_v62 = vrot.slane %v1917_v26, 5  ;;  %v1927_v5 = vshll.u32 %v5214_v41, 16  ;;  %v4722_v24 = vcombine.low %v5215_v18, %v5216_v3 }
 0x26a   : > { %v1910_v34 = vrot.slane %v1908_v38, 4 }
 0x26b   : > { %5046 = vmatmul.mubr.msk.bf16.gmra.mxu1 %vm3508_vm14, %v7853_v52  ;;  %v3271_v51 = vpop.permute.xlu0 %3270  ;;  %4055 = vmatmul.mubr.bf16.gmra.mxu0 %v3613_v49  ;;  %v1921_v52 = vshrl.u32 %v7857_v60, 16 }
 0x26c   : > { %5049 = vmatprep.mubr.msk.bf16.mxu1 %vm3508_vm14, %v7855_v22  ;;  %4062 = vmatprep.mubr.bf16.mxu0 %v3744_v15  ;;  %v3668_v25 = vsel %vm3508_vm14, %v4785_v29, %v3271_v51  ;;  %v1914_v0 = vor.u32 %v1913_v27, %v1910_v34 }
 0x26d   : > { %v1923_v8 = vrot.slane %v1921_v52, 4 }
 0x26f   : > { %v3367_v47 = vpop.permute.xlu0 %3366  ;;  %v1924_v32 = vor.u32 %v1923_v8, %v1919_v62 }
 0x270   : > { %v3706_v22 = vsel %vm3557_vm15, %v3668_v25, %v3367_v47  ;;  %v7858_v47 = vcombine.low %v7847_v55, %v7846_v35 }
 0x271   : > { %v1925_v31 = vrot.slane %v1924_v32, 4 }
 0x272   : > { %v2965_v19 = vpop.permute.xlu1 %2964 }
 0x273   : > { %5050 = vmatmul.mubr.msk.bf16.gmra.mxu1 %vm3508_vm14, %v4849_v54  ;;  %v3535_v1 = vsel %vm3508_vm14, %v4720_v45, %v2965_v19  ;;  %v1929_v54 = vrot.slane %v1927_v5, 5 }
 0x274   : > { %5053 = vmatprep.mubr.msk.bf16.mxu1 %vm3508_vm14, %v4850_v30  ;;  %v3575_v53 = vsel %vm3557_vm15, %v3535_v1, %v7202_v2  ;;  %v4852_v2 = vcombine.low %v2811_v61, %v2814_v59 }
 0x275   : > { %v3616_v28 = vsel %vm3590_vm0, %v3575_v53, %v7252_v16  ;;  %v5213_v16 = vld [vmem:[#allocation2 + $0x70] sm:$0xf]  ;;  %v1930_v42 = vsel %vm5440_vm7, %v1925_v31, %v1929_v54 }
 0x276   : > { %v3143_v56 = vpop.permute.xlu1 %3142  ;;  %4063 = vmatmul.mubr.bf16.gmra.mxu0 %v3616_v28  ;;  %v4721_v51 = vcombine.low %v5212_v36, %v5213_v16 }
 0x277   : > { %v3447_v37 = vpop.permute.xlu0 %3446 }
 0x278   : > { %v3747_v49 = vsel %vm3590_vm0, %v3706_v22, %v3447_v37  ;;  %v3538_v15 = vsel %vm3508_vm14, %v4721_v51, %v7270_v4 }
 0x279   : > { %4070 = vmatprep.mubr.bf16.mxu0 %v3747_v49  ;;  %v3577_v43 = vsel %vm3557_vm15, %v3538_v15, %v3047_v17 }
 0x27a   : > { %v2969_v33 = vpop.permute.xlu1 %2968  ;;  %v3619_v20 = vsel %vm3590_vm0, %v3577_v43, %v3143_v56 }
 0x27b   : > { %5054 = vmatmul.mubr.msk.bf16.gmra.mxu1 %vm3508_vm14, %v4851_v13  ;;  %v1915_v13 = vrot.slane %v1914_v0, 4 }
 0x27c   : > { %5057 = vmatprep.mubr.msk.bf16.mxu1 %vm3508_vm14, %v4852_v2 }
 0x27d   : > { %v1920_v17 = vsel %vm5440_vm7, %v1915_v13, %v1919_v62 }
 0x27e   : > { %4071 = vmatmul.mubr.bf16.gmra.mxu0 %v3619_v20  ;;  %v4786_v30 = vcombine.low %v1920_v17, %v1930_v42 }
 0x27f   : > { %v3273_v44 = vpop.permute.xlu0 %3272  ;;  %v3049_v4 = vpop.permute.xlu1 %3048 }
 0x280   : > { %v3671_v7 = vsel %vm3508_vm14, %v4786_v30, %v3273_v44 }
 0x283   : > { %5058 = vmatmul.mubr.msk.bf16.gmra.mxu1 %vm3508_vm14, %v4853_v12  ;;  %v3369_v48 = vpop.permute.xlu0 %3368  ;;  %v3145_v57 = vpop.permute.xlu1 %3144  ;;  %v3541_v12 = vsel %vm3508_vm14, %v4722_v24, %v2969_v33 }
 0x284   : > { %5061 = vmatprep.mubr.msk.bf16.mxu1 %vm3508_vm14, %v4854_v21  ;;  %v3708_v11 = vsel %vm3557_vm15, %v3671_v7, %v3369_v48  ;;  %v3579_v40 = vsel %vm3557_vm15, %v3541_v12, %v3049_v4  ;;  %v7389_v7 = vld [vmem:[%s7635_s4] ss:$0 sm:$0xff] }
 0x285   : > { %v3622_v6 = vsel %vm3590_vm0, %v3579_v40, %v3145_v57 }
 0x28a   : > { %v3449_v9 = vpop.permute.xlu0 %3448 }
 0x28b   : > { %5062 = vmatmul.mubr.msk.bf16.gmra.mxu1 %vm3508_vm14, %v4855_v46  ;;  %v3750_v21 = vsel %vm3590_vm0, %v3708_v11, %v3449_v9 }
 0x28c   : > { %4078 = vmatprep.mubr.bf16.mxu0 %v3750_v21 }
 0x28d   : > { %4079 = vmatmul.mubr.bf16.gmra.mxu0 %v3622_v6 }
 0x28e   : > { %v2971_v58 = vpop.permute.xlu1 %2970  ;;  %v3275_v14 = vpop.permute.xlu0 %3274 }
 0x28f   : > { %v3674_v46 = vsel %vm3508_vm14, %v7187_v23, %v3275_v14  ;;  %v3544_v10 = vsel %vm3508_vm14, %v7858_v47, %v2971_v58 }
 0x292   : > { %v3051_v39 = vpop.permute.xlu1 %3050  ;;  %v3371_v50 = vpop.permute.xlu0 %3370 }
 0x293   : > { %v3710_v38 = vsel %vm3557_vm15, %v3674_v46, %v3371_v50  ;;  %v3581_v63 = vsel %vm3557_vm15, %v3544_v10, %v3051_v39 }
 0x296   : > { %v3147_v45 = vpop.permute.xlu1 %3146 }
 0x297   : > { %v3625_v29 = vsel %vm3590_vm0, %v3581_v63, %v3147_v45 }
 0x29b   : > { %v3451_v19 = vpop.permute.xlu0 %3450 }
 0x29c   : > { %v3753_v1 = vsel %vm3590_vm0, %v3710_v38, %v3451_v19 }
 0x29d   : > { %4086 = vmatprep.mubr.bf16.mxu0 %v3753_v1 }
 0x29e   : > { %4087 = vmatmul.mubr.bf16.gmra.mxu0 %v3625_v29 }
 0x2a4   : > { %v4915_v60 = vpop.f32.mrf.mxu0 }
 0x2a6   : > { %v4916_v26 = vpop.f32.mrf.mxu0 }
 0x2a7   : > { %v4917_v18 = vadd.f32 %v4916_v26, %v4915_v60 }
 0x2a8   : > { %v4918_v23 = vpop.f32.mrf.mxu0 }
 0x2a9   : > { %v4001_v21 = vadd.f32 %v4917_v18, %v7389_v7 }
 0x2aa   : > { %v4919_v53 = vpop.f32.mrf.mxu0 }
 0x2ab   : > { %v4920_v9 = vadd.f32 %v4919_v53, %v4918_v23 }
 0x2ad   : > { %v4004_v45 = vadd.f32 %v4920_v9, %v7389_v7 }
 0x2c3   : > { %v4921_v52 = vpop.f32.mrf.mxu0 }
 0x2c5   : > { %v4922_v61 = vpop.f32.mrf.mxu0 }
 0x2c6   : > { %v4923_v40 = vadd.f32 %v4922_v61, %v4921_v52 }
 0x2c7   : > { %v4924_v35 = vpop.f32.mrf.mxu0 }
 0x2c8   : > { %v4009_v46 = vadd.f32 %v4923_v40, %v7389_v7 }
 0x2c9   : > { %v4925_v59 = vpop.f32.mrf.mxu0 }
 0x2ca   : > { %v4926_v58 = vadd.f32 %v4925_v59, %v4924_v35 }
 0x2cc   : > { %v4012_v19 = vadd.f32 %v4926_v58, %v7389_v7 }
 0x2e2   : > { %v4927_v25 = vpop.f32.mrf.mxu0 }
 0x2e4   : > { %v4928_v37 = vpop.f32.mrf.mxu0 }
 0x2e5   : > { %v4929_v29 = vadd.f32 %v4928_v37, %v4927_v25 }
 0x2e6   : > { %v4930_v62 = vpop.f32.mrf.mxu0 }
 0x2e7   : > { %v4987_v55 = vpop.f32.mrf.mxu1 }
 0x2e8   : > { %v4931_v51 = vpop.f32.mrf.mxu0 }
 0x2e9   : > { %v4988_v28 = vpop.f32.mrf.mxu1  ;;  %v4932_v60 = vadd.f32 %v4931_v51, %v4930_v62 }
 0x2ea   : > { %v7366_v56 = vadd.f32 %v4988_v28, %v4987_v55 }
 0x2eb   : > { %v4990_v34 = vpop.f32.mrf.mxu1  ;;  %v4933_v33 = vpop.f32.mrf.mxu0 }
 0x2ed   : > { %v4991_v22 = vpop.f32.mrf.mxu1  ;;  %v4934_v43 = vpop.f32.mrf.mxu0 }
 0x2ee   : > { %v7368_v2 = vadd.f32 %v4991_v22, %v4990_v34  ;;  %v4935_v25 = vadd.f32 %v4934_v43, %v4933_v33 }
 0x2ef   : > { %v4936_v0 = vpop.f32.mrf.mxu0 }
 0x2f1   : > { %v4993_v27 = vpop.f32.mrf.mxu1  ;;  %v4937_v5 = vpop.f32.mrf.mxu0 }
 0x2f2   : > { %v4938_v28 = vadd.f32 %v4937_v5, %v4936_v0 }
 0x2f3   : > { %v4994_v49 = vpop.f32.mrf.mxu1 }
 0x2f4   : > { %v7370_v8 = vadd.f32 %v4994_v49, %v4993_v27  ;;  %v7376_v13 = vpop.f32.mrf.mxu0 }
 0x2f5   : > { %v4996_v36 = vpop.f32.mrf.mxu1 }
 0x2f6   : > { %v7380_v17 = vpop.f32.mrf.mxu0 }
 0x2f7   : > { %v4997_v16 = vpop.f32.mrf.mxu1 }
 0x2f8   : > { %v7372_v15 = vadd.f32 %v4997_v16, %v4996_v36  ;;  %v4942_v57 = vpop.f32.mrf.mxu0  ;;  %v4020_v36 = vadd.f32 %v4932_v60, %v7389_v7 }
 0x2fa   : > { %v4943_v11 = vpop.f32.mrf.mxu0 }
 0x2fb   : > { %v4944_v43 = vadd.f32 %v4943_v11, %v4942_v57 }
 0x2fe   : > { %v4945_v50 = vpop.f32.mrf.mxu0 }
 0x300   : > { %v4946_v26 = vpop.f32.mrf.mxu0 }
 0x301   : > { %v4947_v11 = vadd.f32 %v4946_v26, %v4945_v50 }
 0x302   : > { %v4948_v37 = vpop.f32.mrf.mxu0 }
 0x303   : > { %v4999_v32 = vpop.f32.mrf.mxu1 }
 0x305   : > { %v5000_v41 = vpop.f32.mrf.mxu1 }
 0x306   : > { %v7374_v20 = vadd.f32 %v5000_v41, %v4999_v32  ;;  %v4017_v32 = vadd.f32 %v4929_v29, %v7389_v7 }
 0x307   : > { %v5002_v44 = vpop.f32.mrf.mxu1 }
 0x309   : > { %v5003_v31 = vpop.f32.mrf.mxu1 }
 0x30a   : > { %v7378_v54 = vadd.f32 %v5003_v31, %v5002_v44 }
 0x30b   : > { %v5005_v4 = vpop.f32.mrf.mxu1 }
 0x30d   : > { %v5006_v42 = vpop.f32.mrf.mxu1 }
 0x30e   : > { %v7382_v48 = vadd.f32 %v5006_v42, %v5005_v4  ;;  %v4028_v42 = vadd.f32 %v4938_v28, %v7389_v7 }
 0x30f   : > { %v5008_v30 = vpop.f32.mrf.mxu1 }
 0x311   : > { %v5009_v3 = vpop.f32.mrf.mxu1 }
 0x312   : > { %v7384_v24 = vadd.f32 %v5009_v3, %v5008_v30  ;;  %v4949_v30 = vpop.f32.mrf.mxu0  ;;  %v4025_v3 = vadd.f32 %v4935_v25, %v7389_v7 }
 0x313   : > { %v5035_v12 = vpop.f32.mrf.mxu1 }
 0x314   : > { %v4170_v10 = vadd.f32 %v5035_v12, %v4009_v46  ;;  %v4941_v12 = vadd.f32 %v7380_v17, %v7376_v13  ;;  %v4036_v13 = vadd.f32 %v4944_v43, %v7389_v7 }
 0x315   : > { %v4161_v6 = vpop.f32.mrf.mxu1 }
 0x316   : > { %v4162_v14 = vadd.f32 %v4161_v6, %v4001_v21  ;;  %v4360_v34 = vmul.f32 %v4170_v10, %v4170_v10  ;;  %v4291_v16 = vsel %vm3508_vm14, %v4170_v10, 0.0  ;;  %v4033_v29 = vadd.f32 %v4941_v12, %v7389_v7 }
 0x317   : > { %v5036_v39 = vpop.f32.mrf.mxu1 }
 0x318   : > { %v4358_v38 = vmul.f32 %v4162_v14, %v4162_v14  ;;  %v4288_v23 = vsel %vm3508_vm14, %v4162_v14, 0.0  ;;  %v4173_v53 = vadd.f32 %v5036_v39, %v4012_v19  ;;  %v4393_v5 = vsel %vm3508_vm14, %v4360_v34, 0.0 }
 0x319   : > { %v4164_v47 = vpop.f32.mrf.mxu1  ;;  %v4950_v39 = vadd.f32 %v4949_v30, %v4948_v37  ;;  %v4041_v34 = vadd.f32 %v4947_v11, %v7389_v7 }
 0x31a   : > { %v4165_v63 = vadd.f32 %v4164_v47, %v4004_v45  ;;  %v4390_v22 = vsel %vm3508_vm14, %v4358_v38, 0.0  ;;  %v4461_v51 = vpack.c.bf16 %v4173_v53, %v4170_v10  ;;  %v4361_v31 = vmul.f32 %v4173_v53, %v4173_v53 }
 0x31b   : > { %v5039_v1 = vpop.f32.mrf.mxu1  ;;  %v4293_v9 = vsel %vm3508_vm14, %v4173_v53, 0.0  ;;  %v4044_v50 = vadd.f32 %v4950_v39, %v7389_v7 }
 0x31c   : > { %v4289_v52 = vsel %vm3508_vm14, %v4165_v63, 0.0  ;;  %v4359_v61 = vmul.f32 %v4165_v63, %v4165_v63  ;;  %v4460_v35 = vpack.c.bf16 %v4165_v63, %v4162_v14  ;;  %v4395_v46 = vsel %vm3508_vm14, %v4361_v31, 0.0 }
 0x31d   : > { %v4177_v55 = vpop.f32.mrf.mxu1  ;;  %v4290_v59 = vadd.f32 %v4289_v52, %v4288_v23  ;;  %v4186_v45 = vadd.f32 %v5039_v1, %v4025_v3 }
 0x31e   : > { %v4391_v27 = vsel %vm3508_vm14, %v4359_v61, 0.0  ;;  %4476 = vxpose.xlu0.c.b16.start [1/8] (narrow) %v4460_v35, 32  ;;  %v4178_v4 = vadd.f32 %v4177_v55, %v4017_v32 }
 0x31f   : > { %v5040_v49 = vpop.f32.mrf.mxu1  ;;  %v4392_v62 = vadd.f32 %v4391_v27, %v4390_v22  ;;  %v4292_v44 = vadd.f32 %v4291_v16, %v4290_v59  ;;  %v4364_v16 = vmul.f32 %v4186_v45, %v4186_v45 }
 0x320   : > { %v4189_v40 = vadd.f32 %v5040_v49, %v4028_v42  ;;  %v4362_v47 = vmul.f32 %v4178_v4, %v4178_v4  ;;  %v4295_v17 = vsel %vm3508_vm14, %v4178_v4, 0.0 }
 0x321   : > { %v4180_v41 = vpop.f32.mrf.mxu1  ;;  %v4394_v18 = vadd.f32 %v4393_v5, %v4392_v62  ;;  %v4294_v14 = vadd.f32 %v4293_v9, %v4292_v44  ;;  %v4299_v5 = vsel %vm3508_vm14, %v4186_v45, 0.0  ;;  %v4401_v3 = vsel %vm3508_vm14, %v4364_v16, 0.0 }
 0x322   : > { %v4181_v0 = vadd.f32 %v4180_v41, %v4020_v36  ;;  %4477 = vxpose.xlu0.c.b16.cont [2/8] (narrow) %v4461_v51, 32  ;;  %v4463_v63 = vpack.c.bf16 %v4189_v40, %v4186_v45  ;;  %v4397_v1 = vsel %vm3508_vm14, %v4362_v47, 0.0 }
 0x323   : > { %v5043_v33 = vpop.f32.mrf.mxu1  ;;  %v4951_v58 = vpop.f32.mrf.mxu0  ;;  %v4396_v38 = vadd.f32 %v4395_v46, %v4394_v18  ;;  %v4296_v23 = vadd.f32 %v4295_v17, %v4294_v14  ;;  %v4301_v14 = vsel %vm3508_vm14, %v4189_v40, 0.0 }
 0x324   : > { %v4462_v21 = vpack.c.bf16 %v4181_v0, %v4178_v4  ;;  %v4363_v19 = vmul.f32 %v4181_v0, %v4181_v0  ;;  %v4297_v61 = vsel %vm3508_vm14, %v4181_v0, 0.0  ;;  %v4202_v51 = vadd.f32 %v5043_v33, %v4041_v34 }
 0x325   : > { %v4193_v6 = vpop.f32.mrf.mxu1  ;;  %v4952_v10 = vpop.f32.mrf.mxu0  ;;  %v4398_v55 = vadd.f32 %v4397_v1, %v4396_v38  ;;  %v4298_v62 = vadd.f32 %v4297_v61, %v4296_v23  ;;  %v4365_v33 = vmul.f32 %v4189_v40, %v4189_v40 }
 0x326   : > { %4478 = vxpose.xlu0.c.b16.cont [3/8] (narrow) %v4462_v21, 32  ;;  %v4194_v35 = vadd.f32 %v4193_v6, %v4033_v29  ;;  %v4399_v28 = vsel %vm3508_vm14, %v4363_v19, 0.0  ;;  %v4953_v22 = vadd.f32 %v4952_v10, %v4951_v58  ;;  %v4307_v16 = vsel %vm3508_vm14, %v4202_v51, 0.0 }
 0x327   : > { %v5044_v57 = vpop.f32.mrf.mxu1  ;;  %v4954_v53 = vpop.f32.mrf.mxu0  ;;  %v4400_v41 = vadd.f32 %v4399_v28, %v4398_v55  ;;  %v4300_v43 = vadd.f32 %v4299_v5, %v4298_v62 }
 0x328   : > { %v7417_v49 = vadd.f32 %v5044_v57, %v4044_v50  ;;  %v4049_v4 = vadd.f32 %v4953_v22, %v7389_v7  ;;  %v4403_v57 = vsel %vm3508_vm14, %v4365_v33, 0.0  ;;  %v4366_v11 = vmul.f32 %v4194_v35, %v4194_v35 }
 0x329   : > { %v4196_v60 = vpop.f32.mrf.mxu1  ;;  %v4955_v59 = vpop.f32.mrf.mxu0  ;;  %v4402_v6 = vadd.f32 %v4401_v3, %v4400_v41  ;;  %v4302_v47 = vadd.f32 %v4301_v14, %v4300_v43  ;;  %v4303_v17 = vsel %vm3508_vm14, %v4194_v35, 0.0 }
 0x32a   : > { %v4197_v52 = vadd.f32 %v4196_v60, %v4036_v13  ;;  %4479 = vxpose.xlu0.c.b16.cont [4/8] (narrow) %v4463_v63, 32  ;;  %v4956_v27 = vadd.f32 %v4955_v59, %v4954_v53  ;;  %v4465_v31 = vpack.c.bf16 %v7417_v49, %v4202_v51  ;;  %v4405_v1 = vsel %vm3508_vm14, %v4366_v11, 0.0 }
 0x32b   : > { %v5047_v26 = vpop.f32.mrf.mxu1  ;;  %v4957_v36 = vpop.f32.mrf.mxu0  ;;  %v4404_v13 = vadd.f32 %v4403_v57, %v4402_v6  ;;  %v4304_v53 = vadd.f32 %v4303_v17, %v4302_v47  ;;  %v4105_v11 = vadd.f32 %v7370_v8, %v7389_v7 }
 0x32c   : > { %v4464_v25 = vpack.c.bf16 %v4197_v52, %v4194_v35  ;;  %v4052_v0 = vadd.f32 %v4956_v27, %v7389_v7  ;;  %v4367_v40 = vmul.f32 %v4197_v52, %v4197_v52  ;;  %v4305_v61 = vsel %vm3508_vm14, %v4197_v52, 0.0 }
 0x32d   : > { %v4209_v37 = vpop.f32.mrf.mxu1  ;;  %v4958_v44 = vpop.f32.mrf.mxu0  ;;  %v4406_v28 = vadd.f32 %v4405_v1, %v4404_v13  ;;  %v4306_v22 = vadd.f32 %v4305_v61, %v4304_v53  ;;  %v4100_v1 = vadd.f32 %v7368_v2, %v7389_v7 }
 0x32e   : > { %4480 = vxpose.xlu0.c.b16.cont [5/8] (narrow) %v4464_v25, 32  ;;  %v4959_v12 = vadd.f32 %v4958_v44, %v4957_v36  ;;  %v7426_v9 = vadd.f32 %v4209_v37, %v4049_v4  ;;  %v4407_v35 = vsel %vm3508_vm14, %v4367_v40, 0.0  ;;  %v4368_v25 = vmul.f32 %v4202_v51, %v4202_v51 }
 0x32f   : > { %v5048_v32 = vpop.f32.mrf.mxu1  ;;  %v4960_v30 = vpop.f32.mrf.mxu0  ;;  %v4408_v52 = vadd.f32 %v4407_v35, %v4406_v28  ;;  %v4308_v44 = vadd.f32 %v4307_v16, %v4306_v22  ;;  %v4369_v4 = vmul.f32 %v7417_v49, %v7417_v49 }
 0x330   : > { %v4057_v10 = vadd.f32 %v4959_v12, %v7389_v7  ;;  %v4309_v12 = vsel %vm3508_vm14, %v7417_v49, 0.0 }
 0x331   : > { %v4212_v42 = vpop.f32.mrf.mxu1  ;;  %v4961_v58 = vpop.f32.mrf.mxu0  ;;  %v4310_v14 = vadd.f32 %v4309_v12, %v4308_v44  ;;  %v4411_v47 = vsel %vm3508_vm14, %v4369_v4, 0.0 }
 0x332   : > { %v7423_v18 = vadd.f32 %v4212_v42, %v4052_v0  ;;  %4481 = vxpose.xlu0.c.b16.cont [6/8] (narrow) %v4465_v31, 32  ;;  %v4962_v39 = vadd.f32 %v4961_v58, %v4960_v30  ;;  %v7439_v29 = vadd.f32 %v5047_v26, %v4057_v10  ;;  %v4409_v31 = vsel %vm3508_vm14, %v4368_v25, 0.0 }
 0x333   : > { %v7428_v21 = vpop.f32.mrf.mxu1  ;;  %v4410_v30 = vadd.f32 %v4409_v31, %v4408_v52 }
 0x334   : > { %v4466_v46 = vpack.c.bf16 %v7423_v18, %v7426_v9  ;;  %v4060_v38 = vadd.f32 %v4962_v39, %v7389_v7  ;;  %v4371_v40 = vmul.f32 %v7423_v18, %v7423_v18 }
 0x335   : > { %v4225_v45 = vpop.f32.mrf.mxu1  ;;  %v4412_v49 = vadd.f32 %v4411_v47, %v4410_v30 }
 0x336   : > { %4482 = vxpose.xlu0.c.b16.cont [7/8] (narrow) %v4466_v46, 32  ;;  %v4963_v63 = vpop.f32.mrf.mxu0  ;;  %v7441_v60 = vadd.f32 %v5048_v32, %v4060_v38  ;;  %v4108_v46 = vadd.f32 %v7372_v15, %v7389_v7  ;;  %v4311_v15 = vsel %vm3508_vm14, %v7426_v9, 0.0  ;;  %v4415_v2 = vsel %vm3508_vm14, %v4371_v40, 0.0 }
 0x337   : > { %v7436_v19 = vpop.f32.mrf.mxu1  ;;  %v4312_v53 = vadd.f32 %v4311_v15, %v4310_v14 }
 0x338   : > { %v4964_v50 = vpop.f32.mrf.mxu0  ;;  %v4467_v55 = vpack.c.bf16 %v7441_v60, %v7439_v29 }
 0x339   : > { %v4228_v23 = vpop.f32.mrf.mxu1  ;;  %v4965_v27 = vadd.f32 %v4964_v50, %v4963_v63  ;;  %v4313_v50 = vsel %vm3508_vm14, %v7423_v18, 0.0  ;;  %v4372_v18 = vmul.f32 %v7439_v29, %v7439_v29 }
 0x33a   : > { %v4966_v34 = vpop.f32.mrf.mxu0  ;;  %4483 = vxpose.xlu0.c.b16.end [8/8] (narrow) %v4467_v55, 32 }
 0x33b   : > { %v7447_v59 = vpop.f32.mrf.mxu1  ;;  %v4065_v0 = vadd.f32 %v4965_v27, %v7389_v7 }
 0x33c   : > { %v4967_v37 = vpop.f32.mrf.mxu0 }
 0x33d   : > { %v7450_v26 = vpop.f32.mrf.mxu1  ;;  %v4968_v36 = vadd.f32 %v4967_v37, %v4966_v34  ;;  %v7462_v33 = vadd.f32 %v4225_v45, %v4065_v0  ;;  %v4370_v45 = vmul.f32 %v7426_v9, %v7426_v9  ;;  %v4097_v9 = vadd.f32 %v7366_v56, %v7389_v7 }
 0x33e   : > { %v4969_v32 = vpop.f32.mrf.mxu0  ;;  %v4314_v56 = vadd.f32 %v4313_v50, %v4312_v53 }
 0x33f   : > { %v7452_v62 = vpop.f32.mrf.mxu1  ;;  %v4068_v5 = vadd.f32 %v4968_v36, %v7389_v7  ;;  %v4413_v61 = vsel %vm3508_vm14, %v4370_v45, 0.0  ;;  %v4124_v36 = vadd.f32 %v7384_v24, %v7389_v7  ;;  %v4116_v24 = vadd.f32 %v7378_v54, %v7389_v7 }
 0x340   : > { %v4970_v42 = vpop.f32.mrf.mxu0  ;;  %v4414_v35 = vadd.f32 %v4413_v61, %v4412_v49 }
 0x341   : > { %v7455_v41 = vpop.f32.mrf.mxu1  ;;  %v4971_v3 = vadd.f32 %v4970_v42, %v4969_v32  ;;  %v7464_v51 = vadd.f32 %v4228_v23, %v4068_v5  ;;  %v4315_v5 = vsel %vm3508_vm14, %v7439_v29, 0.0  ;;  %v4417_v42 = vsel %vm3508_vm14, %v4372_v18, 0.0 }
 0x342   : > { %v4972_v6 = vpop.f32.mrf.mxu0  ;;  %v4416_v32 = vadd.f32 %v4415_v2, %v4414_v35 }
 0x343   : > { %v5059_v43 = vpop.f32.mrf.mxu1  ;;  %v4468_v39 = vpack.c.bf16 %v7464_v51, %v7462_v33  ;;  %v4073_v38 = vadd.f32 %v4971_v3, %v7389_v7  ;;  %v4373_v3 = vmul.f32 %v7441_v60, %v7441_v60 }
 0x344   : > { %v4973_v57 = vpop.f32.mrf.mxu0  ;;  %v7484_v63 = vadd.f32 %v5059_v43, %v4105_v11  ;;  %v4316_v43 = vadd.f32 %v4315_v5, %v4314_v56 }
 0x345   : > { %v4257_v58 = vpop.f32.mrf.mxu1  ;;  %v4974_v13 = vadd.f32 %v4973_v57, %v4972_v6  ;;  %4492 = vxpose.xlu1.c.b16.start [1/8] (narrow) %v4468_v39, 32  ;;  %v4234_v34 = vadd.f32 %v7428_v21, %v4073_v38  ;;  %v4317_v39 = vsel %vm3508_vm14, %v7441_v60, 0.0  ;;  %v4419_v45 = vsel %vm3508_vm14, %v4373_v3, 0.0 }
 0x346   : > { %v7501_v25 = vadd.f32 %v4257_v58, %v4097_v9  ;;  %v4418_v58 = vadd.f32 %v4417_v42, %v4416_v32  ;;  %v4374_v57 = vmul.f32 %v7462_v33, %v7462_v33  ;;  %v4319_v38 = vsel %vm3508_vm14, %v7462_v33, 0.0 }
 0x347   : > { %v5060_v10 = vpop.f32.mrf.mxu1  ;;  %v4076_v8 = vadd.f32 %v4974_v13, %v7389_v7  ;;  %v4375_v60 = vmul.f32 %v7464_v51, %v7464_v51  ;;  %v4376_v9 = vmul.f32 %v4234_v34, %v4234_v34 }
 0x348   : > { %v7478_v17 = vadd.f32 %v5060_v10, %v4108_v46  ;;  %v4318_v46 = vadd.f32 %v4317_v39, %v4316_v43  ;;  %v4420_v49 = vadd.f32 %v4419_v45, %v4418_v58  ;;  %v4421_v40 = vsel %vm3508_vm14, %v4374_v57, 0.0 }
 0x349   : > { %v4260_v23 = vpop.f32.mrf.mxu1  ;;  %v4237_v22 = vadd.f32 %v7436_v19, %v4076_v8  ;;  %v4121_v19 = vadd.f32 %v7382_v48, %v7389_v7  ;;  %v4113_v48 = vadd.f32 %v7374_v20, %v7389_v7  ;;  %v4423_v61 = vsel %vm3508_vm14, %v4375_v60, 0.0 }
 0x34a   : > { %v4473_v55 = vpack.c.bf16 %v7478_v17, %v7484_v63  ;;  %v7498_v27 = vadd.f32 %v4260_v23, %v4100_v1  ;;  %v4320_v15 = vadd.f32 %v4319_v38, %v4318_v46  ;;  %v4321_v23 = vsel %vm3508_vm14, %v7464_v51, 0.0 }
 0x34b   : > { %v5063_v28 = vpop.f32.mrf.mxu1  ;;  %v4469_v52 = vpack.c.bf16 %v4237_v22, %v4234_v34  ;;  %v4422_v1 = vadd.f32 %v4421_v40, %v4420_v49  ;;  %v4377_v2 = vmul.f32 %v4237_v22, %v4237_v22  ;;  %v4425_v51 = vsel %vm3508_vm14, %v4376_v9, 0.0 }
 0x34c   : > { %v4472_v21 = vpack.c.bf16 %v7498_v27, %v7501_v25  ;;  %v7515_v31 = vadd.f32 %v5063_v28, %v4121_v19  ;;  %v4322_v33 = vadd.f32 %v4321_v23, %v4320_v15  ;;  %v4383_v40 = vmul.f32 %v7498_v27, %v7498_v27 }
 0x34d   : > { %v4273_v37 = vpop.f32.mrf.mxu1  ;;  %v4975_v44 = vpop.f32.mrf.mxu0  ;;  %4493 = vxpose.xlu1.c.b16.cont [2/8] (narrow) %v4469_v52, 32  ;;  %v4424_v28 = vadd.f32 %v4423_v61, %v4422_v1  ;;  %v4427_v32 = vsel %vm3508_vm14, %v4377_v2, 0.0  ;;  %v4337_v1 = vsel %vm3508_vm14, %v7498_v27, 0.0  ;;  %v4385_v9 = vmul.f32 %v7478_v17, %v7478_v17 }
 0x34e   : > { %v7528_v54 = vadd.f32 %v4273_v37, %v4113_v48  ;;  %v4323_v37 = vsel %vm3508_vm14, %v4234_v34, 0.0 }
 0x34f   : > { %v5064_v16 = vpop.f32.mrf.mxu1  ;;  %v4976_v30 = vpop.f32.mrf.mxu0  ;;  %v4324_v18 = vadd.f32 %v4323_v37, %v4322_v33  ;;  %v4339_v33 = vsel %vm3508_vm14, %v7484_v63, 0.0 }
 0x350   : > { %v7511_v0 = vadd.f32 %v5064_v16, %v4124_v36  ;;  %v4977_v12 = vadd.f32 %v4976_v30, %v4975_v44  ;;  %v4426_v36 = vadd.f32 %v4425_v51, %v4424_v28  ;;  %v4439_v28 = vsel %vm3508_vm14, %v4383_v40, 0.0 }
 0x351   : > { %v4276_v4 = vpop.f32.mrf.mxu1  ;;  %v4978_v14 = vpop.f32.mrf.mxu0 }
 0x352   : > { %v4475_v29 = vpack.c.bf16 %v7511_v0, %v7515_v31  ;;  %v7526_v6 = vadd.f32 %v4276_v4, %v4116_v24  ;;  %v4081_v11 = vadd.f32 %v4977_v12, %v7389_v7  ;;  %v4428_v48 = vadd.f32 %v4427_v32, %v4426_v36 }
 0x353   : > { %v4979_v47 = vpop.f32.mrf.mxu0  ;;  %v4388_v36 = vmul.f32 %v7515_v31, %v7515_v31 }
 0x354   : > { %v4474_v20 = vpack.c.bf16 %v7526_v6, %v7528_v54  ;;  %v4980_v10 = vadd.f32 %v4979_v47, %v4978_v14  ;;  %v4242_v53 = vadd.f32 %v7450_v26, %v4081_v11  ;;  %v4325_v26 = vsel %vm3508_vm14, %v4237_v22, 0.0 }
 0x355   : > { %v4326_v24 = vadd.f32 %v4325_v26, %v4324_v18  ;;  %v4341_v18 = vsel %vm3508_vm14, %v7478_v17, 0.0  ;;  %v4387_v27 = vmul.f32 %v7526_v6, %v7526_v6 }
 0x356   : > { %v4084_v13 = vadd.f32 %v4980_v10, %v7389_v7  ;;  %v4378_v52 = vmul.f32 %v4242_v53, %v4242_v53  ;;  %v4327_v16 = vsel %vm3508_vm14, %v4242_v53, 0.0 }
 0x357   : > { %v4328_v30 = vadd.f32 %v4327_v16, %v4326_v24  ;;  %v4345_v16 = vsel %vm3508_vm14, %v7526_v6, 0.0  ;;  %v4389_v24 = vmul.f32 %v7511_v0, %v7511_v0  ;;  %v4447_v17 = vsel %vm3508_vm14, %v4387_v27, 0.0 }
 0x358   : > { %v4245_v8 = vadd.f32 %v7455_v41, %v4084_v13  ;;  %v4429_v34 = vsel %vm3508_vm14, %v4378_v52, 0.0  ;;  %v4443_v52 = vsel %vm3508_vm14, %v4385_v9, 0.0 }
 0x359   : > { %v4430_v39 = vadd.f32 %v4429_v34, %v4428_v48  ;;  %v4349_v34 = vsel %vm3508_vm14, %v7511_v0, 0.0 }
 0x35a   : > { %v4470_v50 = vpack.c.bf16 %v4245_v8, %v4242_v53  ;;  %v4379_v44 = vmul.f32 %v4245_v8, %v4245_v8  ;;  %v4329_v42 = vsel %vm3508_vm14, %v4245_v8, 0.0  ;;  %v4384_v53 = vmul.f32 %v7484_v63, %v7484_v63 }
 0x35b   : > { %v4330_v46 = vadd.f32 %v4329_v42, %v4328_v30 }
 0x35c   : > { %4494 = vxpose.xlu1.c.b16.cont [3/8] (narrow) %v4470_v50, 32  ;;  %v4431_v3 = vsel %vm3508_vm14, %v4379_v44, 0.0  ;;  %v4441_v37 = vsel %vm3508_vm14, %v4384_v53, 0.0 }
 0x35d   : > { %v4432_v57 = vadd.f32 %v4431_v3, %v4430_v39 }
 0x35e   : > { %v4981_v35 = vpop.f32.mrf.mxu0 }
 0x360   : > { %v4982_v56 = vpop.f32.mrf.mxu0 }
 0x361   : > { %v4983_v41 = vadd.f32 %v4982_v56, %v4981_v35  ;;  %v4386_v56 = vmul.f32 %v7528_v54, %v7528_v54 }
 0x362   : > { %v4984_v19 = vpop.f32.mrf.mxu0 }
 0x363   : > { %v4089_v5 = vadd.f32 %v4983_v41, %v7389_v7  ;;  %v4343_v41 = vsel %vm3508_vm14, %v7528_v54, 0.0 }
 0x364   : > { %v4985_v4 = vpop.f32.mrf.mxu0 }
 0x365   : > { %v4250_v43 = vadd.f32 %v7447_v59, %v4089_v5  ;;  %v4986_v22 = vadd.f32 %v4985_v4, %v4984_v19  ;;  %v4382_v59 = vmul.f32 %v7501_v25, %v7501_v25  ;;  %v4445_v19 = vsel %vm3508_vm14, %v4386_v56, 0.0 }
 0x366   : > { %v4347_v5 = vsel %vm3508_vm14, %v7515_v31, 0.0  ;;  %v4449_v4 = vsel %vm3508_vm14, %v4388_v36, 0.0 }
 0x367   : > { %v4331_v12 = vsel %vm3508_vm14, %v4250_v43, 0.0  ;;  %v4380_v58 = vmul.f32 %v4250_v43, %v4250_v43  ;;  %v4092_v14 = vadd.f32 %v4986_v22, %v7389_v7  ;;  %v4335_v7 = vsel %vm3508_vm14, %v7501_v25, 0.0 }
 0x368   : > { %v4332_v11 = vadd.f32 %v4331_v12, %v4330_v46  ;;  %v4437_v8 = vsel %vm3508_vm14, %v4382_v59, 0.0  ;;  %v4451_v22 = vsel %vm3508_vm14, %v4389_v24, 0.0 }
 0x369   : > { %v4433_v47 = vsel %vm3508_vm14, %v4380_v58, 0.0  ;;  %v4253_v45 = vadd.f32 %v7452_v62, %v4092_v14 }
 0x36a   : > { %v4434_v60 = vadd.f32 %v4433_v47, %v4432_v57 }
 0x36b   : > { %v4333_v10 = vsel %vm3508_vm14, %v4253_v45, 0.0  ;;  %v4381_v49 = vmul.f32 %v4253_v45, %v4253_v45  ;;  %v4471_v38 = vpack.c.bf16 %v4253_v45, %v4250_v43 }
 0x36c   : > { %v4334_v13 = vadd.f32 %v4333_v10, %v4332_v11 }
 0x36d   : > { %v4435_v15 = vsel %vm3508_vm14, %v4381_v49, 0.0  ;;  %4495 = vxpose.xlu1.c.b16.cont [4/8] (narrow) %v4471_v38, 32 }
 0x36e   : > { %v4336_v62 = vadd.f32 %v4335_v7, %v4334_v13  ;;  %v4436_v23 = vadd.f32 %v4435_v15, %v4434_v60 }
 0x370   : > { %v4338_v61 = vadd.f32 %v4337_v1, %v4336_v62  ;;  %v4438_v50 = vadd.f32 %v4437_v8, %v4436_v23 }
 0x371   : > { %4496 = vxpose.xlu1.c.b16.cont [5/8] (narrow) %v4472_v21, 32 }
 0x372   : > { %v4340_v35 = vadd.f32 %v4339_v33, %v4338_v61  ;;  %v4440_v2 = vadd.f32 %v4439_v28, %v4438_v50 }
 0x374   : > { %v4442_v51 = vadd.f32 %v4441_v37, %v4440_v2  ;;  %v4342_v26 = vadd.f32 %v4341_v18, %v4340_v35 }
 0x375   : > { %4497 = vxpose.xlu1.c.b16.cont [6/8] (narrow) %v4473_v55, 32 }
 0x376   : > { %v4344_v25 = vadd.f32 %v4343_v41, %v4342_v26  ;;  %v4444_v21 = vadd.f32 %v4443_v52, %v4442_v51 }
 0x378   : > { %v4446_v32 = vadd.f32 %v4445_v19, %v4444_v21  ;;  %v4346_v44 = vadd.f32 %v4345_v16, %v4344_v25 }
 0x379   : > { %4498 = vxpose.xlu1.c.b16.cont [7/8] (narrow) %v4474_v20, 32 }
 0x37a   : > { %v4348_v63 = vadd.f32 %v4347_v5, %v4346_v44  ;;  %v4448_v55 = vadd.f32 %v4447_v17, %v4446_v32 }
 0x37c   : > { %v4350_v42 = vadd.f32 %v4349_v34, %v4348_v63  ;;  %v4450_v43 = vadd.f32 %v4449_v4, %v4448_v55 }
 0x37d   : > { %4499 = vxpose.xlu1.c.b16.end [8/8] (narrow) %v4475_v29, 32 }
 0x37e   : > { %v4351_v30 = vrot.slane %v4350_v42, 4  ;;  %v4452_v48 = vadd.f32 %v4451_v22, %v4450_v43 }
 0x380   : > { %v4352_v6 = vadd.f32 %v4351_v30, %v4350_v42  ;;  %v4453_v54 = vrot.slane %v4452_v48, 4  ;;  %v4484_v31 = vpop.trf.xlu0 }
 0x382   : > { %v4353_v20 = vrot.slane %v4352_v6, 2  ;;  %v4454_v3 = vadd.f32 %v4453_v54, %v4452_v48 }
 0x384   : > { %v4354_v12 = vadd.f32 %v4353_v20, %v4352_v6  ;;  %v4455_v58 = vrot.slane %v4454_v3, 2  ;;  %v4485_v11 = vpop.trf.xlu0 }
 0x386   : > { %v4355_v14 = vrot.slane %v4354_v12, 1  ;;  %v4456_v39 = vadd.f32 %v4455_v58, %v4454_v3 }
 0x388   : > { %v4356_v46 = vadd.f32 %v4355_v14, %v4354_v12  ;;  %v4457_v47 = vrot.slane %v4456_v39, 1 }
 0x38a   : > { %4357 = vst.msk [vmem:[%s262_s28] sm:$0x1] %vm431_vm1, %v4356_v46  ;;  %v4458_v0 = vadd.f32 %v4457_v47, %v4456_v39 }
 0x38c   : > { %4459 = vst.msk [vmem:[%s262_s28 + $0x1] sm:$0x1] %vm431_vm1, %v4458_v0 }
 0x3c3   : > { %v4500_v29 = vpop.trf.xlu1 }
 0x3c4   : > { %v4891_v45 = vcombine.low %v4484_v31, %v4500_v29  ;;  %v4892_v57 = vcombine.high %v4484_v31, %v4500_v29 }
 0x3c6   : > { %4528 = vst [vmem:[%s258_s7] sm:$0xff] %v4891_v45  ;;  %4529 = vst [vmem:[%s258_s7 + $0x8] sm:$0xff] %v4892_v57 }
 0x3c7   : > { %v4501_v59 = vpop.trf.xlu1 }
 0x3c8   : > { %v4893_v10 = vcombine.low %v4485_v11, %v4501_v59  ;;  %v4894_v49 = vcombine.high %v4485_v11, %v4501_v59 }
 0x3ca   : > { %4530 = vst [vmem:[%s258_s7 + $0x10] sm:$0xff] %v4893_v10  ;;  %4531 = vst [vmem:[%s258_s7 + $0x18] sm:$0xff] %v4894_v49 }
 0x3cb PF: > { %s17_s21 = sadd.s32 1, %s5223_s21  }
 0x3cc   : > { %p14_p4 = scmp.ge.s32.totalorder %s17_s21, 4  }
 0x3ce   :  { %16 = sbr.rel (!%p14_p4) target bundleno = 1 (0x1), region = 84 }

</bundles_post_ra>
